<compile_context>
chip_gen: v7x
topology: tpu7x:2x2x1
jax: 0.10.0
libtpu: 0.0.40
codegen_flags: <defaults>
</compile_context>

<pallas_src>
import functools
import math

import jax
import jax.numpy as jnp
from jax.experimental import pallas as pl
from jax.experimental.pallas import tpu as pltpu

DTYPE = jnp.float32        # activations / norms / biases (reference default is fp16)
MM_DTYPE = jnp.bfloat16    # MXU operand dtype (native on v5e/v6e/v7x)
NEG_INF = -1e9             # additive mask for padded key columns

# everything is tiny, so the single fused pallas_call uses full-array VMEM blocks
VMEM = pl.BlockSpec(memory_space=pltpu.MemorySpace.VMEM)


# ----------------------------- small config -----------------------------
class SmallConfig:
    in_chan = 4
    image_size = 16
    patch_size = 4
    num_query_token = 8
    word_embed = 32
    visual_encoder_embed_dim = 32
    visual_encoder_attn_heads = 4
    visual_encoder_attn_hidden_dim = (16 // 4) ** 2 + 1  # 16 patches + cls = 17
    visual_encoder_fc_hidden_dim = 64
    visual_encoder_num_blocks = 2
    bert_hidden_layers = 2
    bert_num_attn_heads = 4
    bert_attn_head_size = 8  # word_embed // bert_num_attn_heads
    bert_interm_query = 64
    llama_proj_size = 48


def _round_up(n, m):
    return (n + m - 1) // m * m


# ----------------------------- in-kernel helpers -----------------------------
def _mm(x, w):
    """bf16 MXU matmul with f32 accumulation; w is pre-transposed (K, N)."""
    return jnp.dot(x.astype(MM_DTYPE), w.astype(MM_DTYPE),
                   preferred_element_type=jnp.float32)


def _layernorm(x, g, b, eps):
    mean = jnp.mean(x, axis=-1, keepdims=True)
    var = jnp.mean(jnp.square(x - mean), axis=-1, keepdims=True)
    return (x - mean) * jax.lax.rsqrt(var + eps) * g + b


def _gelu(x):
    # tanh-approx GELU: routes through the EUP slot instead of a long erf VPU polynomial
    return jax.nn.gelu(x, approximate=True)


def _softmax_rows(s):
    s = s - jnp.max(s, axis=-1, keepdims=True)
    p = jnp.exp(s)
    return p * pl.reciprocal(jnp.sum(p, axis=-1, keepdims=True), approx=True)


def _mha(q_in, kv_in, wq, qb, wk, kb, wv, vb, proj_w, proj_b,
         num_heads, scale, key_bias):
    """Multi-head attention + output projection.

    wq/wk/wv are (heads, K, head_dim) refs, qb/kb/vb are (heads, 1, head_dim) refs
    (or None): per-head weights are read with a free leading-dim index, so no
    unaligned lane/sublane slicing of activations or weights.  The per-head
    contexts are concatenated back into one lane-dense (Tq, E) tile and pushed
    through a single output-projection matmul."""
    ctxs = []
    for h in range(num_heads):
        qh = _mm(q_in, wq[h]) + qb[h]
        kh = _mm(kv_in, wk[h])
        if kb is not None:
            kh = kh + kb[h]
        vh = _mm(kv_in, wv[h])
        if vb is not None:
            vh = vh + vb[h]
        s = jax.lax.dot_general(qh.astype(MM_DTYPE), kh.astype(MM_DTYPE),
                                (((1,), (1,)), ((), ())),
                                preferred_element_type=jnp.float32) * scale
        if key_bias is not None:
            s = s + key_bias               # -1e9 on padded key columns
        p = _softmax_rows(s)
        ctxs.append(jnp.dot(p.astype(MM_DTYPE), vh.astype(MM_DTYPE),
                            preferred_element_type=jnp.float32))
    ctx = jnp.concatenate(ctxs, axis=-1)   # (Tq, heads*head_dim), lane offset 0
    return _mm(ctx, proj_w[...]) + proj_b[...]


# ----------------------------- the fused whole-model kernel -----------------------------
def _minigpt_kernel(*refs, n_vis_blocks, vis_heads, bert_heads, cross_flags):
    out_ref = refs[-1]
    it = iter(refs[:-1])
    nxt = lambda: next(it)  # noqa: E731

    patches_ref = nxt()     # (T_img_pad, 3*ps*ps)  row 0 = 0 (cls slot), rows >= 17 = pad
    pe_wT = nxt()           # (3*ps*ps, E)          CLIP normalization folded in
    pe_add = nxt()          # (T_img_pad, E)        row0 = cls+pos0, rows 1..16 = bias+pos
    key_bias_ref = nxt()    # (1, T_img_pad)        0 on valid tokens, -1e9 on padding
    query_emb_ref = nxt()   # (nq, we)              layernorm(query_tokens), precomputed

    img_key_bias = key_bias_ref[...]

    # ---- patch embed (stride=patch conv as matmul) + cls token + pos embed ----
    x = _mm(patches_ref[...], pe_wT[...]) + pe_add[...]          # (T_img_pad, E) f32

    # ---- visual encoder blocks ----
    for _ in range(n_vis_blocks):
        n1g, n1b = nxt(), nxt()
        wq, qb, wk, wv, vb = nxt(), nxt(), nxt(), nxt(), nxt()
        pw, pb = nxt(), nxt()
        n2g, n2b = nxt(), nxt()
        f1w, f1b, f2w, f2b = nxt(), nxt(), nxt(), nxt()

        h = _layernorm(x, n1g[...], n1b[...], 1e-5)
        attn = _mha(h, h, wq, qb, wk, None, wv, vb, pw, pb,
                    vis_heads, float(wq.shape[2]) ** -0.5, img_key_bias)
        x = x + attn                                             # residual 1
        h2 = _layernorm(x, n2g[...], n2b[...], 1e-5)
        m = _gelu(_mm(h2, f1w[...]) + f1b[...])
        m = _mm(m, f2w[...]) + f2b[...]
        x = x + m                                                # residual 2

    lng, lnb = nxt(), nxt()
    img = _layernorm(x, lng[...], lnb[...], 1e-5)                # ln_vision -> image embeds

    # ---- Q-Former (BERT layers) ----
    def attn_sublayer(hidden, states, key_bias):
        wq, qb, wk, kb, wv, vb, dw, db, ng, nb = [nxt() for _ in range(10)]
        ctx = _mha(hidden, states, wq, qb, wk, kb, wv, vb, dw, db,
                   bert_heads, 1.0 / math.sqrt(wq.shape[2]), key_bias)
        return _layernorm(ctx + hidden, ng[...], nb[...], 1e-12)

    emb = query_emb_ref[...]
    for has_cross in cross_flags:
        # self-attn mask is (1 - ones) * -10000 == 0 in the reference -> dropped
        attn_out = attn_sublayer(emb, emb, None)
        if has_cross:
            # cross-attn mask is (1 - ones) == 0; only the pad columns need masking
            attn_out = attn_sublayer(attn_out, img, img_key_bias)
        iw, ib, ow, ob, g2, b2 = [nxt() for _ in range(6)]
        mid = _gelu(_mm(attn_out, iw[...]) + ib[...])
        mid = _mm(mid, ow[...]) + ob[...]
        emb = _layernorm(mid + attn_out, g2[...], b2[...], 1e-12)

    # ---- LLaMA projection ----
    pw, pb = nxt(), nxt()
    out_ref[...] = (_mm(emb, pw[...]) + pb[...]).astype(out_ref.dtype)

    assert not list(it), "kernel argument order mismatch"


# ----------------------------- forward wrapper (one pallas_call) -----------------------------
def minigpt_forward(params, image, cfg):
    ps = cfg.patch_size
    n_img = cfg.visual_encoder_attn_hidden_dim
    n_img_pad = params["pe_add"].shape[0]
    _, _, H, W = image.shape
    oh, ow = H // ps, W // ps

    # Glue: RGBA->RGB slice + im2col of the stride=patch conv.  The CLIP
    # normalization is folded into pe_wT / pe_add; everything else runs in-kernel.
    x = image[0, :3].astype(jnp.float32)
    patches = (x.reshape(3, oh, ps, ow, ps)
                .transpose(1, 3, 0, 2, 4)
                .reshape(oh * ow, 3 * ps * ps))
    patches_pad = jnp.zeros((n_img_pad, patches.shape[1]), jnp.float32)
    patches_pad = patches_pad.at[1:n_img].set(patches)           # row 0 = cls slot

    flat_args = [patches_pad, params["pe_wT"], params["pe_add"],
                 params["img_key_bias"], params["query_embedded"]]
    for blk in params["vis_blocks"]:
        flat_args += blk
    flat_args += params["ln_vision"]
    for layer in params["bert_layers"]:
        flat_args += layer
    flat_args += params["llama_proj"]

    nq = params["query_embedded"].shape[0]
    proj_size = params["llama_proj"][0].shape[1]

    kernel = functools.partial(
        _minigpt_kernel,
        n_vis_blocks=len(params["vis_blocks"]),
        vis_heads=cfg.visual_encoder_attn_heads,
        bert_heads=cfg.bert_num_attn_heads,
        cross_flags=params["cross_flags"],
    )
    out = pl.pallas_call(
        kernel,
        out_shape=jax.ShapeDtypeStruct((nq, proj_size), DTYPE),
        in_specs=[VMEM] * len(flat_args),
        out_specs=VMEM,
    )(*flat_args)
    return out[None]                                             # (1, nq, llama_proj_size)


# ----------------------------- parameter init (reference layout) -----------------------------
def init_params(cfg, key):
    keys = iter(jax.random.split(key, 512))

    def w(shape, scale=0.02):
        return (scale * jax.random.normal(next(keys), shape)).astype(DTYPE)

    def b(shape):
        return (0.01 * jax.random.normal(next(keys), shape)).astype(DTYPE)

    E = cfg.visual_encoder_embed_dim
    we = cfg.word_embed
    ps = cfg.patch_size
    N = cfg.visual_encoder_attn_hidden_dim

    def visual_block_params():
        return dict(
            norm1_weight=1.0 + w((E,)), norm1_bias=b((E,)),
            attn=dict(
                q_bias=b((E,)), v_bias=b((E,)),
                qkv_weight=w((3 * E, E)),
                proj_weight=w((E, E)), proj_bias=b((E,)),
            ),
            norm2_weight=1.0 + w((E,)), norm2_bias=b((E,)),
            mlp=dict(
                fc1_weight=w((cfg.visual_encoder_fc_hidden_dim, E)),
                fc1_bias=b((cfg.visual_encoder_fc_hidden_dim,)),
                fc2_weight=w((E, cfg.visual_encoder_fc_hidden_dim)),
                fc2_bias=b((E,)),
            ),
        )

    def bert_attn_params(hidden_dim):
        return dict(
            query_weight=w((we, we)), query_bias=b((we,)),
            key_weight=w((we, hidden_dim)), key_bias=b((we,)),
            value_weight=w((we, hidden_dim)), value_bias=b((we,)),
            dense_weight=w((we, we)), dense_bias=b((we,)),
            norm_weight=1.0 + w((we,)), norm_bias=b((we,)),
        )

    def bert_layer_params(use_cross):
        d = dict(attention=bert_attn_params(we))
        if use_cross:
            d["cross_attention"] = bert_attn_params(E)
        d.update(
            interm_query_weight=w((cfg.bert_interm_query, we)),
            interm_query_bias=b((cfg.bert_interm_query,)),
            output_query_weight=w((we, cfg.bert_interm_query)),
            output_query_bias=b((we,)),
            norm_weight=1.0 + w((we,)), norm_bias=b((we,)),
        )
        return d

    return dict(
        visual_encoder=dict(
            patch_embed=dict(
                cls_token=w((1, 1, E)),
                pos_embed=w((1, N, E)),
                weight=w((E, 3, ps, ps)),
                bias=b((E,)),
            ),
            blocks=[visual_block_params() for _ in range(cfg.visual_encoder_num_blocks)],
            ln_vision_weight=1.0 + w((E,)), ln_vision_bias=b((E,)),
        ),
        q_former=dict(
            query_tokens=w((1, cfg.num_query_token, we)),
            embedding=dict(norm_weight=1.0 + w((we,)), norm_bias=b((we,))),
            bert_layers=[bert_layer_params(i % 2 == 0) for i in range(cfg.bert_hidden_layers)],
        ),
        llama_proj=dict(
            weight=w((cfg.llama_proj_size, we)),
            bias=b((cfg.llama_proj_size,)),
        ),
    )


# ----------------------------- one-time parameter prep (outside the trace) -----------------------------
def prepare_params(cfg, raw):
    """Pre-transpose matmul weights to (K, N) bf16, split Q/K/V weights per head into
    (heads, K, head_dim) (free leading-dim indexing in the kernel), reshape biases/LN
    params to (1, N) f32 rows, fold the CLIP normalization + cls/pos into the patch
    embed, pad the image-token axis 17 -> 24 with a -1e9 key-bias row, and precompute
    the parameter-only Q-Former query-token layernorm."""
    f32 = jnp.float32
    E = cfg.visual_encoder_embed_dim
    ps = cfg.patch_size
    Hv = cfg.visual_encoder_attn_heads
    Dv = E // Hv
    Hb = cfg.bert_num_attn_heads
    Db = cfg.bert_attn_head_size
    n_img = cfg.visual_encoder_attn_hidden_dim
    n_img_pad = _round_up(n_img, 8)

    def w_t(w):                          # (N, K) -> (K, N) bf16
        return jnp.asarray(w, f32).T.astype(MM_DTYPE)

    def row(v):                          # (N,) -> (1, N) f32
        return jnp.asarray(v, f32).reshape(1, -1)

    def heads_w(w, H, D):                # (N, K) -> (H, K, D) bf16
        wt = jnp.asarray(w, f32).T
        return wt.reshape(wt.shape[0], H, D).transpose(1, 0, 2).astype(MM_DTYPE)

    def heads_b(v, H, D):                # (N,) -> (H, 1, D) f32
        return jnp.asarray(v, f32).reshape(H, 1, D)

    rve = raw["visual_encoder"]
    pe = rve["patch_embed"]

    # TODO(synk): TransformImage is not defined in the reference; approximated as
    # RGBA->RGB slice + /255 + CLIP mean/std normalization, folded into the conv weights.
    clip_mean = jnp.array([0.48145466, 0.4578275, 0.40821073], f32)
    clip_std = jnp.array([0.26862954, 0.26130258, 0.27577711], f32)
    a_c = 1.0 / (255.0 * clip_std)
    b_c = -clip_mean / clip_std
    w_conv = jnp.asarray(pe["weight"], f32)                       # (E, 3, ps, ps)
    pe_wT = (w_conv * a_c[None, :, None, None]).reshape(E, -1).T.astype(MM_DTYPE)
    pe_bias = jnp.asarray(pe["bias"], f32) + jnp.einsum("ecij,c->e", w_conv, b_c)

    cls = jnp.asarray(pe["cls_token"], f32)[0, 0]                 # (E,)
    pos = jnp.asarray(pe["pos_embed"], f32)[0]                    # (n_img, E)
    pe_add = jnp.zeros((n_img_pad, E), f32)
    pe_add = pe_add.at[0].set(cls + pos[0])
    pe_add = pe_add.at[1:n_img].set(pe_bias[None, :] + pos[1:])

    img_key_bias = jnp.where(jnp.arange(n_img_pad) < n_img, 0.0, NEG_INF)
    img_key_bias = img_key_bias.astype(f32).reshape(1, n_img_pad)

    vis_blocks = []
    for blk in rve["blocks"]:
        a = blk["attn"]
        qkv = jnp.asarray(a["qkv_weight"], f32)                   # (3E, E): [q; k; v] rows
        vis_blocks.append([
            row(blk["norm1_weight"]), row(blk["norm1_bias"]),
            heads_w(qkv[:E], Hv, Dv), heads_b(a["q_bias"], Hv, Dv),
            heads_w(qkv[E:2 * E], Hv, Dv),                        # k has no bias (zeros)
            heads_w(qkv[2 * E:], Hv, Dv), heads_b(a["v_bias"], Hv, Dv),
            w_t(a["proj_weight"]), row(a["proj_bias"]),
            row(blk["norm2_weight"]), row(blk["norm2_bias"]),
            w_t(blk["mlp"]["fc1_weight"]), row(blk["mlp"]["fc1_bias"]),
            w_t(blk["mlp"]["fc2_weight"]), row(blk["mlp"]["fc2_bias"]),
        ])

    rqf = raw["q_former"]
    qt = jnp.asarray(rqf["query_tokens"], f32)[0]                 # (nq, we)
    g = jnp.asarray(rqf["embedding"]["norm_weight"], f32)
    bb = jnp.asarray(rqf["embedding"]["norm_bias"], f32)
    mean = jnp.mean(qt, axis=-1, keepdims=True)
    var = jnp.mean(jnp.square(qt - mean), axis=-1, keepdims=True)
    query_embedded = (qt - mean) * jax.lax.rsqrt(var + 1e-12) * g + bb

    def attn_pack(a):
        return [
            heads_w(a["query_weight"], Hb, Db), heads_b(a["query_bias"], Hb, Db),
            heads_w(a["key_weight"], Hb, Db), heads_b(a["key_bias"], Hb, Db),
            heads_w(a["value_weight"], Hb, Db), heads_b(a["value_bias"], Hb, Db),
            w_t(a["dense_weight"]), row(a["dense_bias"]),
            row(a["norm_weight"]), row(a["norm_bias"]),
        ]

    bert_layers, cross_flags = [], []
    for lp in rqf["bert_layers"]:
        args = attn_pack(lp["attention"])
        has_cross = "cross_attention" in lp
        if has_cross:
            args += attn_pack(lp["cross_attention"])
        args += [
            w_t(lp["interm_query_weight"]), row(lp["interm_query_bias"]),
            w_t(lp["output_query_weight"]), row(lp["output_query_bias"]),
            row(lp["norm_weight"]), row(lp["norm_bias"]),
        ]
        bert_layers.append(args)
        cross_flags.append(has_cross)

    return dict(
        pe_wT=pe_wT, pe_add=pe_add, img_key_bias=img_key_bias,
        query_embedded=query_embedded,
        vis_blocks=vis_blocks,
        ln_vision=[row(rve["ln_vision_weight"]), row(rve["ln_vision_bias"])],
        bert_layers=bert_layers, cross_flags=tuple(cross_flags),
        llama_proj=[w_t(raw["llama_proj"]["weight"]), row(raw["llama_proj"]["bias"])],
    )


# ----------------------------- pure-JAX f32 reference (for validation) -----------------------------
def _reference_forward(cfg, raw, image):
    f32 = jnp.float32
    mean = jnp.array([0.48145466, 0.4578275, 0.40821073], f32).reshape(1, 3, 1, 1)
    std = jnp.array([0.26862954, 0.26130258, 0.27577711], f32).reshape(1, 3, 1, 1)
    x = (image[:, :3].astype(f32) / 255.0 - mean) / std

    def ln(v, g, b, eps):
        m = v.mean(-1, keepdims=True)
        var = ((v - m) ** 2).mean(-1, keepdims=True)
        return (v - m) / jnp.sqrt(var + eps) * jnp.asarray(g, f32) + jnp.asarray(b, f32)

    def mha(q_in, kv_in, wq, qb, wk, kb, wv, vb, H, D, scale):
        q = q_in @ jnp.asarray(wq, f32).T + jnp.asarray(qb, f32)
        k = kv_in @ jnp.asarray(wk, f32).T + (jnp.asarray(kb, f32) if kb is not None else 0.0)
        v = kv_in @ jnp.asarray(wv, f32).T + (jnp.asarray(vb, f32) if vb is not None else 0.0)
        tq, tk = q.shape[0], k.shape[0]
        q = q.reshape(tq, H, D).transpose(1, 0, 2)
        k = k.reshape(tk, H, D).transpose(1, 0, 2)
        v = v.reshape(tk, H, D).transpose(1, 0, 2)
        p = jax.nn.softmax(jnp.einsum("htd,hsd->hts", q, k) * scale, axis=-1)
        return jnp.einsum("hts,hsd->htd", p, v).transpose(1, 0, 2).reshape(tq, H * D)

    ve = raw["visual_encoder"]
    pe = ve["patch_embed"]
    ps = cfg.patch_size
    E = cfg.visual_encoder_embed_dim
    oh = ow = cfg.image_size // ps
    patches = (x[0].reshape(3, oh, ps, ow, ps).transpose(1, 3, 0, 2, 4)
               .reshape(oh * ow, 3 * ps * ps))
    emb = patches @ jnp.asarray(pe["weight"], f32).reshape(E, -1).T + jnp.asarray(pe["bias"], f32)
    h = jnp.concatenate([jnp.asarray(pe["cls_token"], f32)[0], emb], axis=0)
    h = h + jnp.asarray(pe["pos_embed"], f32)[0]

    Hv, Dv = cfg.visual_encoder_attn_heads, E // cfg.visual_encoder_attn_heads
    for blk in ve["blocks"]:
        a = blk["attn"]
        qkv = jnp.asarray(a["qkv_weight"], f32)
        hn = ln(h, blk["norm1_weight"], blk["norm1_bias"], 1e-5)
        ctx = mha(hn, hn, qkv[:E], a["q_bias"], qkv[E:2 * E], None,
                  qkv[2 * E:], a["v_bias"], Hv, Dv, Dv ** -0.5)
        h = h + (ctx @ jnp.asarray(a["proj_weight"], f32).T + jnp.asarray(a["proj_bias"], f32))
        hn = ln(h, blk["norm2_weight"], blk["norm2_bias"], 1e-5)
        m = jax.nn.gelu(hn @ jnp.asarray(blk["mlp"]["fc1_weight"], f32).T
                        + jnp.asarray(blk["mlp"]["fc1_bias"], f32), approximate=True)
        h = h + (m @ jnp.asarray(blk["mlp"]["fc2_weight"], f32).T
                 + jnp.asarray(blk["mlp"]["fc2_bias"], f32))
    img = ln(h, ve["ln_vision_weight"], ve["ln_vision_bias"], 1e-5)

    rqf = raw["q_former"]
    emb = ln(jnp.asarray(rqf["query_tokens"], f32)[0],
             rqf["embedding"]["norm_weight"], rqf["embedding"]["norm_bias"], 1e-12)
    Hb, Db = cfg.bert_num_attn_heads, cfg.bert_attn_head_size
    for lp in rqf["bert_layers"]:
        def bert_attn(a, hidden, states):
            ctx = mha(hidden, states, a["query_weight"], a["query_bias"],
                      a["key_weight"], a["key_bias"], a["value_weight"], a["value_bias"],
                      Hb, Db, 1.0 / math.sqrt(Db))
            ctx = ctx @ jnp.asarray(a["dense_weight"], f32).T + jnp.asarray(a["dense_bias"], f32)
            return ln(ctx + hidden, a["norm_weight"], a["norm_bias"], 1e-12)
        attn_out = bert_attn(lp["attention"], emb, emb)
        if "cross_attention" in lp:
            attn_out = bert_attn(lp["cross_attention"], attn_out, img)
        mid = jax.nn.gelu(attn_out @ jnp.asarray(lp["interm_query_weight"], f32).T
                          + jnp.asarray(lp["interm_query_bias"], f32), approximate=True)
        mid = mid @ jnp.asarray(lp["output_query_weight"], f32).T + jnp.asarray(lp["output_query_bias"], f32)
        emb = ln(mid + attn_out, lp["norm_weight"], lp["norm_bias"], 1e-12)

    out = emb @ jnp.asarray(raw["llama_proj"]["weight"], f32).T + jnp.asarray(raw["llama_proj"]["bias"], f32)
    return out[None]


# ----------------------------- main -----------------------------
if __name__ == "__main__":
    cfg = SmallConfig()
    k_img, k_par = jax.random.split(jax.random.PRNGKey(0))
    image = jax.random.uniform(
        k_img, (1, cfg.in_chan, cfg.image_size, cfg.image_size),
        DTYPE, minval=0.0, maxval=255.0,
    )
    raw_params = init_params(cfg, k_par)
    params = prepare_params(cfg, raw_params)

    fwd = jax.jit(functools.partial(minigpt_forward, params, cfg=cfg))
    out = fwd(image)
    jax.block_until_ready(out)

    assert out.shape == (1, cfg.num_query_token, cfg.llama_proj_size), out.shape
    assert bool(jnp.all(jnp.isfinite(out)))

    # numerical check vs. pure-JAX f32 reference (bf16 MXU + approx recip/gelu drift only)
    ref = _reference_forward(cfg, raw_params, image)
    max_err = float(jnp.max(jnp.abs(out - ref)))
    assert max_err < 5e-2, f"max abs error vs reference: {max_err}"

    print("KERNEL_OK")
</pallas_src>

<mosaic_0001>
module attributes {stable_mosaic.version = 11 : i64} {
  func.func @_minigpt_kernel(%arg0: memref<24x48xf32, #tpu.memory_space<vmem>>, %arg1: memref<48x32xbf16, #tpu.memory_space<vmem>>, %arg2: memref<24x32xf32, #tpu.memory_space<vmem>>, %arg3: memref<1x24xf32, #tpu.memory_space<vmem>>, %arg4: memref<8x32xf32, #tpu.memory_space<vmem>>, %arg5: memref<1x32xf32, #tpu.memory_space<vmem>>, %arg6: memref<1x32xf32, #tpu.memory_space<vmem>>, %arg7: memref<4x32x8xbf16, #tpu.memory_space<vmem>>, %arg8: memref<4x1x8xf32, #tpu.memory_space<vmem>>, %arg9: memref<4x32x8xbf16, #tpu.memory_space<vmem>>, %arg10: memref<4x32x8xbf16, #tpu.memory_space<vmem>>, %arg11: memref<4x1x8xf32, #tpu.memory_space<vmem>>, %arg12: memref<32x32xbf16, #tpu.memory_space<vmem>>, %arg13: memref<1x32xf32, #tpu.memory_space<vmem>>, %arg14: memref<1x32xf32, #tpu.memory_space<vmem>>, %arg15: memref<1x32xf32, #tpu.memory_space<vmem>>, %arg16: memref<32x64xbf16, #tpu.memory_space<vmem>>, %arg17: memref<1x64xf32, #tpu.memory_space<vmem>>, %arg18: memref<64x32xbf16, #tpu.memory_space<vmem>>, %arg19: memref<1x32xf32, #tpu.memory_space<vmem>>, %arg20: memref<1x32xf32, #tpu.memory_space<vmem>>, %arg21: memref<1x32xf32, #tpu.memory_space<vmem>>, %arg22: memref<4x32x8xbf16, #tpu.memory_space<vmem>>, %arg23: memref<4x1x8xf32, #tpu.memory_space<vmem>>, %arg24: memref<4x32x8xbf16, #tpu.memory_space<vmem>>, %arg25: memref<4x32x8xbf16, #tpu.memory_space<vmem>>, %arg26: memref<4x1x8xf32, #tpu.memory_space<vmem>>, %arg27: memref<32x32xbf16, #tpu.memory_space<vmem>>, %arg28: memref<1x32xf32, #tpu.memory_space<vmem>>, %arg29: memref<1x32xf32, #tpu.memory_space<vmem>>, %arg30: memref<1x32xf32, #tpu.memory_space<vmem>>, %arg31: memref<32x64xbf16, #tpu.memory_space<vmem>>, %arg32: memref<1x64xf32, #tpu.memory_space<vmem>>, %arg33: memref<64x32xbf16, #tpu.memory_space<vmem>>, %arg34: memref<1x32xf32, #tpu.memory_space<vmem>>, %arg35: memref<1x32xf32, #tpu.memory_space<vmem>>, %arg36: memref<1x32xf32, #tpu.memory_space<vmem>>, %arg37: memref<4x32x8xbf16, #tpu.memory_space<vmem>>, %arg38: memref<4x1x8xf32, #tpu.memory_space<vmem>>, %arg39: memref<4x32x8xbf16, #tpu.memory_space<vmem>>, %arg40: memref<4x1x8xf32, #tpu.memory_space<vmem>>, %arg41: memref<4x32x8xbf16, #tpu.memory_space<vmem>>, %arg42: memref<4x1x8xf32, #tpu.memory_space<vmem>>, %arg43: memref<32x32xbf16, #tpu.memory_space<vmem>>, %arg44: memref<1x32xf32, #tpu.memory_space<vmem>>, %arg45: memref<1x32xf32, #tpu.memory_space<vmem>>, %arg46: memref<1x32xf32, #tpu.memory_space<vmem>>, %arg47: memref<4x32x8xbf16, #tpu.memory_space<vmem>>, %arg48: memref<4x1x8xf32, #tpu.memory_space<vmem>>, %arg49: memref<4x32x8xbf16, #tpu.memory_space<vmem>>, %arg50: memref<4x1x8xf32, #tpu.memory_space<vmem>>, %arg51: memref<4x32x8xbf16, #tpu.memory_space<vmem>>, %arg52: memref<4x1x8xf32, #tpu.memory_space<vmem>>, %arg53: memref<32x32xbf16, #tpu.memory_space<vmem>>, %arg54: memref<1x32xf32, #tpu.memory_space<vmem>>, %arg55: memref<1x32xf32, #tpu.memory_space<vmem>>, %arg56: memref<1x32xf32, #tpu.memory_space<vmem>>, %arg57: memref<32x64xbf16, #tpu.memory_space<vmem>>, %arg58: memref<1x64xf32, #tpu.memory_space<vmem>>, %arg59: memref<64x32xbf16, #tpu.memory_space<vmem>>, %arg60: memref<1x32xf32, #tpu.memory_space<vmem>>, %arg61: memref<1x32xf32, #tpu.memory_space<vmem>>, %arg62: memref<1x32xf32, #tpu.memory_space<vmem>>, %arg63: memref<4x32x8xbf16, #tpu.memory_space<vmem>>, %arg64: memref<4x1x8xf32, #tpu.memory_space<vmem>>, %arg65: memref<4x32x8xbf16, #tpu.memory_space<vmem>>, %arg66: memref<4x1x8xf32, #tpu.memory_space<vmem>>, %arg67: memref<4x32x8xbf16, #tpu.memory_space<vmem>>, %arg68: memref<4x1x8xf32, #tpu.memory_space<vmem>>, %arg69: memref<32x32xbf16, #tpu.memory_space<vmem>>, %arg70: memref<1x32xf32, #tpu.memory_space<vmem>>, %arg71: memref<1x32xf32, #tpu.memory_space<vmem>>, %arg72: memref<1x32xf32, #tpu.memory_space<vmem>>, %arg73: memref<32x64xbf16, #tpu.memory_space<vmem>>, %arg74: memref<1x64xf32, #tpu.memory_space<vmem>>, %arg75: memref<64x32xbf16, #tpu.memory_space<vmem>>, %arg76: memref<1x32xf32, #tpu.memory_space<vmem>>, %arg77: memref<1x32xf32, #tpu.memory_space<vmem>>, %arg78: memref<1x32xf32, #tpu.memory_space<vmem>>, %arg79: memref<32x48xbf16, #tpu.memory_space<vmem>>, %arg80: memref<1x48xf32, #tpu.memory_space<vmem>>, %arg81: memref<8x48xf32, #tpu.memory_space<vmem>>) attributes {dimension_semantics = [], scalar_prefetch = 0 : i64, scratch_operands = 0 : i64, tpu.core_type = #tpu.core_type<tc>} {
    %c0 = arith.constant 0 : index
    %c0_0 = arith.constant 0 : index
    %0 = vector.load %arg3[%c0, %c0_0] : memref<1x24xf32, #tpu.memory_space<vmem>>, vector<1x24xf32>
    %c0_1 = arith.constant 0 : index
    %c0_2 = arith.constant 0 : index
    %1 = vector.load %arg0[%c0_1, %c0_2] : memref<24x48xf32, #tpu.memory_space<vmem>>, vector<24x48xf32>
    %c0_3 = arith.constant 0 : index
    %c0_4 = arith.constant 0 : index
    %2 = vector.load %arg1[%c0_3, %c0_4] : memref<48x32xbf16, #tpu.memory_space<vmem>>, vector<48x32xbf16>
    %3 = arith.truncf %1 : vector<24x48xf32> to vector<24x48xbf16>
    %cst = arith.constant dense<0.000000e+00> : vector<24x32xf32>
    %4 = tpu.matmul %3, %2, %cst {dimension_numbers = #tpu.dot_dimension_numbers<[1], [0], [0], [1], [0, 0, 1, 1], [], []>} : vector<24x48xbf16>, vector<48x32xbf16>, vector<24x32xf32> -> vector<24x32xf32>
    %c0_5 = arith.constant 0 : index
    %c0_6 = arith.constant 0 : index
    %5 = vector.load %arg2[%c0_5, %c0_6] : memref<24x32xf32, #tpu.memory_space<vmem>>, vector<24x32xf32>
    %6 = arith.addf %4, %5 : vector<24x32xf32>
    %c0_7 = arith.constant 0 : index
    %c0_8 = arith.constant 0 : index
    %7 = vector.load %arg5[%c0_7, %c0_8] : memref<1x32xf32, #tpu.memory_space<vmem>>, vector<1x32xf32>
    %c0_9 = arith.constant 0 : index
    %c0_10 = arith.constant 0 : index
    %8 = vector.load %arg6[%c0_9, %c0_10] : memref<1x32xf32, #tpu.memory_space<vmem>>, vector<1x32xf32>
    %cst_11 = arith.constant dense<0.000000e+00> : vector<24xf32>
    %9 = vector.multi_reduction <add>, %6, %cst_11 [1] : vector<24x32xf32> to vector<24xf32>
    %10 = vector.shape_cast %9 : vector<24xf32> to vector<24x1xf32>
    %cst_12 = arith.constant 3.200000e+01 : f32
    %11 = vector.broadcast %cst_12 : f32 to vector<24x1xf32>
    %12 = arith.divf %10, %11 : vector<24x1xf32>
    %13 = vector.broadcast %12 : vector<24x1xf32> to vector<24x32xf32>
    %14 = arith.subf %6, %13 : vector<24x32xf32>
    %15 = arith.mulf %14, %14 : vector<24x32xf32>
    %cst_13 = arith.constant dense<0.000000e+00> : vector<24xf32>
    %16 = vector.multi_reduction <add>, %15, %cst_13 [1] : vector<24x32xf32> to vector<24xf32>
    %17 = vector.shape_cast %16 : vector<24xf32> to vector<24x1xf32>
    %cst_14 = arith.constant 3.200000e+01 : f32
    %18 = vector.broadcast %cst_14 : f32 to vector<24x1xf32>
    %19 = arith.divf %17, %18 : vector<24x1xf32>
    %20 = vector.broadcast %12 : vector<24x1xf32> to vector<24x32xf32>
    %21 = arith.subf %6, %20 : vector<24x32xf32>
    %cst_15 = arith.constant 9.99999974E-6 : f32
    %22 = vector.broadcast %cst_15 : f32 to vector<24x1xf32>
    %23 = arith.addf %19, %22 : vector<24x1xf32>
    %24 = math.rsqrt %23 : vector<24x1xf32>
    %25 = vector.broadcast %24 : vector<24x1xf32> to vector<24x32xf32>
    %26 = arith.mulf %21, %25 : vector<24x32xf32>
    %27 = vector.broadcast %7 : vector<1x32xf32> to vector<24x32xf32>
    %28 = arith.mulf %26, %27 : vector<24x32xf32>
    %29 = vector.broadcast %8 : vector<1x32xf32> to vector<24x32xf32>
    %30 = arith.addf %28, %29 : vector<24x32xf32>
    %c0_16 = arith.constant 0 : index
    %c0_17 = arith.constant 0 : index
    %c0_18 = arith.constant 0 : index
    %31 = vector.load %arg7[%c0_16, %c0_17, %c0_18] : memref<4x32x8xbf16, #tpu.memory_space<vmem>>, vector<1x32x8xbf16>
    %32 = vector.shape_cast %31 : vector<1x32x8xbf16> to vector<32x8xbf16>
    %33 = arith.truncf %30 : vector<24x32xf32> to vector<24x32xbf16>
    %cst_19 = arith.constant dense<0.000000e+00> : vector<24x8xf32>
    %34 = tpu.matmul %33, %32, %cst_19 {dimension_numbers = #tpu.dot_dimension_numbers<[1], [0], [0], [1], [0, 0, 1, 1], [], []>} : vector<24x32xbf16>, vector<32x8xbf16>, vector<24x8xf32> -> vector<24x8xf32>
    %c0_20 = arith.constant 0 : index
    %c0_21 = arith.constant 0 : index
    %c0_22 = arith.constant 0 : index
    %35 = vector.load %arg8[%c0_20, %c0_21, %c0_22] : memref<4x1x8xf32, #tpu.memory_space<vmem>>, vector<1x1x8xf32>
    %36 = vector.shape_cast %35 : vector<1x1x8xf32> to vector<1x8xf32>
    %37 = vector.broadcast %36 : vector<1x8xf32> to vector<24x8xf32>
    %38 = arith.addf %34, %37 : vector<24x8xf32>
    %c0_23 = arith.constant 0 : index
    %c0_24 = arith.constant 0 : index
    %c0_25 = arith.constant 0 : index
    %39 = vector.load %arg9[%c0_23, %c0_24, %c0_25] : memref<4x32x8xbf16, #tpu.memory_space<vmem>>, vector<1x32x8xbf16>
    %40 = vector.shape_cast %39 : vector<1x32x8xbf16> to vector<32x8xbf16>
    %41 = arith.truncf %30 : vector<24x32xf32> to vector<24x32xbf16>
    %cst_26 = arith.constant dense<0.000000e+00> : vector<24x8xf32>
    %42 = tpu.matmul %41, %40, %cst_26 {dimension_numbers = #tpu.dot_dimension_numbers<[1], [0], [0], [1], [0, 0, 1, 1], [], []>} : vector<24x32xbf16>, vector<32x8xbf16>, vector<24x8xf32> -> vector<24x8xf32>
    %c0_27 = arith.constant 0 : index
    %c0_28 = arith.constant 0 : index
    %c0_29 = arith.constant 0 : index
    %43 = vector.load %arg10[%c0_27, %c0_28, %c0_29] : memref<4x32x8xbf16, #tpu.memory_space<vmem>>, vector<1x32x8xbf16>
    %44 = vector.shape_cast %43 : vector<1x32x8xbf16> to vector<32x8xbf16>
    %45 = arith.truncf %30 : vector<24x32xf32> to vector<24x32xbf16>
    %cst_30 = arith.constant dense<0.000000e+00> : vector<24x8xf32>
    %46 = tpu.matmul %45, %44, %cst_30 {dimension_numbers = #tpu.dot_dimension_numbers<[1], [0], [0], [1], [0, 0, 1, 1], [], []>} : vector<24x32xbf16>, vector<32x8xbf16>, vector<24x8xf32> -> vector<24x8xf32>
    %c0_31 = arith.constant 0 : index
    %c0_32 = arith.constant 0 : index
    %c0_33 = arith.constant 0 : index
    %47 = vector.load %arg11[%c0_31, %c0_32, %c0_33] : memref<4x1x8xf32, #tpu.memory_space<vmem>>, vector<1x1x8xf32>
    %48 = vector.shape_cast %47 : vector<1x1x8xf32> to vector<1x8xf32>
    %49 = vector.broadcast %48 : vector<1x8xf32> to vector<24x8xf32>
    %50 = arith.addf %46, %49 : vector<24x8xf32>
    %51 = arith.truncf %38 : vector<24x8xf32> to vector<24x8xbf16>
    %52 = arith.truncf %42 : vector<24x8xf32> to vector<24x8xbf16>
    %cst_34 = arith.constant dense<0.000000e+00> : vector<24x24xf32>
    %53 = tpu.matmul %51, %52, %cst_34 {dimension_numbers = #tpu.dot_dimension_numbers<[1], [1], [0], [0], [0, 0, 1, 0], [], []>} : vector<24x8xbf16>, vector<24x8xbf16>, vector<24x24xf32> -> vector<24x24xf32>
    %cst_35 = arith.constant 0.353553385 : f32
    %54 = vector.broadcast %cst_35 : f32 to vector<24x24xf32>
    %55 = arith.mulf %53, %54 : vector<24x24xf32>
    %56 = vector.broadcast %0 : vector<1x24xf32> to vector<24x24xf32>
    %57 = arith.addf %55, %56 : vector<24x24xf32>
    %cst_36 = arith.constant dense<0xFF800000> : vector<24xf32>
    %58 = vector.multi_reduction <maximumf>, %57, %cst_36 [1] : vector<24x24xf32> to vector<24xf32>
    %59 = vector.shape_cast %58 : vector<24xf32> to vector<24x1xf32>
    %60 = vector.broadcast %59 : vector<24x1xf32> to vector<24x24xf32>
    %61 = arith.subf %57, %60 : vector<24x24xf32>
    %62 = math.exp %61 : vector<24x24xf32>
    %cst_37 = arith.constant dense<0.000000e+00> : vector<24xf32>
    %63 = vector.multi_reduction <add>, %62, %cst_37 [1] : vector<24x24xf32> to vector<24xf32>
    %64 = vector.shape_cast %63 : vector<24xf32> to vector<24x1xf32>
    %65 = tpu.reciprocal %64 {approx = true} : vector<24x1xf32> -> vector<24x1xf32>
    %66 = vector.broadcast %65 : vector<24x1xf32> to vector<24x24xf32>
    %67 = arith.mulf %62, %66 : vector<24x24xf32>
    %68 = arith.truncf %67 : vector<24x24xf32> to vector<24x24xbf16>
    %69 = arith.truncf %50 : vector<24x8xf32> to vector<24x8xbf16>
    %cst_38 = arith.constant dense<0.000000e+00> : vector<24x8xf32>
    %70 = tpu.matmul %68, %69, %cst_38 {dimension_numbers = #tpu.dot_dimension_numbers<[1], [0], [0], [1], [0, 0, 1, 1], [], []>} : vector<24x24xbf16>, vector<24x8xbf16>, vector<24x8xf32> -> vector<24x8xf32>
    %c1 = arith.constant 1 : index
    %c0_39 = arith.constant 0 : index
    %c0_40 = arith.constant 0 : index
    %71 = vector.load %arg7[%c1, %c0_39, %c0_40] : memref<4x32x8xbf16, #tpu.memory_space<vmem>>, vector<1x32x8xbf16>
    %72 = vector.shape_cast %71 : vector<1x32x8xbf16> to vector<32x8xbf16>
    %73 = arith.truncf %30 : vector<24x32xf32> to vector<24x32xbf16>
    %cst_41 = arith.constant dense<0.000000e+00> : vector<24x8xf32>
    %74 = tpu.matmul %73, %72, %cst_41 {dimension_numbers = #tpu.dot_dimension_numbers<[1], [0], [0], [1], [0, 0, 1, 1], [], []>} : vector<24x32xbf16>, vector<32x8xbf16>, vector<24x8xf32> -> vector<24x8xf32>
    %c1_42 = arith.constant 1 : index
    %c0_43 = arith.constant 0 : index
    %c0_44 = arith.constant 0 : index
    %75 = vector.load %arg8[%c1_42, %c0_43, %c0_44] : memref<4x1x8xf32, #tpu.memory_space<vmem>>, vector<1x1x8xf32>
    %76 = vector.shape_cast %75 : vector<1x1x8xf32> to vector<1x8xf32>
    %77 = vector.broadcast %76 : vector<1x8xf32> to vector<24x8xf32>
    %78 = arith.addf %74, %77 : vector<24x8xf32>
    %c1_45 = arith.constant 1 : index
    %c0_46 = arith.constant 0 : index
    %c0_47 = arith.constant 0 : index
    %79 = vector.load %arg9[%c1_45, %c0_46, %c0_47] : memref<4x32x8xbf16, #tpu.memory_space<vmem>>, vector<1x32x8xbf16>
    %80 = vector.shape_cast %79 : vector<1x32x8xbf16> to vector<32x8xbf16>
    %81 = arith.truncf %30 : vector<24x32xf32> to vector<24x32xbf16>
    %cst_48 = arith.constant dense<0.000000e+00> : vector<24x8xf32>
    %82 = tpu.matmul %81, %80, %cst_48 {dimension_numbers = #tpu.dot_dimension_numbers<[1], [0], [0], [1], [0, 0, 1, 1], [], []>} : vector<24x32xbf16>, vector<32x8xbf16>, vector<24x8xf32> -> vector<24x8xf32>
    %c1_49 = arith.constant 1 : index
    %c0_50 = arith.constant 0 : index
    %c0_51 = arith.constant 0 : index
    %83 = vector.load %arg10[%c1_49, %c0_50, %c0_51] : memref<4x32x8xbf16, #tpu.memory_space<vmem>>, vector<1x32x8xbf16>
    %84 = vector.shape_cast %83 : vector<1x32x8xbf16> to vector<32x8xbf16>
    %85 = arith.truncf %30 : vector<24x32xf32> to vector<24x32xbf16>
    %cst_52 = arith.constant dense<0.000000e+00> : vector<24x8xf32>
    %86 = tpu.matmul %85, %84, %cst_52 {dimension_numbers = #tpu.dot_dimension_numbers<[1], [0], [0], [1], [0, 0, 1, 1], [], []>} : vector<24x32xbf16>, vector<32x8xbf16>, vector<24x8xf32> -> vector<24x8xf32>
    %c1_53 = arith.constant 1 : index
    %c0_54 = arith.constant 0 : index
    %c0_55 = arith.constant 0 : index
    %87 = vector.load %arg11[%c1_53, %c0_54, %c0_55] : memref<4x1x8xf32, #tpu.memory_space<vmem>>, vector<1x1x8xf32>
    %88 = vector.shape_cast %87 : vector<1x1x8xf32> to vector<1x8xf32>
    %89 = vector.broadcast %88 : vector<1x8xf32> to vector<24x8xf32>
    %90 = arith.addf %86, %89 : vector<24x8xf32>
    %91 = arith.truncf %78 : vector<24x8xf32> to vector<24x8xbf16>
    %92 = arith.truncf %82 : vector<24x8xf32> to vector<24x8xbf16>
    %cst_56 = arith.constant dense<0.000000e+00> : vector<24x24xf32>
    %93 = tpu.matmul %91, %92, %cst_56 {dimension_numbers = #tpu.dot_dimension_numbers<[1], [1], [0], [0], [0, 0, 1, 0], [], []>} : vector<24x8xbf16>, vector<24x8xbf16>, vector<24x24xf32> -> vector<24x24xf32>
    %cst_57 = arith.constant 0.353553385 : f32
    %94 = vector.broadcast %cst_57 : f32 to vector<24x24xf32>
    %95 = arith.mulf %93, %94 : vector<24x24xf32>
    %96 = vector.broadcast %0 : vector<1x24xf32> to vector<24x24xf32>
    %97 = arith.addf %95, %96 : vector<24x24xf32>
    %cst_58 = arith.constant dense<0xFF800000> : vector<24xf32>
    %98 = vector.multi_reduction <maximumf>, %97, %cst_58 [1] : vector<24x24xf32> to vector<24xf32>
    %99 = vector.shape_cast %98 : vector<24xf32> to vector<24x1xf32>
    %100 = vector.broadcast %99 : vector<24x1xf32> to vector<24x24xf32>
    %101 = arith.subf %97, %100 : vector<24x24xf32>
    %102 = math.exp %101 : vector<24x24xf32>
    %cst_59 = arith.constant dense<0.000000e+00> : vector<24xf32>
    %103 = vector.multi_reduction <add>, %102, %cst_59 [1] : vector<24x24xf32> to vector<24xf32>
    %104 = vector.shape_cast %103 : vector<24xf32> to vector<24x1xf32>
    %105 = tpu.reciprocal %104 {approx = true} : vector<24x1xf32> -> vector<24x1xf32>
    %106 = vector.broadcast %105 : vector<24x1xf32> to vector<24x24xf32>
    %107 = arith.mulf %102, %106 : vector<24x24xf32>
    %108 = arith.truncf %107 : vector<24x24xf32> to vector<24x24xbf16>
    %109 = arith.truncf %90 : vector<24x8xf32> to vector<24x8xbf16>
    %cst_60 = arith.constant dense<0.000000e+00> : vector<24x8xf32>
    %110 = tpu.matmul %108, %109, %cst_60 {dimension_numbers = #tpu.dot_dimension_numbers<[1], [0], [0], [1], [0, 0, 1, 1], [], []>} : vector<24x24xbf16>, vector<24x8xbf16>, vector<24x8xf32> -> vector<24x8xf32>
    %c2 = arith.constant 2 : index
    %c0_61 = arith.constant 0 : index
    %c0_62 = arith.constant 0 : index
    %111 = vector.load %arg7[%c2, %c0_61, %c0_62] : memref<4x32x8xbf16, #tpu.memory_space<vmem>>, vector<1x32x8xbf16>
    %112 = vector.shape_cast %111 : vector<1x32x8xbf16> to vector<32x8xbf16>
    %113 = arith.truncf %30 : vector<24x32xf32> to vector<24x32xbf16>
    %cst_63 = arith.constant dense<0.000000e+00> : vector<24x8xf32>
    %114 = tpu.matmul %113, %112, %cst_63 {dimension_numbers = #tpu.dot_dimension_numbers<[1], [0], [0], [1], [0, 0, 1, 1], [], []>} : vector<24x32xbf16>, vector<32x8xbf16>, vector<24x8xf32> -> vector<24x8xf32>
    %c2_64 = arith.constant 2 : index
    %c0_65 = arith.constant 0 : index
    %c0_66 = arith.constant 0 : index
    %115 = vector.load %arg8[%c2_64, %c0_65, %c0_66] : memref<4x1x8xf32, #tpu.memory_space<vmem>>, vector<1x1x8xf32>
    %116 = vector.shape_cast %115 : vector<1x1x8xf32> to vector<1x8xf32>
    %117 = vector.broadcast %116 : vector<1x8xf32> to vector<24x8xf32>
    %118 = arith.addf %114, %117 : vector<24x8xf32>
    %c2_67 = arith.constant 2 : index
    %c0_68 = arith.constant 0 : index
    %c0_69 = arith.constant 0 : index
    %119 = vector.load %arg9[%c2_67, %c0_68, %c0_69] : memref<4x32x8xbf16, #tpu.memory_space<vmem>>, vector<1x32x8xbf16>
    %120 = vector.shape_cast %119 : vector<1x32x8xbf16> to vector<32x8xbf16>
    %121 = arith.truncf %30 : vector<24x32xf32> to vector<24x32xbf16>
    %cst_70 = arith.constant dense<0.000000e+00> : vector<24x8xf32>
    %122 = tpu.matmul %121, %120, %cst_70 {dimension_numbers = #tpu.dot_dimension_numbers<[1], [0], [0], [1], [0, 0, 1, 1], [], []>} : vector<24x32xbf16>, vector<32x8xbf16>, vector<24x8xf32> -> vector<24x8xf32>
    %c2_71 = arith.constant 2 : index
    %c0_72 = arith.constant 0 : index
    %c0_73 = arith.constant 0 : index
    %123 = vector.load %arg10[%c2_71, %c0_72, %c0_73] : memref<4x32x8xbf16, #tpu.memory_space<vmem>>, vector<1x32x8xbf16>
    %124 = vector.shape_cast %123 : vector<1x32x8xbf16> to vector<32x8xbf16>
    %125 = arith.truncf %30 : vector<24x32xf32> to vector<24x32xbf16>
    %cst_74 = arith.constant dense<0.000000e+00> : vector<24x8xf32>
    %126 = tpu.matmul %125, %124, %cst_74 {dimension_numbers = #tpu.dot_dimension_numbers<[1], [0], [0], [1], [0, 0, 1, 1], [], []>} : vector<24x32xbf16>, vector<32x8xbf16>, vector<24x8xf32> -> vector<24x8xf32>
    %c2_75 = arith.constant 2 : index
    %c0_76 = arith.constant 0 : index
    %c0_77 = arith.constant 0 : index
    %127 = vector.load %arg11[%c2_75, %c0_76, %c0_77] : memref<4x1x8xf32, #tpu.memory_space<vmem>>, vector<1x1x8xf32>
    %128 = vector.shape_cast %127 : vector<1x1x8xf32> to vector<1x8xf32>
    %129 = vector.broadcast %128 : vector<1x8xf32> to vector<24x8xf32>
    %130 = arith.addf %126, %129 : vector<24x8xf32>
    %131 = arith.truncf %118 : vector<24x8xf32> to vector<24x8xbf16>
    %132 = arith.truncf %122 : vector<24x8xf32> to vector<24x8xbf16>
    %cst_78 = arith.constant dense<0.000000e+00> : vector<24x24xf32>
    %133 = tpu.matmul %131, %132, %cst_78 {dimension_numbers = #tpu.dot_dimension_numbers<[1], [1], [0], [0], [0, 0, 1, 0], [], []>} : vector<24x8xbf16>, vector<24x8xbf16>, vector<24x24xf32> -> vector<24x24xf32>
    %cst_79 = arith.constant 0.353553385 : f32
    %134 = vector.broadcast %cst_79 : f32 to vector<24x24xf32>
    %135 = arith.mulf %133, %134 : vector<24x24xf32>
    %136 = vector.broadcast %0 : vector<1x24xf32> to vector<24x24xf32>
    %137 = arith.addf %135, %136 : vector<24x24xf32>
    %cst_80 = arith.constant dense<0xFF800000> : vector<24xf32>
    %138 = vector.multi_reduction <maximumf>, %137, %cst_80 [1] : vector<24x24xf32> to vector<24xf32>
    %139 = vector.shape_cast %138 : vector<24xf32> to vector<24x1xf32>
    %140 = vector.broadcast %139 : vector<24x1xf32> to vector<24x24xf32>
    %141 = arith.subf %137, %140 : vector<24x24xf32>
    %142 = math.exp %141 : vector<24x24xf32>
    %cst_81 = arith.constant dense<0.000000e+00> : vector<24xf32>
    %143 = vector.multi_reduction <add>, %142, %cst_81 [1] : vector<24x24xf32> to vector<24xf32>
    %144 = vector.shape_cast %143 : vector<24xf32> to vector<24x1xf32>
    %145 = tpu.reciprocal %144 {approx = true} : vector<24x1xf32> -> vector<24x1xf32>
    %146 = vector.broadcast %145 : vector<24x1xf32> to vector<24x24xf32>
    %147 = arith.mulf %142, %146 : vector<24x24xf32>
    %148 = arith.truncf %147 : vector<24x24xf32> to vector<24x24xbf16>
    %149 = arith.truncf %130 : vector<24x8xf32> to vector<24x8xbf16>
    %cst_82 = arith.constant dense<0.000000e+00> : vector<24x8xf32>
    %150 = tpu.matmul %148, %149, %cst_82 {dimension_numbers = #tpu.dot_dimension_numbers<[1], [0], [0], [1], [0, 0, 1, 1], [], []>} : vector<24x24xbf16>, vector<24x8xbf16>, vector<24x8xf32> -> vector<24x8xf32>
    %c3 = arith.constant 3 : index
    %c0_83 = arith.constant 0 : index
    %c0_84 = arith.constant 0 : index
    %151 = vector.load %arg7[%c3, %c0_83, %c0_84] : memref<4x32x8xbf16, #tpu.memory_space<vmem>>, vector<1x32x8xbf16>
    %152 = vector.shape_cast %151 : vector<1x32x8xbf16> to vector<32x8xbf16>
    %153 = arith.truncf %30 : vector<24x32xf32> to vector<24x32xbf16>
    %cst_85 = arith.constant dense<0.000000e+00> : vector<24x8xf32>
    %154 = tpu.matmul %153, %152, %cst_85 {dimension_numbers = #tpu.dot_dimension_numbers<[1], [0], [0], [1], [0, 0, 1, 1], [], []>} : vector<24x32xbf16>, vector<32x8xbf16>, vector<24x8xf32> -> vector<24x8xf32>
    %c3_86 = arith.constant 3 : index
    %c0_87 = arith.constant 0 : index
    %c0_88 = arith.constant 0 : index
    %155 = vector.load %arg8[%c3_86, %c0_87, %c0_88] : memref<4x1x8xf32, #tpu.memory_space<vmem>>, vector<1x1x8xf32>
    %156 = vector.shape_cast %155 : vector<1x1x8xf32> to vector<1x8xf32>
    %157 = vector.broadcast %156 : vector<1x8xf32> to vector<24x8xf32>
    %158 = arith.addf %154, %157 : vector<24x8xf32>
    %c3_89 = arith.constant 3 : index
    %c0_90 = arith.constant 0 : index
    %c0_91 = arith.constant 0 : index
    %159 = vector.load %arg9[%c3_89, %c0_90, %c0_91] : memref<4x32x8xbf16, #tpu.memory_space<vmem>>, vector<1x32x8xbf16>
    %160 = vector.shape_cast %159 : vector<1x32x8xbf16> to vector<32x8xbf16>
    %161 = arith.truncf %30 : vector<24x32xf32> to vector<24x32xbf16>
    %cst_92 = arith.constant dense<0.000000e+00> : vector<24x8xf32>
    %162 = tpu.matmul %161, %160, %cst_92 {dimension_numbers = #tpu.dot_dimension_numbers<[1], [0], [0], [1], [0, 0, 1, 1], [], []>} : vector<24x32xbf16>, vector<32x8xbf16>, vector<24x8xf32> -> vector<24x8xf32>
    %c3_93 = arith.constant 3 : index
    %c0_94 = arith.constant 0 : index
    %c0_95 = arith.constant 0 : index
    %163 = vector.load %arg10[%c3_93, %c0_94, %c0_95] : memref<4x32x8xbf16, #tpu.memory_space<vmem>>, vector<1x32x8xbf16>
    %164 = vector.shape_cast %163 : vector<1x32x8xbf16> to vector<32x8xbf16>
    %165 = arith.truncf %30 : vector<24x32xf32> to vector<24x32xbf16>
    %cst_96 = arith.constant dense<0.000000e+00> : vector<24x8xf32>
    %166 = tpu.matmul %165, %164, %cst_96 {dimension_numbers = #tpu.dot_dimension_numbers<[1], [0], [0], [1], [0, 0, 1, 1], [], []>} : vector<24x32xbf16>, vector<32x8xbf16>, vector<24x8xf32> -> vector<24x8xf32>
    %c3_97 = arith.constant 3 : index
    %c0_98 = arith.constant 0 : index
    %c0_99 = arith.constant 0 : index
    %167 = vector.load %arg11[%c3_97, %c0_98, %c0_99] : memref<4x1x8xf32, #tpu.memory_space<vmem>>, vector<1x1x8xf32>
    %168 = vector.shape_cast %167 : vector<1x1x8xf32> to vector<1x8xf32>
    %169 = vector.broadcast %168 : vector<1x8xf32> to vector<24x8xf32>
    %170 = arith.addf %166, %169 : vector<24x8xf32>
    %171 = arith.truncf %158 : vector<24x8xf32> to vector<24x8xbf16>
    %172 = arith.truncf %162 : vector<24x8xf32> to vector<24x8xbf16>
    %cst_100 = arith.constant dense<0.000000e+00> : vector<24x24xf32>
    %173 = tpu.matmul %171, %172, %cst_100 {dimension_numbers = #tpu.dot_dimension_numbers<[1], [1], [0], [0], [0, 0, 1, 0], [], []>} : vector<24x8xbf16>, vector<24x8xbf16>, vector<24x24xf32> -> vector<24x24xf32>
    %cst_101 = arith.constant 0.353553385 : f32
    %174 = vector.broadcast %cst_101 : f32 to vector<24x24xf32>
    %175 = arith.mulf %173, %174 : vector<24x24xf32>
    %176 = vector.broadcast %0 : vector<1x24xf32> to vector<24x24xf32>
    %177 = arith.addf %175, %176 : vector<24x24xf32>
    %cst_102 = arith.constant dense<0xFF800000> : vector<24xf32>
    %178 = vector.multi_reduction <maximumf>, %177, %cst_102 [1] : vector<24x24xf32> to vector<24xf32>
    %179 = vector.shape_cast %178 : vector<24xf32> to vector<24x1xf32>
    %180 = vector.broadcast %179 : vector<24x1xf32> to vector<24x24xf32>
    %181 = arith.subf %177, %180 : vector<24x24xf32>
    %182 = math.exp %181 : vector<24x24xf32>
    %cst_103 = arith.constant dense<0.000000e+00> : vector<24xf32>
    %183 = vector.multi_reduction <add>, %182, %cst_103 [1] : vector<24x24xf32> to vector<24xf32>
    %184 = vector.shape_cast %183 : vector<24xf32> to vector<24x1xf32>
    %185 = tpu.reciprocal %184 {approx = true} : vector<24x1xf32> -> vector<24x1xf32>
    %186 = vector.broadcast %185 : vector<24x1xf32> to vector<24x24xf32>
    %187 = arith.mulf %182, %186 : vector<24x24xf32>
    %188 = arith.truncf %187 : vector<24x24xf32> to vector<24x24xbf16>
    %189 = arith.truncf %170 : vector<24x8xf32> to vector<24x8xbf16>
    %cst_104 = arith.constant dense<0.000000e+00> : vector<24x8xf32>
    %190 = tpu.matmul %188, %189, %cst_104 {dimension_numbers = #tpu.dot_dimension_numbers<[1], [0], [0], [1], [0, 0, 1, 1], [], []>} : vector<24x24xbf16>, vector<24x8xbf16>, vector<24x8xf32> -> vector<24x8xf32>
    %191 = tpu.concatenate %70, %110, %150, %190 in 1 : vector<24x8xf32>, vector<24x8xf32>, vector<24x8xf32>, vector<24x8xf32> -> vector<24x32xf32>
    %c0_105 = arith.constant 0 : index
    %c0_106 = arith.constant 0 : index
    %192 = vector.load %arg12[%c0_105, %c0_106] : memref<32x32xbf16, #tpu.memory_space<vmem>>, vector<32x32xbf16>
    %193 = arith.truncf %191 : vector<24x32xf32> to vector<24x32xbf16>
    %cst_107 = arith.constant dense<0.000000e+00> : vector<24x32xf32>
    %194 = tpu.matmul %193, %192, %cst_107 {dimension_numbers = #tpu.dot_dimension_numbers<[1], [0], [0], [1], [0, 0, 1, 1], [], []>} : vector<24x32xbf16>, vector<32x32xbf16>, vector<24x32xf32> -> vector<24x32xf32>
    %c0_108 = arith.constant 0 : index
    %c0_109 = arith.constant 0 : index
    %195 = vector.load %arg13[%c0_108, %c0_109] : memref<1x32xf32, #tpu.memory_space<vmem>>, vector<1x32xf32>
    %196 = vector.broadcast %195 : vector<1x32xf32> to vector<24x32xf32>
    %197 = arith.addf %194, %196 : vector<24x32xf32>
    %198 = arith.addf %6, %197 : vector<24x32xf32>
    %c0_110 = arith.constant 0 : index
    %c0_111 = arith.constant 0 : index
    %199 = vector.load %arg14[%c0_110, %c0_111] : memref<1x32xf32, #tpu.memory_space<vmem>>, vector<1x32xf32>
    %c0_112 = arith.constant 0 : index
    %c0_113 = arith.constant 0 : index
    %200 = vector.load %arg15[%c0_112, %c0_113] : memref<1x32xf32, #tpu.memory_space<vmem>>, vector<1x32xf32>
    %cst_114 = arith.constant dense<0.000000e+00> : vector<24xf32>
    %201 = vector.multi_reduction <add>, %198, %cst_114 [1] : vector<24x32xf32> to vector<24xf32>
    %202 = vector.shape_cast %201 : vector<24xf32> to vector<24x1xf32>
    %cst_115 = arith.constant 3.200000e+01 : f32
    %203 = vector.broadcast %cst_115 : f32 to vector<24x1xf32>
    %204 = arith.divf %202, %203 : vector<24x1xf32>
    %205 = vector.broadcast %204 : vector<24x1xf32> to vector<24x32xf32>
    %206 = arith.subf %198, %205 : vector<24x32xf32>
    %207 = arith.mulf %206, %206 : vector<24x32xf32>
    %cst_116 = arith.constant dense<0.000000e+00> : vector<24xf32>
    %208 = vector.multi_reduction <add>, %207, %cst_116 [1] : vector<24x32xf32> to vector<24xf32>
    %209 = vector.shape_cast %208 : vector<24xf32> to vector<24x1xf32>
    %cst_117 = arith.constant 3.200000e+01 : f32
    %210 = vector.broadcast %cst_117 : f32 to vector<24x1xf32>
    %211 = arith.divf %209, %210 : vector<24x1xf32>
    %212 = vector.broadcast %204 : vector<24x1xf32> to vector<24x32xf32>
    %213 = arith.subf %198, %212 : vector<24x32xf32>
    %cst_118 = arith.constant 9.99999974E-6 : f32
    %214 = vector.broadcast %cst_118 : f32 to vector<24x1xf32>
    %215 = arith.addf %211, %214 : vector<24x1xf32>
    %216 = math.rsqrt %215 : vector<24x1xf32>
    %217 = vector.broadcast %216 : vector<24x1xf32> to vector<24x32xf32>
    %218 = arith.mulf %213, %217 : vector<24x32xf32>
    %219 = vector.broadcast %199 : vector<1x32xf32> to vector<24x32xf32>
    %220 = arith.mulf %218, %219 : vector<24x32xf32>
    %221 = vector.broadcast %200 : vector<1x32xf32> to vector<24x32xf32>
    %222 = arith.addf %220, %221 : vector<24x32xf32>
    %c0_119 = arith.constant 0 : index
    %c0_120 = arith.constant 0 : index
    %223 = vector.load %arg16[%c0_119, %c0_120] : memref<32x64xbf16, #tpu.memory_space<vmem>>, vector<32x64xbf16>
    %224 = arith.truncf %222 : vector<24x32xf32> to vector<24x32xbf16>
    %cst_121 = arith.constant dense<0.000000e+00> : vector<24x64xf32>
    %225 = tpu.matmul %224, %223, %cst_121 {dimension_numbers = #tpu.dot_dimension_numbers<[1], [0], [0], [1], [0, 0, 1, 1], [], []>} : vector<24x32xbf16>, vector<32x64xbf16>, vector<24x64xf32> -> vector<24x64xf32>
    %c0_122 = arith.constant 0 : index
    %c0_123 = arith.constant 0 : index
    %226 = vector.load %arg17[%c0_122, %c0_123] : memref<1x64xf32, #tpu.memory_space<vmem>>, vector<1x64xf32>
    %227 = vector.broadcast %226 : vector<1x64xf32> to vector<24x64xf32>
    %228 = arith.addf %225, %227 : vector<24x64xf32>
    %229 = arith.mulf %228, %228 : vector<24x64xf32>
    %230 = arith.mulf %228, %229 : vector<24x64xf32>
    %cst_124 = arith.constant 4.471500e-02 : f32
    %231 = vector.broadcast %cst_124 : f32 to vector<24x64xf32>
    %232 = arith.mulf %231, %230 : vector<24x64xf32>
    %233 = arith.addf %228, %232 : vector<24x64xf32>
    %cst_125 = arith.constant 0.797884583 : f32
    %234 = vector.broadcast %cst_125 : f32 to vector<24x64xf32>
    %235 = arith.mulf %234, %233 : vector<24x64xf32>
    %236 = math.tanh %235 : vector<24x64xf32>
    %cst_126 = arith.constant 1.000000e+00 : f32
    %237 = vector.broadcast %cst_126 : f32 to vector<24x64xf32>
    %238 = arith.addf %237, %236 : vector<24x64xf32>
    %cst_127 = arith.constant 5.000000e-01 : f32
    %239 = vector.broadcast %cst_127 : f32 to vector<24x64xf32>
    %240 = arith.mulf %239, %238 : vector<24x64xf32>
    %241 = arith.mulf %228, %240 : vector<24x64xf32>
    %c0_128 = arith.constant 0 : index
    %c0_129 = arith.constant 0 : index
    %242 = vector.load %arg18[%c0_128, %c0_129] : memref<64x32xbf16, #tpu.memory_space<vmem>>, vector<64x32xbf16>
    %243 = arith.truncf %241 : vector<24x64xf32> to vector<24x64xbf16>
    %cst_130 = arith.constant dense<0.000000e+00> : vector<24x32xf32>
    %244 = tpu.matmul %243, %242, %cst_130 {dimension_numbers = #tpu.dot_dimension_numbers<[1], [0], [0], [1], [0, 0, 1, 1], [], []>} : vector<24x64xbf16>, vector<64x32xbf16>, vector<24x32xf32> -> vector<24x32xf32>
    %c0_131 = arith.constant 0 : index
    %c0_132 = arith.constant 0 : index
    %245 = vector.load %arg19[%c0_131, %c0_132] : memref<1x32xf32, #tpu.memory_space<vmem>>, vector<1x32xf32>
    %246 = vector.broadcast %245 : vector<1x32xf32> to vector<24x32xf32>
    %247 = arith.addf %244, %246 : vector<24x32xf32>
    %248 = arith.addf %198, %247 : vector<24x32xf32>
    %c0_133 = arith.constant 0 : index
    %c0_134 = arith.constant 0 : index
    %249 = vector.load %arg20[%c0_133, %c0_134] : memref<1x32xf32, #tpu.memory_space<vmem>>, vector<1x32xf32>
    %c0_135 = arith.constant 0 : index
    %c0_136 = arith.constant 0 : index
    %250 = vector.load %arg21[%c0_135, %c0_136] : memref<1x32xf32, #tpu.memory_space<vmem>>, vector<1x32xf32>
    %cst_137 = arith.constant dense<0.000000e+00> : vector<24xf32>
    %251 = vector.multi_reduction <add>, %248, %cst_137 [1] : vector<24x32xf32> to vector<24xf32>
    %252 = vector.shape_cast %251 : vector<24xf32> to vector<24x1xf32>
    %cst_138 = arith.constant 3.200000e+01 : f32
    %253 = vector.broadcast %cst_138 : f32 to vector<24x1xf32>
    %254 = arith.divf %252, %253 : vector<24x1xf32>
    %255 = vector.broadcast %254 : vector<24x1xf32> to vector<24x32xf32>
    %256 = arith.subf %248, %255 : vector<24x32xf32>
    %257 = arith.mulf %256, %256 : vector<24x32xf32>
    %cst_139 = arith.constant dense<0.000000e+00> : vector<24xf32>
    %258 = vector.multi_reduction <add>, %257, %cst_139 [1] : vector<24x32xf32> to vector<24xf32>
    %259 = vector.shape_cast %258 : vector<24xf32> to vector<24x1xf32>
    %cst_140 = arith.constant 3.200000e+01 : f32
    %260 = vector.broadcast %cst_140 : f32 to vector<24x1xf32>
    %261 = arith.divf %259, %260 : vector<24x1xf32>
    %262 = vector.broadcast %254 : vector<24x1xf32> to vector<24x32xf32>
    %263 = arith.subf %248, %262 : vector<24x32xf32>
    %cst_141 = arith.constant 9.99999974E-6 : f32
    %264 = vector.broadcast %cst_141 : f32 to vector<24x1xf32>
    %265 = arith.addf %261, %264 : vector<24x1xf32>
    %266 = math.rsqrt %265 : vector<24x1xf32>
    %267 = vector.broadcast %266 : vector<24x1xf32> to vector<24x32xf32>
    %268 = arith.mulf %263, %267 : vector<24x32xf32>
    %269 = vector.broadcast %249 : vector<1x32xf32> to vector<24x32xf32>
    %270 = arith.mulf %268, %269 : vector<24x32xf32>
    %271 = vector.broadcast %250 : vector<1x32xf32> to vector<24x32xf32>
    %272 = arith.addf %270, %271 : vector<24x32xf32>
    %c0_142 = arith.constant 0 : index
    %c0_143 = arith.constant 0 : index
    %c0_144 = arith.constant 0 : index
    %273 = vector.load %arg22[%c0_142, %c0_143, %c0_144] : memref<4x32x8xbf16, #tpu.memory_space<vmem>>, vector<1x32x8xbf16>
    %274 = vector.shape_cast %273 : vector<1x32x8xbf16> to vector<32x8xbf16>
    %275 = arith.truncf %272 : vector<24x32xf32> to vector<24x32xbf16>
    %cst_145 = arith.constant dense<0.000000e+00> : vector<24x8xf32>
    %276 = tpu.matmul %275, %274, %cst_145 {dimension_numbers = #tpu.dot_dimension_numbers<[1], [0], [0], [1], [0, 0, 1, 1], [], []>} : vector<24x32xbf16>, vector<32x8xbf16>, vector<24x8xf32> -> vector<24x8xf32>
    %c0_146 = arith.constant 0 : index
    %c0_147 = arith.constant 0 : index
    %c0_148 = arith.constant 0 : index
    %277 = vector.load %arg23[%c0_146, %c0_147, %c0_148] : memref<4x1x8xf32, #tpu.memory_space<vmem>>, vector<1x1x8xf32>
    %278 = vector.shape_cast %277 : vector<1x1x8xf32> to vector<1x8xf32>
    %279 = vector.broadcast %278 : vector<1x8xf32> to vector<24x8xf32>
    %280 = arith.addf %276, %279 : vector<24x8xf32>
    %c0_149 = arith.constant 0 : index
    %c0_150 = arith.constant 0 : index
    %c0_151 = arith.constant 0 : index
    %281 = vector.load %arg24[%c0_149, %c0_150, %c0_151] : memref<4x32x8xbf16, #tpu.memory_space<vmem>>, vector<1x32x8xbf16>
    %282 = vector.shape_cast %281 : vector<1x32x8xbf16> to vector<32x8xbf16>
    %283 = arith.truncf %272 : vector<24x32xf32> to vector<24x32xbf16>
    %cst_152 = arith.constant dense<0.000000e+00> : vector<24x8xf32>
    %284 = tpu.matmul %283, %282, %cst_152 {dimension_numbers = #tpu.dot_dimension_numbers<[1], [0], [0], [1], [0, 0, 1, 1], [], []>} : vector<24x32xbf16>, vector<32x8xbf16>, vector<24x8xf32> -> vector<24x8xf32>
    %c0_153 = arith.constant 0 : index
    %c0_154 = arith.constant 0 : index
    %c0_155 = arith.constant 0 : index
    %285 = vector.load %arg25[%c0_153, %c0_154, %c0_155] : memref<4x32x8xbf16, #tpu.memory_space<vmem>>, vector<1x32x8xbf16>
    %286 = vector.shape_cast %285 : vector<1x32x8xbf16> to vector<32x8xbf16>
    %287 = arith.truncf %272 : vector<24x32xf32> to vector<24x32xbf16>
    %cst_156 = arith.constant dense<0.000000e+00> : vector<24x8xf32>
    %288 = tpu.matmul %287, %286, %cst_156 {dimension_numbers = #tpu.dot_dimension_numbers<[1], [0], [0], [1], [0, 0, 1, 1], [], []>} : vector<24x32xbf16>, vector<32x8xbf16>, vector<24x8xf32> -> vector<24x8xf32>
    %c0_157 = arith.constant 0 : index
    %c0_158 = arith.constant 0 : index
    %c0_159 = arith.constant 0 : index
    %289 = vector.load %arg26[%c0_157, %c0_158, %c0_159] : memref<4x1x8xf32, #tpu.memory_space<vmem>>, vector<1x1x8xf32>
    %290 = vector.shape_cast %289 : vector<1x1x8xf32> to vector<1x8xf32>
    %291 = vector.broadcast %290 : vector<1x8xf32> to vector<24x8xf32>
    %292 = arith.addf %288, %291 : vector<24x8xf32>
    %293 = arith.truncf %280 : vector<24x8xf32> to vector<24x8xbf16>
    %294 = arith.truncf %284 : vector<24x8xf32> to vector<24x8xbf16>
    %cst_160 = arith.constant dense<0.000000e+00> : vector<24x24xf32>
    %295 = tpu.matmul %293, %294, %cst_160 {dimension_numbers = #tpu.dot_dimension_numbers<[1], [1], [0], [0], [0, 0, 1, 0], [], []>} : vector<24x8xbf16>, vector<24x8xbf16>, vector<24x24xf32> -> vector<24x24xf32>
    %cst_161 = arith.constant 0.353553385 : f32
    %296 = vector.broadcast %cst_161 : f32 to vector<24x24xf32>
    %297 = arith.mulf %295, %296 : vector<24x24xf32>
    %298 = vector.broadcast %0 : vector<1x24xf32> to vector<24x24xf32>
    %299 = arith.addf %297, %298 : vector<24x24xf32>
    %cst_162 = arith.constant dense<0xFF800000> : vector<24xf32>
    %300 = vector.multi_reduction <maximumf>, %299, %cst_162 [1] : vector<24x24xf32> to vector<24xf32>
    %301 = vector.shape_cast %300 : vector<24xf32> to vector<24x1xf32>
    %302 = vector.broadcast %301 : vector<24x1xf32> to vector<24x24xf32>
    %303 = arith.subf %299, %302 : vector<24x24xf32>
    %304 = math.exp %303 : vector<24x24xf32>
    %cst_163 = arith.constant dense<0.000000e+00> : vector<24xf32>
    %305 = vector.multi_reduction <add>, %304, %cst_163 [1] : vector<24x24xf32> to vector<24xf32>
    %306 = vector.shape_cast %305 : vector<24xf32> to vector<24x1xf32>
    %307 = tpu.reciprocal %306 {approx = true} : vector<24x1xf32> -> vector<24x1xf32>
    %308 = vector.broadcast %307 : vector<24x1xf32> to vector<24x24xf32>
    %309 = arith.mulf %304, %308 : vector<24x24xf32>
    %310 = arith.truncf %309 : vector<24x24xf32> to vector<24x24xbf16>
    %311 = arith.truncf %292 : vector<24x8xf32> to vector<24x8xbf16>
    %cst_164 = arith.constant dense<0.000000e+00> : vector<24x8xf32>
    %312 = tpu.matmul %310, %311, %cst_164 {dimension_numbers = #tpu.dot_dimension_numbers<[1], [0], [0], [1], [0, 0, 1, 1], [], []>} : vector<24x24xbf16>, vector<24x8xbf16>, vector<24x8xf32> -> vector<24x8xf32>
    %c1_165 = arith.constant 1 : index
    %c0_166 = arith.constant 0 : index
    %c0_167 = arith.constant 0 : index
    %313 = vector.load %arg22[%c1_165, %c0_166, %c0_167] : memref<4x32x8xbf16, #tpu.memory_space<vmem>>, vector<1x32x8xbf16>
    %314 = vector.shape_cast %313 : vector<1x32x8xbf16> to vector<32x8xbf16>
    %315 = arith.truncf %272 : vector<24x32xf32> to vector<24x32xbf16>
    %cst_168 = arith.constant dense<0.000000e+00> : vector<24x8xf32>
    %316 = tpu.matmul %315, %314, %cst_168 {dimension_numbers = #tpu.dot_dimension_numbers<[1], [0], [0], [1], [0, 0, 1, 1], [], []>} : vector<24x32xbf16>, vector<32x8xbf16>, vector<24x8xf32> -> vector<24x8xf32>
    %c1_169 = arith.constant 1 : index
    %c0_170 = arith.constant 0 : index
    %c0_171 = arith.constant 0 : index
    %317 = vector.load %arg23[%c1_169, %c0_170, %c0_171] : memref<4x1x8xf32, #tpu.memory_space<vmem>>, vector<1x1x8xf32>
    %318 = vector.shape_cast %317 : vector<1x1x8xf32> to vector<1x8xf32>
    %319 = vector.broadcast %318 : vector<1x8xf32> to vector<24x8xf32>
    %320 = arith.addf %316, %319 : vector<24x8xf32>
    %c1_172 = arith.constant 1 : index
    %c0_173 = arith.constant 0 : index
    %c0_174 = arith.constant 0 : index
    %321 = vector.load %arg24[%c1_172, %c0_173, %c0_174] : memref<4x32x8xbf16, #tpu.memory_space<vmem>>, vector<1x32x8xbf16>
    %322 = vector.shape_cast %321 : vector<1x32x8xbf16> to vector<32x8xbf16>
    %323 = arith.truncf %272 : vector<24x32xf32> to vector<24x32xbf16>
    %cst_175 = arith.constant dense<0.000000e+00> : vector<24x8xf32>
    %324 = tpu.matmul %323, %322, %cst_175 {dimension_numbers = #tpu.dot_dimension_numbers<[1], [0], [0], [1], [0, 0, 1, 1], [], []>} : vector<24x32xbf16>, vector<32x8xbf16>, vector<24x8xf32> -> vector<24x8xf32>
    %c1_176 = arith.constant 1 : index
    %c0_177 = arith.constant 0 : index
    %c0_178 = arith.constant 0 : index
    %325 = vector.load %arg25[%c1_176, %c0_177, %c0_178] : memref<4x32x8xbf16, #tpu.memory_space<vmem>>, vector<1x32x8xbf16>
    %326 = vector.shape_cast %325 : vector<1x32x8xbf16> to vector<32x8xbf16>
    %327 = arith.truncf %272 : vector<24x32xf32> to vector<24x32xbf16>
    %cst_179 = arith.constant dense<0.000000e+00> : vector<24x8xf32>
    %328 = tpu.matmul %327, %326, %cst_179 {dimension_numbers = #tpu.dot_dimension_numbers<[1], [0], [0], [1], [0, 0, 1, 1], [], []>} : vector<24x32xbf16>, vector<32x8xbf16>, vector<24x8xf32> -> vector<24x8xf32>
    %c1_180 = arith.constant 1 : index
    %c0_181 = arith.constant 0 : index
    %c0_182 = arith.constant 0 : index
    %329 = vector.load %arg26[%c1_180, %c0_181, %c0_182] : memref<4x1x8xf32, #tpu.memory_space<vmem>>, vector<1x1x8xf32>
    %330 = vector.shape_cast %329 : vector<1x1x8xf32> to vector<1x8xf32>
    %331 = vector.broadcast %330 : vector<1x8xf32> to vector<24x8xf32>
    %332 = arith.addf %328, %331 : vector<24x8xf32>
    %333 = arith.truncf %320 : vector<24x8xf32> to vector<24x8xbf16>
    %334 = arith.truncf %324 : vector<24x8xf32> to vector<24x8xbf16>
    %cst_183 = arith.constant dense<0.000000e+00> : vector<24x24xf32>
    %335 = tpu.matmul %333, %334, %cst_183 {dimension_numbers = #tpu.dot_dimension_numbers<[1], [1], [0], [0], [0, 0, 1, 0], [], []>} : vector<24x8xbf16>, vector<24x8xbf16>, vector<24x24xf32> -> vector<24x24xf32>
    %cst_184 = arith.constant 0.353553385 : f32
    %336 = vector.broadcast %cst_184 : f32 to vector<24x24xf32>
    %337 = arith.mulf %335, %336 : vector<24x24xf32>
    %338 = vector.broadcast %0 : vector<1x24xf32> to vector<24x24xf32>
    %339 = arith.addf %337, %338 : vector<24x24xf32>
    %cst_185 = arith.constant dense<0xFF800000> : vector<24xf32>
    %340 = vector.multi_reduction <maximumf>, %339, %cst_185 [1] : vector<24x24xf32> to vector<24xf32>
    %341 = vector.shape_cast %340 : vector<24xf32> to vector<24x1xf32>
    %342 = vector.broadcast %341 : vector<24x1xf32> to vector<24x24xf32>
    %343 = arith.subf %339, %342 : vector<24x24xf32>
    %344 = math.exp %343 : vector<24x24xf32>
    %cst_186 = arith.constant dense<0.000000e+00> : vector<24xf32>
    %345 = vector.multi_reduction <add>, %344, %cst_186 [1] : vector<24x24xf32> to vector<24xf32>
    %346 = vector.shape_cast %345 : vector<24xf32> to vector<24x1xf32>
    %347 = tpu.reciprocal %346 {approx = true} : vector<24x1xf32> -> vector<24x1xf32>
    %348 = vector.broadcast %347 : vector<24x1xf32> to vector<24x24xf32>
    %349 = arith.mulf %344, %348 : vector<24x24xf32>
    %350 = arith.truncf %349 : vector<24x24xf32> to vector<24x24xbf16>
    %351 = arith.truncf %332 : vector<24x8xf32> to vector<24x8xbf16>
    %cst_187 = arith.constant dense<0.000000e+00> : vector<24x8xf32>
    %352 = tpu.matmul %350, %351, %cst_187 {dimension_numbers = #tpu.dot_dimension_numbers<[1], [0], [0], [1], [0, 0, 1, 1], [], []>} : vector<24x24xbf16>, vector<24x8xbf16>, vector<24x8xf32> -> vector<24x8xf32>
    %c2_188 = arith.constant 2 : index
    %c0_189 = arith.constant 0 : index
    %c0_190 = arith.constant 0 : index
    %353 = vector.load %arg22[%c2_188, %c0_189, %c0_190] : memref<4x32x8xbf16, #tpu.memory_space<vmem>>, vector<1x32x8xbf16>
    %354 = vector.shape_cast %353 : vector<1x32x8xbf16> to vector<32x8xbf16>
    %355 = arith.truncf %272 : vector<24x32xf32> to vector<24x32xbf16>
    %cst_191 = arith.constant dense<0.000000e+00> : vector<24x8xf32>
    %356 = tpu.matmul %355, %354, %cst_191 {dimension_numbers = #tpu.dot_dimension_numbers<[1], [0], [0], [1], [0, 0, 1, 1], [], []>} : vector<24x32xbf16>, vector<32x8xbf16>, vector<24x8xf32> -> vector<24x8xf32>
    %c2_192 = arith.constant 2 : index
    %c0_193 = arith.constant 0 : index
    %c0_194 = arith.constant 0 : index
    %357 = vector.load %arg23[%c2_192, %c0_193, %c0_194] : memref<4x1x8xf32, #tpu.memory_space<vmem>>, vector<1x1x8xf32>
    %358 = vector.shape_cast %357 : vector<1x1x8xf32> to vector<1x8xf32>
    %359 = vector.broadcast %358 : vector<1x8xf32> to vector<24x8xf32>
    %360 = arith.addf %356, %359 : vector<24x8xf32>
    %c2_195 = arith.constant 2 : index
    %c0_196 = arith.constant 0 : index
    %c0_197 = arith.constant 0 : index
    %361 = vector.load %arg24[%c2_195, %c0_196, %c0_197] : memref<4x32x8xbf16, #tpu.memory_space<vmem>>, vector<1x32x8xbf16>
    %362 = vector.shape_cast %361 : vector<1x32x8xbf16> to vector<32x8xbf16>
    %363 = arith.truncf %272 : vector<24x32xf32> to vector<24x32xbf16>
    %cst_198 = arith.constant dense<0.000000e+00> : vector<24x8xf32>
    %364 = tpu.matmul %363, %362, %cst_198 {dimension_numbers = #tpu.dot_dimension_numbers<[1], [0], [0], [1], [0, 0, 1, 1], [], []>} : vector<24x32xbf16>, vector<32x8xbf16>, vector<24x8xf32> -> vector<24x8xf32>
    %c2_199 = arith.constant 2 : index
    %c0_200 = arith.constant 0 : index
    %c0_201 = arith.constant 0 : index
    %365 = vector.load %arg25[%c2_199, %c0_200, %c0_201] : memref<4x32x8xbf16, #tpu.memory_space<vmem>>, vector<1x32x8xbf16>
    %366 = vector.shape_cast %365 : vector<1x32x8xbf16> to vector<32x8xbf16>
    %367 = arith.truncf %272 : vector<24x32xf32> to vector<24x32xbf16>
    %cst_202 = arith.constant dense<0.000000e+00> : vector<24x8xf32>
    %368 = tpu.matmul %367, %366, %cst_202 {dimension_numbers = #tpu.dot_dimension_numbers<[1], [0], [0], [1], [0, 0, 1, 1], [], []>} : vector<24x32xbf16>, vector<32x8xbf16>, vector<24x8xf32> -> vector<24x8xf32>
    %c2_203 = arith.constant 2 : index
    %c0_204 = arith.constant 0 : index
    %c0_205 = arith.constant 0 : index
    %369 = vector.load %arg26[%c2_203, %c0_204, %c0_205] : memref<4x1x8xf32, #tpu.memory_space<vmem>>, vector<1x1x8xf32>
    %370 = vector.shape_cast %369 : vector<1x1x8xf32> to vector<1x8xf32>
    %371 = vector.broadcast %370 : vector<1x8xf32> to vector<24x8xf32>
    %372 = arith.addf %368, %371 : vector<24x8xf32>
    %373 = arith.truncf %360 : vector<24x8xf32> to vector<24x8xbf16>
    %374 = arith.truncf %364 : vector<24x8xf32> to vector<24x8xbf16>
    %cst_206 = arith.constant dense<0.000000e+00> : vector<24x24xf32>
    %375 = tpu.matmul %373, %374, %cst_206 {dimension_numbers = #tpu.dot_dimension_numbers<[1], [1], [0], [0], [0, 0, 1, 0], [], []>} : vector<24x8xbf16>, vector<24x8xbf16>, vector<24x24xf32> -> vector<24x24xf32>
    %cst_207 = arith.constant 0.353553385 : f32
    %376 = vector.broadcast %cst_207 : f32 to vector<24x24xf32>
    %377 = arith.mulf %375, %376 : vector<24x24xf32>
    %378 = vector.broadcast %0 : vector<1x24xf32> to vector<24x24xf32>
    %379 = arith.addf %377, %378 : vector<24x24xf32>
    %cst_208 = arith.constant dense<0xFF800000> : vector<24xf32>
    %380 = vector.multi_reduction <maximumf>, %379, %cst_208 [1] : vector<24x24xf32> to vector<24xf32>
    %381 = vector.shape_cast %380 : vector<24xf32> to vector<24x1xf32>
    %382 = vector.broadcast %381 : vector<24x1xf32> to vector<24x24xf32>
    %383 = arith.subf %379, %382 : vector<24x24xf32>
    %384 = math.exp %383 : vector<24x24xf32>
    %cst_209 = arith.constant dense<0.000000e+00> : vector<24xf32>
    %385 = vector.multi_reduction <add>, %384, %cst_209 [1] : vector<24x24xf32> to vector<24xf32>
    %386 = vector.shape_cast %385 : vector<24xf32> to vector<24x1xf32>
    %387 = tpu.reciprocal %386 {approx = true} : vector<24x1xf32> -> vector<24x1xf32>
    %388 = vector.broadcast %387 : vector<24x1xf32> to vector<24x24xf32>
    %389 = arith.mulf %384, %388 : vector<24x24xf32>
    %390 = arith.truncf %389 : vector<24x24xf32> to vector<24x24xbf16>
    %391 = arith.truncf %372 : vector<24x8xf32> to vector<24x8xbf16>
    %cst_210 = arith.constant dense<0.000000e+00> : vector<24x8xf32>
    %392 = tpu.matmul %390, %391, %cst_210 {dimension_numbers = #tpu.dot_dimension_numbers<[1], [0], [0], [1], [0, 0, 1, 1], [], []>} : vector<24x24xbf16>, vector<24x8xbf16>, vector<24x8xf32> -> vector<24x8xf32>
    %c3_211 = arith.constant 3 : index
    %c0_212 = arith.constant 0 : index
    %c0_213 = arith.constant 0 : index
    %393 = vector.load %arg22[%c3_211, %c0_212, %c0_213] : memref<4x32x8xbf16, #tpu.memory_space<vmem>>, vector<1x32x8xbf16>
    %394 = vector.shape_cast %393 : vector<1x32x8xbf16> to vector<32x8xbf16>
    %395 = arith.truncf %272 : vector<24x32xf32> to vector<24x32xbf16>
    %cst_214 = arith.constant dense<0.000000e+00> : vector<24x8xf32>
    %396 = tpu.matmul %395, %394, %cst_214 {dimension_numbers = #tpu.dot_dimension_numbers<[1], [0], [0], [1], [0, 0, 1, 1], [], []>} : vector<24x32xbf16>, vector<32x8xbf16>, vector<24x8xf32> -> vector<24x8xf32>
    %c3_215 = arith.constant 3 : index
    %c0_216 = arith.constant 0 : index
    %c0_217 = arith.constant 0 : index
    %397 = vector.load %arg23[%c3_215, %c0_216, %c0_217] : memref<4x1x8xf32, #tpu.memory_space<vmem>>, vector<1x1x8xf32>
    %398 = vector.shape_cast %397 : vector<1x1x8xf32> to vector<1x8xf32>
    %399 = vector.broadcast %398 : vector<1x8xf32> to vector<24x8xf32>
    %400 = arith.addf %396, %399 : vector<24x8xf32>
    %c3_218 = arith.constant 3 : index
    %c0_219 = arith.constant 0 : index
    %c0_220 = arith.constant 0 : index
    %401 = vector.load %arg24[%c3_218, %c0_219, %c0_220] : memref<4x32x8xbf16, #tpu.memory_space<vmem>>, vector<1x32x8xbf16>
    %402 = vector.shape_cast %401 : vector<1x32x8xbf16> to vector<32x8xbf16>
    %403 = arith.truncf %272 : vector<24x32xf32> to vector<24x32xbf16>
    %cst_221 = arith.constant dense<0.000000e+00> : vector<24x8xf32>
    %404 = tpu.matmul %403, %402, %cst_221 {dimension_numbers = #tpu.dot_dimension_numbers<[1], [0], [0], [1], [0, 0, 1, 1], [], []>} : vector<24x32xbf16>, vector<32x8xbf16>, vector<24x8xf32> -> vector<24x8xf32>
    %c3_222 = arith.constant 3 : index
    %c0_223 = arith.constant 0 : index
    %c0_224 = arith.constant 0 : index
    %405 = vector.load %arg25[%c3_222, %c0_223, %c0_224] : memref<4x32x8xbf16, #tpu.memory_space<vmem>>, vector<1x32x8xbf16>
    %406 = vector.shape_cast %405 : vector<1x32x8xbf16> to vector<32x8xbf16>
    %407 = arith.truncf %272 : vector<24x32xf32> to vector<24x32xbf16>
    %cst_225 = arith.constant dense<0.000000e+00> : vector<24x8xf32>
    %408 = tpu.matmul %407, %406, %cst_225 {dimension_numbers = #tpu.dot_dimension_numbers<[1], [0], [0], [1], [0, 0, 1, 1], [], []>} : vector<24x32xbf16>, vector<32x8xbf16>, vector<24x8xf32> -> vector<24x8xf32>
    %c3_226 = arith.constant 3 : index
    %c0_227 = arith.constant 0 : index
    %c0_228 = arith.constant 0 : index
    %409 = vector.load %arg26[%c3_226, %c0_227, %c0_228] : memref<4x1x8xf32, #tpu.memory_space<vmem>>, vector<1x1x8xf32>
    %410 = vector.shape_cast %409 : vector<1x1x8xf32> to vector<1x8xf32>
    %411 = vector.broadcast %410 : vector<1x8xf32> to vector<24x8xf32>
    %412 = arith.addf %408, %411 : vector<24x8xf32>
    %413 = arith.truncf %400 : vector<24x8xf32> to vector<24x8xbf16>
    %414 = arith.truncf %404 : vector<24x8xf32> to vector<24x8xbf16>
    %cst_229 = arith.constant dense<0.000000e+00> : vector<24x24xf32>
    %415 = tpu.matmul %413, %414, %cst_229 {dimension_numbers = #tpu.dot_dimension_numbers<[1], [1], [0], [0], [0, 0, 1, 0], [], []>} : vector<24x8xbf16>, vector<24x8xbf16>, vector<24x24xf32> -> vector<24x24xf32>
    %cst_230 = arith.constant 0.353553385 : f32
    %416 = vector.broadcast %cst_230 : f32 to vector<24x24xf32>
    %417 = arith.mulf %415, %416 : vector<24x24xf32>
    %418 = vector.broadcast %0 : vector<1x24xf32> to vector<24x24xf32>
    %419 = arith.addf %417, %418 : vector<24x24xf32>
    %cst_231 = arith.constant dense<0xFF800000> : vector<24xf32>
    %420 = vector.multi_reduction <maximumf>, %419, %cst_231 [1] : vector<24x24xf32> to vector<24xf32>
    %421 = vector.shape_cast %420 : vector<24xf32> to vector<24x1xf32>
    %422 = vector.broadcast %421 : vector<24x1xf32> to vector<24x24xf32>
    %423 = arith.subf %419, %422 : vector<24x24xf32>
    %424 = math.exp %423 : vector<24x24xf32>
    %cst_232 = arith.constant dense<0.000000e+00> : vector<24xf32>
    %425 = vector.multi_reduction <add>, %424, %cst_232 [1] : vector<24x24xf32> to vector<24xf32>
    %426 = vector.shape_cast %425 : vector<24xf32> to vector<24x1xf32>
    %427 = tpu.reciprocal %426 {approx = true} : vector<24x1xf32> -> vector<24x1xf32>
    %428 = vector.broadcast %427 : vector<24x1xf32> to vector<24x24xf32>
    %429 = arith.mulf %424, %428 : vector<24x24xf32>
    %430 = arith.truncf %429 : vector<24x24xf32> to vector<24x24xbf16>
    %431 = arith.truncf %412 : vector<24x8xf32> to vector<24x8xbf16>
    %cst_233 = arith.constant dense<0.000000e+00> : vector<24x8xf32>
    %432 = tpu.matmul %430, %431, %cst_233 {dimension_numbers = #tpu.dot_dimension_numbers<[1], [0], [0], [1], [0, 0, 1, 1], [], []>} : vector<24x24xbf16>, vector<24x8xbf16>, vector<24x8xf32> -> vector<24x8xf32>
    %433 = tpu.concatenate %312, %352, %392, %432 in 1 : vector<24x8xf32>, vector<24x8xf32>, vector<24x8xf32>, vector<24x8xf32> -> vector<24x32xf32>
    %c0_234 = arith.constant 0 : index
    %c0_235 = arith.constant 0 : index
    %434 = vector.load %arg27[%c0_234, %c0_235] : memref<32x32xbf16, #tpu.memory_space<vmem>>, vector<32x32xbf16>
    %435 = arith.truncf %433 : vector<24x32xf32> to vector<24x32xbf16>
    %cst_236 = arith.constant dense<0.000000e+00> : vector<24x32xf32>
    %436 = tpu.matmul %435, %434, %cst_236 {dimension_numbers = #tpu.dot_dimension_numbers<[1], [0], [0], [1], [0, 0, 1, 1], [], []>} : vector<24x32xbf16>, vector<32x32xbf16>, vector<24x32xf32> -> vector<24x32xf32>
    %c0_237 = arith.constant 0 : index
    %c0_238 = arith.constant 0 : index
    %437 = vector.load %arg28[%c0_237, %c0_238] : memref<1x32xf32, #tpu.memory_space<vmem>>, vector<1x32xf32>
    %438 = vector.broadcast %437 : vector<1x32xf32> to vector<24x32xf32>
    %439 = arith.addf %436, %438 : vector<24x32xf32>
    %440 = arith.addf %248, %439 : vector<24x32xf32>
    %c0_239 = arith.constant 0 : index
    %c0_240 = arith.constant 0 : index
    %441 = vector.load %arg29[%c0_239, %c0_240] : memref<1x32xf32, #tpu.memory_space<vmem>>, vector<1x32xf32>
    %c0_241 = arith.constant 0 : index
    %c0_242 = arith.constant 0 : index
    %442 = vector.load %arg30[%c0_241, %c0_242] : memref<1x32xf32, #tpu.memory_space<vmem>>, vector<1x32xf32>
    %cst_243 = arith.constant dense<0.000000e+00> : vector<24xf32>
    %443 = vector.multi_reduction <add>, %440, %cst_243 [1] : vector<24x32xf32> to vector<24xf32>
    %444 = vector.shape_cast %443 : vector<24xf32> to vector<24x1xf32>
    %cst_244 = arith.constant 3.200000e+01 : f32
    %445 = vector.broadcast %cst_244 : f32 to vector<24x1xf32>
    %446 = arith.divf %444, %445 : vector<24x1xf32>
    %447 = vector.broadcast %446 : vector<24x1xf32> to vector<24x32xf32>
    %448 = arith.subf %440, %447 : vector<24x32xf32>
    %449 = arith.mulf %448, %448 : vector<24x32xf32>
    %cst_245 = arith.constant dense<0.000000e+00> : vector<24xf32>
    %450 = vector.multi_reduction <add>, %449, %cst_245 [1] : vector<24x32xf32> to vector<24xf32>
    %451 = vector.shape_cast %450 : vector<24xf32> to vector<24x1xf32>
    %cst_246 = arith.constant 3.200000e+01 : f32
    %452 = vector.broadcast %cst_246 : f32 to vector<24x1xf32>
    %453 = arith.divf %451, %452 : vector<24x1xf32>
    %454 = vector.broadcast %446 : vector<24x1xf32> to vector<24x32xf32>
    %455 = arith.subf %440, %454 : vector<24x32xf32>
    %cst_247 = arith.constant 9.99999974E-6 : f32
    %456 = vector.broadcast %cst_247 : f32 to vector<24x1xf32>
    %457 = arith.addf %453, %456 : vector<24x1xf32>
    %458 = math.rsqrt %457 : vector<24x1xf32>
    %459 = vector.broadcast %458 : vector<24x1xf32> to vector<24x32xf32>
    %460 = arith.mulf %455, %459 : vector<24x32xf32>
    %461 = vector.broadcast %441 : vector<1x32xf32> to vector<24x32xf32>
    %462 = arith.mulf %460, %461 : vector<24x32xf32>
    %463 = vector.broadcast %442 : vector<1x32xf32> to vector<24x32xf32>
    %464 = arith.addf %462, %463 : vector<24x32xf32>
    %c0_248 = arith.constant 0 : index
    %c0_249 = arith.constant 0 : index
    %465 = vector.load %arg31[%c0_248, %c0_249] : memref<32x64xbf16, #tpu.memory_space<vmem>>, vector<32x64xbf16>
    %466 = arith.truncf %464 : vector<24x32xf32> to vector<24x32xbf16>
    %cst_250 = arith.constant dense<0.000000e+00> : vector<24x64xf32>
    %467 = tpu.matmul %466, %465, %cst_250 {dimension_numbers = #tpu.dot_dimension_numbers<[1], [0], [0], [1], [0, 0, 1, 1], [], []>} : vector<24x32xbf16>, vector<32x64xbf16>, vector<24x64xf32> -> vector<24x64xf32>
    %c0_251 = arith.constant 0 : index
    %c0_252 = arith.constant 0 : index
    %468 = vector.load %arg32[%c0_251, %c0_252] : memref<1x64xf32, #tpu.memory_space<vmem>>, vector<1x64xf32>
    %469 = vector.broadcast %468 : vector<1x64xf32> to vector<24x64xf32>
    %470 = arith.addf %467, %469 : vector<24x64xf32>
    %471 = arith.mulf %470, %470 : vector<24x64xf32>
    %472 = arith.mulf %470, %471 : vector<24x64xf32>
    %cst_253 = arith.constant 4.471500e-02 : f32
    %473 = vector.broadcast %cst_253 : f32 to vector<24x64xf32>
    %474 = arith.mulf %473, %472 : vector<24x64xf32>
    %475 = arith.addf %470, %474 : vector<24x64xf32>
    %cst_254 = arith.constant 0.797884583 : f32
    %476 = vector.broadcast %cst_254 : f32 to vector<24x64xf32>
    %477 = arith.mulf %476, %475 : vector<24x64xf32>
    %478 = math.tanh %477 : vector<24x64xf32>
    %cst_255 = arith.constant 1.000000e+00 : f32
    %479 = vector.broadcast %cst_255 : f32 to vector<24x64xf32>
    %480 = arith.addf %479, %478 : vector<24x64xf32>
    %cst_256 = arith.constant 5.000000e-01 : f32
    %481 = vector.broadcast %cst_256 : f32 to vector<24x64xf32>
    %482 = arith.mulf %481, %480 : vector<24x64xf32>
    %483 = arith.mulf %470, %482 : vector<24x64xf32>
    %c0_257 = arith.constant 0 : index
    %c0_258 = arith.constant 0 : index
    %484 = vector.load %arg33[%c0_257, %c0_258] : memref<64x32xbf16, #tpu.memory_space<vmem>>, vector<64x32xbf16>
    %485 = arith.truncf %483 : vector<24x64xf32> to vector<24x64xbf16>
    %cst_259 = arith.constant dense<0.000000e+00> : vector<24x32xf32>
    %486 = tpu.matmul %485, %484, %cst_259 {dimension_numbers = #tpu.dot_dimension_numbers<[1], [0], [0], [1], [0, 0, 1, 1], [], []>} : vector<24x64xbf16>, vector<64x32xbf16>, vector<24x32xf32> -> vector<24x32xf32>
    %c0_260 = arith.constant 0 : index
    %c0_261 = arith.constant 0 : index
    %487 = vector.load %arg34[%c0_260, %c0_261] : memref<1x32xf32, #tpu.memory_space<vmem>>, vector<1x32xf32>
    %488 = vector.broadcast %487 : vector<1x32xf32> to vector<24x32xf32>
    %489 = arith.addf %486, %488 : vector<24x32xf32>
    %490 = arith.addf %440, %489 : vector<24x32xf32>
    %c0_262 = arith.constant 0 : index
    %c0_263 = arith.constant 0 : index
    %491 = vector.load %arg35[%c0_262, %c0_263] : memref<1x32xf32, #tpu.memory_space<vmem>>, vector<1x32xf32>
    %c0_264 = arith.constant 0 : index
    %c0_265 = arith.constant 0 : index
    %492 = vector.load %arg36[%c0_264, %c0_265] : memref<1x32xf32, #tpu.memory_space<vmem>>, vector<1x32xf32>
    %cst_266 = arith.constant dense<0.000000e+00> : vector<24xf32>
    %493 = vector.multi_reduction <add>, %490, %cst_266 [1] : vector<24x32xf32> to vector<24xf32>
    %494 = vector.shape_cast %493 : vector<24xf32> to vector<24x1xf32>
    %cst_267 = arith.constant 3.200000e+01 : f32
    %495 = vector.broadcast %cst_267 : f32 to vector<24x1xf32>
    %496 = arith.divf %494, %495 : vector<24x1xf32>
    %497 = vector.broadcast %496 : vector<24x1xf32> to vector<24x32xf32>
    %498 = arith.subf %490, %497 : vector<24x32xf32>
    %499 = arith.mulf %498, %498 : vector<24x32xf32>
    %cst_268 = arith.constant dense<0.000000e+00> : vector<24xf32>
    %500 = vector.multi_reduction <add>, %499, %cst_268 [1] : vector<24x32xf32> to vector<24xf32>
    %501 = vector.shape_cast %500 : vector<24xf32> to vector<24x1xf32>
    %cst_269 = arith.constant 3.200000e+01 : f32
    %502 = vector.broadcast %cst_269 : f32 to vector<24x1xf32>
    %503 = arith.divf %501, %502 : vector<24x1xf32>
    %504 = vector.broadcast %496 : vector<24x1xf32> to vector<24x32xf32>
    %505 = arith.subf %490, %504 : vector<24x32xf32>
    %cst_270 = arith.constant 9.99999974E-6 : f32
    %506 = vector.broadcast %cst_270 : f32 to vector<24x1xf32>
    %507 = arith.addf %503, %506 : vector<24x1xf32>
    %508 = math.rsqrt %507 : vector<24x1xf32>
    %509 = vector.broadcast %508 : vector<24x1xf32> to vector<24x32xf32>
    %510 = arith.mulf %505, %509 : vector<24x32xf32>
    %511 = vector.broadcast %491 : vector<1x32xf32> to vector<24x32xf32>
    %512 = arith.mulf %510, %511 : vector<24x32xf32>
    %513 = vector.broadcast %492 : vector<1x32xf32> to vector<24x32xf32>
    %514 = arith.addf %512, %513 : vector<24x32xf32>
    %c0_271 = arith.constant 0 : index
    %c0_272 = arith.constant 0 : index
    %515 = vector.load %arg4[%c0_271, %c0_272] : memref<8x32xf32, #tpu.memory_space<vmem>>, vector<8x32xf32>
    %c0_273 = arith.constant 0 : index
    %c0_274 = arith.constant 0 : index
    %c0_275 = arith.constant 0 : index
    %516 = vector.load %arg37[%c0_273, %c0_274, %c0_275] : memref<4x32x8xbf16, #tpu.memory_space<vmem>>, vector<1x32x8xbf16>
    %517 = vector.shape_cast %516 : vector<1x32x8xbf16> to vector<32x8xbf16>
    %518 = arith.truncf %515 : vector<8x32xf32> to vector<8x32xbf16>
    %cst_276 = arith.constant dense<0.000000e+00> : vector<8x8xf32>
    %519 = tpu.matmul %518, %517, %cst_276 {dimension_numbers = #tpu.dot_dimension_numbers<[1], [0], [0], [1], [0, 0, 1, 1], [], []>} : vector<8x32xbf16>, vector<32x8xbf16>, vector<8x8xf32> -> vector<8x8xf32>
    %c0_277 = arith.constant 0 : index
    %c0_278 = arith.constant 0 : index
    %c0_279 = arith.constant 0 : index
    %520 = vector.load %arg38[%c0_277, %c0_278, %c0_279] : memref<4x1x8xf32, #tpu.memory_space<vmem>>, vector<1x1x8xf32>
    %521 = vector.shape_cast %520 : vector<1x1x8xf32> to vector<1x8xf32>
    %522 = vector.broadcast %521 : vector<1x8xf32> to vector<8x8xf32>
    %523 = arith.addf %519, %522 : vector<8x8xf32>
    %c0_280 = arith.constant 0 : index
    %c0_281 = arith.constant 0 : index
    %c0_282 = arith.constant 0 : index
    %524 = vector.load %arg39[%c0_280, %c0_281, %c0_282] : memref<4x32x8xbf16, #tpu.memory_space<vmem>>, vector<1x32x8xbf16>
    %525 = vector.shape_cast %524 : vector<1x32x8xbf16> to vector<32x8xbf16>
    %526 = arith.truncf %515 : vector<8x32xf32> to vector<8x32xbf16>
    %cst_283 = arith.constant dense<0.000000e+00> : vector<8x8xf32>
    %527 = tpu.matmul %526, %525, %cst_283 {dimension_numbers = #tpu.dot_dimension_numbers<[1], [0], [0], [1], [0, 0, 1, 1], [], []>} : vector<8x32xbf16>, vector<32x8xbf16>, vector<8x8xf32> -> vector<8x8xf32>
    %c0_284 = arith.constant 0 : index
    %c0_285 = arith.constant 0 : index
    %c0_286 = arith.constant 0 : index
    %528 = vector.load %arg40[%c0_284, %c0_285, %c0_286] : memref<4x1x8xf32, #tpu.memory_space<vmem>>, vector<1x1x8xf32>
    %529 = vector.shape_cast %528 : vector<1x1x8xf32> to vector<1x8xf32>
    %530 = vector.broadcast %529 : vector<1x8xf32> to vector<8x8xf32>
    %531 = arith.addf %527, %530 : vector<8x8xf32>
    %c0_287 = arith.constant 0 : index
    %c0_288 = arith.constant 0 : index
    %c0_289 = arith.constant 0 : index
    %532 = vector.load %arg41[%c0_287, %c0_288, %c0_289] : memref<4x32x8xbf16, #tpu.memory_space<vmem>>, vector<1x32x8xbf16>
    %533 = vector.shape_cast %532 : vector<1x32x8xbf16> to vector<32x8xbf16>
    %534 = arith.truncf %515 : vector<8x32xf32> to vector<8x32xbf16>
    %cst_290 = arith.constant dense<0.000000e+00> : vector<8x8xf32>
    %535 = tpu.matmul %534, %533, %cst_290 {dimension_numbers = #tpu.dot_dimension_numbers<[1], [0], [0], [1], [0, 0, 1, 1], [], []>} : vector<8x32xbf16>, vector<32x8xbf16>, vector<8x8xf32> -> vector<8x8xf32>
    %c0_291 = arith.constant 0 : index
    %c0_292 = arith.constant 0 : index
    %c0_293 = arith.constant 0 : index
    %536 = vector.load %arg42[%c0_291, %c0_292, %c0_293] : memref<4x1x8xf32, #tpu.memory_space<vmem>>, vector<1x1x8xf32>
    %537 = vector.shape_cast %536 : vector<1x1x8xf32> to vector<1x8xf32>
    %538 = vector.broadcast %537 : vector<1x8xf32> to vector<8x8xf32>
    %539 = arith.addf %535, %538 : vector<8x8xf32>
    %540 = arith.truncf %523 : vector<8x8xf32> to vector<8x8xbf16>
    %541 = arith.truncf %531 : vector<8x8xf32> to vector<8x8xbf16>
    %cst_294 = arith.constant dense<0.000000e+00> : vector<8x8xf32>
    %542 = tpu.matmul %540, %541, %cst_294 {dimension_numbers = #tpu.dot_dimension_numbers<[1], [1], [0], [0], [0, 0, 1, 0], [], []>} : vector<8x8xbf16>, vector<8x8xbf16>, vector<8x8xf32> -> vector<8x8xf32>
    %cst_295 = arith.constant 0.353553385 : f32
    %543 = vector.broadcast %cst_295 : f32 to vector<8x8xf32>
    %544 = arith.mulf %542, %543 : vector<8x8xf32>
    %cst_296 = arith.constant dense<0xFF800000> : vector<8xf32>
    %545 = vector.multi_reduction <maximumf>, %544, %cst_296 [1] : vector<8x8xf32> to vector<8xf32>
    %546 = vector.shape_cast %545 : vector<8xf32> to vector<8x1xf32>
    %547 = vector.broadcast %546 : vector<8x1xf32> to vector<8x8xf32>
    %548 = arith.subf %544, %547 : vector<8x8xf32>
    %549 = math.exp %548 : vector<8x8xf32>
    %cst_297 = arith.constant dense<0.000000e+00> : vector<8xf32>
    %550 = vector.multi_reduction <add>, %549, %cst_297 [1] : vector<8x8xf32> to vector<8xf32>
    %551 = vector.shape_cast %550 : vector<8xf32> to vector<8x1xf32>
    %552 = tpu.reciprocal %551 {approx = true} : vector<8x1xf32> -> vector<8x1xf32>
    %553 = vector.broadcast %552 : vector<8x1xf32> to vector<8x8xf32>
    %554 = arith.mulf %549, %553 : vector<8x8xf32>
    %555 = arith.truncf %554 : vector<8x8xf32> to vector<8x8xbf16>
    %556 = arith.truncf %539 : vector<8x8xf32> to vector<8x8xbf16>
    %cst_298 = arith.constant dense<0.000000e+00> : vector<8x8xf32>
    %557 = tpu.matmul %555, %556, %cst_298 {dimension_numbers = #tpu.dot_dimension_numbers<[1], [0], [0], [1], [0, 0, 1, 1], [], []>} : vector<8x8xbf16>, vector<8x8xbf16>, vector<8x8xf32> -> vector<8x8xf32>
    %c1_299 = arith.constant 1 : index
    %c0_300 = arith.constant 0 : index
    %c0_301 = arith.constant 0 : index
    %558 = vector.load %arg37[%c1_299, %c0_300, %c0_301] : memref<4x32x8xbf16, #tpu.memory_space<vmem>>, vector<1x32x8xbf16>
    %559 = vector.shape_cast %558 : vector<1x32x8xbf16> to vector<32x8xbf16>
    %560 = arith.truncf %515 : vector<8x32xf32> to vector<8x32xbf16>
    %cst_302 = arith.constant dense<0.000000e+00> : vector<8x8xf32>
    %561 = tpu.matmul %560, %559, %cst_302 {dimension_numbers = #tpu.dot_dimension_numbers<[1], [0], [0], [1], [0, 0, 1, 1], [], []>} : vector<8x32xbf16>, vector<32x8xbf16>, vector<8x8xf32> -> vector<8x8xf32>
    %c1_303 = arith.constant 1 : index
    %c0_304 = arith.constant 0 : index
    %c0_305 = arith.constant 0 : index
    %562 = vector.load %arg38[%c1_303, %c0_304, %c0_305] : memref<4x1x8xf32, #tpu.memory_space<vmem>>, vector<1x1x8xf32>
    %563 = vector.shape_cast %562 : vector<1x1x8xf32> to vector<1x8xf32>
    %564 = vector.broadcast %563 : vector<1x8xf32> to vector<8x8xf32>
    %565 = arith.addf %561, %564 : vector<8x8xf32>
    %c1_306 = arith.constant 1 : index
    %c0_307 = arith.constant 0 : index
    %c0_308 = arith.constant 0 : index
    %566 = vector.load %arg39[%c1_306, %c0_307, %c0_308] : memref<4x32x8xbf16, #tpu.memory_space<vmem>>, vector<1x32x8xbf16>
    %567 = vector.shape_cast %566 : vector<1x32x8xbf16> to vector<32x8xbf16>
    %568 = arith.truncf %515 : vector<8x32xf32> to vector<8x32xbf16>
    %cst_309 = arith.constant dense<0.000000e+00> : vector<8x8xf32>
    %569 = tpu.matmul %568, %567, %cst_309 {dimension_numbers = #tpu.dot_dimension_numbers<[1], [0], [0], [1], [0, 0, 1, 1], [], []>} : vector<8x32xbf16>, vector<32x8xbf16>, vector<8x8xf32> -> vector<8x8xf32>
    %c1_310 = arith.constant 1 : index
    %c0_311 = arith.constant 0 : index
    %c0_312 = arith.constant 0 : index
    %570 = vector.load %arg40[%c1_310, %c0_311, %c0_312] : memref<4x1x8xf32, #tpu.memory_space<vmem>>, vector<1x1x8xf32>
    %571 = vector.shape_cast %570 : vector<1x1x8xf32> to vector<1x8xf32>
    %572 = vector.broadcast %571 : vector<1x8xf32> to vector<8x8xf32>
    %573 = arith.addf %569, %572 : vector<8x8xf32>
    %c1_313 = arith.constant 1 : index
    %c0_314 = arith.constant 0 : index
    %c0_315 = arith.constant 0 : index
    %574 = vector.load %arg41[%c1_313, %c0_314, %c0_315] : memref<4x32x8xbf16, #tpu.memory_space<vmem>>, vector<1x32x8xbf16>
    %575 = vector.shape_cast %574 : vector<1x32x8xbf16> to vector<32x8xbf16>
    %576 = arith.truncf %515 : vector<8x32xf32> to vector<8x32xbf16>
    %cst_316 = arith.constant dense<0.000000e+00> : vector<8x8xf32>
    %577 = tpu.matmul %576, %575, %cst_316 {dimension_numbers = #tpu.dot_dimension_numbers<[1], [0], [0], [1], [0, 0, 1, 1], [], []>} : vector<8x32xbf16>, vector<32x8xbf16>, vector<8x8xf32> -> vector<8x8xf32>
    %c1_317 = arith.constant 1 : index
    %c0_318 = arith.constant 0 : index
    %c0_319 = arith.constant 0 : index
    %578 = vector.load %arg42[%c1_317, %c0_318, %c0_319] : memref<4x1x8xf32, #tpu.memory_space<vmem>>, vector<1x1x8xf32>
    %579 = vector.shape_cast %578 : vector<1x1x8xf32> to vector<1x8xf32>
    %580 = vector.broadcast %579 : vector<1x8xf32> to vector<8x8xf32>
    %581 = arith.addf %577, %580 : vector<8x8xf32>
    %582 = arith.truncf %565 : vector<8x8xf32> to vector<8x8xbf16>
    %583 = arith.truncf %573 : vector<8x8xf32> to vector<8x8xbf16>
    %cst_320 = arith.constant dense<0.000000e+00> : vector<8x8xf32>
    %584 = tpu.matmul %582, %583, %cst_320 {dimension_numbers = #tpu.dot_dimension_numbers<[1], [1], [0], [0], [0, 0, 1, 0], [], []>} : vector<8x8xbf16>, vector<8x8xbf16>, vector<8x8xf32> -> vector<8x8xf32>
    %cst_321 = arith.constant 0.353553385 : f32
    %585 = vector.broadcast %cst_321 : f32 to vector<8x8xf32>
    %586 = arith.mulf %584, %585 : vector<8x8xf32>
    %cst_322 = arith.constant dense<0xFF800000> : vector<8xf32>
    %587 = vector.multi_reduction <maximumf>, %586, %cst_322 [1] : vector<8x8xf32> to vector<8xf32>
    %588 = vector.shape_cast %587 : vector<8xf32> to vector<8x1xf32>
    %589 = vector.broadcast %588 : vector<8x1xf32> to vector<8x8xf32>
    %590 = arith.subf %586, %589 : vector<8x8xf32>
    %591 = math.exp %590 : vector<8x8xf32>
    %cst_323 = arith.constant dense<0.000000e+00> : vector<8xf32>
    %592 = vector.multi_reduction <add>, %591, %cst_323 [1] : vector<8x8xf32> to vector<8xf32>
    %593 = vector.shape_cast %592 : vector<8xf32> to vector<8x1xf32>
    %594 = tpu.reciprocal %593 {approx = true} : vector<8x1xf32> -> vector<8x1xf32>
    %595 = vector.broadcast %594 : vector<8x1xf32> to vector<8x8xf32>
    %596 = arith.mulf %591, %595 : vector<8x8xf32>
    %597 = arith.truncf %596 : vector<8x8xf32> to vector<8x8xbf16>
    %598 = arith.truncf %581 : vector<8x8xf32> to vector<8x8xbf16>
    %cst_324 = arith.constant dense<0.000000e+00> : vector<8x8xf32>
    %599 = tpu.matmul %597, %598, %cst_324 {dimension_numbers = #tpu.dot_dimension_numbers<[1], [0], [0], [1], [0, 0, 1, 1], [], []>} : vector<8x8xbf16>, vector<8x8xbf16>, vector<8x8xf32> -> vector<8x8xf32>
    %c2_325 = arith.constant 2 : index
    %c0_326 = arith.constant 0 : index
    %c0_327 = arith.constant 0 : index
    %600 = vector.load %arg37[%c2_325, %c0_326, %c0_327] : memref<4x32x8xbf16, #tpu.memory_space<vmem>>, vector<1x32x8xbf16>
    %601 = vector.shape_cast %600 : vector<1x32x8xbf16> to vector<32x8xbf16>
    %602 = arith.truncf %515 : vector<8x32xf32> to vector<8x32xbf16>
    %cst_328 = arith.constant dense<0.000000e+00> : vector<8x8xf32>
    %603 = tpu.matmul %602, %601, %cst_328 {dimension_numbers = #tpu.dot_dimension_numbers<[1], [0], [0], [1], [0, 0, 1, 1], [], []>} : vector<8x32xbf16>, vector<32x8xbf16>, vector<8x8xf32> -> vector<8x8xf32>
    %c2_329 = arith.constant 2 : index
    %c0_330 = arith.constant 0 : index
    %c0_331 = arith.constant 0 : index
    %604 = vector.load %arg38[%c2_329, %c0_330, %c0_331] : memref<4x1x8xf32, #tpu.memory_space<vmem>>, vector<1x1x8xf32>
    %605 = vector.shape_cast %604 : vector<1x1x8xf32> to vector<1x8xf32>
    %606 = vector.broadcast %605 : vector<1x8xf32> to vector<8x8xf32>
    %607 = arith.addf %603, %606 : vector<8x8xf32>
    %c2_332 = arith.constant 2 : index
    %c0_333 = arith.constant 0 : index
    %c0_334 = arith.constant 0 : index
    %608 = vector.load %arg39[%c2_332, %c0_333, %c0_334] : memref<4x32x8xbf16, #tpu.memory_space<vmem>>, vector<1x32x8xbf16>
    %609 = vector.shape_cast %608 : vector<1x32x8xbf16> to vector<32x8xbf16>
    %610 = arith.truncf %515 : vector<8x32xf32> to vector<8x32xbf16>
    %cst_335 = arith.constant dense<0.000000e+00> : vector<8x8xf32>
    %611 = tpu.matmul %610, %609, %cst_335 {dimension_numbers = #tpu.dot_dimension_numbers<[1], [0], [0], [1], [0, 0, 1, 1], [], []>} : vector<8x32xbf16>, vector<32x8xbf16>, vector<8x8xf32> -> vector<8x8xf32>
    %c2_336 = arith.constant 2 : index
    %c0_337 = arith.constant 0 : index
    %c0_338 = arith.constant 0 : index
    %612 = vector.load %arg40[%c2_336, %c0_337, %c0_338] : memref<4x1x8xf32, #tpu.memory_space<vmem>>, vector<1x1x8xf32>
    %613 = vector.shape_cast %612 : vector<1x1x8xf32> to vector<1x8xf32>
    %614 = vector.broadcast %613 : vector<1x8xf32> to vector<8x8xf32>
    %615 = arith.addf %611, %614 : vector<8x8xf32>
    %c2_339 = arith.constant 2 : index
    %c0_340 = arith.constant 0 : index
    %c0_341 = arith.constant 0 : index
    %616 = vector.load %arg41[%c2_339, %c0_340, %c0_341] : memref<4x32x8xbf16, #tpu.memory_space<vmem>>, vector<1x32x8xbf16>
    %617 = vector.shape_cast %616 : vector<1x32x8xbf16> to vector<32x8xbf16>
    %618 = arith.truncf %515 : vector<8x32xf32> to vector<8x32xbf16>
    %cst_342 = arith.constant dense<0.000000e+00> : vector<8x8xf32>
    %619 = tpu.matmul %618, %617, %cst_342 {dimension_numbers = #tpu.dot_dimension_numbers<[1], [0], [0], [1], [0, 0, 1, 1], [], []>} : vector<8x32xbf16>, vector<32x8xbf16>, vector<8x8xf32> -> vector<8x8xf32>
    %c2_343 = arith.constant 2 : index
    %c0_344 = arith.constant 0 : index
    %c0_345 = arith.constant 0 : index
    %620 = vector.load %arg42[%c2_343, %c0_344, %c0_345] : memref<4x1x8xf32, #tpu.memory_space<vmem>>, vector<1x1x8xf32>
    %621 = vector.shape_cast %620 : vector<1x1x8xf32> to vector<1x8xf32>
    %622 = vector.broadcast %621 : vector<1x8xf32> to vector<8x8xf32>
    %623 = arith.addf %619, %622 : vector<8x8xf32>
    %624 = arith.truncf %607 : vector<8x8xf32> to vector<8x8xbf16>
    %625 = arith.truncf %615 : vector<8x8xf32> to vector<8x8xbf16>
    %cst_346 = arith.constant dense<0.000000e+00> : vector<8x8xf32>
    %626 = tpu.matmul %624, %625, %cst_346 {dimension_numbers = #tpu.dot_dimension_numbers<[1], [1], [0], [0], [0, 0, 1, 0], [], []>} : vector<8x8xbf16>, vector<8x8xbf16>, vector<8x8xf32> -> vector<8x8xf32>
    %cst_347 = arith.constant 0.353553385 : f32
    %627 = vector.broadcast %cst_347 : f32 to vector<8x8xf32>
    %628 = arith.mulf %626, %627 : vector<8x8xf32>
    %cst_348 = arith.constant dense<0xFF800000> : vector<8xf32>
    %629 = vector.multi_reduction <maximumf>, %628, %cst_348 [1] : vector<8x8xf32> to vector<8xf32>
    %630 = vector.shape_cast %629 : vector<8xf32> to vector<8x1xf32>
    %631 = vector.broadcast %630 : vector<8x1xf32> to vector<8x8xf32>
    %632 = arith.subf %628, %631 : vector<8x8xf32>
    %633 = math.exp %632 : vector<8x8xf32>
    %cst_349 = arith.constant dense<0.000000e+00> : vector<8xf32>
    %634 = vector.multi_reduction <add>, %633, %cst_349 [1] : vector<8x8xf32> to vector<8xf32>
    %635 = vector.shape_cast %634 : vector<8xf32> to vector<8x1xf32>
    %636 = tpu.reciprocal %635 {approx = true} : vector<8x1xf32> -> vector<8x1xf32>
    %637 = vector.broadcast %636 : vector<8x1xf32> to vector<8x8xf32>
    %638 = arith.mulf %633, %637 : vector<8x8xf32>
    %639 = arith.truncf %638 : vector<8x8xf32> to vector<8x8xbf16>
    %640 = arith.truncf %623 : vector<8x8xf32> to vector<8x8xbf16>
    %cst_350 = arith.constant dense<0.000000e+00> : vector<8x8xf32>
    %641 = tpu.matmul %639, %640, %cst_350 {dimension_numbers = #tpu.dot_dimension_numbers<[1], [0], [0], [1], [0, 0, 1, 1], [], []>} : vector<8x8xbf16>, vector<8x8xbf16>, vector<8x8xf32> -> vector<8x8xf32>
    %c3_351 = arith.constant 3 : index
    %c0_352 = arith.constant 0 : index
    %c0_353 = arith.constant 0 : index
    %642 = vector.load %arg37[%c3_351, %c0_352, %c0_353] : memref<4x32x8xbf16, #tpu.memory_space<vmem>>, vector<1x32x8xbf16>
    %643 = vector.shape_cast %642 : vector<1x32x8xbf16> to vector<32x8xbf16>
    %644 = arith.truncf %515 : vector<8x32xf32> to vector<8x32xbf16>
    %cst_354 = arith.constant dense<0.000000e+00> : vector<8x8xf32>
    %645 = tpu.matmul %644, %643, %cst_354 {dimension_numbers = #tpu.dot_dimension_numbers<[1], [0], [0], [1], [0, 0, 1, 1], [], []>} : vector<8x32xbf16>, vector<32x8xbf16>, vector<8x8xf32> -> vector<8x8xf32>
    %c3_355 = arith.constant 3 : index
    %c0_356 = arith.constant 0 : index
    %c0_357 = arith.constant 0 : index
    %646 = vector.load %arg38[%c3_355, %c0_356, %c0_357] : memref<4x1x8xf32, #tpu.memory_space<vmem>>, vector<1x1x8xf32>
    %647 = vector.shape_cast %646 : vector<1x1x8xf32> to vector<1x8xf32>
    %648 = vector.broadcast %647 : vector<1x8xf32> to vector<8x8xf32>
    %649 = arith.addf %645, %648 : vector<8x8xf32>
    %c3_358 = arith.constant 3 : index
    %c0_359 = arith.constant 0 : index
    %c0_360 = arith.constant 0 : index
    %650 = vector.load %arg39[%c3_358, %c0_359, %c0_360] : memref<4x32x8xbf16, #tpu.memory_space<vmem>>, vector<1x32x8xbf16>
    %651 = vector.shape_cast %650 : vector<1x32x8xbf16> to vector<32x8xbf16>
    %652 = arith.truncf %515 : vector<8x32xf32> to vector<8x32xbf16>
    %cst_361 = arith.constant dense<0.000000e+00> : vector<8x8xf32>
    %653 = tpu.matmul %652, %651, %cst_361 {dimension_numbers = #tpu.dot_dimension_numbers<[1], [0], [0], [1], [0, 0, 1, 1], [], []>} : vector<8x32xbf16>, vector<32x8xbf16>, vector<8x8xf32> -> vector<8x8xf32>
    %c3_362 = arith.constant 3 : index
    %c0_363 = arith.constant 0 : index
    %c0_364 = arith.constant 0 : index
    %654 = vector.load %arg40[%c3_362, %c0_363, %c0_364] : memref<4x1x8xf32, #tpu.memory_space<vmem>>, vector<1x1x8xf32>
    %655 = vector.shape_cast %654 : vector<1x1x8xf32> to vector<1x8xf32>
    %656 = vector.broadcast %655 : vector<1x8xf32> to vector<8x8xf32>
    %657 = arith.addf %653, %656 : vector<8x8xf32>
    %c3_365 = arith.constant 3 : index
    %c0_366 = arith.constant 0 : index
    %c0_367 = arith.constant 0 : index
    %658 = vector.load %arg41[%c3_365, %c0_366, %c0_367] : memref<4x32x8xbf16, #tpu.memory_space<vmem>>, vector<1x32x8xbf16>
    %659 = vector.shape_cast %658 : vector<1x32x8xbf16> to vector<32x8xbf16>
    %660 = arith.truncf %515 : vector<8x32xf32> to vector<8x32xbf16>
    %cst_368 = arith.constant dense<0.000000e+00> : vector<8x8xf32>
    %661 = tpu.matmul %660, %659, %cst_368 {dimension_numbers = #tpu.dot_dimension_numbers<[1], [0], [0], [1], [0, 0, 1, 1], [], []>} : vector<8x32xbf16>, vector<32x8xbf16>, vector<8x8xf32> -> vector<8x8xf32>
    %c3_369 = arith.constant 3 : index
    %c0_370 = arith.constant 0 : index
    %c0_371 = arith.constant 0 : index
    %662 = vector.load %arg42[%c3_369, %c0_370, %c0_371] : memref<4x1x8xf32, #tpu.memory_space<vmem>>, vector<1x1x8xf32>
    %663 = vector.shape_cast %662 : vector<1x1x8xf32> to vector<1x8xf32>
    %664 = vector.broadcast %663 : vector<1x8xf32> to vector<8x8xf32>
    %665 = arith.addf %661, %664 : vector<8x8xf32>
    %666 = arith.truncf %649 : vector<8x8xf32> to vector<8x8xbf16>
    %667 = arith.truncf %657 : vector<8x8xf32> to vector<8x8xbf16>
    %cst_372 = arith.constant dense<0.000000e+00> : vector<8x8xf32>
    %668 = tpu.matmul %666, %667, %cst_372 {dimension_numbers = #tpu.dot_dimension_numbers<[1], [1], [0], [0], [0, 0, 1, 0], [], []>} : vector<8x8xbf16>, vector<8x8xbf16>, vector<8x8xf32> -> vector<8x8xf32>
    %cst_373 = arith.constant 0.353553385 : f32
    %669 = vector.broadcast %cst_373 : f32 to vector<8x8xf32>
    %670 = arith.mulf %668, %669 : vector<8x8xf32>
    %cst_374 = arith.constant dense<0xFF800000> : vector<8xf32>
    %671 = vector.multi_reduction <maximumf>, %670, %cst_374 [1] : vector<8x8xf32> to vector<8xf32>
    %672 = vector.shape_cast %671 : vector<8xf32> to vector<8x1xf32>
    %673 = vector.broadcast %672 : vector<8x1xf32> to vector<8x8xf32>
    %674 = arith.subf %670, %673 : vector<8x8xf32>
    %675 = math.exp %674 : vector<8x8xf32>
    %cst_375 = arith.constant dense<0.000000e+00> : vector<8xf32>
    %676 = vector.multi_reduction <add>, %675, %cst_375 [1] : vector<8x8xf32> to vector<8xf32>
    %677 = vector.shape_cast %676 : vector<8xf32> to vector<8x1xf32>
    %678 = tpu.reciprocal %677 {approx = true} : vector<8x1xf32> -> vector<8x1xf32>
    %679 = vector.broadcast %678 : vector<8x1xf32> to vector<8x8xf32>
    %680 = arith.mulf %675, %679 : vector<8x8xf32>
    %681 = arith.truncf %680 : vector<8x8xf32> to vector<8x8xbf16>
    %682 = arith.truncf %665 : vector<8x8xf32> to vector<8x8xbf16>
    %cst_376 = arith.constant dense<0.000000e+00> : vector<8x8xf32>
    %683 = tpu.matmul %681, %682, %cst_376 {dimension_numbers = #tpu.dot_dimension_numbers<[1], [0], [0], [1], [0, 0, 1, 1], [], []>} : vector<8x8xbf16>, vector<8x8xbf16>, vector<8x8xf32> -> vector<8x8xf32>
    %684 = tpu.concatenate %557, %599, %641, %683 in 1 : vector<8x8xf32>, vector<8x8xf32>, vector<8x8xf32>, vector<8x8xf32> -> vector<8x32xf32>
    %c0_377 = arith.constant 0 : index
    %c0_378 = arith.constant 0 : index
    %685 = vector.load %arg43[%c0_377, %c0_378] : memref<32x32xbf16, #tpu.memory_space<vmem>>, vector<32x32xbf16>
    %686 = arith.truncf %684 : vector<8x32xf32> to vector<8x32xbf16>
    %cst_379 = arith.constant dense<0.000000e+00> : vector<8x32xf32>
    %687 = tpu.matmul %686, %685, %cst_379 {dimension_numbers = #tpu.dot_dimension_numbers<[1], [0], [0], [1], [0, 0, 1, 1], [], []>} : vector<8x32xbf16>, vector<32x32xbf16>, vector<8x32xf32> -> vector<8x32xf32>
    %c0_380 = arith.constant 0 : index
    %c0_381 = arith.constant 0 : index
    %688 = vector.load %arg44[%c0_380, %c0_381] : memref<1x32xf32, #tpu.memory_space<vmem>>, vector<1x32xf32>
    %689 = vector.broadcast %688 : vector<1x32xf32> to vector<8x32xf32>
    %690 = arith.addf %687, %689 : vector<8x32xf32>
    %691 = arith.addf %690, %515 : vector<8x32xf32>
    %c0_382 = arith.constant 0 : index
    %c0_383 = arith.constant 0 : index
    %692 = vector.load %arg45[%c0_382, %c0_383] : memref<1x32xf32, #tpu.memory_space<vmem>>, vector<1x32xf32>
    %c0_384 = arith.constant 0 : index
    %c0_385 = arith.constant 0 : index
    %693 = vector.load %arg46[%c0_384, %c0_385] : memref<1x32xf32, #tpu.memory_space<vmem>>, vector<1x32xf32>
    %cst_386 = arith.constant dense<0.000000e+00> : vector<8xf32>
    %694 = vector.multi_reduction <add>, %691, %cst_386 [1] : vector<8x32xf32> to vector<8xf32>
    %695 = vector.shape_cast %694 : vector<8xf32> to vector<8x1xf32>
    %cst_387 = arith.constant 3.200000e+01 : f32
    %696 = vector.broadcast %cst_387 : f32 to vector<8x1xf32>
    %697 = arith.divf %695, %696 : vector<8x1xf32>
    %698 = vector.broadcast %697 : vector<8x1xf32> to vector<8x32xf32>
    %699 = arith.subf %691, %698 : vector<8x32xf32>
    %700 = arith.mulf %699, %699 : vector<8x32xf32>
    %cst_388 = arith.constant dense<0.000000e+00> : vector<8xf32>
    %701 = vector.multi_reduction <add>, %700, %cst_388 [1] : vector<8x32xf32> to vector<8xf32>
    %702 = vector.shape_cast %701 : vector<8xf32> to vector<8x1xf32>
    %cst_389 = arith.constant 3.200000e+01 : f32
    %703 = vector.broadcast %cst_389 : f32 to vector<8x1xf32>
    %704 = arith.divf %702, %703 : vector<8x1xf32>
    %705 = vector.broadcast %697 : vector<8x1xf32> to vector<8x32xf32>
    %706 = arith.subf %691, %705 : vector<8x32xf32>
    %cst_390 = arith.constant 9.99999996E-13 : f32
    %707 = vector.broadcast %cst_390 : f32 to vector<8x1xf32>
    %708 = arith.addf %704, %707 : vector<8x1xf32>
    %709 = math.rsqrt %708 : vector<8x1xf32>
    %710 = vector.broadcast %709 : vector<8x1xf32> to vector<8x32xf32>
    %711 = arith.mulf %706, %710 : vector<8x32xf32>
    %712 = vector.broadcast %692 : vector<1x32xf32> to vector<8x32xf32>
    %713 = arith.mulf %711, %712 : vector<8x32xf32>
    %714 = vector.broadcast %693 : vector<1x32xf32> to vector<8x32xf32>
    %715 = arith.addf %713, %714 : vector<8x32xf32>
    %c0_391 = arith.constant 0 : index
    %c0_392 = arith.constant 0 : index
    %c0_393 = arith.constant 0 : index
    %716 = vector.load %arg47[%c0_391, %c0_392, %c0_393] : memref<4x32x8xbf16, #tpu.memory_space<vmem>>, vector<1x32x8xbf16>
    %717 = vector.shape_cast %716 : vector<1x32x8xbf16> to vector<32x8xbf16>
    %718 = arith.truncf %715 : vector<8x32xf32> to vector<8x32xbf16>
    %cst_394 = arith.constant dense<0.000000e+00> : vector<8x8xf32>
    %719 = tpu.matmul %718, %717, %cst_394 {dimension_numbers = #tpu.dot_dimension_numbers<[1], [0], [0], [1], [0, 0, 1, 1], [], []>} : vector<8x32xbf16>, vector<32x8xbf16>, vector<8x8xf32> -> vector<8x8xf32>
    %c0_395 = arith.constant 0 : index
    %c0_396 = arith.constant 0 : index
    %c0_397 = arith.constant 0 : index
    %720 = vector.load %arg48[%c0_395, %c0_396, %c0_397] : memref<4x1x8xf32, #tpu.memory_space<vmem>>, vector<1x1x8xf32>
    %721 = vector.shape_cast %720 : vector<1x1x8xf32> to vector<1x8xf32>
    %722 = vector.broadcast %721 : vector<1x8xf32> to vector<8x8xf32>
    %723 = arith.addf %719, %722 : vector<8x8xf32>
    %c0_398 = arith.constant 0 : index
    %c0_399 = arith.constant 0 : index
    %c0_400 = arith.constant 0 : index
    %724 = vector.load %arg49[%c0_398, %c0_399, %c0_400] : memref<4x32x8xbf16, #tpu.memory_space<vmem>>, vector<1x32x8xbf16>
    %725 = vector.shape_cast %724 : vector<1x32x8xbf16> to vector<32x8xbf16>
    %726 = arith.truncf %514 : vector<24x32xf32> to vector<24x32xbf16>
    %cst_401 = arith.constant dense<0.000000e+00> : vector<24x8xf32>
    %727 = tpu.matmul %726, %725, %cst_401 {dimension_numbers = #tpu.dot_dimension_numbers<[1], [0], [0], [1], [0, 0, 1, 1], [], []>} : vector<24x32xbf16>, vector<32x8xbf16>, vector<24x8xf32> -> vector<24x8xf32>
    %c0_402 = arith.constant 0 : index
    %c0_403 = arith.constant 0 : index
    %c0_404 = arith.constant 0 : index
    %728 = vector.load %arg50[%c0_402, %c0_403, %c0_404] : memref<4x1x8xf32, #tpu.memory_space<vmem>>, vector<1x1x8xf32>
    %729 = vector.shape_cast %728 : vector<1x1x8xf32> to vector<1x8xf32>
    %730 = vector.broadcast %729 : vector<1x8xf32> to vector<24x8xf32>
    %731 = arith.addf %727, %730 : vector<24x8xf32>
    %c0_405 = arith.constant 0 : index
    %c0_406 = arith.constant 0 : index
    %c0_407 = arith.constant 0 : index
    %732 = vector.load %arg51[%c0_405, %c0_406, %c0_407] : memref<4x32x8xbf16, #tpu.memory_space<vmem>>, vector<1x32x8xbf16>
    %733 = vector.shape_cast %732 : vector<1x32x8xbf16> to vector<32x8xbf16>
    %734 = arith.truncf %514 : vector<24x32xf32> to vector<24x32xbf16>
    %cst_408 = arith.constant dense<0.000000e+00> : vector<24x8xf32>
    %735 = tpu.matmul %734, %733, %cst_408 {dimension_numbers = #tpu.dot_dimension_numbers<[1], [0], [0], [1], [0, 0, 1, 1], [], []>} : vector<24x32xbf16>, vector<32x8xbf16>, vector<24x8xf32> -> vector<24x8xf32>
    %c0_409 = arith.constant 0 : index
    %c0_410 = arith.constant 0 : index
    %c0_411 = arith.constant 0 : index
    %736 = vector.load %arg52[%c0_409, %c0_410, %c0_411] : memref<4x1x8xf32, #tpu.memory_space<vmem>>, vector<1x1x8xf32>
    %737 = vector.shape_cast %736 : vector<1x1x8xf32> to vector<1x8xf32>
    %738 = vector.broadcast %737 : vector<1x8xf32> to vector<24x8xf32>
    %739 = arith.addf %735, %738 : vector<24x8xf32>
    %740 = arith.truncf %723 : vector<8x8xf32> to vector<8x8xbf16>
    %741 = arith.truncf %731 : vector<24x8xf32> to vector<24x8xbf16>
    %cst_412 = arith.constant dense<0.000000e+00> : vector<8x24xf32>
    %742 = tpu.matmul %740, %741, %cst_412 {dimension_numbers = #tpu.dot_dimension_numbers<[1], [1], [0], [0], [0, 0, 1, 0], [], []>} : vector<8x8xbf16>, vector<24x8xbf16>, vector<8x24xf32> -> vector<8x24xf32>
    %cst_413 = arith.constant 0.353553385 : f32
    %743 = vector.broadcast %cst_413 : f32 to vector<8x24xf32>
    %744 = arith.mulf %742, %743 : vector<8x24xf32>
    %745 = vector.broadcast %0 : vector<1x24xf32> to vector<8x24xf32>
    %746 = arith.addf %744, %745 : vector<8x24xf32>
    %cst_414 = arith.constant dense<0xFF800000> : vector<8xf32>
    %747 = vector.multi_reduction <maximumf>, %746, %cst_414 [1] : vector<8x24xf32> to vector<8xf32>
    %748 = vector.shape_cast %747 : vector<8xf32> to vector<8x1xf32>
    %749 = vector.broadcast %748 : vector<8x1xf32> to vector<8x24xf32>
    %750 = arith.subf %746, %749 : vector<8x24xf32>
    %751 = math.exp %750 : vector<8x24xf32>
    %cst_415 = arith.constant dense<0.000000e+00> : vector<8xf32>
    %752 = vector.multi_reduction <add>, %751, %cst_415 [1] : vector<8x24xf32> to vector<8xf32>
    %753 = vector.shape_cast %752 : vector<8xf32> to vector<8x1xf32>
    %754 = tpu.reciprocal %753 {approx = true} : vector<8x1xf32> -> vector<8x1xf32>
    %755 = vector.broadcast %754 : vector<8x1xf32> to vector<8x24xf32>
    %756 = arith.mulf %751, %755 : vector<8x24xf32>
    %757 = arith.truncf %756 : vector<8x24xf32> to vector<8x24xbf16>
    %758 = arith.truncf %739 : vector<24x8xf32> to vector<24x8xbf16>
    %cst_416 = arith.constant dense<0.000000e+00> : vector<8x8xf32>
    %759 = tpu.matmul %757, %758, %cst_416 {dimension_numbers = #tpu.dot_dimension_numbers<[1], [0], [0], [1], [0, 0, 1, 1], [], []>} : vector<8x24xbf16>, vector<24x8xbf16>, vector<8x8xf32> -> vector<8x8xf32>
    %c1_417 = arith.constant 1 : index
    %c0_418 = arith.constant 0 : index
    %c0_419 = arith.constant 0 : index
    %760 = vector.load %arg47[%c1_417, %c0_418, %c0_419] : memref<4x32x8xbf16, #tpu.memory_space<vmem>>, vector<1x32x8xbf16>
    %761 = vector.shape_cast %760 : vector<1x32x8xbf16> to vector<32x8xbf16>
    %762 = arith.truncf %715 : vector<8x32xf32> to vector<8x32xbf16>
    %cst_420 = arith.constant dense<0.000000e+00> : vector<8x8xf32>
    %763 = tpu.matmul %762, %761, %cst_420 {dimension_numbers = #tpu.dot_dimension_numbers<[1], [0], [0], [1], [0, 0, 1, 1], [], []>} : vector<8x32xbf16>, vector<32x8xbf16>, vector<8x8xf32> -> vector<8x8xf32>
    %c1_421 = arith.constant 1 : index
    %c0_422 = arith.constant 0 : index
    %c0_423 = arith.constant 0 : index
    %764 = vector.load %arg48[%c1_421, %c0_422, %c0_423] : memref<4x1x8xf32, #tpu.memory_space<vmem>>, vector<1x1x8xf32>
    %765 = vector.shape_cast %764 : vector<1x1x8xf32> to vector<1x8xf32>
    %766 = vector.broadcast %765 : vector<1x8xf32> to vector<8x8xf32>
    %767 = arith.addf %763, %766 : vector<8x8xf32>
    %c1_424 = arith.constant 1 : index
    %c0_425 = arith.constant 0 : index
    %c0_426 = arith.constant 0 : index
    %768 = vector.load %arg49[%c1_424, %c0_425, %c0_426] : memref<4x32x8xbf16, #tpu.memory_space<vmem>>, vector<1x32x8xbf16>
    %769 = vector.shape_cast %768 : vector<1x32x8xbf16> to vector<32x8xbf16>
    %770 = arith.truncf %514 : vector<24x32xf32> to vector<24x32xbf16>
    %cst_427 = arith.constant dense<0.000000e+00> : vector<24x8xf32>
    %771 = tpu.matmul %770, %769, %cst_427 {dimension_numbers = #tpu.dot_dimension_numbers<[1], [0], [0], [1], [0, 0, 1, 1], [], []>} : vector<24x32xbf16>, vector<32x8xbf16>, vector<24x8xf32> -> vector<24x8xf32>
    %c1_428 = arith.constant 1 : index
    %c0_429 = arith.constant 0 : index
    %c0_430 = arith.constant 0 : index
    %772 = vector.load %arg50[%c1_428, %c0_429, %c0_430] : memref<4x1x8xf32, #tpu.memory_space<vmem>>, vector<1x1x8xf32>
    %773 = vector.shape_cast %772 : vector<1x1x8xf32> to vector<1x8xf32>
    %774 = vector.broadcast %773 : vector<1x8xf32> to vector<24x8xf32>
    %775 = arith.addf %771, %774 : vector<24x8xf32>
    %c1_431 = arith.constant 1 : index
    %c0_432 = arith.constant 0 : index
    %c0_433 = arith.constant 0 : index
    %776 = vector.load %arg51[%c1_431, %c0_432, %c0_433] : memref<4x32x8xbf16, #tpu.memory_space<vmem>>, vector<1x32x8xbf16>
    %777 = vector.shape_cast %776 : vector<1x32x8xbf16> to vector<32x8xbf16>
    %778 = arith.truncf %514 : vector<24x32xf32> to vector<24x32xbf16>
    %cst_434 = arith.constant dense<0.000000e+00> : vector<24x8xf32>
    %779 = tpu.matmul %778, %777, %cst_434 {dimension_numbers = #tpu.dot_dimension_numbers<[1], [0], [0], [1], [0, 0, 1, 1], [], []>} : vector<24x32xbf16>, vector<32x8xbf16>, vector<24x8xf32> -> vector<24x8xf32>
    %c1_435 = arith.constant 1 : index
    %c0_436 = arith.constant 0 : index
    %c0_437 = arith.constant 0 : index
    %780 = vector.load %arg52[%c1_435, %c0_436, %c0_437] : memref<4x1x8xf32, #tpu.memory_space<vmem>>, vector<1x1x8xf32>
    %781 = vector.shape_cast %780 : vector<1x1x8xf32> to vector<1x8xf32>
    %782 = vector.broadcast %781 : vector<1x8xf32> to vector<24x8xf32>
    %783 = arith.addf %779, %782 : vector<24x8xf32>
    %784 = arith.truncf %767 : vector<8x8xf32> to vector<8x8xbf16>
    %785 = arith.truncf %775 : vector<24x8xf32> to vector<24x8xbf16>
    %cst_438 = arith.constant dense<0.000000e+00> : vector<8x24xf32>
    %786 = tpu.matmul %784, %785, %cst_438 {dimension_numbers = #tpu.dot_dimension_numbers<[1], [1], [0], [0], [0, 0, 1, 0], [], []>} : vector<8x8xbf16>, vector<24x8xbf16>, vector<8x24xf32> -> vector<8x24xf32>
    %cst_439 = arith.constant 0.353553385 : f32
    %787 = vector.broadcast %cst_439 : f32 to vector<8x24xf32>
    %788 = arith.mulf %786, %787 : vector<8x24xf32>
    %789 = vector.broadcast %0 : vector<1x24xf32> to vector<8x24xf32>
    %790 = arith.addf %788, %789 : vector<8x24xf32>
    %cst_440 = arith.constant dense<0xFF800000> : vector<8xf32>
    %791 = vector.multi_reduction <maximumf>, %790, %cst_440 [1] : vector<8x24xf32> to vector<8xf32>
    %792 = vector.shape_cast %791 : vector<8xf32> to vector<8x1xf32>
    %793 = vector.broadcast %792 : vector<8x1xf32> to vector<8x24xf32>
    %794 = arith.subf %790, %793 : vector<8x24xf32>
    %795 = math.exp %794 : vector<8x24xf32>
    %cst_441 = arith.constant dense<0.000000e+00> : vector<8xf32>
    %796 = vector.multi_reduction <add>, %795, %cst_441 [1] : vector<8x24xf32> to vector<8xf32>
    %797 = vector.shape_cast %796 : vector<8xf32> to vector<8x1xf32>
    %798 = tpu.reciprocal %797 {approx = true} : vector<8x1xf32> -> vector<8x1xf32>
    %799 = vector.broadcast %798 : vector<8x1xf32> to vector<8x24xf32>
    %800 = arith.mulf %795, %799 : vector<8x24xf32>
    %801 = arith.truncf %800 : vector<8x24xf32> to vector<8x24xbf16>
    %802 = arith.truncf %783 : vector<24x8xf32> to vector<24x8xbf16>
    %cst_442 = arith.constant dense<0.000000e+00> : vector<8x8xf32>
    %803 = tpu.matmul %801, %802, %cst_442 {dimension_numbers = #tpu.dot_dimension_numbers<[1], [0], [0], [1], [0, 0, 1, 1], [], []>} : vector<8x24xbf16>, vector<24x8xbf16>, vector<8x8xf32> -> vector<8x8xf32>
    %c2_443 = arith.constant 2 : index
    %c0_444 = arith.constant 0 : index
    %c0_445 = arith.constant 0 : index
    %804 = vector.load %arg47[%c2_443, %c0_444, %c0_445] : memref<4x32x8xbf16, #tpu.memory_space<vmem>>, vector<1x32x8xbf16>
    %805 = vector.shape_cast %804 : vector<1x32x8xbf16> to vector<32x8xbf16>
    %806 = arith.truncf %715 : vector<8x32xf32> to vector<8x32xbf16>
    %cst_446 = arith.constant dense<0.000000e+00> : vector<8x8xf32>
    %807 = tpu.matmul %806, %805, %cst_446 {dimension_numbers = #tpu.dot_dimension_numbers<[1], [0], [0], [1], [0, 0, 1, 1], [], []>} : vector<8x32xbf16>, vector<32x8xbf16>, vector<8x8xf32> -> vector<8x8xf32>
    %c2_447 = arith.constant 2 : index
    %c0_448 = arith.constant 0 : index
    %c0_449 = arith.constant 0 : index
    %808 = vector.load %arg48[%c2_447, %c0_448, %c0_449] : memref<4x1x8xf32, #tpu.memory_space<vmem>>, vector<1x1x8xf32>
    %809 = vector.shape_cast %808 : vector<1x1x8xf32> to vector<1x8xf32>
    %810 = vector.broadcast %809 : vector<1x8xf32> to vector<8x8xf32>
    %811 = arith.addf %807, %810 : vector<8x8xf32>
    %c2_450 = arith.constant 2 : index
    %c0_451 = arith.constant 0 : index
    %c0_452 = arith.constant 0 : index
    %812 = vector.load %arg49[%c2_450, %c0_451, %c0_452] : memref<4x32x8xbf16, #tpu.memory_space<vmem>>, vector<1x32x8xbf16>
    %813 = vector.shape_cast %812 : vector<1x32x8xbf16> to vector<32x8xbf16>
    %814 = arith.truncf %514 : vector<24x32xf32> to vector<24x32xbf16>
    %cst_453 = arith.constant dense<0.000000e+00> : vector<24x8xf32>
    %815 = tpu.matmul %814, %813, %cst_453 {dimension_numbers = #tpu.dot_dimension_numbers<[1], [0], [0], [1], [0, 0, 1, 1], [], []>} : vector<24x32xbf16>, vector<32x8xbf16>, vector<24x8xf32> -> vector<24x8xf32>
    %c2_454 = arith.constant 2 : index
    %c0_455 = arith.constant 0 : index
    %c0_456 = arith.constant 0 : index
    %816 = vector.load %arg50[%c2_454, %c0_455, %c0_456] : memref<4x1x8xf32, #tpu.memory_space<vmem>>, vector<1x1x8xf32>
    %817 = vector.shape_cast %816 : vector<1x1x8xf32> to vector<1x8xf32>
    %818 = vector.broadcast %817 : vector<1x8xf32> to vector<24x8xf32>
    %819 = arith.addf %815, %818 : vector<24x8xf32>
    %c2_457 = arith.constant 2 : index
    %c0_458 = arith.constant 0 : index
    %c0_459 = arith.constant 0 : index
    %820 = vector.load %arg51[%c2_457, %c0_458, %c0_459] : memref<4x32x8xbf16, #tpu.memory_space<vmem>>, vector<1x32x8xbf16>
    %821 = vector.shape_cast %820 : vector<1x32x8xbf16> to vector<32x8xbf16>
    %822 = arith.truncf %514 : vector<24x32xf32> to vector<24x32xbf16>
    %cst_460 = arith.constant dense<0.000000e+00> : vector<24x8xf32>
    %823 = tpu.matmul %822, %821, %cst_460 {dimension_numbers = #tpu.dot_dimension_numbers<[1], [0], [0], [1], [0, 0, 1, 1], [], []>} : vector<24x32xbf16>, vector<32x8xbf16>, vector<24x8xf32> -> vector<24x8xf32>
    %c2_461 = arith.constant 2 : index
    %c0_462 = arith.constant 0 : index
    %c0_463 = arith.constant 0 : index
    %824 = vector.load %arg52[%c2_461, %c0_462, %c0_463] : memref<4x1x8xf32, #tpu.memory_space<vmem>>, vector<1x1x8xf32>
    %825 = vector.shape_cast %824 : vector<1x1x8xf32> to vector<1x8xf32>
    %826 = vector.broadcast %825 : vector<1x8xf32> to vector<24x8xf32>
    %827 = arith.addf %823, %826 : vector<24x8xf32>
    %828 = arith.truncf %811 : vector<8x8xf32> to vector<8x8xbf16>
    %829 = arith.truncf %819 : vector<24x8xf32> to vector<24x8xbf16>
    %cst_464 = arith.constant dense<0.000000e+00> : vector<8x24xf32>
    %830 = tpu.matmul %828, %829, %cst_464 {dimension_numbers = #tpu.dot_dimension_numbers<[1], [1], [0], [0], [0, 0, 1, 0], [], []>} : vector<8x8xbf16>, vector<24x8xbf16>, vector<8x24xf32> -> vector<8x24xf32>
    %cst_465 = arith.constant 0.353553385 : f32
    %831 = vector.broadcast %cst_465 : f32 to vector<8x24xf32>
    %832 = arith.mulf %830, %831 : vector<8x24xf32>
    %833 = vector.broadcast %0 : vector<1x24xf32> to vector<8x24xf32>
    %834 = arith.addf %832, %833 : vector<8x24xf32>
    %cst_466 = arith.constant dense<0xFF800000> : vector<8xf32>
    %835 = vector.multi_reduction <maximumf>, %834, %cst_466 [1] : vector<8x24xf32> to vector<8xf32>
    %836 = vector.shape_cast %835 : vector<8xf32> to vector<8x1xf32>
    %837 = vector.broadcast %836 : vector<8x1xf32> to vector<8x24xf32>
    %838 = arith.subf %834, %837 : vector<8x24xf32>
    %839 = math.exp %838 : vector<8x24xf32>
    %cst_467 = arith.constant dense<0.000000e+00> : vector<8xf32>
    %840 = vector.multi_reduction <add>, %839, %cst_467 [1] : vector<8x24xf32> to vector<8xf32>
    %841 = vector.shape_cast %840 : vector<8xf32> to vector<8x1xf32>
    %842 = tpu.reciprocal %841 {approx = true} : vector<8x1xf32> -> vector<8x1xf32>
    %843 = vector.broadcast %842 : vector<8x1xf32> to vector<8x24xf32>
    %844 = arith.mulf %839, %843 : vector<8x24xf32>
    %845 = arith.truncf %844 : vector<8x24xf32> to vector<8x24xbf16>
    %846 = arith.truncf %827 : vector<24x8xf32> to vector<24x8xbf16>
    %cst_468 = arith.constant dense<0.000000e+00> : vector<8x8xf32>
    %847 = tpu.matmul %845, %846, %cst_468 {dimension_numbers = #tpu.dot_dimension_numbers<[1], [0], [0], [1], [0, 0, 1, 1], [], []>} : vector<8x24xbf16>, vector<24x8xbf16>, vector<8x8xf32> -> vector<8x8xf32>
    %c3_469 = arith.constant 3 : index
    %c0_470 = arith.constant 0 : index
    %c0_471 = arith.constant 0 : index
    %848 = vector.load %arg47[%c3_469, %c0_470, %c0_471] : memref<4x32x8xbf16, #tpu.memory_space<vmem>>, vector<1x32x8xbf16>
    %849 = vector.shape_cast %848 : vector<1x32x8xbf16> to vector<32x8xbf16>
    %850 = arith.truncf %715 : vector<8x32xf32> to vector<8x32xbf16>
    %cst_472 = arith.constant dense<0.000000e+00> : vector<8x8xf32>
    %851 = tpu.matmul %850, %849, %cst_472 {dimension_numbers = #tpu.dot_dimension_numbers<[1], [0], [0], [1], [0, 0, 1, 1], [], []>} : vector<8x32xbf16>, vector<32x8xbf16>, vector<8x8xf32> -> vector<8x8xf32>
    %c3_473 = arith.constant 3 : index
    %c0_474 = arith.constant 0 : index
    %c0_475 = arith.constant 0 : index
    %852 = vector.load %arg48[%c3_473, %c0_474, %c0_475] : memref<4x1x8xf32, #tpu.memory_space<vmem>>, vector<1x1x8xf32>
    %853 = vector.shape_cast %852 : vector<1x1x8xf32> to vector<1x8xf32>
    %854 = vector.broadcast %853 : vector<1x8xf32> to vector<8x8xf32>
    %855 = arith.addf %851, %854 : vector<8x8xf32>
    %c3_476 = arith.constant 3 : index
    %c0_477 = arith.constant 0 : index
    %c0_478 = arith.constant 0 : index
    %856 = vector.load %arg49[%c3_476, %c0_477, %c0_478] : memref<4x32x8xbf16, #tpu.memory_space<vmem>>, vector<1x32x8xbf16>
    %857 = vector.shape_cast %856 : vector<1x32x8xbf16> to vector<32x8xbf16>
    %858 = arith.truncf %514 : vector<24x32xf32> to vector<24x32xbf16>
    %cst_479 = arith.constant dense<0.000000e+00> : vector<24x8xf32>
    %859 = tpu.matmul %858, %857, %cst_479 {dimension_numbers = #tpu.dot_dimension_numbers<[1], [0], [0], [1], [0, 0, 1, 1], [], []>} : vector<24x32xbf16>, vector<32x8xbf16>, vector<24x8xf32> -> vector<24x8xf32>
    %c3_480 = arith.constant 3 : index
    %c0_481 = arith.constant 0 : index
    %c0_482 = arith.constant 0 : index
    %860 = vector.load %arg50[%c3_480, %c0_481, %c0_482] : memref<4x1x8xf32, #tpu.memory_space<vmem>>, vector<1x1x8xf32>
    %861 = vector.shape_cast %860 : vector<1x1x8xf32> to vector<1x8xf32>
    %862 = vector.broadcast %861 : vector<1x8xf32> to vector<24x8xf32>
    %863 = arith.addf %859, %862 : vector<24x8xf32>
    %c3_483 = arith.constant 3 : index
    %c0_484 = arith.constant 0 : index
    %c0_485 = arith.constant 0 : index
    %864 = vector.load %arg51[%c3_483, %c0_484, %c0_485] : memref<4x32x8xbf16, #tpu.memory_space<vmem>>, vector<1x32x8xbf16>
    %865 = vector.shape_cast %864 : vector<1x32x8xbf16> to vector<32x8xbf16>
    %866 = arith.truncf %514 : vector<24x32xf32> to vector<24x32xbf16>
    %cst_486 = arith.constant dense<0.000000e+00> : vector<24x8xf32>
    %867 = tpu.matmul %866, %865, %cst_486 {dimension_numbers = #tpu.dot_dimension_numbers<[1], [0], [0], [1], [0, 0, 1, 1], [], []>} : vector<24x32xbf16>, vector<32x8xbf16>, vector<24x8xf32> -> vector<24x8xf32>
    %c3_487 = arith.constant 3 : index
    %c0_488 = arith.constant 0 : index
    %c0_489 = arith.constant 0 : index
    %868 = vector.load %arg52[%c3_487, %c0_488, %c0_489] : memref<4x1x8xf32, #tpu.memory_space<vmem>>, vector<1x1x8xf32>
    %869 = vector.shape_cast %868 : vector<1x1x8xf32> to vector<1x8xf32>
    %870 = vector.broadcast %869 : vector<1x8xf32> to vector<24x8xf32>
    %871 = arith.addf %867, %870 : vector<24x8xf32>
    %872 = arith.truncf %855 : vector<8x8xf32> to vector<8x8xbf16>
    %873 = arith.truncf %863 : vector<24x8xf32> to vector<24x8xbf16>
    %cst_490 = arith.constant dense<0.000000e+00> : vector<8x24xf32>
    %874 = tpu.matmul %872, %873, %cst_490 {dimension_numbers = #tpu.dot_dimension_numbers<[1], [1], [0], [0], [0, 0, 1, 0], [], []>} : vector<8x8xbf16>, vector<24x8xbf16>, vector<8x24xf32> -> vector<8x24xf32>
    %cst_491 = arith.constant 0.353553385 : f32
    %875 = vector.broadcast %cst_491 : f32 to vector<8x24xf32>
    %876 = arith.mulf %874, %875 : vector<8x24xf32>
    %877 = vector.broadcast %0 : vector<1x24xf32> to vector<8x24xf32>
    %878 = arith.addf %876, %877 : vector<8x24xf32>
    %cst_492 = arith.constant dense<0xFF800000> : vector<8xf32>
    %879 = vector.multi_reduction <maximumf>, %878, %cst_492 [1] : vector<8x24xf32> to vector<8xf32>
    %880 = vector.shape_cast %879 : vector<8xf32> to vector<8x1xf32>
    %881 = vector.broadcast %880 : vector<8x1xf32> to vector<8x24xf32>
    %882 = arith.subf %878, %881 : vector<8x24xf32>
    %883 = math.exp %882 : vector<8x24xf32>
    %cst_493 = arith.constant dense<0.000000e+00> : vector<8xf32>
    %884 = vector.multi_reduction <add>, %883, %cst_493 [1] : vector<8x24xf32> to vector<8xf32>
    %885 = vector.shape_cast %884 : vector<8xf32> to vector<8x1xf32>
    %886 = tpu.reciprocal %885 {approx = true} : vector<8x1xf32> -> vector<8x1xf32>
    %887 = vector.broadcast %886 : vector<8x1xf32> to vector<8x24xf32>
    %888 = arith.mulf %883, %887 : vector<8x24xf32>
    %889 = arith.truncf %888 : vector<8x24xf32> to vector<8x24xbf16>
    %890 = arith.truncf %871 : vector<24x8xf32> to vector<24x8xbf16>
    %cst_494 = arith.constant dense<0.000000e+00> : vector<8x8xf32>
    %891 = tpu.matmul %889, %890, %cst_494 {dimension_numbers = #tpu.dot_dimension_numbers<[1], [0], [0], [1], [0, 0, 1, 1], [], []>} : vector<8x24xbf16>, vector<24x8xbf16>, vector<8x8xf32> -> vector<8x8xf32>
    %892 = tpu.concatenate %759, %803, %847, %891 in 1 : vector<8x8xf32>, vector<8x8xf32>, vector<8x8xf32>, vector<8x8xf32> -> vector<8x32xf32>
    %c0_495 = arith.constant 0 : index
    %c0_496 = arith.constant 0 : index
    %893 = vector.load %arg53[%c0_495, %c0_496] : memref<32x32xbf16, #tpu.memory_space<vmem>>, vector<32x32xbf16>
    %894 = arith.truncf %892 : vector<8x32xf32> to vector<8x32xbf16>
    %cst_497 = arith.constant dense<0.000000e+00> : vector<8x32xf32>
    %895 = tpu.matmul %894, %893, %cst_497 {dimension_numbers = #tpu.dot_dimension_numbers<[1], [0], [0], [1], [0, 0, 1, 1], [], []>} : vector<8x32xbf16>, vector<32x32xbf16>, vector<8x32xf32> -> vector<8x32xf32>
    %c0_498 = arith.constant 0 : index
    %c0_499 = arith.constant 0 : index
    %896 = vector.load %arg54[%c0_498, %c0_499] : memref<1x32xf32, #tpu.memory_space<vmem>>, vector<1x32xf32>
    %897 = vector.broadcast %896 : vector<1x32xf32> to vector<8x32xf32>
    %898 = arith.addf %895, %897 : vector<8x32xf32>
    %899 = arith.addf %898, %715 : vector<8x32xf32>
    %c0_500 = arith.constant 0 : index
    %c0_501 = arith.constant 0 : index
    %900 = vector.load %arg55[%c0_500, %c0_501] : memref<1x32xf32, #tpu.memory_space<vmem>>, vector<1x32xf32>
    %c0_502 = arith.constant 0 : index
    %c0_503 = arith.constant 0 : index
    %901 = vector.load %arg56[%c0_502, %c0_503] : memref<1x32xf32, #tpu.memory_space<vmem>>, vector<1x32xf32>
    %cst_504 = arith.constant dense<0.000000e+00> : vector<8xf32>
    %902 = vector.multi_reduction <add>, %899, %cst_504 [1] : vector<8x32xf32> to vector<8xf32>
    %903 = vector.shape_cast %902 : vector<8xf32> to vector<8x1xf32>
    %cst_505 = arith.constant 3.200000e+01 : f32
    %904 = vector.broadcast %cst_505 : f32 to vector<8x1xf32>
    %905 = arith.divf %903, %904 : vector<8x1xf32>
    %906 = vector.broadcast %905 : vector<8x1xf32> to vector<8x32xf32>
    %907 = arith.subf %899, %906 : vector<8x32xf32>
    %908 = arith.mulf %907, %907 : vector<8x32xf32>
    %cst_506 = arith.constant dense<0.000000e+00> : vector<8xf32>
    %909 = vector.multi_reduction <add>, %908, %cst_506 [1] : vector<8x32xf32> to vector<8xf32>
    %910 = vector.shape_cast %909 : vector<8xf32> to vector<8x1xf32>
    %cst_507 = arith.constant 3.200000e+01 : f32
    %911 = vector.broadcast %cst_507 : f32 to vector<8x1xf32>
    %912 = arith.divf %910, %911 : vector<8x1xf32>
    %913 = vector.broadcast %905 : vector<8x1xf32> to vector<8x32xf32>
    %914 = arith.subf %899, %913 : vector<8x32xf32>
    %cst_508 = arith.constant 9.99999996E-13 : f32
    %915 = vector.broadcast %cst_508 : f32 to vector<8x1xf32>
    %916 = arith.addf %912, %915 : vector<8x1xf32>
    %917 = math.rsqrt %916 : vector<8x1xf32>
    %918 = vector.broadcast %917 : vector<8x1xf32> to vector<8x32xf32>
    %919 = arith.mulf %914, %918 : vector<8x32xf32>
    %920 = vector.broadcast %900 : vector<1x32xf32> to vector<8x32xf32>
    %921 = arith.mulf %919, %920 : vector<8x32xf32>
    %922 = vector.broadcast %901 : vector<1x32xf32> to vector<8x32xf32>
    %923 = arith.addf %921, %922 : vector<8x32xf32>
    %c0_509 = arith.constant 0 : index
    %c0_510 = arith.constant 0 : index
    %924 = vector.load %arg57[%c0_509, %c0_510] : memref<32x64xbf16, #tpu.memory_space<vmem>>, vector<32x64xbf16>
    %925 = arith.truncf %923 : vector<8x32xf32> to vector<8x32xbf16>
    %cst_511 = arith.constant dense<0.000000e+00> : vector<8x64xf32>
    %926 = tpu.matmul %925, %924, %cst_511 {dimension_numbers = #tpu.dot_dimension_numbers<[1], [0], [0], [1], [0, 0, 1, 1], [], []>} : vector<8x32xbf16>, vector<32x64xbf16>, vector<8x64xf32> -> vector<8x64xf32>
    %c0_512 = arith.constant 0 : index
    %c0_513 = arith.constant 0 : index
    %927 = vector.load %arg58[%c0_512, %c0_513] : memref<1x64xf32, #tpu.memory_space<vmem>>, vector<1x64xf32>
    %928 = vector.broadcast %927 : vector<1x64xf32> to vector<8x64xf32>
    %929 = arith.addf %926, %928 : vector<8x64xf32>
    %930 = arith.mulf %929, %929 : vector<8x64xf32>
    %931 = arith.mulf %929, %930 : vector<8x64xf32>
    %cst_514 = arith.constant 4.471500e-02 : f32
    %932 = vector.broadcast %cst_514 : f32 to vector<8x64xf32>
    %933 = arith.mulf %932, %931 : vector<8x64xf32>
    %934 = arith.addf %929, %933 : vector<8x64xf32>
    %cst_515 = arith.constant 0.797884583 : f32
    %935 = vector.broadcast %cst_515 : f32 to vector<8x64xf32>
    %936 = arith.mulf %935, %934 : vector<8x64xf32>
    %937 = math.tanh %936 : vector<8x64xf32>
    %cst_516 = arith.constant 1.000000e+00 : f32
    %938 = vector.broadcast %cst_516 : f32 to vector<8x64xf32>
    %939 = arith.addf %938, %937 : vector<8x64xf32>
    %cst_517 = arith.constant 5.000000e-01 : f32
    %940 = vector.broadcast %cst_517 : f32 to vector<8x64xf32>
    %941 = arith.mulf %940, %939 : vector<8x64xf32>
    %942 = arith.mulf %929, %941 : vector<8x64xf32>
    %c0_518 = arith.constant 0 : index
    %c0_519 = arith.constant 0 : index
    %943 = vector.load %arg59[%c0_518, %c0_519] : memref<64x32xbf16, #tpu.memory_space<vmem>>, vector<64x32xbf16>
    %944 = arith.truncf %942 : vector<8x64xf32> to vector<8x64xbf16>
    %cst_520 = arith.constant dense<0.000000e+00> : vector<8x32xf32>
    %945 = tpu.matmul %944, %943, %cst_520 {dimension_numbers = #tpu.dot_dimension_numbers<[1], [0], [0], [1], [0, 0, 1, 1], [], []>} : vector<8x64xbf16>, vector<64x32xbf16>, vector<8x32xf32> -> vector<8x32xf32>
    %c0_521 = arith.constant 0 : index
    %c0_522 = arith.constant 0 : index
    %946 = vector.load %arg60[%c0_521, %c0_522] : memref<1x32xf32, #tpu.memory_space<vmem>>, vector<1x32xf32>
    %947 = vector.broadcast %946 : vector<1x32xf32> to vector<8x32xf32>
    %948 = arith.addf %945, %947 : vector<8x32xf32>
    %949 = arith.addf %948, %923 : vector<8x32xf32>
    %c0_523 = arith.constant 0 : index
    %c0_524 = arith.constant 0 : index
    %950 = vector.load %arg61[%c0_523, %c0_524] : memref<1x32xf32, #tpu.memory_space<vmem>>, vector<1x32xf32>
    %c0_525 = arith.constant 0 : index
    %c0_526 = arith.constant 0 : index
    %951 = vector.load %arg62[%c0_525, %c0_526] : memref<1x32xf32, #tpu.memory_space<vmem>>, vector<1x32xf32>
    %cst_527 = arith.constant dense<0.000000e+00> : vector<8xf32>
    %952 = vector.multi_reduction <add>, %949, %cst_527 [1] : vector<8x32xf32> to vector<8xf32>
    %953 = vector.shape_cast %952 : vector<8xf32> to vector<8x1xf32>
    %cst_528 = arith.constant 3.200000e+01 : f32
    %954 = vector.broadcast %cst_528 : f32 to vector<8x1xf32>
    %955 = arith.divf %953, %954 : vector<8x1xf32>
    %956 = vector.broadcast %955 : vector<8x1xf32> to vector<8x32xf32>
    %957 = arith.subf %949, %956 : vector<8x32xf32>
    %958 = arith.mulf %957, %957 : vector<8x32xf32>
    %cst_529 = arith.constant dense<0.000000e+00> : vector<8xf32>
    %959 = vector.multi_reduction <add>, %958, %cst_529 [1] : vector<8x32xf32> to vector<8xf32>
    %960 = vector.shape_cast %959 : vector<8xf32> to vector<8x1xf32>
    %cst_530 = arith.constant 3.200000e+01 : f32
    %961 = vector.broadcast %cst_530 : f32 to vector<8x1xf32>
    %962 = arith.divf %960, %961 : vector<8x1xf32>
    %963 = vector.broadcast %955 : vector<8x1xf32> to vector<8x32xf32>
    %964 = arith.subf %949, %963 : vector<8x32xf32>
    %cst_531 = arith.constant 9.99999996E-13 : f32
    %965 = vector.broadcast %cst_531 : f32 to vector<8x1xf32>
    %966 = arith.addf %962, %965 : vector<8x1xf32>
    %967 = math.rsqrt %966 : vector<8x1xf32>
    %968 = vector.broadcast %967 : vector<8x1xf32> to vector<8x32xf32>
    %969 = arith.mulf %964, %968 : vector<8x32xf32>
    %970 = vector.broadcast %950 : vector<1x32xf32> to vector<8x32xf32>
    %971 = arith.mulf %969, %970 : vector<8x32xf32>
    %972 = vector.broadcast %951 : vector<1x32xf32> to vector<8x32xf32>
    %973 = arith.addf %971, %972 : vector<8x32xf32>
    %c0_532 = arith.constant 0 : index
    %c0_533 = arith.constant 0 : index
    %c0_534 = arith.constant 0 : index
    %974 = vector.load %arg63[%c0_532, %c0_533, %c0_534] : memref<4x32x8xbf16, #tpu.memory_space<vmem>>, vector<1x32x8xbf16>
    %975 = vector.shape_cast %974 : vector<1x32x8xbf16> to vector<32x8xbf16>
    %976 = arith.truncf %973 : vector<8x32xf32> to vector<8x32xbf16>
    %cst_535 = arith.constant dense<0.000000e+00> : vector<8x8xf32>
    %977 = tpu.matmul %976, %975, %cst_535 {dimension_numbers = #tpu.dot_dimension_numbers<[1], [0], [0], [1], [0, 0, 1, 1], [], []>} : vector<8x32xbf16>, vector<32x8xbf16>, vector<8x8xf32> -> vector<8x8xf32>
    %c0_536 = arith.constant 0 : index
    %c0_537 = arith.constant 0 : index
    %c0_538 = arith.constant 0 : index
    %978 = vector.load %arg64[%c0_536, %c0_537, %c0_538] : memref<4x1x8xf32, #tpu.memory_space<vmem>>, vector<1x1x8xf32>
    %979 = vector.shape_cast %978 : vector<1x1x8xf32> to vector<1x8xf32>
    %980 = vector.broadcast %979 : vector<1x8xf32> to vector<8x8xf32>
    %981 = arith.addf %977, %980 : vector<8x8xf32>
    %c0_539 = arith.constant 0 : index
    %c0_540 = arith.constant 0 : index
    %c0_541 = arith.constant 0 : index
    %982 = vector.load %arg65[%c0_539, %c0_540, %c0_541] : memref<4x32x8xbf16, #tpu.memory_space<vmem>>, vector<1x32x8xbf16>
    %983 = vector.shape_cast %982 : vector<1x32x8xbf16> to vector<32x8xbf16>
    %984 = arith.truncf %973 : vector<8x32xf32> to vector<8x32xbf16>
    %cst_542 = arith.constant dense<0.000000e+00> : vector<8x8xf32>
    %985 = tpu.matmul %984, %983, %cst_542 {dimension_numbers = #tpu.dot_dimension_numbers<[1], [0], [0], [1], [0, 0, 1, 1], [], []>} : vector<8x32xbf16>, vector<32x8xbf16>, vector<8x8xf32> -> vector<8x8xf32>
    %c0_543 = arith.constant 0 : index
    %c0_544 = arith.constant 0 : index
    %c0_545 = arith.constant 0 : index
    %986 = vector.load %arg66[%c0_543, %c0_544, %c0_545] : memref<4x1x8xf32, #tpu.memory_space<vmem>>, vector<1x1x8xf32>
    %987 = vector.shape_cast %986 : vector<1x1x8xf32> to vector<1x8xf32>
    %988 = vector.broadcast %987 : vector<1x8xf32> to vector<8x8xf32>
    %989 = arith.addf %985, %988 : vector<8x8xf32>
    %c0_546 = arith.constant 0 : index
    %c0_547 = arith.constant 0 : index
    %c0_548 = arith.constant 0 : index
    %990 = vector.load %arg67[%c0_546, %c0_547, %c0_548] : memref<4x32x8xbf16, #tpu.memory_space<vmem>>, vector<1x32x8xbf16>
    %991 = vector.shape_cast %990 : vector<1x32x8xbf16> to vector<32x8xbf16>
    %992 = arith.truncf %973 : vector<8x32xf32> to vector<8x32xbf16>
    %cst_549 = arith.constant dense<0.000000e+00> : vector<8x8xf32>
    %993 = tpu.matmul %992, %991, %cst_549 {dimension_numbers = #tpu.dot_dimension_numbers<[1], [0], [0], [1], [0, 0, 1, 1], [], []>} : vector<8x32xbf16>, vector<32x8xbf16>, vector<8x8xf32> -> vector<8x8xf32>
    %c0_550 = arith.constant 0 : index
    %c0_551 = arith.constant 0 : index
    %c0_552 = arith.constant 0 : index
    %994 = vector.load %arg68[%c0_550, %c0_551, %c0_552] : memref<4x1x8xf32, #tpu.memory_space<vmem>>, vector<1x1x8xf32>
    %995 = vector.shape_cast %994 : vector<1x1x8xf32> to vector<1x8xf32>
    %996 = vector.broadcast %995 : vector<1x8xf32> to vector<8x8xf32>
    %997 = arith.addf %993, %996 : vector<8x8xf32>
    %998 = arith.truncf %981 : vector<8x8xf32> to vector<8x8xbf16>
    %999 = arith.truncf %989 : vector<8x8xf32> to vector<8x8xbf16>
    %cst_553 = arith.constant dense<0.000000e+00> : vector<8x8xf32>
    %1000 = tpu.matmul %998, %999, %cst_553 {dimension_numbers = #tpu.dot_dimension_numbers<[1], [1], [0], [0], [0, 0, 1, 0], [], []>} : vector<8x8xbf16>, vector<8x8xbf16>, vector<8x8xf32> -> vector<8x8xf32>
    %cst_554 = arith.constant 0.353553385 : f32
    %1001 = vector.broadcast %cst_554 : f32 to vector<8x8xf32>
    %1002 = arith.mulf %1000, %1001 : vector<8x8xf32>
    %cst_555 = arith.constant dense<0xFF800000> : vector<8xf32>
    %1003 = vector.multi_reduction <maximumf>, %1002, %cst_555 [1] : vector<8x8xf32> to vector<8xf32>
    %1004 = vector.shape_cast %1003 : vector<8xf32> to vector<8x1xf32>
    %1005 = vector.broadcast %1004 : vector<8x1xf32> to vector<8x8xf32>
    %1006 = arith.subf %1002, %1005 : vector<8x8xf32>
    %1007 = math.exp %1006 : vector<8x8xf32>
    %cst_556 = arith.constant dense<0.000000e+00> : vector<8xf32>
    %1008 = vector.multi_reduction <add>, %1007, %cst_556 [1] : vector<8x8xf32> to vector<8xf32>
    %1009 = vector.shape_cast %1008 : vector<8xf32> to vector<8x1xf32>
    %1010 = tpu.reciprocal %1009 {approx = true} : vector<8x1xf32> -> vector<8x1xf32>
    %1011 = vector.broadcast %1010 : vector<8x1xf32> to vector<8x8xf32>
    %1012 = arith.mulf %1007, %1011 : vector<8x8xf32>
    %1013 = arith.truncf %1012 : vector<8x8xf32> to vector<8x8xbf16>
    %1014 = arith.truncf %997 : vector<8x8xf32> to vector<8x8xbf16>
    %cst_557 = arith.constant dense<0.000000e+00> : vector<8x8xf32>
    %1015 = tpu.matmul %1013, %1014, %cst_557 {dimension_numbers = #tpu.dot_dimension_numbers<[1], [0], [0], [1], [0, 0, 1, 1], [], []>} : vector<8x8xbf16>, vector<8x8xbf16>, vector<8x8xf32> -> vector<8x8xf32>
    %c1_558 = arith.constant 1 : index
    %c0_559 = arith.constant 0 : index
    %c0_560 = arith.constant 0 : index
    %1016 = vector.load %arg63[%c1_558, %c0_559, %c0_560] : memref<4x32x8xbf16, #tpu.memory_space<vmem>>, vector<1x32x8xbf16>
    %1017 = vector.shape_cast %1016 : vector<1x32x8xbf16> to vector<32x8xbf16>
    %1018 = arith.truncf %973 : vector<8x32xf32> to vector<8x32xbf16>
    %cst_561 = arith.constant dense<0.000000e+00> : vector<8x8xf32>
    %1019 = tpu.matmul %1018, %1017, %cst_561 {dimension_numbers = #tpu.dot_dimension_numbers<[1], [0], [0], [1], [0, 0, 1, 1], [], []>} : vector<8x32xbf16>, vector<32x8xbf16>, vector<8x8xf32> -> vector<8x8xf32>
    %c1_562 = arith.constant 1 : index
    %c0_563 = arith.constant 0 : index
    %c0_564 = arith.constant 0 : index
    %1020 = vector.load %arg64[%c1_562, %c0_563, %c0_564] : memref<4x1x8xf32, #tpu.memory_space<vmem>>, vector<1x1x8xf32>
    %1021 = vector.shape_cast %1020 : vector<1x1x8xf32> to vector<1x8xf32>
    %1022 = vector.broadcast %1021 : vector<1x8xf32> to vector<8x8xf32>
    %1023 = arith.addf %1019, %1022 : vector<8x8xf32>
    %c1_565 = arith.constant 1 : index
    %c0_566 = arith.constant 0 : index
    %c0_567 = arith.constant 0 : index
    %1024 = vector.load %arg65[%c1_565, %c0_566, %c0_567] : memref<4x32x8xbf16, #tpu.memory_space<vmem>>, vector<1x32x8xbf16>
    %1025 = vector.shape_cast %1024 : vector<1x32x8xbf16> to vector<32x8xbf16>
    %1026 = arith.truncf %973 : vector<8x32xf32> to vector<8x32xbf16>
    %cst_568 = arith.constant dense<0.000000e+00> : vector<8x8xf32>
    %1027 = tpu.matmul %1026, %1025, %cst_568 {dimension_numbers = #tpu.dot_dimension_numbers<[1], [0], [0], [1], [0, 0, 1, 1], [], []>} : vector<8x32xbf16>, vector<32x8xbf16>, vector<8x8xf32> -> vector<8x8xf32>
    %c1_569 = arith.constant 1 : index
    %c0_570 = arith.constant 0 : index
    %c0_571 = arith.constant 0 : index
    %1028 = vector.load %arg66[%c1_569, %c0_570, %c0_571] : memref<4x1x8xf32, #tpu.memory_space<vmem>>, vector<1x1x8xf32>
    %1029 = vector.shape_cast %1028 : vector<1x1x8xf32> to vector<1x8xf32>
    %1030 = vector.broadcast %1029 : vector<1x8xf32> to vector<8x8xf32>
    %1031 = arith.addf %1027, %1030 : vector<8x8xf32>
    %c1_572 = arith.constant 1 : index
    %c0_573 = arith.constant 0 : index
    %c0_574 = arith.constant 0 : index
    %1032 = vector.load %arg67[%c1_572, %c0_573, %c0_574] : memref<4x32x8xbf16, #tpu.memory_space<vmem>>, vector<1x32x8xbf16>
    %1033 = vector.shape_cast %1032 : vector<1x32x8xbf16> to vector<32x8xbf16>
    %1034 = arith.truncf %973 : vector<8x32xf32> to vector<8x32xbf16>
    %cst_575 = arith.constant dense<0.000000e+00> : vector<8x8xf32>
    %1035 = tpu.matmul %1034, %1033, %cst_575 {dimension_numbers = #tpu.dot_dimension_numbers<[1], [0], [0], [1], [0, 0, 1, 1], [], []>} : vector<8x32xbf16>, vector<32x8xbf16>, vector<8x8xf32> -> vector<8x8xf32>
    %c1_576 = arith.constant 1 : index
    %c0_577 = arith.constant 0 : index
    %c0_578 = arith.constant 0 : index
    %1036 = vector.load %arg68[%c1_576, %c0_577, %c0_578] : memref<4x1x8xf32, #tpu.memory_space<vmem>>, vector<1x1x8xf32>
    %1037 = vector.shape_cast %1036 : vector<1x1x8xf32> to vector<1x8xf32>
    %1038 = vector.broadcast %1037 : vector<1x8xf32> to vector<8x8xf32>
    %1039 = arith.addf %1035, %1038 : vector<8x8xf32>
    %1040 = arith.truncf %1023 : vector<8x8xf32> to vector<8x8xbf16>
    %1041 = arith.truncf %1031 : vector<8x8xf32> to vector<8x8xbf16>
    %cst_579 = arith.constant dense<0.000000e+00> : vector<8x8xf32>
    %1042 = tpu.matmul %1040, %1041, %cst_579 {dimension_numbers = #tpu.dot_dimension_numbers<[1], [1], [0], [0], [0, 0, 1, 0], [], []>} : vector<8x8xbf16>, vector<8x8xbf16>, vector<8x8xf32> -> vector<8x8xf32>
    %cst_580 = arith.constant 0.353553385 : f32
    %1043 = vector.broadcast %cst_580 : f32 to vector<8x8xf32>
    %1044 = arith.mulf %1042, %1043 : vector<8x8xf32>
    %cst_581 = arith.constant dense<0xFF800000> : vector<8xf32>
    %1045 = vector.multi_reduction <maximumf>, %1044, %cst_581 [1] : vector<8x8xf32> to vector<8xf32>
    %1046 = vector.shape_cast %1045 : vector<8xf32> to vector<8x1xf32>
    %1047 = vector.broadcast %1046 : vector<8x1xf32> to vector<8x8xf32>
    %1048 = arith.subf %1044, %1047 : vector<8x8xf32>
    %1049 = math.exp %1048 : vector<8x8xf32>
    %cst_582 = arith.constant dense<0.000000e+00> : vector<8xf32>
    %1050 = vector.multi_reduction <add>, %1049, %cst_582 [1] : vector<8x8xf32> to vector<8xf32>
    %1051 = vector.shape_cast %1050 : vector<8xf32> to vector<8x1xf32>
    %1052 = tpu.reciprocal %1051 {approx = true} : vector<8x1xf32> -> vector<8x1xf32>
    %1053 = vector.broadcast %1052 : vector<8x1xf32> to vector<8x8xf32>
    %1054 = arith.mulf %1049, %1053 : vector<8x8xf32>
    %1055 = arith.truncf %1054 : vector<8x8xf32> to vector<8x8xbf16>
    %1056 = arith.truncf %1039 : vector<8x8xf32> to vector<8x8xbf16>
    %cst_583 = arith.constant dense<0.000000e+00> : vector<8x8xf32>
    %1057 = tpu.matmul %1055, %1056, %cst_583 {dimension_numbers = #tpu.dot_dimension_numbers<[1], [0], [0], [1], [0, 0, 1, 1], [], []>} : vector<8x8xbf16>, vector<8x8xbf16>, vector<8x8xf32> -> vector<8x8xf32>
    %c2_584 = arith.constant 2 : index
    %c0_585 = arith.constant 0 : index
    %c0_586 = arith.constant 0 : index
    %1058 = vector.load %arg63[%c2_584, %c0_585, %c0_586] : memref<4x32x8xbf16, #tpu.memory_space<vmem>>, vector<1x32x8xbf16>
    %1059 = vector.shape_cast %1058 : vector<1x32x8xbf16> to vector<32x8xbf16>
    %1060 = arith.truncf %973 : vector<8x32xf32> to vector<8x32xbf16>
    %cst_587 = arith.constant dense<0.000000e+00> : vector<8x8xf32>
    %1061 = tpu.matmul %1060, %1059, %cst_587 {dimension_numbers = #tpu.dot_dimension_numbers<[1], [0], [0], [1], [0, 0, 1, 1], [], []>} : vector<8x32xbf16>, vector<32x8xbf16>, vector<8x8xf32> -> vector<8x8xf32>
    %c2_588 = arith.constant 2 : index
    %c0_589 = arith.constant 0 : index
    %c0_590 = arith.constant 0 : index
    %1062 = vector.load %arg64[%c2_588, %c0_589, %c0_590] : memref<4x1x8xf32, #tpu.memory_space<vmem>>, vector<1x1x8xf32>
    %1063 = vector.shape_cast %1062 : vector<1x1x8xf32> to vector<1x8xf32>
    %1064 = vector.broadcast %1063 : vector<1x8xf32> to vector<8x8xf32>
    %1065 = arith.addf %1061, %1064 : vector<8x8xf32>
    %c2_591 = arith.constant 2 : index
    %c0_592 = arith.constant 0 : index
    %c0_593 = arith.constant 0 : index
    %1066 = vector.load %arg65[%c2_591, %c0_592, %c0_593] : memref<4x32x8xbf16, #tpu.memory_space<vmem>>, vector<1x32x8xbf16>
    %1067 = vector.shape_cast %1066 : vector<1x32x8xbf16> to vector<32x8xbf16>
    %1068 = arith.truncf %973 : vector<8x32xf32> to vector<8x32xbf16>
    %cst_594 = arith.constant dense<0.000000e+00> : vector<8x8xf32>
    %1069 = tpu.matmul %1068, %1067, %cst_594 {dimension_numbers = #tpu.dot_dimension_numbers<[1], [0], [0], [1], [0, 0, 1, 1], [], []>} : vector<8x32xbf16>, vector<32x8xbf16>, vector<8x8xf32> -> vector<8x8xf32>
    %c2_595 = arith.constant 2 : index
    %c0_596 = arith.constant 0 : index
    %c0_597 = arith.constant 0 : index
    %1070 = vector.load %arg66[%c2_595, %c0_596, %c0_597] : memref<4x1x8xf32, #tpu.memory_space<vmem>>, vector<1x1x8xf32>
    %1071 = vector.shape_cast %1070 : vector<1x1x8xf32> to vector<1x8xf32>
    %1072 = vector.broadcast %1071 : vector<1x8xf32> to vector<8x8xf32>
    %1073 = arith.addf %1069, %1072 : vector<8x8xf32>
    %c2_598 = arith.constant 2 : index
    %c0_599 = arith.constant 0 : index
    %c0_600 = arith.constant 0 : index
    %1074 = vector.load %arg67[%c2_598, %c0_599, %c0_600] : memref<4x32x8xbf16, #tpu.memory_space<vmem>>, vector<1x32x8xbf16>
    %1075 = vector.shape_cast %1074 : vector<1x32x8xbf16> to vector<32x8xbf16>
    %1076 = arith.truncf %973 : vector<8x32xf32> to vector<8x32xbf16>
    %cst_601 = arith.constant dense<0.000000e+00> : vector<8x8xf32>
    %1077 = tpu.matmul %1076, %1075, %cst_601 {dimension_numbers = #tpu.dot_dimension_numbers<[1], [0], [0], [1], [0, 0, 1, 1], [], []>} : vector<8x32xbf16>, vector<32x8xbf16>, vector<8x8xf32> -> vector<8x8xf32>
    %c2_602 = arith.constant 2 : index
    %c0_603 = arith.constant 0 : index
    %c0_604 = arith.constant 0 : index
    %1078 = vector.load %arg68[%c2_602, %c0_603, %c0_604] : memref<4x1x8xf32, #tpu.memory_space<vmem>>, vector<1x1x8xf32>
    %1079 = vector.shape_cast %1078 : vector<1x1x8xf32> to vector<1x8xf32>
    %1080 = vector.broadcast %1079 : vector<1x8xf32> to vector<8x8xf32>
    %1081 = arith.addf %1077, %1080 : vector<8x8xf32>
    %1082 = arith.truncf %1065 : vector<8x8xf32> to vector<8x8xbf16>
    %1083 = arith.truncf %1073 : vector<8x8xf32> to vector<8x8xbf16>
    %cst_605 = arith.constant dense<0.000000e+00> : vector<8x8xf32>
    %1084 = tpu.matmul %1082, %1083, %cst_605 {dimension_numbers = #tpu.dot_dimension_numbers<[1], [1], [0], [0], [0, 0, 1, 0], [], []>} : vector<8x8xbf16>, vector<8x8xbf16>, vector<8x8xf32> -> vector<8x8xf32>
    %cst_606 = arith.constant 0.353553385 : f32
    %1085 = vector.broadcast %cst_606 : f32 to vector<8x8xf32>
    %1086 = arith.mulf %1084, %1085 : vector<8x8xf32>
    %cst_607 = arith.constant dense<0xFF800000> : vector<8xf32>
    %1087 = vector.multi_reduction <maximumf>, %1086, %cst_607 [1] : vector<8x8xf32> to vector<8xf32>
    %1088 = vector.shape_cast %1087 : vector<8xf32> to vector<8x1xf32>
    %1089 = vector.broadcast %1088 : vector<8x1xf32> to vector<8x8xf32>
    %1090 = arith.subf %1086, %1089 : vector<8x8xf32>
    %1091 = math.exp %1090 : vector<8x8xf32>
    %cst_608 = arith.constant dense<0.000000e+00> : vector<8xf32>
    %1092 = vector.multi_reduction <add>, %1091, %cst_608 [1] : vector<8x8xf32> to vector<8xf32>
    %1093 = vector.shape_cast %1092 : vector<8xf32> to vector<8x1xf32>
    %1094 = tpu.reciprocal %1093 {approx = true} : vector<8x1xf32> -> vector<8x1xf32>
    %1095 = vector.broadcast %1094 : vector<8x1xf32> to vector<8x8xf32>
    %1096 = arith.mulf %1091, %1095 : vector<8x8xf32>
    %1097 = arith.truncf %1096 : vector<8x8xf32> to vector<8x8xbf16>
    %1098 = arith.truncf %1081 : vector<8x8xf32> to vector<8x8xbf16>
    %cst_609 = arith.constant dense<0.000000e+00> : vector<8x8xf32>
    %1099 = tpu.matmul %1097, %1098, %cst_609 {dimension_numbers = #tpu.dot_dimension_numbers<[1], [0], [0], [1], [0, 0, 1, 1], [], []>} : vector<8x8xbf16>, vector<8x8xbf16>, vector<8x8xf32> -> vector<8x8xf32>
    %c3_610 = arith.constant 3 : index
    %c0_611 = arith.constant 0 : index
    %c0_612 = arith.constant 0 : index
    %1100 = vector.load %arg63[%c3_610, %c0_611, %c0_612] : memref<4x32x8xbf16, #tpu.memory_space<vmem>>, vector<1x32x8xbf16>
    %1101 = vector.shape_cast %1100 : vector<1x32x8xbf16> to vector<32x8xbf16>
    %1102 = arith.truncf %973 : vector<8x32xf32> to vector<8x32xbf16>
    %cst_613 = arith.constant dense<0.000000e+00> : vector<8x8xf32>
    %1103 = tpu.matmul %1102, %1101, %cst_613 {dimension_numbers = #tpu.dot_dimension_numbers<[1], [0], [0], [1], [0, 0, 1, 1], [], []>} : vector<8x32xbf16>, vector<32x8xbf16>, vector<8x8xf32> -> vector<8x8xf32>
    %c3_614 = arith.constant 3 : index
    %c0_615 = arith.constant 0 : index
    %c0_616 = arith.constant 0 : index
    %1104 = vector.load %arg64[%c3_614, %c0_615, %c0_616] : memref<4x1x8xf32, #tpu.memory_space<vmem>>, vector<1x1x8xf32>
    %1105 = vector.shape_cast %1104 : vector<1x1x8xf32> to vector<1x8xf32>
    %1106 = vector.broadcast %1105 : vector<1x8xf32> to vector<8x8xf32>
    %1107 = arith.addf %1103, %1106 : vector<8x8xf32>
    %c3_617 = arith.constant 3 : index
    %c0_618 = arith.constant 0 : index
    %c0_619 = arith.constant 0 : index
    %1108 = vector.load %arg65[%c3_617, %c0_618, %c0_619] : memref<4x32x8xbf16, #tpu.memory_space<vmem>>, vector<1x32x8xbf16>
    %1109 = vector.shape_cast %1108 : vector<1x32x8xbf16> to vector<32x8xbf16>
    %1110 = arith.truncf %973 : vector<8x32xf32> to vector<8x32xbf16>
    %cst_620 = arith.constant dense<0.000000e+00> : vector<8x8xf32>
    %1111 = tpu.matmul %1110, %1109, %cst_620 {dimension_numbers = #tpu.dot_dimension_numbers<[1], [0], [0], [1], [0, 0, 1, 1], [], []>} : vector<8x32xbf16>, vector<32x8xbf16>, vector<8x8xf32> -> vector<8x8xf32>
    %c3_621 = arith.constant 3 : index
    %c0_622 = arith.constant 0 : index
    %c0_623 = arith.constant 0 : index
    %1112 = vector.load %arg66[%c3_621, %c0_622, %c0_623] : memref<4x1x8xf32, #tpu.memory_space<vmem>>, vector<1x1x8xf32>
    %1113 = vector.shape_cast %1112 : vector<1x1x8xf32> to vector<1x8xf32>
    %1114 = vector.broadcast %1113 : vector<1x8xf32> to vector<8x8xf32>
    %1115 = arith.addf %1111, %1114 : vector<8x8xf32>
    %c3_624 = arith.constant 3 : index
    %c0_625 = arith.constant 0 : index
    %c0_626 = arith.constant 0 : index
    %1116 = vector.load %arg67[%c3_624, %c0_625, %c0_626] : memref<4x32x8xbf16, #tpu.memory_space<vmem>>, vector<1x32x8xbf16>
    %1117 = vector.shape_cast %1116 : vector<1x32x8xbf16> to vector<32x8xbf16>
    %1118 = arith.truncf %973 : vector<8x32xf32> to vector<8x32xbf16>
    %cst_627 = arith.constant dense<0.000000e+00> : vector<8x8xf32>
    %1119 = tpu.matmul %1118, %1117, %cst_627 {dimension_numbers = #tpu.dot_dimension_numbers<[1], [0], [0], [1], [0, 0, 1, 1], [], []>} : vector<8x32xbf16>, vector<32x8xbf16>, vector<8x8xf32> -> vector<8x8xf32>
    %c3_628 = arith.constant 3 : index
    %c0_629 = arith.constant 0 : index
    %c0_630 = arith.constant 0 : index
    %1120 = vector.load %arg68[%c3_628, %c0_629, %c0_630] : memref<4x1x8xf32, #tpu.memory_space<vmem>>, vector<1x1x8xf32>
    %1121 = vector.shape_cast %1120 : vector<1x1x8xf32> to vector<1x8xf32>
    %1122 = vector.broadcast %1121 : vector<1x8xf32> to vector<8x8xf32>
    %1123 = arith.addf %1119, %1122 : vector<8x8xf32>
    %1124 = arith.truncf %1107 : vector<8x8xf32> to vector<8x8xbf16>
    %1125 = arith.truncf %1115 : vector<8x8xf32> to vector<8x8xbf16>
    %cst_631 = arith.constant dense<0.000000e+00> : vector<8x8xf32>
    %1126 = tpu.matmul %1124, %1125, %cst_631 {dimension_numbers = #tpu.dot_dimension_numbers<[1], [1], [0], [0], [0, 0, 1, 0], [], []>} : vector<8x8xbf16>, vector<8x8xbf16>, vector<8x8xf32> -> vector<8x8xf32>
    %cst_632 = arith.constant 0.353553385 : f32
    %1127 = vector.broadcast %cst_632 : f32 to vector<8x8xf32>
    %1128 = arith.mulf %1126, %1127 : vector<8x8xf32>
    %cst_633 = arith.constant dense<0xFF800000> : vector<8xf32>
    %1129 = vector.multi_reduction <maximumf>, %1128, %cst_633 [1] : vector<8x8xf32> to vector<8xf32>
    %1130 = vector.shape_cast %1129 : vector<8xf32> to vector<8x1xf32>
    %1131 = vector.broadcast %1130 : vector<8x1xf32> to vector<8x8xf32>
    %1132 = arith.subf %1128, %1131 : vector<8x8xf32>
    %1133 = math.exp %1132 : vector<8x8xf32>
    %cst_634 = arith.constant dense<0.000000e+00> : vector<8xf32>
    %1134 = vector.multi_reduction <add>, %1133, %cst_634 [1] : vector<8x8xf32> to vector<8xf32>
    %1135 = vector.shape_cast %1134 : vector<8xf32> to vector<8x1xf32>
    %1136 = tpu.reciprocal %1135 {approx = true} : vector<8x1xf32> -> vector<8x1xf32>
    %1137 = vector.broadcast %1136 : vector<8x1xf32> to vector<8x8xf32>
    %1138 = arith.mulf %1133, %1137 : vector<8x8xf32>
    %1139 = arith.truncf %1138 : vector<8x8xf32> to vector<8x8xbf16>
    %1140 = arith.truncf %1123 : vector<8x8xf32> to vector<8x8xbf16>
    %cst_635 = arith.constant dense<0.000000e+00> : vector<8x8xf32>
    %1141 = tpu.matmul %1139, %1140, %cst_635 {dimension_numbers = #tpu.dot_dimension_numbers<[1], [0], [0], [1], [0, 0, 1, 1], [], []>} : vector<8x8xbf16>, vector<8x8xbf16>, vector<8x8xf32> -> vector<8x8xf32>
    %1142 = tpu.concatenate %1015, %1057, %1099, %1141 in 1 : vector<8x8xf32>, vector<8x8xf32>, vector<8x8xf32>, vector<8x8xf32> -> vector<8x32xf32>
    %c0_636 = arith.constant 0 : index
    %c0_637 = arith.constant 0 : index
    %1143 = vector.load %arg69[%c0_636, %c0_637] : memref<32x32xbf16, #tpu.memory_space<vmem>>, vector<32x32xbf16>
    %1144 = arith.truncf %1142 : vector<8x32xf32> to vector<8x32xbf16>
    %cst_638 = arith.constant dense<0.000000e+00> : vector<8x32xf32>
    %1145 = tpu.matmul %1144, %1143, %cst_638 {dimension_numbers = #tpu.dot_dimension_numbers<[1], [0], [0], [1], [0, 0, 1, 1], [], []>} : vector<8x32xbf16>, vector<32x32xbf16>, vector<8x32xf32> -> vector<8x32xf32>
    %c0_639 = arith.constant 0 : index
    %c0_640 = arith.constant 0 : index
    %1146 = vector.load %arg70[%c0_639, %c0_640] : memref<1x32xf32, #tpu.memory_space<vmem>>, vector<1x32xf32>
    %1147 = vector.broadcast %1146 : vector<1x32xf32> to vector<8x32xf32>
    %1148 = arith.addf %1145, %1147 : vector<8x32xf32>
    %1149 = arith.addf %1148, %973 : vector<8x32xf32>
    %c0_641 = arith.constant 0 : index
    %c0_642 = arith.constant 0 : index
    %1150 = vector.load %arg71[%c0_641, %c0_642] : memref<1x32xf32, #tpu.memory_space<vmem>>, vector<1x32xf32>
    %c0_643 = arith.constant 0 : index
    %c0_644 = arith.constant 0 : index
    %1151 = vector.load %arg72[%c0_643, %c0_644] : memref<1x32xf32, #tpu.memory_space<vmem>>, vector<1x32xf32>
    %cst_645 = arith.constant dense<0.000000e+00> : vector<8xf32>
    %1152 = vector.multi_reduction <add>, %1149, %cst_645 [1] : vector<8x32xf32> to vector<8xf32>
    %1153 = vector.shape_cast %1152 : vector<8xf32> to vector<8x1xf32>
    %cst_646 = arith.constant 3.200000e+01 : f32
    %1154 = vector.broadcast %cst_646 : f32 to vector<8x1xf32>
    %1155 = arith.divf %1153, %1154 : vector<8x1xf32>
    %1156 = vector.broadcast %1155 : vector<8x1xf32> to vector<8x32xf32>
    %1157 = arith.subf %1149, %1156 : vector<8x32xf32>
    %1158 = arith.mulf %1157, %1157 : vector<8x32xf32>
    %cst_647 = arith.constant dense<0.000000e+00> : vector<8xf32>
    %1159 = vector.multi_reduction <add>, %1158, %cst_647 [1] : vector<8x32xf32> to vector<8xf32>
    %1160 = vector.shape_cast %1159 : vector<8xf32> to vector<8x1xf32>
    %cst_648 = arith.constant 3.200000e+01 : f32
    %1161 = vector.broadcast %cst_648 : f32 to vector<8x1xf32>
    %1162 = arith.divf %1160, %1161 : vector<8x1xf32>
    %1163 = vector.broadcast %1155 : vector<8x1xf32> to vector<8x32xf32>
    %1164 = arith.subf %1149, %1163 : vector<8x32xf32>
    %cst_649 = arith.constant 9.99999996E-13 : f32
    %1165 = vector.broadcast %cst_649 : f32 to vector<8x1xf32>
    %1166 = arith.addf %1162, %1165 : vector<8x1xf32>
    %1167 = math.rsqrt %1166 : vector<8x1xf32>
    %1168 = vector.broadcast %1167 : vector<8x1xf32> to vector<8x32xf32>
    %1169 = arith.mulf %1164, %1168 : vector<8x32xf32>
    %1170 = vector.broadcast %1150 : vector<1x32xf32> to vector<8x32xf32>
    %1171 = arith.mulf %1169, %1170 : vector<8x32xf32>
    %1172 = vector.broadcast %1151 : vector<1x32xf32> to vector<8x32xf32>
    %1173 = arith.addf %1171, %1172 : vector<8x32xf32>
    %c0_650 = arith.constant 0 : index
    %c0_651 = arith.constant 0 : index
    %1174 = vector.load %arg73[%c0_650, %c0_651] : memref<32x64xbf16, #tpu.memory_space<vmem>>, vector<32x64xbf16>
    %1175 = arith.truncf %1173 : vector<8x32xf32> to vector<8x32xbf16>
    %cst_652 = arith.constant dense<0.000000e+00> : vector<8x64xf32>
    %1176 = tpu.matmul %1175, %1174, %cst_652 {dimension_numbers = #tpu.dot_dimension_numbers<[1], [0], [0], [1], [0, 0, 1, 1], [], []>} : vector<8x32xbf16>, vector<32x64xbf16>, vector<8x64xf32> -> vector<8x64xf32>
    %c0_653 = arith.constant 0 : index
    %c0_654 = arith.constant 0 : index
    %1177 = vector.load %arg74[%c0_653, %c0_654] : memref<1x64xf32, #tpu.memory_space<vmem>>, vector<1x64xf32>
    %1178 = vector.broadcast %1177 : vector<1x64xf32> to vector<8x64xf32>
    %1179 = arith.addf %1176, %1178 : vector<8x64xf32>
    %1180 = arith.mulf %1179, %1179 : vector<8x64xf32>
    %1181 = arith.mulf %1179, %1180 : vector<8x64xf32>
    %cst_655 = arith.constant 4.471500e-02 : f32
    %1182 = vector.broadcast %cst_655 : f32 to vector<8x64xf32>
    %1183 = arith.mulf %1182, %1181 : vector<8x64xf32>
    %1184 = arith.addf %1179, %1183 : vector<8x64xf32>
    %cst_656 = arith.constant 0.797884583 : f32
    %1185 = vector.broadcast %cst_656 : f32 to vector<8x64xf32>
    %1186 = arith.mulf %1185, %1184 : vector<8x64xf32>
    %1187 = math.tanh %1186 : vector<8x64xf32>
    %cst_657 = arith.constant 1.000000e+00 : f32
    %1188 = vector.broadcast %cst_657 : f32 to vector<8x64xf32>
    %1189 = arith.addf %1188, %1187 : vector<8x64xf32>
    %cst_658 = arith.constant 5.000000e-01 : f32
    %1190 = vector.broadcast %cst_658 : f32 to vector<8x64xf32>
    %1191 = arith.mulf %1190, %1189 : vector<8x64xf32>
    %1192 = arith.mulf %1179, %1191 : vector<8x64xf32>
    %c0_659 = arith.constant 0 : index
    %c0_660 = arith.constant 0 : index
    %1193 = vector.load %arg75[%c0_659, %c0_660] : memref<64x32xbf16, #tpu.memory_space<vmem>>, vector<64x32xbf16>
    %1194 = arith.truncf %1192 : vector<8x64xf32> to vector<8x64xbf16>
    %cst_661 = arith.constant dense<0.000000e+00> : vector<8x32xf32>
    %1195 = tpu.matmul %1194, %1193, %cst_661 {dimension_numbers = #tpu.dot_dimension_numbers<[1], [0], [0], [1], [0, 0, 1, 1], [], []>} : vector<8x64xbf16>, vector<64x32xbf16>, vector<8x32xf32> -> vector<8x32xf32>
    %c0_662 = arith.constant 0 : index
    %c0_663 = arith.constant 0 : index
    %1196 = vector.load %arg76[%c0_662, %c0_663] : memref<1x32xf32, #tpu.memory_space<vmem>>, vector<1x32xf32>
    %1197 = vector.broadcast %1196 : vector<1x32xf32> to vector<8x32xf32>
    %1198 = arith.addf %1195, %1197 : vector<8x32xf32>
    %1199 = arith.addf %1198, %1173 : vector<8x32xf32>
    %c0_664 = arith.constant 0 : index
    %c0_665 = arith.constant 0 : index
    %1200 = vector.load %arg77[%c0_664, %c0_665] : memref<1x32xf32, #tpu.memory_space<vmem>>, vector<1x32xf32>
    %c0_666 = arith.constant 0 : index
    %c0_667 = arith.constant 0 : index
    %1201 = vector.load %arg78[%c0_666, %c0_667] : memref<1x32xf32, #tpu.memory_space<vmem>>, vector<1x32xf32>
    %cst_668 = arith.constant dense<0.000000e+00> : vector<8xf32>
    %1202 = vector.multi_reduction <add>, %1199, %cst_668 [1] : vector<8x32xf32> to vector<8xf32>
    %1203 = vector.shape_cast %1202 : vector<8xf32> to vector<8x1xf32>
    %cst_669 = arith.constant 3.200000e+01 : f32
    %1204 = vector.broadcast %cst_669 : f32 to vector<8x1xf32>
    %1205 = arith.divf %1203, %1204 : vector<8x1xf32>
    %1206 = vector.broadcast %1205 : vector<8x1xf32> to vector<8x32xf32>
    %1207 = arith.subf %1199, %1206 : vector<8x32xf32>
    %1208 = arith.mulf %1207, %1207 : vector<8x32xf32>
    %cst_670 = arith.constant dense<0.000000e+00> : vector<8xf32>
    %1209 = vector.multi_reduction <add>, %1208, %cst_670 [1] : vector<8x32xf32> to vector<8xf32>
    %1210 = vector.shape_cast %1209 : vector<8xf32> to vector<8x1xf32>
    %cst_671 = arith.constant 3.200000e+01 : f32
    %1211 = vector.broadcast %cst_671 : f32 to vector<8x1xf32>
    %1212 = arith.divf %1210, %1211 : vector<8x1xf32>
    %1213 = vector.broadcast %1205 : vector<8x1xf32> to vector<8x32xf32>
    %1214 = arith.subf %1199, %1213 : vector<8x32xf32>
    %cst_672 = arith.constant 9.99999996E-13 : f32
    %1215 = vector.broadcast %cst_672 : f32 to vector<8x1xf32>
    %1216 = arith.addf %1212, %1215 : vector<8x1xf32>
    %1217 = math.rsqrt %1216 : vector<8x1xf32>
    %1218 = vector.broadcast %1217 : vector<8x1xf32> to vector<8x32xf32>
    %1219 = arith.mulf %1214, %1218 : vector<8x32xf32>
    %1220 = vector.broadcast %1200 : vector<1x32xf32> to vector<8x32xf32>
    %1221 = arith.mulf %1219, %1220 : vector<8x32xf32>
    %1222 = vector.broadcast %1201 : vector<1x32xf32> to vector<8x32xf32>
    %1223 = arith.addf %1221, %1222 : vector<8x32xf32>
    %c0_673 = arith.constant 0 : index
    %c0_674 = arith.constant 0 : index
    %1224 = vector.load %arg79[%c0_673, %c0_674] : memref<32x48xbf16, #tpu.memory_space<vmem>>, vector<32x48xbf16>
    %1225 = arith.truncf %1223 : vector<8x32xf32> to vector<8x32xbf16>
    %cst_675 = arith.constant dense<0.000000e+00> : vector<8x48xf32>
    %1226 = tpu.matmul %1225, %1224, %cst_675 {dimension_numbers = #tpu.dot_dimension_numbers<[1], [0], [0], [1], [0, 0, 1, 1], [], []>} : vector<8x32xbf16>, vector<32x48xbf16>, vector<8x48xf32> -> vector<8x48xf32>
    %c0_676 = arith.constant 0 : index
    %c0_677 = arith.constant 0 : index
    %1227 = vector.load %arg80[%c0_676, %c0_677] : memref<1x48xf32, #tpu.memory_space<vmem>>, vector<1x48xf32>
    %1228 = vector.broadcast %1227 : vector<1x48xf32> to vector<8x48xf32>
    %1229 = arith.addf %1226, %1228 : vector<8x48xf32>
    %c0_678 = arith.constant 0 : index
    %c0_679 = arith.constant 0 : index
    %1230 = vector.load %arg81[%c0_678, %c0_679] : memref<8x48xf32, #tpu.memory_space<vmem>>, vector<8x48xf32>
    tpu.vector_store %arg81[%c0_678, %c0_679], %1229 {strides = array<i32>} : memref<8x48xf32, #tpu.memory_space<vmem>>, vector<8x48xf32>,
    return
  }
}

</mosaic_0001>

<bundles_post_ra>
// kernel: squeeze.1
= control target key start
LH: loop header
LB: loop body
LE: loop exit
PB: predicated region body
PF: predicated region fallthrough
CT: control target
= control target key end

     0   :  { %vm3_vm0 = vcmask 31744   ;;  %s603_s12 = smov 124   ;;  %s605_s19 = smov 116   ;;  %s826_s0 = inlined_call_operand.vmem [shape: f32[1,3,16,16], index: 0, kind: input, shape index: {}]   ;;  %s827_s1 = inlined_call_operand.vmem [shape: f32[3,4,4,4,4], index: 1, kind: output, shape index: {}]  }
   0x1   :  { %v539_v0 = vld [vmem:[%s826_s0 + $0x10] sm:$0xff]   ;;  %v41_v1 = vld [vmem:[%s826_s0] sm:$0xff]   ;;  %v540_v2 = vld [vmem:[%s826_s0 + $0x18] sm:$0xff]  }
   0x2   :  { %60 = vrot.lane.b32.xlu1 %v539_v0, %s603_s12  ;;  %42 = vrot.lane.b32.xlu0 %v41_v1, %s603_s12  ;;  %v538_v3 = vld [vmem:[%s826_s0 + $0x8] sm:$0xff]   ;;  %4 = vst.msk [vmem:[#allocation0] ss:$8 sm:$0xf] %vm3_vm0, %v41_v1   ;;  %v541_v5 = vld [vmem:[%s826_s0 + $0x20] sm:$0xff]  }
   0x3   :  { %v542_v4 = vld [vmem:[%s826_s0 + $0x28] sm:$0xff]   ;;  %5 = vst.msk [vmem:[#allocation0] ss:$8 sm:$0xf0] %vm3_vm0, %v41_v1   ;;  %s604_s0 = smov 120  }
   0x4   :  { %24 = vst.msk [vmem:[#allocation0 + $0xc0] ss:$8 sm:$0xf] %vm3_vm0, %v540_v2   ;;  %26 = vst.msk [vmem:[#allocation0 + $0xc0] ss:$8 sm:$0xf0] %vm3_vm0, %v540_v2  }
   0x5   :  { %17 = vst.msk [vmem:[#allocation0 + $0x80] ss:$8 sm:$0xf] %vm3_vm0, %v539_v0   ;;  %19 = vst.msk [vmem:[#allocation0 + $0x80] ss:$8 sm:$0xf0] %vm3_vm0, %v539_v0  }
   0x6   :  { %10 = vst.msk [vmem:[#allocation0 + $0x40] ss:$8 sm:$0xf] %vm3_vm0, %v538_v3   ;;  %12 = vst.msk [vmem:[#allocation0 + $0x40] ss:$8 sm:$0xf0] %vm3_vm0, %v538_v3   ;;  %69 = vrot.lane.b32.xlu1 %v540_v2, %s603_s12  ;;  %51 = vrot.lane.b32.xlu0 %v538_v3, %s603_s12 }
   0x7   :  { %38 = vst.msk [vmem:[#allocation0 + $0x140] ss:$8 sm:$0xf] %vm3_vm0, %v542_v4   ;;  %40 = vst.msk [vmem:[#allocation0 + $0x140] ss:$8 sm:$0xf0] %vm3_vm0, %v542_v4  }
   0x8   :  { %31 = vst.msk [vmem:[#allocation0 + $0x100] ss:$8 sm:$0xf] %vm3_vm0, %v541_v5   ;;  %33 = vst.msk [vmem:[#allocation0 + $0x100] ss:$8 sm:$0xf0] %vm3_vm0, %v541_v5  }
   0xa   :  { %87 = vrot.lane.b32.xlu1 %v542_v4, %s603_s12  ;;  %78 = vrot.lane.b32.xlu0 %v541_v5, %s603_s12 }
   0xe   :  { %104 = vrot.lane.b32.xlu1 %v538_v3, %s604_s0  ;;  %95 = vrot.lane.b32.xlu0 %v41_v1, %s604_s0 }
  0x12   :  { %122 = vrot.lane.b32.xlu1 %v540_v2, %s604_s0  ;;  %113 = vrot.lane.b32.xlu0 %v539_v0, %s604_s0 }
  0x16   :  { %140 = vrot.lane.b32.xlu1 %v542_v4, %s604_s0  ;;  %131 = vrot.lane.b32.xlu0 %v541_v5, %s604_s0 }
  0x1a   :  { %157 = vrot.lane.b32.xlu1 %v538_v3, %s605_s19  ;;  %148 = vrot.lane.b32.xlu0 %v41_v1, %s605_s19 }
  0x1e   :  { %175 = vrot.lane.b32.xlu1 %v540_v2, %s605_s19  ;;  %166 = vrot.lane.b32.xlu0 %v539_v0, %s605_s19 }
  0x22   :  { %193 = vrot.lane.b32.xlu1 %v542_v4, %s605_s19  ;;  %184 = vrot.lane.b32.xlu0 %v541_v5, %s605_s19 }
  0x74   :  { %v61_v6 = vpop.permute.xlu1 %60   ;;  %v43_v7 = vpop.permute.xlu0 %42  }
  0x75   :  { %64 = vst.msk [vmem:[#allocation0 + $0x81] ss:$8 sm:$0xf] %vm3_vm0, %v61_v6   ;;  %66 = vst.msk [vmem:[#allocation0 + $0x81] ss:$8 sm:$0xf0] %vm3_vm0, %v61_v6  }
  0x76   :  { %46 = vst.msk [vmem:[#allocation0 + $0x1] ss:$8 sm:$0xf] %vm3_vm0, %v43_v7   ;;  %48 = vst.msk [vmem:[#allocation0 + $0x1] ss:$8 sm:$0xf0] %vm3_vm0, %v43_v7  }
  0x78   :  { %v70_v8 = vpop.permute.xlu1 %69   ;;  %v52_v9 = vpop.permute.xlu0 %51  }
  0x79   :  { %73 = vst.msk [vmem:[#allocation0 + $0xc1] ss:$8 sm:$0xf] %vm3_vm0, %v70_v8   ;;  %75 = vst.msk [vmem:[#allocation0 + $0xc1] ss:$8 sm:$0xf0] %vm3_vm0, %v70_v8  }
  0x7a   :  { %55 = vst.msk [vmem:[#allocation0 + $0x41] ss:$8 sm:$0xf] %vm3_vm0, %v52_v9   ;;  %57 = vst.msk [vmem:[#allocation0 + $0x41] ss:$8 sm:$0xf0] %vm3_vm0, %v52_v9  }
  0x7c   :  { %v88_v10 = vpop.permute.xlu1 %87   ;;  %v79_v11 = vpop.permute.xlu0 %78  }
  0x7d   :  { %91 = vst.msk [vmem:[#allocation0 + $0x141] ss:$8 sm:$0xf] %vm3_vm0, %v88_v10   ;;  %93 = vst.msk [vmem:[#allocation0 + $0x141] ss:$8 sm:$0xf0] %vm3_vm0, %v88_v10  }
  0x7e   :  { %82 = vst.msk [vmem:[#allocation0 + $0x101] ss:$8 sm:$0xf] %vm3_vm0, %v79_v11   ;;  %84 = vst.msk [vmem:[#allocation0 + $0x101] ss:$8 sm:$0xf0] %vm3_vm0, %v79_v11  }
  0x80   :  { %v105_v12 = vpop.permute.xlu1 %104   ;;  %v96_v13 = vpop.permute.xlu0 %95  }
  0x81   :  { %108 = vst.msk [vmem:[#allocation0 + $0x42] ss:$8 sm:$0xf] %vm3_vm0, %v105_v12   ;;  %110 = vst.msk [vmem:[#allocation0 + $0x42] ss:$8 sm:$0xf0] %vm3_vm0, %v105_v12  }
  0x82   :  { %99 = vst.msk [vmem:[#allocation0 + $0x2] ss:$8 sm:$0xf] %vm3_vm0, %v96_v13   ;;  %101 = vst.msk [vmem:[#allocation0 + $0x2] ss:$8 sm:$0xf0] %vm3_vm0, %v96_v13  }
  0x84   :  { %v123_v14 = vpop.permute.xlu1 %122   ;;  %v114_v15 = vpop.permute.xlu0 %113  }
  0x85   :  { %126 = vst.msk [vmem:[#allocation0 + $0xc2] ss:$8 sm:$0xf] %vm3_vm0, %v123_v14   ;;  %128 = vst.msk [vmem:[#allocation0 + $0xc2] ss:$8 sm:$0xf0] %vm3_vm0, %v123_v14  }
  0x86   :  { %117 = vst.msk [vmem:[#allocation0 + $0x82] ss:$8 sm:$0xf] %vm3_vm0, %v114_v15   ;;  %119 = vst.msk [vmem:[#allocation0 + $0x82] ss:$8 sm:$0xf0] %vm3_vm0, %v114_v15  }
  0x88   :  { %v141_v16 = vpop.permute.xlu1 %140   ;;  %v132_v17 = vpop.permute.xlu0 %131  }
  0x89   :  { %144 = vst.msk [vmem:[#allocation0 + $0x142] ss:$8 sm:$0xf] %vm3_vm0, %v141_v16   ;;  %146 = vst.msk [vmem:[#allocation0 + $0x142] ss:$8 sm:$0xf0] %vm3_vm0, %v141_v16  }
  0x8a   :  { %135 = vst.msk [vmem:[#allocation0 + $0x102] ss:$8 sm:$0xf] %vm3_vm0, %v132_v17   ;;  %137 = vst.msk [vmem:[#allocation0 + $0x102] ss:$8 sm:$0xf0] %vm3_vm0, %v132_v17  }
  0x8c   :  { %v158_v18 = vpop.permute.xlu1 %157   ;;  %v149_v19 = vpop.permute.xlu0 %148  }
  0x8d   :  { %161 = vst.msk [vmem:[#allocation0 + $0x43] ss:$8 sm:$0xf] %vm3_vm0, %v158_v18   ;;  %163 = vst.msk [vmem:[#allocation0 + $0x43] ss:$8 sm:$0xf0] %vm3_vm0, %v158_v18  }
  0x8e   :  { %152 = vst.msk [vmem:[#allocation0 + $0x3] ss:$8 sm:$0xf] %vm3_vm0, %v149_v19   ;;  %154 = vst.msk [vmem:[#allocation0 + $0x3] ss:$8 sm:$0xf0] %vm3_vm0, %v149_v19  }
  0x90   :  { %v176_v20 = vpop.permute.xlu1 %175   ;;  %v167_v21 = vpop.permute.xlu0 %166  }
  0x91   :  { %179 = vst.msk [vmem:[#allocation0 + $0xc3] ss:$8 sm:$0xf] %vm3_vm0, %v176_v20   ;;  %181 = vst.msk [vmem:[#allocation0 + $0xc3] ss:$8 sm:$0xf0] %vm3_vm0, %v176_v20  }
  0x92   :  { %170 = vst.msk [vmem:[#allocation0 + $0x83] ss:$8 sm:$0xf] %vm3_vm0, %v167_v21   ;;  %172 = vst.msk [vmem:[#allocation0 + $0x83] ss:$8 sm:$0xf0] %vm3_vm0, %v167_v21  }
  0x94   :  { %v248_v22 = vld [vmem:[#allocation0 + $0x40] sm:$0xf]  ;;  %v254_v23 = vld [vmem:[#allocation0 + $0x48] sm:$0xf]  ;;  %v260_v24 = vld [vmem:[#allocation0 + $0x50] sm:$0xf]  ;;  %v194_v25 = vpop.permute.xlu1 %193   ;;  %v185_v26 = vpop.permute.xlu0 %184  }
  0x95   :  { %560 = vst [vmem:[%s827_s1 + $0x20] sm:$0xf] %v248_v22  ;;  %561 = vst [vmem:[%s827_s1 + $0x24] sm:$0xf] %v254_v23  ;;  %v266_v27 = vld [vmem:[#allocation0 + $0x58] sm:$0xf] }
  0x96   :  { %562 = vst [vmem:[%s827_s1 + $0x28] sm:$0xf] %v260_v24  ;;  %v272_v28 = vld [vmem:[#allocation0 + $0x60] sm:$0xf]  ;;  %v278_v29 = vld [vmem:[#allocation0 + $0x68] sm:$0xf] }
  0x97   :  { %197 = vst.msk [vmem:[#allocation0 + $0x143] ss:$8 sm:$0xf] %vm3_vm0, %v194_v25   ;;  %199 = vst.msk [vmem:[#allocation0 + $0x143] ss:$8 sm:$0xf0] %vm3_vm0, %v194_v25  }
  0x98   :  { %188 = vst.msk [vmem:[#allocation0 + $0x103] ss:$8 sm:$0xf] %vm3_vm0, %v185_v26   ;;  %190 = vst.msk [vmem:[#allocation0 + $0x103] ss:$8 sm:$0xf0] %vm3_vm0, %v185_v26  }
  0x99   :  { %563 = vst [vmem:[%s827_s1 + $0x2c] sm:$0xf] %v266_v27  ;;  %564 = vst [vmem:[%s827_s1 + $0x30] sm:$0xf] %v272_v28  ;;  %v284_v30 = vld [vmem:[#allocation0 + $0x70] sm:$0xf] }
  0x9a   :  { %565 = vst [vmem:[%s827_s1 + $0x34] sm:$0xf] %v278_v29  ;;  %v290_v31 = vld [vmem:[#allocation0 + $0x78] sm:$0xf]  ;;  %v203_v32 = vld [vmem:[#allocation0] sm:$0xf] }
  0x9b   :  { %566 = vst [vmem:[%s827_s1 + $0x38] sm:$0xf] %v284_v30  ;;  %567 = vst [vmem:[%s827_s1 + $0x3c] sm:$0xf] %v290_v31  ;;  %v207_v33 = vld [vmem:[#allocation0 + $0x8] sm:$0xf] }
  0x9c   :  { %205 = vst [vmem:[%s827_s1] sm:$0xf] %v203_v32  ;;  %v212_v34 = vld [vmem:[#allocation0 + $0x10] sm:$0xf]  ;;  %v218_v35 = vld [vmem:[#allocation0 + $0x18] sm:$0xf] }
  0x9d   :  { %553 = vst [vmem:[%s827_s1 + $0x4] sm:$0xf] %v207_v33  ;;  %554 = vst [vmem:[%s827_s1 + $0x8] sm:$0xf] %v212_v34  ;;  %v224_v36 = vld [vmem:[#allocation0 + $0x20] sm:$0xf] }
  0x9e   :  { %555 = vst [vmem:[%s827_s1 + $0xc] sm:$0xf] %v218_v35  ;;  %v230_v37 = vld [vmem:[#allocation0 + $0x28] sm:$0xf]  ;;  %v236_v38 = vld [vmem:[#allocation0 + $0x30] sm:$0xf] }
  0x9f   :  { %556 = vst [vmem:[%s827_s1 + $0x10] sm:$0xf] %v224_v36  ;;  %557 = vst [vmem:[%s827_s1 + $0x14] sm:$0xf] %v230_v37  ;;  %v242_v39 = vld [vmem:[#allocation0 + $0x38] sm:$0xf] }
  0xa0   :  { %558 = vst [vmem:[%s827_s1 + $0x18] sm:$0xf] %v236_v38  ;;  %v344_v40 = vld [vmem:[#allocation0 + $0xc0] sm:$0xf]  ;;  %v350_v41 = vld [vmem:[#allocation0 + $0xc8] sm:$0xf] }
  0xa1   :  { %559 = vst [vmem:[%s827_s1 + $0x1c] sm:$0xf] %v242_v39  ;;  %576 = vst [vmem:[%s827_s1 + $0x60] sm:$0xf] %v344_v40  ;;  %v356_v42 = vld [vmem:[#allocation0 + $0xd0] sm:$0xf] }
  0xa2   :  { %577 = vst [vmem:[%s827_s1 + $0x64] sm:$0xf] %v350_v41  ;;  %v362_v43 = vld [vmem:[#allocation0 + $0xd8] sm:$0xf]  ;;  %v368_v44 = vld [vmem:[#allocation0 + $0xe0] sm:$0xf] }
  0xa3   :  { %578 = vst [vmem:[%s827_s1 + $0x68] sm:$0xf] %v356_v42  ;;  %579 = vst [vmem:[%s827_s1 + $0x6c] sm:$0xf] %v362_v43  ;;  %v374_v45 = vld [vmem:[#allocation0 + $0xe8] sm:$0xf] }
  0xa4   :  { %580 = vst [vmem:[%s827_s1 + $0x70] sm:$0xf] %v368_v44  ;;  %v380_v46 = vld [vmem:[#allocation0 + $0xf0] sm:$0xf]  ;;  %v386_v47 = vld [vmem:[#allocation0 + $0xf8] sm:$0xf] }
  0xa5   :  { %581 = vst [vmem:[%s827_s1 + $0x74] sm:$0xf] %v374_v45  ;;  %582 = vst [vmem:[%s827_s1 + $0x78] sm:$0xf] %v380_v46  ;;  %v296_v48 = vld [vmem:[#allocation0 + $0x80] sm:$0xf] }
  0xa6   :  { %583 = vst [vmem:[%s827_s1 + $0x7c] sm:$0xf] %v386_v47  ;;  %v302_v49 = vld [vmem:[#allocation0 + $0x88] sm:$0xf]  ;;  %v308_v50 = vld [vmem:[#allocation0 + $0x90] sm:$0xf] }
  0xa7   :  { %568 = vst [vmem:[%s827_s1 + $0x40] sm:$0xf] %v296_v48  ;;  %569 = vst [vmem:[%s827_s1 + $0x44] sm:$0xf] %v302_v49  ;;  %v314_v51 = vld [vmem:[#allocation0 + $0x98] sm:$0xf] }
  0xa8   :  { %570 = vst [vmem:[%s827_s1 + $0x48] sm:$0xf] %v308_v50  ;;  %v320_v52 = vld [vmem:[#allocation0 + $0xa0] sm:$0xf]  ;;  %v326_v53 = vld [vmem:[#allocation0 + $0xa8] sm:$0xf] }
  0xa9   :  { %571 = vst [vmem:[%s827_s1 + $0x4c] sm:$0xf] %v314_v51  ;;  %572 = vst [vmem:[%s827_s1 + $0x50] sm:$0xf] %v320_v52  ;;  %v332_v54 = vld [vmem:[#allocation0 + $0xb0] sm:$0xf] }
  0xaa   :  { %573 = vst [vmem:[%s827_s1 + $0x54] sm:$0xf] %v326_v53  ;;  %v338_v55 = vld [vmem:[#allocation0 + $0xb8] sm:$0xf]  ;;  %v440_v56 = vld [vmem:[#allocation0 + $0x140] sm:$0xf] }
  0xab   :  { %574 = vst [vmem:[%s827_s1 + $0x58] sm:$0xf] %v332_v54  ;;  %575 = vst [vmem:[%s827_s1 + $0x5c] sm:$0xf] %v338_v55  ;;  %v446_v57 = vld [vmem:[#allocation0 + $0x148] sm:$0xf] }
  0xac   :  { %592 = vst [vmem:[%s827_s1 + $0xa0] sm:$0xf] %v440_v56  ;;  %v452_v58 = vld [vmem:[#allocation0 + $0x150] sm:$0xf]  ;;  %v458_v59 = vld [vmem:[#allocation0 + $0x158] sm:$0xf] }
  0xad   :  { %593 = vst [vmem:[%s827_s1 + $0xa4] sm:$0xf] %v446_v57  ;;  %594 = vst [vmem:[%s827_s1 + $0xa8] sm:$0xf] %v452_v58  ;;  %v464_v60 = vld [vmem:[#allocation0 + $0x160] sm:$0xf] }
  0xae   :  { %595 = vst [vmem:[%s827_s1 + $0xac] sm:$0xf] %v458_v59  ;;  %v470_v61 = vld [vmem:[#allocation0 + $0x168] sm:$0xf]  ;;  %v476_v62 = vld [vmem:[#allocation0 + $0x170] sm:$0xf] }
  0xaf   :  { %596 = vst [vmem:[%s827_s1 + $0xb0] sm:$0xf] %v464_v60  ;;  %597 = vst [vmem:[%s827_s1 + $0xb4] sm:$0xf] %v470_v61  ;;  %v482_v63 = vld [vmem:[#allocation0 + $0x178] sm:$0xf] }
  0xb0   :  { %598 = vst [vmem:[%s827_s1 + $0xb8] sm:$0xf] %v476_v62  ;;  %v392_v0 = vld [vmem:[#allocation0 + $0x100] sm:$0xf]  ;;  %v398_v1 = vld [vmem:[#allocation0 + $0x108] sm:$0xf] }
  0xb1   :  { %599 = vst [vmem:[%s827_s1 + $0xbc] sm:$0xf] %v482_v63  ;;  %584 = vst [vmem:[%s827_s1 + $0x80] sm:$0xf] %v392_v0  ;;  %v404_v2 = vld [vmem:[#allocation0 + $0x110] sm:$0xf] }
  0xb2   :  { %585 = vst [vmem:[%s827_s1 + $0x84] sm:$0xf] %v398_v1  ;;  %v410_v3 = vld [vmem:[#allocation0 + $0x118] sm:$0xf]  ;;  %v416_v4 = vld [vmem:[#allocation0 + $0x120] sm:$0xf] }
  0xb3   :  { %586 = vst [vmem:[%s827_s1 + $0x88] sm:$0xf] %v404_v2  ;;  %587 = vst [vmem:[%s827_s1 + $0x8c] sm:$0xf] %v410_v3  ;;  %v422_v5 = vld [vmem:[#allocation0 + $0x128] sm:$0xf] }
  0xb4   :  { %588 = vst [vmem:[%s827_s1 + $0x90] sm:$0xf] %v416_v4  ;;  %v428_v6 = vld [vmem:[#allocation0 + $0x130] sm:$0xf]  ;;  %v434_v7 = vld [vmem:[#allocation0 + $0x138] sm:$0xf] }
  0xb5   :  { %589 = vst [vmem:[%s827_s1 + $0x94] sm:$0xf] %v422_v5  ;;  %590 = vst [vmem:[%s827_s1 + $0x98] sm:$0xf] %v428_v6 }
  0xb6   :  { %591 = vst [vmem:[%s827_s1 + $0x9c] sm:$0xf] %v434_v7 }

// kernel: minigpt_forward.1
= control target key start
LH: loop header
LB: loop body
LE: loop exit
PB: predicated region body
PF: predicated region fallthrough
CT: control target
= control target key end

     0   :  { %s13295_s6 = smov 1   ;;  %s13296_s10 = smov 2   ;;  %s15270_s0 = inlined_call_operand.smem [shape: u32[82], index: -1, kind: input, shape index: {}] }
   0x1   :  { %s13445_s5 = sld [smem:[%s15270_s0]]   ;;  %s13297_s14 = smov 3  }
   0x2   :  { %s13450_s9 = sld [smem:[%s15270_s0 + %s13295_s6]]   ;;  %s13298_s18 = smov 4  }
   0x3   :  { %s13455_s13 = sld [smem:[%s15270_s0 + %s13296_s10]]   ;;  %s13299_s22 = smov 5  }
   0x4   :  { %s13460_s17 = sld [smem:[%s15270_s0 + %s13297_s14]]   ;;  %s13300_s26 = smov 6  }
   0x5   :  { %s13465_s21 = sld [smem:[%s15270_s0 + %s13298_s18]]   ;;  %s13301_s30 = smov 7  }
   0x6   :  { %s13470_s25 = sld [smem:[%s15270_s0 + %s13299_s22]]   ;;  %s13302_s4 = smov 8  }
   0x7   :  { %15335 = sst [smem:[#allocation108_spill]] %s13445_s5  ;;  %s13303_s10 = smov 9  }
   0x8   :  { %15336 = sst [smem:[#allocation109_spill]] %s13450_s9  ;;  %s13304_s15 = smov 10  }
   0x9   :  { %15337 = sst [smem:[#allocation110_spill]] %s13455_s13  ;;  %s13305_s20 = smov 11  }
   0xa   :  { %s13475_s29 = sld [smem:[%s15270_s0 + %s13300_s26]]   ;;  %s13306_s26 = smov 12  }
   0xb   :  { %15338 = sst [smem:[#allocation111_spill]] %s13465_s21  ;;  %s13307_s1 = smov 13  }
   0xc   :  { %s13480_s3 = sld [smem:[%s15270_s0 + %s13301_s30]]   ;;  %s13308_s7 = smov 14  }
   0xd   :  { %s13485_s8 = sld [smem:[%s15270_s0 + %s13302_s4]]   ;;  %s13310_s22 = smov 16  }
   0xe   :  { %s13490_s14 = sld [smem:[%s15270_s0 + %s13303_s10]]   ;;  %s13311_s28 = smov 17  }
   0xf   :  { %s13495_s19 = sld [smem:[%s15270_s0 + %s13304_s15]]   ;;  %s13309_s15 = smov 15  }
  0x10   :  { %15339 = sst [smem:[#allocation112_spill]] %s13475_s29 }
  0x11   :  { %s13500_s24 = sld [smem:[%s15270_s0 + %s13305_s20]]  }
  0x12   :  { %15340 = sst [smem:[#allocation113_spill]] %s13480_s3 }
  0x13   :  { %s13505_s30 = sld [smem:[%s15270_s0 + %s13306_s26]]  }
  0x14   :  { %15341 = sst [smem:[#allocation114_spill]] %s13490_s14 }
  0x15   :  { %15342 = sst [smem:[#allocation115_spill]] %s13495_s19 }
  0x16   :  { %s13510_s6 = sld [smem:[%s15270_s0 + %s13307_s1]]  }
  0x17   :  { %15343 = sst [smem:[#allocation116_spill]] %s13500_s24 }
  0x18   :  { %s13515_s12 = sld [smem:[%s15270_s0 + %s13308_s7]]   ;;  %s13312_s7 = smov 18  }
  0x19   :  { %s13520_s20 = sld [smem:[%s15270_s0 + %s13309_s15]]   ;;  %s13313_s15 = smov 19  }
  0x1a   :  { %s13525_s27 = sld [smem:[%s15270_s0 + %s13310_s22]]   ;;  %s13314_s22 = smov 20  }
  0x1b   :  { %s13530_s4 = sld [smem:[%s15270_s0 + %s13311_s28]]   ;;  %s13315_s28 = smov 21  }
  0x1c   :  { %15344 = sst [smem:[#allocation117_spill]] %s13510_s6 }
  0x1d   :  { %s13535_s14 = sld [smem:[%s15270_s0 + %s13312_s7]]   ;;  %s13316_s7 = smov 22  }
  0x1e   :  { %s13540_s19 = sld [smem:[%s15270_s0 + %s13313_s15]]   ;;  %s13317_s15 = smov 23  }
  0x1f   :  { %15345 = sst [smem:[#allocation118_spill]] %s13520_s20 }
  0x20   :  { %s13545_s3 = sld [smem:[%s15270_s0 + %s13314_s22]]   ;;  %s13318_s22 = smov 24  }
  0x21   :  { %15346 = sst [smem:[#allocation119_spill]] %s13530_s4 }
  0x22   :  { %s13550_s5 = sld [smem:[%s15270_s0 + %s13315_s28]]   ;;  %s13319_s28 = smov 25  }
  0x23   :  { %15347 = sst [smem:[#allocation120_spill]] %s13535_s14 }
  0x24   :  { %s13555_s14 = sld [smem:[%s15270_s0 + %s13316_s7]]   ;;  %s13320_s7 = smov 26  }
  0x25   :  { %s13560_s9 = sld [smem:[%s15270_s0 + %s13317_s15]]   ;;  %s13321_s15 = smov 27  }
  0x26   :  { %15348 = sst [smem:[#allocation121_spill]] %s13545_s3 }
  0x27   :  { %s13565_s3 = sld [smem:[%s15270_s0 + %s13318_s22]]   ;;  %s13322_s22 = smov 28  }
  0x28   :  { %s13570_s4 = sld [smem:[%s15270_s0 + %s13319_s28]]   ;;  %s13323_s28 = smov 29  }
  0x2a   :  { %15349 = sst [smem:[#allocation122_spill]] %s13555_s14 }
  0x2b   :  { %15350 = sst [smem:[#allocation123_spill]] %s13560_s9 }
  0x2c   :  { %s13575_s14 = sld [smem:[%s15270_s0 + %s13320_s7]]   ;;  %s13324_s7 = smov 30  }
  0x2d   :  { %15351 = sst [smem:[#allocation124_spill]] %s13565_s3 }
  0x2e   :  { %15352 = sst [smem:[#allocation125_spill]] %s13570_s4 }
  0x2f   :  { %s13580_s9 = sld [smem:[%s15270_s0 + %s13321_s15]]   ;;  %s13325_s15 = smov 31  }
  0x30   :  { %s13585_s3 = sld [smem:[%s15270_s0 + %s13322_s22]]   ;;  %s13326_s22 = smov 32  }
  0x31   :  { %s13590_s4 = sld [smem:[%s15270_s0 + %s13323_s28]]   ;;  %s13327_s28 = smov 33  }
  0x32   :  { %s13595_s20 = sld [smem:[%s15270_s0 + %s13324_s7]]   ;;  %s13328_s7 = smov 34  }
  0x33   :  { %s13610_s6 = sld [smem:[%s15270_s0 + %s13327_s28]]   ;;  %s13331_s28 = smov 37  }
  0x35   :  { %15353 = sst [smem:[#allocation126_spill]] %s13580_s9 }
  0x36   :  { %15354 = sst [smem:[#allocation127_spill]] %s13585_s3 }
  0x37   :  { %s13600_s9 = sld [smem:[%s15270_s0 + %s13325_s15]]   ;;  %s13329_s15 = smov 35  }
  0x38   :  { %15355 = sst [smem:[#allocation128_spill]] %s13595_s20 }
  0x39   :  { %s13605_s3 = sld [smem:[%s15270_s0 + %s13326_s22]]   ;;  %s13330_s22 = smov 36  }
  0x3a   :  { %15357 = sst [smem:[#allocation130_spill]] %s13610_s6 }
  0x3b   :  { %s13615_s20 = sld [smem:[%s15270_s0 + %s13328_s7]]   ;;  %s13332_s7 = smov 38  }
  0x3c   :  { %s13625_s24 = sld [smem:[%s15270_s0 + %s13330_s22]]   ;;  %s13334_s22 = smov 40  }
  0x3d   :  { %15356 = sst [smem:[#allocation129_spill]] %s13600_s9 }
  0x3e   :  { %s13620_s9 = sld [smem:[%s15270_s0 + %s13329_s15]]   ;;  %s13333_s15 = smov 39  }
  0x3f   :  { %s13630_s6 = sld [smem:[%s15270_s0 + %s13331_s28]]   ;;  %s13335_s28 = smov 41  }
  0x40   :  { %s13640_s29 = sld [smem:[%s15270_s0 + %s13333_s15]]   ;;  %s13337_s15 = smov 43  }
  0x41   :  { %15358 = sst [smem:[#allocation131_spill]] %s13615_s20 }
  0x42   :  { %15359 = sst [smem:[#allocation132_spill]] %s13625_s24 }
  0x43   :  { %s13635_s20 = sld [smem:[%s15270_s0 + %s13332_s7]]   ;;  %s13336_s7 = smov 42  }
  0x44   :  { %s13645_s24 = sld [smem:[%s15270_s0 + %s13334_s22]]   ;;  %s13338_s22 = smov 44  }
  0x45   :  { %15360 = sst [smem:[#allocation133_spill]] %s13630_s6 }
  0x46   :  { %15361 = sst [smem:[#allocation134_spill]] %s13640_s29 }
  0x47   :  { %s13650_s6 = sld [smem:[%s15270_s0 + %s13335_s28]]   ;;  %s13339_s28 = smov 45  }
  0x48   :  { %s13655_s21 = sld [smem:[%s15270_s0 + %s13336_s7]]   ;;  %s13340_s7 = smov 46  }
  0x49   :  { %s13660_s29 = sld [smem:[%s15270_s0 + %s13337_s15]]   ;;  %s13341_s15 = smov 47  }
  0x4a   :  { %15362 = sst [smem:[#allocation135_spill]] %s13645_s24 }
  0x4b   :  { %s13665_s24 = sld [smem:[%s15270_s0 + %s13338_s22]]   ;;  %s13342_s22 = smov 48  }
  0x4c   :  { %s13675_s13 = sld [smem:[%s15270_s0 + %s13340_s7]]   ;;  %s13344_s7 = smov 50  }
  0x4d   :  { %15363 = sst [smem:[#allocation136_spill]] %s13650_s6 }
  0x4e   :  { %s13670_s6 = sld [smem:[%s15270_s0 + %s13339_s28]]   ;;  %s13343_s28 = smov 49  }
  0x4f   :  { %15364 = sst [smem:[#allocation137_spill]] %s13660_s29 }
  0x50   :  { %s13680_s29 = sld [smem:[%s15270_s0 + %s13341_s15]]   ;;  %s13345_s15 = smov 51  }
  0x51   :  { %15365 = sst [smem:[#allocation138_spill]] %s13665_s24 }
  0x52   :  { %15367 = sst [smem:[#allocation140_spill]] %s13675_s13 }
  0x53   :  { %s13685_s24 = sld [smem:[%s15270_s0 + %s13342_s22]]   ;;  %s13346_s22 = smov 52  }
  0x54   :  { %15366 = sst [smem:[#allocation139_spill]] %s13670_s6 }
  0x55   :  { %s13690_s6 = sld [smem:[%s15270_s0 + %s13343_s28]]   ;;  %s13347_s28 = smov 53  }
  0x56   :  { %15368 = sst [smem:[#allocation141_spill]] %s13680_s29 }
  0x57   :  { %s13695_s13 = sld [smem:[%s15270_s0 + %s13344_s7]]   ;;  %s13348_s7 = smov 54  }
  0x58   :  { %s13700_s29 = sld [smem:[%s15270_s0 + %s13345_s15]]   ;;  %s13349_s15 = smov 55  }
  0x59   :  { %15369 = sst [smem:[#allocation142_spill]] %s13685_s24 }
  0x5a   :  { %s13705_s24 = sld [smem:[%s15270_s0 + %s13346_s22]]   ;;  %s13350_s22 = smov 56  }
  0x5b   :  { %15370 = sst [smem:[#allocation143_spill]] %s13690_s6 }
  0x5c   :  { %s13710_s6 = sld [smem:[%s15270_s0 + %s13347_s28]]   ;;  %s13351_s28 = smov 57  }
  0x5d   :  { %15371 = sst [smem:[#allocation144_spill]] %s13695_s13 }
  0x5e   :  { %15372 = sst [smem:[#allocation145_spill]] %s13700_s29 }
  0x5f   :  { %s13715_s13 = sld [smem:[%s15270_s0 + %s13348_s7]]   ;;  %s13352_s7 = smov 58  }
  0x60   :  { %15373 = sst [smem:[#allocation146_spill]] %s13705_s24 }
  0x61   :  { %s13720_s29 = sld [smem:[%s15270_s0 + %s13349_s15]]   ;;  %s13353_s15 = smov 59  }
  0x62   :  { %15374 = sst [smem:[#allocation147_spill]] %s13710_s6 }
  0x63   :  { %s13725_s24 = sld [smem:[%s15270_s0 + %s13350_s22]]   ;;  %s13354_s22 = smov 60  }
  0x64   :  { %s13730_s6 = sld [smem:[%s15270_s0 + %s13351_s28]]   ;;  %s13355_s28 = smov 61  }
  0x65   :  { %15375 = sst [smem:[#allocation148_spill]] %s13715_s13 }
  0x66   :  { %s13735_s13 = sld [smem:[%s15270_s0 + %s13352_s7]]   ;;  %s13356_s7 = smov 62  }
  0x67   :  { %15376 = sst [smem:[#allocation149_spill]] %s13720_s29 }
  0x68   :  { %s13740_s29 = sld [smem:[%s15270_s0 + %s13353_s15]]   ;;  %s13357_s15 = smov 63  }
  0x69   :  { %15377 = sst [smem:[#allocation150_spill]] %s13725_s24 }
  0x6a   :  { %15378 = sst [smem:[#allocation151_spill]] %s13730_s6 }
  0x6b   :  { %s13745_s24 = sld [smem:[%s15270_s0 + %s13354_s22]]   ;;  %s13358_s22 = smov 64  }
  0x6c   :  { %15379 = sst [smem:[#allocation152_spill]] %s13735_s13 }
  0x6d   :  { %s13750_s6 = sld [smem:[%s15270_s0 + %s13355_s28]]   ;;  %s13359_s28 = smov 65  }
  0x6e   :  { %15380 = sst [smem:[#allocation153_spill]] %s13740_s29 }
  0x6f   :  { %s13755_s13 = sld [smem:[%s15270_s0 + %s13356_s7]]   ;;  %s13360_s7 = smov 66  }
  0x70   :  { %s13760_s29 = sld [smem:[%s15270_s0 + %s13357_s15]]   ;;  %s13361_s15 = smov 67  }
  0x71   :  { %15381 = sst [smem:[#allocation154_spill]] %s13745_s24 }
  0x72   :  { %s13765_s24 = sld [smem:[%s15270_s0 + %s13358_s22]]   ;;  %s13362_s22 = smov 68  }
  0x73   :  { %15382 = sst [smem:[#allocation155_spill]] %s13750_s6 }
  0x74   :  { %s13770_s6 = sld [smem:[%s15270_s0 + %s13359_s28]]   ;;  %s13363_s28 = smov 69  }
  0x75   :  { %15383 = sst [smem:[#allocation156_spill]] %s13755_s13 }
  0x76   :  { %15384 = sst [smem:[#allocation157_spill]] %s13760_s29 }
  0x77   :  { %s13775_s13 = sld [smem:[%s15270_s0 + %s13360_s7]]   ;;  %s13364_s7 = smov 70  }
  0x78   :  { %15385 = sst [smem:[#allocation158_spill]] %s13765_s24 }
  0x79   :  { %s13780_s29 = sld [smem:[%s15270_s0 + %s13361_s15]]   ;;  %s13365_s15 = smov 71  }
  0x7a   :  { %15386 = sst [smem:[#allocation159_spill]] %s13770_s6 }
  0x7b   :  { %s13785_s24 = sld [smem:[%s15270_s0 + %s13362_s22]]   ;;  %s13366_s22 = smov 72  }
  0x7c   :  { %s13790_s6 = sld [smem:[%s15270_s0 + %s13363_s28]]   ;;  %s13367_s28 = smov 73  }
  0x7d   :  { %15387 = sst [smem:[#allocation160_spill]] %s13775_s13 }
  0x7e   :  { %s13795_s13 = sld [smem:[%s15270_s0 + %s13364_s7]]   ;;  %s13368_s7 = smov 74  }
  0x7f   :  { %15388 = sst [smem:[#allocation161_spill]] %s13780_s29 }
  0x80   :  { %s13800_s29 = sld [smem:[%s15270_s0 + %s13365_s15]]   ;;  %s13369_s15 = smov 75  }
  0x81   :  { %15389 = sst [smem:[#allocation162_spill]] %s13785_s24 }
  0x82   :  { %15390 = sst [smem:[#allocation163_spill]] %s13790_s6 }
  0x83   :  { %s13805_s24 = sld [smem:[%s15270_s0 + %s13366_s22]]   ;;  %s13370_s22 = smov 76  }
  0x84   :  { %15391 = sst [smem:[#allocation164_spill]] %s13795_s13 }
  0x85   :  { %s13810_s6 = sld [smem:[%s15270_s0 + %s13367_s28]]   ;;  %s13371_s28 = smov 77  }
  0x86   :  { %15392 = sst [smem:[#allocation165_spill]] %s13800_s29 }
  0x87   :  { %s13815_s13 = sld [smem:[%s15270_s0 + %s13368_s7]]   ;;  %s13372_s7 = smov 78  }
  0x88   :  { %s13820_s29 = sld [smem:[%s15270_s0 + %s13369_s15]]   ;;  %s13373_s15 = smov 79  }
  0x89   :  { %15393 = sst [smem:[#allocation166_spill]] %s13805_s24 }
  0x8a   :  { %s13825_s24 = sld [smem:[%s15270_s0 + %s13370_s22]]   ;;  %s13374_s22 = smov 80  }
  0x8b   :  { %15394 = sst [smem:[#allocation167_spill]] %s13810_s6 }
  0x8c   :  { %s13830_s6 = sld [smem:[%s15270_s0 + %s13371_s28]]   ;;  %s13375_s28 = smov 81  }
  0x8d   :  { %15395 = sst [smem:[#allocation168_spill]] %s13815_s13 }
  0x8e   :  { %15396 = sst [smem:[#allocation169_spill]] %s13820_s29 }
  0x8f   :  { %s13835_s13 = sld [smem:[%s15270_s0 + %s13372_s7]]  }
  0x90   :  { %15397 = sst [smem:[#allocation170_spill]] %s13825_s24 }
  0x91   :  { %s13840_s29 = sld [smem:[%s15270_s0 + %s13373_s15]]  }
  0x92   :  { %15398 = sst [smem:[#allocation171_spill]] %s13830_s6 }
  0x93   :  { %s13845_s24 = sld [smem:[%s15270_s0 + %s13374_s22]]  }
  0x94   :  { %s13850_s6 = sld [smem:[%s15270_s0 + %s13375_s28]]  }
  0x95   :  { %168 = vsyncpa [#allocation3], 0 }
  0x96   :  { %169 = vsyncpa [#allocation6], 0 }
  0x97   :  { %170 = vsyncpa [#allocation9], 0 }
  0x98   :  { %171 = vsyncpa [#allocation12], 0 }
  0x99   :  { %172 = vsyncpa [#allocation15], 0 }
  0x9a   :  { %173 = vsyncpa [#allocation18], 0 }
  0x9b   :  { %174 = vsyncpa [#allocation21], 0 }
  0x9c   :  { %175 = vsyncpa [#allocation24], 0 }
  0x9d   :  { %176 = vsyncpa [#allocation27], 0 }
  0x9e   :  { %177 = vsyncpa [#allocation30], 0 }
  0x9f   :  { %178 = vsyncpa [#allocation33], 0 }
  0xa0   :  { %179 = vsyncpa [#allocation36], 0 }
  0xa1   :  { %180 = vsyncpa [#allocation39], 0 }
  0xa2   :  { %181 = vsyncpa [#allocation42], 0 }
  0xa3   :  { %182 = vsyncpa [#allocation45], 0 }
  0xa4   :  { %183 = vsyncpa [#allocation48], 0 }
  0xa5   :  { %184 = vsyncpa [#allocation51], 0 }
  0xa6   :  { %185 = vsyncpa [#allocation54], 0 }
  0xa7   :  { %186 = vsyncpa [#allocation57], 0 }
  0xa8   :  { %187 = vsyncpa [#allocation60], 0 }
  0xa9   :  { %188 = vsyncpa [#allocation63], 0 }
  0xaa   :  { %189 = vsyncpa [#allocation66], 0 }
  0xab   :  { %190 = vsyncpa [#allocation69], 0 }
  0xac   :  { %191 = vsyncpa [#allocation72], 0 }
  0xad   :  { %192 = vsyncpa [#allocation75], 0 }
  0xae   :  { %193 = vsyncpa [#allocation78], 0 }
  0xaf   :  { %194 = vsyncpa [#allocation4], 0  ;;  %s13376_s0 = smov [#allocation5]   ;;  %s13377_s10 = smov [#allocation8]  }
  0xb0   :  { %s217_s7 = sshll.u32 %s13376_s0, 4  ;;  %s237_s11 = sshll.u32 %s13377_s10, 4  ;;  %s218_s7 = int_to_ptr.vmem [resolvable:$true] %s217_s7  ;;  %s238_s11 = int_to_ptr.vmem [resolvable:$true] %s237_s11 }
  0xb1   :  { %s12097_s15 = scalar_lea.hbm %s13460_s17, 16 }
  0xb2   :  { %p12098_p0 = scmp.ne.s32.totalorder %s13460_s17, %s12097_s15  ;;  %p12101_p1 = scmp.lt.u32.totalorder %s12097_s15, %s13460_s17 }
  0xb4   :  { %p12103_p2 = pnand %p12101_p1, %p12098_p0 }
  0xb6   :  { %12106 = shalt.err (!%p12103_p2)
}
  0xb7   :  { %s12107_s16 = scalar_lea.vmem %s218_s7, 16  ;;  %s12111_s18 = scalar_lea.vmem %s218_s7, 32 }
  0xb8   :  { %p12108_p3 = scmp.ne.s32.totalorder %s218_s7, %s12107_s16  ;;  %p12112_p4 = scmp.lt.s32.totalorder %s218_s7, %s218_s7 }
  0xb9   :  { %p12113_p5 = scmp.lt.s32.totalorder %s12111_s18, %s12107_s16 }
  0xbb   :  { %p12114_p6 = por %p12113_p5, %p12112_p4 }
  0xbd   :  { %p12115_p7 = pnand %p12114_p6, %p12108_p3 }
  0xbf   :  { %12118 = shalt.err (!%p12115_p7)
}
  0xc0   :  { %220 = dma.hbm_to_vmem [thread:$0]  %s13460_s17, 16, %s218_s7, [#allocation6]  }
  0xc1   :  { %s12119_s22 = scalar_lea.hbm %s13470_s25, 16 }
  0xc2   :  { %p12120_p8 = scmp.ne.s32.totalorder %s13470_s25, %s12119_s22  ;;  %p12123_p9 = scmp.lt.u32.totalorder %s12119_s22, %s13470_s25 }
  0xc4   :  { %p12125_p10 = pnand %p12123_p9, %p12120_p8 }
  0xc6   :  { %12128 = shalt.err (!%p12125_p10)
}
  0xc7   :  { %s12129_s23 = scalar_lea.vmem %s238_s11, 16  ;;  %s12133_s26 = scalar_lea.vmem %s238_s11, 32 }
  0xc8   :  { %p12130_p11 = scmp.ne.s32.totalorder %s238_s11, %s12129_s23  ;;  %p12134_p12 = scmp.lt.s32.totalorder %s238_s11, %s238_s11 }
  0xc9   :  { %p12135_p13 = scmp.lt.s32.totalorder %s12133_s26, %s12129_s23 }
  0xcb   :  { %p12136_p0 = por %p12135_p13, %p12134_p12 }
  0xcd   :  { %p12137_p1 = pnand %p12136_p0, %p12130_p11 }
  0xcf   :  { %12140 = shalt.err (!%p12137_p1)
}
  0xd0   :  { %240 = dma.hbm_to_vmem [thread:$0]  %s13470_s25, 16, %s238_s11, [#allocation9]  }
  0xd1   :  { %s13378_s28 = smov [#allocation11]   ;;  %s12141_s1 = scalar_lea.hbm %s13485_s8, 64 }
  0xd2   :  { %s258_s17 = sshll.u32 %s13378_s28, 4  ;;  %p12142_p2 = scmp.ne.s32.totalorder %s13485_s8, %s12141_s1  ;;  %s259_s17 = int_to_ptr.vmem [resolvable:$true] %s258_s17 }
  0xd3   :  { %p12145_p3 = scmp.lt.u32.totalorder %s12141_s1, %s13485_s8 }
  0xd5   :  { %p12147_p4 = pnand %p12145_p3, %p12142_p2 }
  0xd7   :  { %12150 = shalt.err (!%p12147_p4)
}
  0xd8   :  { %s12151_s2 = scalar_lea.vmem %s259_s17, 64  ;;  %p12156_p6 = scmp.lt.s32.totalorder %s259_s17, %s259_s17 }
  0xd9   :  { %p12152_p5 = scmp.ne.s32.totalorder %s259_s17, %s12151_s2  ;;  %p12157_p7 = scmp.lt.s32.totalorder %s12151_s2, %s12151_s2 }
  0xdb   :  { %p12158_p8 = por %p12157_p7, %p12156_p6 }
  0xdd   :  { %p12159_p9 = pnand %p12158_p8, %p12152_p5 }
  0xdf   :  { %12162 = shalt.err (!%p12159_p9)
}
  0xe0   :  { %s13379_s0 = smov 16   ;;  %s13380_s25 = smov 1  }
  0xe1   :  { %264 = dma.hbm_to_vmem [thread:$0]  %s13485_s8, 64, %s259_s17, [#allocation12], %s13379_s0, %s13379_s0, %s13380_s25  }
  0xe2   :  { %s13381_s7 = smov [#allocation14]   ;;  %s12163_s11 = scalar_lea.hbm %s13505_s30, 256 }
  0xe3   :  { %s286_s10 = sshll.u32 %s13381_s7, 4  ;;  %p12164_p10 = scmp.ne.s32.totalorder %s13505_s30, %s12163_s11  ;;  %s287_s10 = int_to_ptr.vmem [resolvable:$true] %s286_s10 }
  0xe4   :  { %p12167_p11 = scmp.lt.u32.totalorder %s12163_s11, %s13505_s30 }
  0xe6   :  { %p12169_p12 = pnand %p12167_p11, %p12164_p10 }
  0xe8   :  { %12172 = shalt.err (!%p12169_p12)
}
  0xe9   :  { %s12173_s15 = scalar_lea.vmem %s287_s10, 256  ;;  %p12178_p0 = scmp.lt.s32.totalorder %s287_s10, %s287_s10 }
  0xea   :  { %p12174_p13 = scmp.ne.s32.totalorder %s287_s10, %s12173_s15  ;;  %p12179_p1 = scmp.lt.s32.totalorder %s12173_s15, %s12173_s15 }
  0xec   :  { %p12180_p2 = por %p12179_p1, %p12178_p0 }
  0xee   :  { %p12181_p3 = pnand %p12180_p2, %p12174_p13 }
  0xf0   :  { %12184 = shalt.err (!%p12181_p3)
}
  0xf1   :  { %s13382_s16 = smov 64   ;;  %s13383_s8 = smov 4  }
  0xf2   :  { %292 = dma.hbm_to_vmem [thread:$0]  %s13505_s30, 256, %s287_s10, [#allocation15], %s13382_s16, %s13382_s16, %s13383_s8  }
  0xf3   :  { %s13384_s18 = smov [#allocation17]   ;;  %s13385_s23 = smov [#allocation20]  }
  0xf4   :  { %s309_s22 = sshll.u32 %s13384_s18, 4  ;;  %s328_s26 = sshll.u32 %s13385_s23, 4  ;;  %s310_s22 = int_to_ptr.vmem [resolvable:$true] %s309_s22  ;;  %s13874_s26 = int_to_ptr.vmem [resolvable:$true] %s328_s26 }
  0xf5   :  { %s12185_s28 = scalar_lea.hbm %s13515_s12, 16 }
  0xf6   :  { %p12186_p4 = scmp.ne.s32.totalorder %s13515_s12, %s12185_s28  ;;  %p12189_p5 = scmp.lt.u32.totalorder %s12185_s28, %s13515_s12 }
  0xf8   :  { %p12191_p6 = pnand %p12189_p5, %p12186_p4 }
  0xfa   :  { %12194 = shalt.err (!%p12191_p6)
}
  0xfb   :  { %s12195_s17 = scalar_lea.vmem %s310_s22, 16  ;;  %s12199_s1 = scalar_lea.vmem %s310_s22, 32 }
  0xfc   :  { %p12196_p7 = scmp.ne.s32.totalorder %s310_s22, %s12195_s17  ;;  %p12200_p8 = scmp.lt.s32.totalorder %s310_s22, %s310_s22 }
  0xfd   :  { %p12201_p9 = scmp.lt.s32.totalorder %s12199_s1, %s12195_s17 }
  0xff   :  { %p12202_p10 = por %p12201_p9, %p12200_p8 }
 0x101   :  { %p12203_p11 = pnand %p12202_p10, %p12196_p7 }
 0x103   :  { %12206 = shalt.err (!%p12203_p11)
}
 0x104   :  { %312 = dma.hbm_to_vmem [thread:$0]  %s13515_s12, 16, %s310_s22, [#allocation18]  }
 0x105   :  { %s12207_s30 = scalar_lea.hbm %s13525_s27, 256 }
 0x106   :  { %p12208_p12 = scmp.ne.s32.totalorder %s13525_s27, %s12207_s30  ;;  %p12211_p13 = scmp.lt.u32.totalorder %s12207_s30, %s13525_s27 }
 0x108   :  { %p12213_p0 = pnand %p12211_p13, %p12208_p12 }
 0x10a   :  { %12216 = shalt.err (!%p12213_p0)
}
 0x10b   :  { %s12217_s2 = scalar_lea.vmem %s13874_s26, 256  ;;  %p12222_p2 = scmp.lt.s32.totalorder %s13874_s26, %s13874_s26 }
 0x10c   :  { %p12218_p1 = scmp.ne.s32.totalorder %s13874_s26, %s12217_s2  ;;  %p12223_p3 = scmp.lt.s32.totalorder %s12217_s2, %s12217_s2 }
 0x10e   :  { %p12224_p4 = por %p12223_p3, %p12222_p2 }
 0x110   :  { %p12225_p5 = pnand %p12224_p4, %p12218_p1 }
 0x112   :  { %12228 = shalt.err (!%p12225_p5)
}
 0x113   :  { %334 = dma.hbm_to_vmem [thread:$0]  %s13525_s27, 256, %s13874_s26, [#allocation21], %s13382_s16, %s13382_s16, %s13383_s8  }
 0x114   :  { %s13386_s12 = smov [#allocation23]   ;;  %s13387_s10 = smov [#allocation26]  }
 0x115   :  { %s353_s7 = sshll.u32 %s13386_s12, 4  ;;  %s373_s11 = sshll.u32 %s13387_s10, 4  ;;  %s354_s7 = int_to_ptr.vmem [resolvable:$true] %s353_s7  ;;  %s374_s11 = int_to_ptr.vmem [resolvable:$true] %s373_s11 }
 0x116   :  { %s12229_s15 = scalar_lea.hbm %s13540_s19, 16 }
 0x117   :  { %p12230_p6 = scmp.ne.s32.totalorder %s13540_s19, %s12229_s15  ;;  %p12233_p7 = scmp.lt.u32.totalorder %s12229_s15, %s13540_s19 }
 0x119   :  { %p12235_p8 = pnand %p12233_p7, %p12230_p6 }
 0x11b   :  { %12238 = shalt.err (!%p12235_p8)
}
 0x11c   :  { %s12239_s18 = scalar_lea.vmem %s354_s7, 16  ;;  %s12243_s22 = scalar_lea.vmem %s354_s7, 32 }
 0x11d   :  { %p12240_p9 = scmp.ne.s32.totalorder %s354_s7, %s12239_s18  ;;  %p12244_p10 = scmp.lt.s32.totalorder %s354_s7, %s354_s7 }
 0x11e   :  { %p12245_p11 = scmp.lt.s32.totalorder %s12243_s22, %s12239_s18 }
 0x120   :  { %p12246_p12 = por %p12245_p11, %p12244_p10 }
 0x122   :  { %p12247_p13 = pnand %p12246_p12, %p12240_p9 }
 0x124   :  { %12250 = shalt.err (!%p12247_p13)
}
 0x125   :  { %356 = dma.hbm_to_vmem [thread:$0]  %s13540_s19, 16, %s354_s7, [#allocation24]  }
 0x126   :  { %s12251_s27 = scalar_lea.hbm %s13550_s5, 16 }
 0x127   :  { %p12252_p0 = scmp.ne.s32.totalorder %s13550_s5, %s12251_s27  ;;  %p12255_p1 = scmp.lt.u32.totalorder %s12251_s27, %s13550_s5 }
 0x129   :  { %p12257_p2 = pnand %p12255_p1, %p12252_p0 }
 0x12b   :  { %12260 = shalt.err (!%p12257_p2)
}
 0x12c   :  { %s12261_s16 = scalar_lea.vmem %s374_s11, 16  ;;  %s12265_s8 = scalar_lea.vmem %s374_s11, 32 }
 0x12d   :  { %p12262_p3 = scmp.ne.s32.totalorder %s374_s11, %s12261_s16  ;;  %p12266_p4 = scmp.lt.s32.totalorder %s374_s11, %s374_s11 }
 0x12e   :  { %p12267_p5 = scmp.lt.s32.totalorder %s12265_s8, %s12261_s16 }
 0x130   :  { %p12268_p6 = por %p12267_p5, %p12266_p4 }
 0x132   :  { %p12269_p7 = pnand %p12268_p6, %p12262_p3 }
 0x134   :  { %12272 = shalt.err (!%p12269_p7)
}
 0x135   :  { %376 = dma.hbm_to_vmem [thread:$0]  %s13550_s5, 16, %s374_s11, [#allocation27]  }
 0x136   :  { %s13388_s23 = smov [#allocation29]   ;;  %s13389_s26 = smov [#allocation32]  }
 0x137   :  { %s400_s19 = sshll.u32 %s13388_s23, 4  ;;  %s425_s28 = sshll.u32 %s13389_s26, 4  ;;  %s401_s19 = int_to_ptr.vmem [resolvable:$true] %s400_s19  ;;  %s426_s28 = int_to_ptr.vmem [resolvable:$true] %s425_s28 }
 0x138   :  { %s12273_s17 = scalar_lea.hbm %s13575_s14, 64 }
 0x139   :  { %p12274_p8 = scmp.ne.s32.totalorder %s13575_s14, %s12273_s17  ;;  %p12277_p9 = scmp.lt.u32.totalorder %s12273_s17, %s13575_s14 }
 0x13b   :  { %p12279_p10 = pnand %p12277_p9, %p12274_p8 }
 0x13d   :  { %12282 = shalt.err (!%p12279_p10)
}
 0x13e   :  { %s12283_s1 = scalar_lea.vmem %s401_s19, 64  ;;  %p12288_p12 = scmp.lt.s32.totalorder %s401_s19, %s401_s19 }
 0x13f   :  { %p12284_p11 = scmp.ne.s32.totalorder %s401_s19, %s12283_s1  ;;  %p12289_p13 = scmp.lt.s32.totalorder %s12283_s1, %s12283_s1 }
 0x141   :  { %p12290_p0 = por %p12289_p13, %p12288_p12 }
 0x143   :  { %p12291_p1 = pnand %p12290_p0, %p12284_p11 }
 0x145   :  { %12294 = shalt.err (!%p12291_p1)
}
 0x146   :  { %406 = dma.hbm_to_vmem [thread:$0]  %s13575_s14, 64, %s401_s19, [#allocation30], %s13379_s0, %s13379_s0, %s13380_s25  }
 0x147   :  { %s12295_s5 = scalar_lea.hbm %s13590_s4, 16 }
 0x148   :  { %p12296_p2 = scmp.ne.s32.totalorder %s13590_s4, %s12295_s5  ;;  %p12299_p3 = scmp.lt.u32.totalorder %s12295_s5, %s13590_s4 }
 0x14a   :  { %p12301_p4 = pnand %p12299_p3, %p12296_p2 }
 0x14c   :  { %12304 = shalt.err (!%p12301_p4)
}
 0x14d   :  { %s12305_s30 = scalar_lea.vmem %s426_s28, 16  ;;  %s12309_s2 = scalar_lea.vmem %s426_s28, 32 }
 0x14e   :  { %p12306_p5 = scmp.ne.s32.totalorder %s426_s28, %s12305_s30  ;;  %p12310_p6 = scmp.lt.s32.totalorder %s426_s28, %s426_s28 }
 0x14f   :  { %p12311_p7 = scmp.lt.s32.totalorder %s12309_s2, %s12305_s30 }
 0x151   :  { %p12312_p8 = por %p12311_p7, %p12310_p6 }
 0x153   :  { %p12313_p9 = pnand %p12312_p8, %p12306_p5 }
 0x155   :  { %12316 = shalt.err (!%p12313_p9)
}
 0x156   :  { %428 = dma.hbm_to_vmem [thread:$0]  %s13590_s4, 16, %s426_s28, [#allocation33]  }
 0x157   :  { %s13390_s12 = smov [#allocation35]   ;;  %s13391_s7 = smov [#allocation38]  }
 0x158   :  { %s447_s14 = sshll.u32 %s13390_s12, 4  ;;  %s469_s10 = sshll.u32 %s13391_s7, 4  ;;  %s448_s14 = int_to_ptr.vmem [resolvable:$true] %s447_s14  ;;  %s470_s10 = int_to_ptr.vmem [resolvable:$true] %s469_s10 }
 0x159   :  { %s12317_s11 = scalar_lea.hbm %s13605_s3, 16 }
 0x15a   :  { %p12318_p10 = scmp.ne.s32.totalorder %s13605_s3, %s12317_s11  ;;  %p12321_p11 = scmp.lt.u32.totalorder %s12317_s11, %s13605_s3 }
 0x15c   :  { %p12323_p12 = pnand %p12321_p11, %p12318_p10 }
 0x15e   :  { %12326 = shalt.err (!%p12323_p12)
}
 0x15f   :  { %s12327_s15 = scalar_lea.vmem %s448_s14, 16  ;;  %s12331_s18 = scalar_lea.vmem %s448_s14, 32 }
 0x160   :  { %p12328_p13 = scmp.ne.s32.totalorder %s448_s14, %s12327_s15  ;;  %p12332_p0 = scmp.lt.s32.totalorder %s448_s14, %s448_s14 }
 0x161   :  { %p12333_p1 = scmp.lt.s32.totalorder %s12331_s18, %s12327_s15 }
 0x163   :  { %p12334_p2 = por %p12333_p1, %p12332_p0 }
 0x165   :  { %p12335_p3 = pnand %p12334_p2, %p12328_p13 }
 0x167   :  { %12338 = shalt.err (!%p12335_p3)
}
 0x168   :  { %450 = dma.hbm_to_vmem [thread:$0]  %s13605_s3, 16, %s448_s14, [#allocation36]  }
 0x169   :  { %s12339_s4 = scalar_lea.hbm %s13620_s9, 16 }
 0x16a   :  { %p12340_p4 = scmp.ne.s32.totalorder %s13620_s9, %s12339_s4  ;;  %p12343_p5 = scmp.lt.u32.totalorder %s12339_s4, %s13620_s9 }
 0x16c   :  { %p12345_p6 = pnand %p12343_p5, %p12340_p4 }
 0x16e   :  { %12348 = shalt.err (!%p12345_p6)
}
 0x16f   :  { %s12349_s22 = scalar_lea.vmem %s470_s10, 16  ;;  %s12353_s27 = scalar_lea.vmem %s470_s10, 32 }
 0x170   :  { %p12350_p7 = scmp.ne.s32.totalorder %s470_s10, %s12349_s22  ;;  %p12354_p8 = scmp.lt.s32.totalorder %s470_s10, %s470_s10 }
 0x171   :  { %p12355_p9 = scmp.lt.s32.totalorder %s12353_s27, %s12349_s22 }
 0x173   :  { %p12356_p10 = por %p12355_p9, %p12354_p8 }
 0x175   :  { %p12357_p11 = pnand %p12356_p10, %p12350_p7 }
 0x177   :  { %12360 = shalt.err (!%p12357_p11)
}
 0x178   :  { %472 = dma.hbm_to_vmem [thread:$0]  %s13620_s9, 16, %s470_s10, [#allocation39]  }
 0x179   :  { %s13392_s16 = smov [#allocation41]   ;;  %s13393_s8 = smov [#allocation44]  }
 0x17a   :  { %s490_s3 = sshll.u32 %s13392_s16, 4  ;;  %s518_s23 = sshll.u32 %s13393_s8, 4  ;;  %s491_s3 = int_to_ptr.vmem [resolvable:$true] %s490_s3  ;;  %s13919_s23 = int_to_ptr.vmem [resolvable:$true] %s518_s23 }
 0x17b   :  { %s12361_s19 = scalar_lea.hbm %s13635_s20, 64 }
 0x17c   :  { %p12362_p12 = scmp.ne.s32.totalorder %s13635_s20, %s12361_s19  ;;  %p12365_p13 = scmp.lt.u32.totalorder %s12361_s19, %s13635_s20 }
 0x17e   :  { %p12367_p0 = pnand %p12365_p13, %p12362_p12 }
 0x180   :  { %12370 = shalt.err (!%p12367_p0)
}
 0x181   :  { %s12371_s26 = scalar_lea.vmem %s491_s3, 64  ;;  %p12376_p2 = scmp.lt.s32.totalorder %s491_s3, %s491_s3 }
 0x182   :  { %p12372_p1 = scmp.ne.s32.totalorder %s491_s3, %s12371_s26  ;;  %p12377_p3 = scmp.lt.s32.totalorder %s12371_s26, %s12371_s26 }
 0x184   :  { %p12378_p4 = por %p12377_p3, %p12376_p2 }
 0x186   :  { %p12379_p5 = pnand %p12378_p4, %p12372_p1 }
 0x188   :  { %12382 = shalt.err (!%p12379_p5)
}
 0x189   :  { %496 = dma.hbm_to_vmem [thread:$0]  %s13635_s20, 64, %s491_s3, [#allocation42], %s13379_s0, %s13379_s0, %s13380_s25  }
 0x18a   :  { %s12383_s9 = scalar_lea.hbm %s13655_s21, 64 }
 0x18b   :  { %p12384_p6 = scmp.ne.s32.totalorder %s13655_s21, %s12383_s9  ;;  %p12387_p7 = scmp.lt.u32.totalorder %s12383_s9, %s13655_s21 }
 0x18d   :  { %p12389_p8 = pnand %p12387_p7, %p12384_p6 }
 0x18f   :  { %12392 = shalt.err (!%p12389_p8)
}
 0x190   :  { %s12393_s28 = scalar_lea.vmem %s13919_s23, 64  ;;  %p12398_p10 = scmp.lt.s32.totalorder %s13919_s23, %s13919_s23 }
 0x191   :  { %p12394_p9 = scmp.ne.s32.totalorder %s13919_s23, %s12393_s28  ;;  %p12399_p11 = scmp.lt.s32.totalorder %s12393_s28, %s12393_s28 }
 0x193   :  { %p12400_p12 = por %p12399_p11, %p12398_p10 }
 0x195   :  { %p12401_p13 = pnand %p12400_p12, %p12394_p9 }
 0x197   :  { %12404 = shalt.err (!%p12401_p13)
}
 0x198   :  { %s15399_s20 = sld [smem:[#allocation139_spill]]  ;;  %s13394_s17 = smov [#allocation47]  }
 0x199   :  { %524 = dma.hbm_to_vmem [thread:$0]  %s13655_s21, 64, %s13919_s23, [#allocation45], %s13379_s0, %s13379_s0, %s13380_s25  }
 0x19a   :  { %s543_s1 = sshll.u32 %s13394_s17, 4  ;;  %s13395_s5 = smov [#allocation50]   ;;  %s544_s1 = int_to_ptr.vmem [resolvable:$true] %s543_s1 }
 0x19b   :  { %s564_s30 = sshll.u32 %s13395_s5, 4  ;;  %s13940_s30 = int_to_ptr.vmem [resolvable:$true] %s564_s30 }
 0x19e   :  { %s12405_s2 = scalar_lea.hbm %s15399_s20, 16 }
 0x19f   :  { %p12406_p0 = scmp.ne.s32.totalorder %s15399_s20, %s12405_s2  ;;  %p12409_p1 = scmp.lt.u32.totalorder %s12405_s2, %s15399_s20 }
 0x1a1   :  { %p12411_p2 = pnand %p12409_p1, %p12406_p0 }
 0x1a3   :  { %12414 = shalt.err (!%p12411_p2)
}
 0x1a4   :  { %s12415_s12 = scalar_lea.vmem %s544_s1, 16  ;;  %s12419_s14 = scalar_lea.vmem %s544_s1, 32 }
 0x1a5   :  { %p12416_p3 = scmp.ne.s32.totalorder %s544_s1, %s12415_s12  ;;  %p12420_p4 = scmp.lt.s32.totalorder %s544_s1, %s544_s1 }
 0x1a6   :  { %p12421_p5 = scmp.lt.s32.totalorder %s12419_s14, %s12415_s12 }
 0x1a8   :  { %p12422_p6 = por %p12421_p5, %p12420_p4 }
 0x1aa   :  { %p12423_p7 = pnand %p12422_p6, %p12416_p3 }
 0x1ac   :  { %12426 = shalt.err (!%p12423_p7)
}
 0x1ad   :  { %s15400_s21 = sld [smem:[#allocation142_spill]] }
 0x1ae   :  { %546 = dma.hbm_to_vmem [thread:$0]  %s15399_s20, 16, %s544_s1, [#allocation48]  }
 0x1b3   :  { %s12427_s7 = scalar_lea.hbm %s15400_s21, 64 }
 0x1b4   :  { %p12428_p8 = scmp.ne.s32.totalorder %s15400_s21, %s12427_s7  ;;  %p12431_p9 = scmp.lt.u32.totalorder %s12427_s7, %s15400_s21 }
 0x1b6   :  { %p12433_p10 = pnand %p12431_p9, %p12428_p8 }
 0x1b8   :  { %12436 = shalt.err (!%p12433_p10)
}
 0x1b9   :  { %s12437_s10 = scalar_lea.vmem %s13940_s30, 64  ;;  %p12442_p12 = scmp.lt.s32.totalorder %s13940_s30, %s13940_s30 }
 0x1ba   :  { %p12438_p11 = scmp.ne.s32.totalorder %s13940_s30, %s12437_s10  ;;  %p12443_p13 = scmp.lt.s32.totalorder %s12437_s10, %s12437_s10 }
 0x1bc   :  { %p12444_p0 = por %p12443_p13, %p12442_p12 }
 0x1be   :  { %p12445_p1 = pnand %p12444_p0, %p12438_p11 }
 0x1c0   :  { %12448 = shalt.err (!%p12445_p1)
}
 0x1c1   :  { %s15401_s11 = sld [smem:[#allocation146_spill]]  ;;  %s13396_s15 = smov [#allocation53]  }
 0x1c2   :  { %570 = dma.hbm_to_vmem [thread:$0]  %s15400_s21, 64, %s13940_s30, [#allocation51], %s13379_s0, %s13379_s0, %s13380_s25  }
 0x1c3   :  { %s592_s18 = sshll.u32 %s13396_s15, 4  ;;  %s13397_s4 = smov [#allocation56]   ;;  %s593_s18 = int_to_ptr.vmem [resolvable:$true] %s592_s18 }
 0x1c4   :  { %s617_s22 = sshll.u32 %s13397_s4, 4  ;;  %s618_s22 = int_to_ptr.vmem [resolvable:$true] %s617_s22 }
 0x1c7   :  { %s12449_s27 = scalar_lea.hbm %s15401_s11, 64 }
 0x1c8   :  { %p12450_p2 = scmp.ne.s32.totalorder %s15401_s11, %s12449_s27  ;;  %p12453_p3 = scmp.lt.u32.totalorder %s12449_s27, %s15401_s11 }
 0x1ca   :  { %p12455_p4 = pnand %p12453_p3, %p12450_p2 }
 0x1cc   :  { %12458 = shalt.err (!%p12455_p4)
}
 0x1cd   :  { %s12459_s16 = scalar_lea.vmem %s593_s18, 64  ;;  %p12464_p6 = scmp.lt.s32.totalorder %s593_s18, %s593_s18 }
 0x1ce   :  { %p12460_p5 = scmp.ne.s32.totalorder %s593_s18, %s12459_s16  ;;  %p12465_p7 = scmp.lt.s32.totalorder %s12459_s16, %s12459_s16 }
 0x1d0   :  { %p12466_p8 = por %p12465_p7, %p12464_p6 }
 0x1d2   :  { %p12467_p9 = pnand %p12466_p8, %p12460_p5 }
 0x1d4   :  { %12470 = shalt.err (!%p12467_p9)
}
 0x1d5   :  { %s15402_s3 = sld [smem:[#allocation149_spill]] }
 0x1d6   :  { %598 = dma.hbm_to_vmem [thread:$0]  %s15401_s11, 64, %s593_s18, [#allocation54], %s13379_s0, %s13379_s0, %s13380_s25  }
 0x1db   :  { %s12471_s8 = scalar_lea.hbm %s15402_s3, 16 }
 0x1dc   :  { %p12472_p10 = scmp.ne.s32.totalorder %s15402_s3, %s12471_s8  ;;  %p12475_p11 = scmp.lt.u32.totalorder %s12471_s8, %s15402_s3 }
 0x1de   :  { %p12477_p12 = pnand %p12475_p11, %p12472_p10 }
 0x1e0   :  { %12480 = shalt.err (!%p12477_p12)
}
 0x1e1   :  { %s12481_s23 = scalar_lea.vmem %s618_s22, 16  ;;  %s12485_s19 = scalar_lea.vmem %s618_s22, 32 }
 0x1e2   :  { %p12482_p13 = scmp.ne.s32.totalorder %s618_s22, %s12481_s23  ;;  %p12486_p0 = scmp.lt.s32.totalorder %s618_s22, %s618_s22 }
 0x1e3   :  { %p12487_p1 = scmp.lt.s32.totalorder %s12485_s19, %s12481_s23 }
 0x1e5   :  { %p12488_p2 = por %p12487_p1, %p12486_p0 }
 0x1e7   :  { %p12489_p3 = pnand %p12488_p2, %p12482_p13 }
 0x1e9   :  { %12492 = shalt.err (!%p12489_p3)
}
 0x1ea   :  { %s15403_s26 = sld [smem:[#allocation152_spill]]  ;;  %s13398_s9 = smov [#allocation59]  }
 0x1eb   :  { %620 = dma.hbm_to_vmem [thread:$0]  %s15402_s3, 16, %s618_s22, [#allocation57]  }
 0x1ec   :  { %s639_s28 = sshll.u32 %s13398_s9, 4  ;;  %s13399_s20 = smov [#allocation62]   ;;  %s640_s28 = int_to_ptr.vmem [resolvable:$true] %s639_s28 }
 0x1ed   :  { %s661_s17 = sshll.u32 %s13399_s20, 4  ;;  %s662_s17 = int_to_ptr.vmem [resolvable:$true] %s661_s17 }
 0x1f0   :  { %s12493_s1 = scalar_lea.hbm %s15403_s26, 16 }
 0x1f1   :  { %p12494_p4 = scmp.ne.s32.totalorder %s15403_s26, %s12493_s1  ;;  %p12497_p5 = scmp.lt.u32.totalorder %s12493_s1, %s15403_s26 }
 0x1f3   :  { %p12499_p6 = pnand %p12497_p5, %p12494_p4 }
 0x1f5   :  { %12502 = shalt.err (!%p12499_p6)
}
 0x1f6   :  { %s12503_s5 = scalar_lea.vmem %s640_s28, 16  ;;  %s12507_s30 = scalar_lea.vmem %s640_s28, 32 }
 0x1f7   :  { %p12504_p7 = scmp.ne.s32.totalorder %s640_s28, %s12503_s5  ;;  %p12508_p8 = scmp.lt.s32.totalorder %s640_s28, %s640_s28 }
 0x1f8   :  { %p12509_p9 = scmp.lt.s32.totalorder %s12507_s30, %s12503_s5 }
 0x1fa   :  { %p12510_p10 = por %p12509_p9, %p12508_p8 }
 0x1fc   :  { %p12511_p11 = pnand %p12510_p10, %p12504_p7 }
 0x1fe   :  { %12514 = shalt.err (!%p12511_p11)
}
 0x1ff   :  { %s15404_s2 = sld [smem:[#allocation155_spill]] }
 0x200   :  { %642 = dma.hbm_to_vmem [thread:$0]  %s15403_s26, 16, %s640_s28, [#allocation60]  }
 0x205   :  { %s12515_s12 = scalar_lea.hbm %s15404_s2, 16 }
 0x206   :  { %p12516_p12 = scmp.ne.s32.totalorder %s15404_s2, %s12515_s12  ;;  %p12519_p13 = scmp.lt.u32.totalorder %s12515_s12, %s15404_s2 }
 0x208   :  { %p12521_p0 = pnand %p12519_p13, %p12516_p12 }
 0x20a   :  { %12524 = shalt.err (!%p12521_p0)
}
 0x20b   :  { %s12525_s14 = scalar_lea.vmem %s662_s17, 16  ;;  %s12529_s21 = scalar_lea.vmem %s662_s17, 32 }
 0x20c   :  { %p12526_p1 = scmp.ne.s32.totalorder %s662_s17, %s12525_s14  ;;  %p12530_p2 = scmp.lt.s32.totalorder %s662_s17, %s662_s17 }
 0x20d   :  { %p12531_p3 = scmp.lt.s32.totalorder %s12529_s21, %s12525_s14 }
 0x20f   :  { %p12532_p4 = por %p12531_p3, %p12530_p2 }
 0x211   :  { %p12533_p5 = pnand %p12532_p4, %p12526_p1 }
 0x213   :  { %12536 = shalt.err (!%p12533_p5)
}
 0x214   :  { %s15405_s7 = sld [smem:[#allocation158_spill]]  ;;  %s13400_s10 = smov [#allocation65]  }
 0x215   :  { %664 = dma.hbm_to_vmem [thread:$0]  %s15404_s2, 16, %s662_s17, [#allocation63]  }
 0x216   :  { %s682_s11 = sshll.u32 %s13400_s10, 4  ;;  %s13401_s15 = smov [#allocation68]   ;;  %s683_s11 = int_to_ptr.vmem [resolvable:$true] %s682_s11 }
 0x217   :  { %s710_s18 = sshll.u32 %s13401_s15, 4  ;;  %s13977_s18 = int_to_ptr.vmem [resolvable:$true] %s710_s18 }
 0x21a   :  { %s12537_s4 = scalar_lea.hbm %s15405_s7, 64 }
 0x21b   :  { %p12538_p6 = scmp.ne.s32.totalorder %s15405_s7, %s12537_s4  ;;  %p12541_p7 = scmp.lt.u32.totalorder %s12537_s4, %s15405_s7 }
 0x21d   :  { %p12543_p8 = pnand %p12541_p7, %p12538_p6 }
 0x21f   :  { %12546 = shalt.err (!%p12543_p8)
}
 0x220   :  { %s12547_s22 = scalar_lea.vmem %s683_s11, 64  ;;  %p12552_p10 = scmp.lt.s32.totalorder %s683_s11, %s683_s11 }
 0x221   :  { %p12548_p9 = scmp.ne.s32.totalorder %s683_s11, %s12547_s22  ;;  %p12553_p11 = scmp.lt.s32.totalorder %s12547_s22, %s12547_s22 }
 0x223   :  { %p12554_p12 = por %p12553_p11, %p12552_p10 }
 0x225   :  { %p12555_p13 = pnand %p12554_p12, %p12548_p9 }
 0x227   :  { %12558 = shalt.err (!%p12555_p13)
}
 0x228   :  { %s15406_s27 = sld [smem:[#allocation162_spill]] }
 0x229   :  { %688 = dma.hbm_to_vmem [thread:$0]  %s15405_s7, 64, %s683_s11, [#allocation66], %s13379_s0, %s13379_s0, %s13380_s25  }
 0x22e   :  { %s12559_s16 = scalar_lea.hbm %s15406_s27, 64 }
 0x22f   :  { %p12560_p0 = scmp.ne.s32.totalorder %s15406_s27, %s12559_s16  ;;  %p12563_p1 = scmp.lt.u32.totalorder %s12559_s16, %s15406_s27 }
 0x231   :  { %p12565_p2 = pnand %p12563_p1, %p12560_p0 }
 0x233   :  { %12568 = shalt.err (!%p12565_p2)
}
 0x234   :  { %s12569_s3 = scalar_lea.vmem %s13977_s18, 64  ;;  %p12574_p4 = scmp.lt.s32.totalorder %s13977_s18, %s13977_s18 }
 0x235   :  { %p12570_p3 = scmp.ne.s32.totalorder %s13977_s18, %s12569_s3  ;;  %p12575_p5 = scmp.lt.s32.totalorder %s12569_s3, %s12569_s3 }
 0x237   :  { %p12576_p6 = por %p12575_p5, %p12574_p4 }
 0x239   :  { %p12577_p7 = pnand %p12576_p6, %p12570_p3 }
 0x23b   :  { %12580 = shalt.err (!%p12577_p7)
}
 0x23c   :  { %s15407_s8 = sld [smem:[#allocation165_spill]]  ;;  %s13402_s23 = smov [#allocation71]  }
 0x23d   :  { %716 = dma.hbm_to_vmem [thread:$0]  %s15406_s27, 64, %s13977_s18, [#allocation69], %s13379_s0, %s13379_s0, %s13380_s25  }
 0x23e   :  { %s735_s19 = sshll.u32 %s13402_s23, 4  ;;  %s13403_s26 = smov [#allocation74]   ;;  %s736_s19 = int_to_ptr.vmem [resolvable:$true] %s735_s19 }
 0x23f   :  { %s757_s9 = sshll.u32 %s13403_s26, 4  ;;  %s758_s9 = int_to_ptr.vmem [resolvable:$true] %s757_s9 }
 0x242   :  { %s12581_s28 = scalar_lea.hbm %s15407_s8, 16 }
 0x243   :  { %p12582_p8 = scmp.ne.s32.totalorder %s15407_s8, %s12581_s28  ;;  %p12585_p9 = scmp.lt.u32.totalorder %s12581_s28, %s15407_s8 }
 0x245   :  { %p12587_p10 = pnand %p12585_p9, %p12582_p8 }
 0x247   :  { %12590 = shalt.err (!%p12587_p10)
}
 0x248   :  { %s12591_s20 = scalar_lea.vmem %s736_s19, 16  ;;  %s12595_s17 = scalar_lea.vmem %s736_s19, 32 }
 0x249   :  { %p12592_p11 = scmp.ne.s32.totalorder %s736_s19, %s12591_s20  ;;  %p12596_p12 = scmp.lt.s32.totalorder %s736_s19, %s736_s19 }
 0x24a   :  { %p12597_p13 = scmp.lt.s32.totalorder %s12595_s17, %s12591_s20 }
 0x24c   :  { %p12598_p0 = por %p12597_p13, %p12596_p12 }
 0x24e   :  { %p12599_p1 = pnand %p12598_p0, %p12592_p11 }
 0x250   :  { %12602 = shalt.err (!%p12599_p1)
}
 0x251   :  { %s15408_s1 = sld [smem:[#allocation168_spill]] }
 0x252   :  { %738 = dma.hbm_to_vmem [thread:$0]  %s15407_s8, 16, %s736_s19, [#allocation72]  }
 0x257   :  { %s12603_s5 = scalar_lea.hbm %s15408_s1, 16 }
 0x258   :  { %p12604_p2 = scmp.ne.s32.totalorder %s15408_s1, %s12603_s5  ;;  %p12607_p3 = scmp.lt.u32.totalorder %s12603_s5, %s15408_s1 }
 0x25a   :  { %p12609_p4 = pnand %p12607_p3, %p12604_p2 }
 0x25c   :  { %12612 = shalt.err (!%p12609_p4)
}
 0x25d   :  { %s12613_s30 = scalar_lea.vmem %s758_s9, 16  ;;  %s12617_s2 = scalar_lea.vmem %s758_s9, 32 }
 0x25e   :  { %p12614_p5 = scmp.ne.s32.totalorder %s758_s9, %s12613_s30  ;;  %p12618_p6 = scmp.lt.s32.totalorder %s758_s9, %s758_s9 }
 0x25f   :  { %p12619_p7 = scmp.lt.s32.totalorder %s12617_s2, %s12613_s30 }
 0x261   :  { %p12620_p8 = por %p12619_p7, %p12618_p6 }
 0x263   :  { %p12621_p9 = pnand %p12620_p8, %p12614_p5 }
 0x265   :  { %12624 = shalt.err (!%p12621_p9)
}
 0x266   :  { %s15409_s12 = sld [smem:[#allocation171_spill]]  ;;  %s13404_s14 = smov [#allocation77]  }
 0x267   :  { %760 = dma.hbm_to_vmem [thread:$0]  %s15408_s1, 16, %s758_s9, [#allocation75]  }
 0x268   :  { %s779_s21 = sshll.u32 %s13404_s14, 4  ;;  %s13405_s7 = smov [#allocation2]   ;;  %s780_s21 = int_to_ptr.vmem [resolvable:$true] %s779_s21 }
 0x269   :  { %s204_s10 = sshll.u32 %s13405_s7, 4  ;;  %s14006_s10 = int_to_ptr.vmem [resolvable:$true] %s204_s10 }
 0x26c   :  { %s12625_s11 = scalar_lea.hbm %s15409_s12, 16 }
 0x26d   :  { %p12626_p10 = scmp.ne.s32.totalorder %s15409_s12, %s12625_s11  ;;  %p12629_p11 = scmp.lt.u32.totalorder %s12625_s11, %s15409_s12 }
 0x26f   :  { %p12631_p12 = pnand %p12629_p11, %p12626_p10 }
 0x271   :  { %12634 = shalt.err (!%p12631_p12)
}
 0x272   :  { %s12635_s15 = scalar_lea.vmem %s780_s21, 16  ;;  %s12639_s18 = scalar_lea.vmem %s780_s21, 32 }
 0x273   :  { %p12636_p13 = scmp.ne.s32.totalorder %s780_s21, %s12635_s15  ;;  %p12640_p0 = scmp.lt.s32.totalorder %s780_s21, %s780_s21 }
 0x274   :  { %p12641_p1 = scmp.lt.s32.totalorder %s12639_s18, %s12635_s15 }
 0x276   :  { %p12642_p2 = por %p12641_p1, %p12640_p0 }
 0x278   :  { %p12643_p3 = pnand %p12642_p2, %p12636_p13 }
 0x27a   :  { %12646 = shalt.err (!%p12643_p3)
}
 0x27b   :  { %s15410_s4 = sld [smem:[#allocation110_spill]] }
 0x27c   :  { %782 = dma.hbm_to_vmem [thread:$0]  %s15409_s12, 16, %s780_s21, [#allocation78]  }
 0x281   :  { %s12647_s22 = scalar_lea.hbm %s15410_s4, 384 }
 0x282   :  { %p12648_p4 = scmp.ne.s32.totalorder %s15410_s4, %s12647_s22  ;;  %p12651_p5 = scmp.lt.u32.totalorder %s12647_s22, %s15410_s4 }
 0x284   :  { %p12653_p6 = pnand %p12651_p5, %p12648_p4 }
 0x286   :  { %12656 = shalt.err (!%p12653_p6)
}
 0x287   :  { %s12657_s27 = scalar_lea.vmem %s14006_s10, 384  ;;  %p12662_p8 = scmp.lt.s32.totalorder %s14006_s10, %s14006_s10 }
 0x288   :  { %p12658_p7 = scmp.ne.s32.totalorder %s14006_s10, %s12657_s27  ;;  %p12663_p9 = scmp.lt.s32.totalorder %s12657_s27, %s12657_s27 }
 0x28a   :  { %p12664_p10 = por %p12663_p9, %p12662_p8 }
 0x28c   :  { %p12665_p11 = pnand %p12664_p10, %p12658_p7 }
 0x28e   :  { %12668 = shalt.err (!%p12665_p11)
}
 0x28f   :  { %s13406_s16 = smov 128   ;;  %s15411_s3 = sld [smem:[#allocation111_spill]] }
 0x290   :  { %s13407_s8 = smov 8   ;;  %s13408_s23 = smov [#allocation7]  }
 0x291   :  { %210 = dma.hbm_to_vmem [thread:$0]  %s15410_s4, 384, %s14006_s10, [#allocation3], %s13406_s16, %s13406_s16, %s13407_s8  }
 0x292   :  { %s227_s19 = sshll.u32 %s13408_s23, 4  ;;  %s13409_s26 = smov [#allocation10]   ;;  %s228_s19 = int_to_ptr.vmem [resolvable:$true] %s227_s19 }
 0x293   :  { %s247_s9 = sshll.u32 %s13409_s26, 4  ;;  %s248_s9 = int_to_ptr.vmem [resolvable:$true] %s247_s9 }
 0x295   :  { %s12669_s28 = scalar_lea.hbm %s15411_s3, 128 }
 0x296   :  { %p12670_p12 = scmp.ne.s32.totalorder %s15411_s3, %s12669_s28  ;;  %p12673_p13 = scmp.lt.u32.totalorder %s12669_s28, %s15411_s3 }
 0x298   :  { %p12675_p0 = pnand %p12673_p13, %p12670_p12 }
 0x29a   :  { %12678 = shalt.err (!%p12675_p0)
}
 0x29b   :  { %s12679_s20 = scalar_lea.vmem %s228_s19, 128  ;;  %p12684_p2 = scmp.lt.s32.totalorder %s228_s19, %s228_s19 }
 0x29c   :  { %p12680_p1 = scmp.ne.s32.totalorder %s228_s19, %s12679_s20  ;;  %p12685_p3 = scmp.lt.s32.totalorder %s12679_s20, %s12679_s20 }
 0x29e   :  { %p12686_p4 = por %p12685_p3, %p12684_p2 }
 0x2a0   :  { %p12687_p5 = pnand %p12686_p4, %p12680_p1 }
 0x2a2   :  { %12690 = shalt.err (!%p12687_p5)
}
 0x2a3   :  { %s15412_s17 = sld [smem:[#allocation112_spill]] }
 0x2a4   :  { %230 = dma.hbm_to_vmem [thread:$0]  %s15411_s3, 128, %s228_s19, [#allocation6]  }
 0x2a9   :  { %s12691_s1 = scalar_lea.hbm %s15412_s17, 16 }
 0x2aa   :  { %p12692_p6 = scmp.ne.s32.totalorder %s15412_s17, %s12691_s1  ;;  %p12695_p7 = scmp.lt.u32.totalorder %s12691_s1, %s15412_s17 }
 0x2ac   :  { %p12697_p8 = pnand %p12695_p7, %p12692_p6 }
 0x2ae   :  { %12700 = shalt.err (!%p12697_p8)
}
 0x2af   :  { %s12701_s5 = scalar_lea.vmem %s248_s9, 16  ;;  %s12705_s30 = scalar_lea.vmem %s248_s9, 32 }
 0x2b0   :  { %p12702_p9 = scmp.ne.s32.totalorder %s248_s9, %s12701_s5  ;;  %p12706_p10 = scmp.lt.s32.totalorder %s248_s9, %s248_s9 }
 0x2b1   :  { %p12707_p11 = scmp.lt.s32.totalorder %s12705_s30, %s12701_s5 }
 0x2b3   :  { %p12708_p12 = por %p12707_p11, %p12706_p10 }
 0x2b5   :  { %p12709_p13 = pnand %p12708_p12, %p12702_p9 }
 0x2b7   :  { %12712 = shalt.err (!%p12709_p13)
}
 0x2b8   :  { %s15413_s2 = sld [smem:[#allocation116_spill]]  ;;  %s13410_s12 = smov [#allocation13]  }
 0x2b9   :  { %250 = dma.hbm_to_vmem [thread:$0]  %s15412_s17, 16, %s248_s9, [#allocation9]  }
 0x2ba   :  { %s274_s14 = sshll.u32 %s13410_s12, 4  ;;  %s13411_s21 = smov [#allocation16]   ;;  %s275_s14 = int_to_ptr.vmem [resolvable:$true] %s274_s14 }
 0x2bb   :  { %s299_s7 = sshll.u32 %s13411_s21, 4  ;;  %s300_s7 = int_to_ptr.vmem [resolvable:$true] %s299_s7 }
 0x2be   :  { %s12713_s10 = scalar_lea.hbm %s15413_s2, 64 }
 0x2bf   :  { %p12714_p0 = scmp.ne.s32.totalorder %s15413_s2, %s12713_s10  ;;  %p12717_p1 = scmp.lt.u32.totalorder %s12713_s10, %s15413_s2 }
 0x2c1   :  { %p12719_p2 = pnand %p12717_p1, %p12714_p0 }
 0x2c3   :  { %12722 = shalt.err (!%p12719_p2)
}
 0x2c4   :  { %s12723_s11 = scalar_lea.vmem %s275_s14, 64  ;;  %p12728_p4 = scmp.lt.s32.totalorder %s275_s14, %s275_s14 }
 0x2c5   :  { %p12724_p3 = scmp.ne.s32.totalorder %s275_s14, %s12723_s11  ;;  %p12729_p5 = scmp.lt.s32.totalorder %s12723_s11, %s12723_s11 }
 0x2c7   :  { %p12730_p6 = por %p12729_p5, %p12728_p4 }
 0x2c9   :  { %p12731_p7 = pnand %p12730_p6, %p12724_p3 }
 0x2cb   :  { %12734 = shalt.err (!%p12731_p7)
}
 0x2cc   :  { %s15414_s15 = sld [smem:[#allocation117_spill]] }
 0x2cd   :  { %280 = dma.hbm_to_vmem [thread:$0]  %s15413_s2, 64, %s275_s14, [#allocation12], %s13379_s0, %s13379_s0, %s13380_s25  }
 0x2d2   :  { %s12735_s18 = scalar_lea.hbm %s15414_s15, 16 }
 0x2d3   :  { %p12736_p8 = scmp.ne.s32.totalorder %s15414_s15, %s12735_s18  ;;  %p12739_p9 = scmp.lt.u32.totalorder %s12735_s18, %s15414_s15 }
 0x2d5   :  { %p12741_p10 = pnand %p12739_p9, %p12736_p8 }
 0x2d7   :  { %12744 = shalt.err (!%p12741_p10)
}
 0x2d8   :  { %s12745_s4 = scalar_lea.vmem %s300_s7, 16  ;;  %s12749_s22 = scalar_lea.vmem %s300_s7, 32 }
 0x2d9   :  { %p12746_p11 = scmp.ne.s32.totalorder %s300_s7, %s12745_s4  ;;  %p12750_p12 = scmp.lt.s32.totalorder %s300_s7, %s300_s7 }
 0x2da   :  { %p12751_p13 = scmp.lt.s32.totalorder %s12749_s22, %s12745_s4 }
 0x2dc   :  { %p12752_p0 = por %p12751_p13, %p12750_p12 }
 0x2de   :  { %p12753_p1 = pnand %p12752_p0, %p12746_p11 }
 0x2e0   :  { %12756 = shalt.err (!%p12753_p1)
}
 0x2e1   :  { %s15415_s27 = sld [smem:[#allocation118_spill]]  ;;  %s13412_s16 = smov [#allocation19]  }
 0x2e2   :  { %302 = dma.hbm_to_vmem [thread:$0]  %s15414_s15, 16, %s300_s7, [#allocation15]  }
 0x2e3   :  { %s319_s3 = sshll.u32 %s13412_s16, 4  ;;  %s13413_s23 = smov [#allocation22]   ;;  %s320_s3 = int_to_ptr.vmem [resolvable:$true] %s319_s3 }
 0x2e4   :  { %s341_s19 = sshll.u32 %s13413_s23, 4  ;;  %s342_s19 = int_to_ptr.vmem [resolvable:$true] %s341_s19 }
 0x2e7   :  { %s12757_s26 = scalar_lea.hbm %s15415_s27, 16 }
 0x2e8   :  { %p12758_p2 = scmp.ne.s32.totalorder %s15415_s27, %s12757_s26  ;;  %p12761_p3 = scmp.lt.u32.totalorder %s12757_s26, %s15415_s27 }
 0x2ea   :  { %p12763_p4 = pnand %p12761_p3, %p12758_p2 }
 0x2ec   :  { %12766 = shalt.err (!%p12763_p4)
}
 0x2ed   :  { %s12767_s9 = scalar_lea.vmem %s320_s3, 16  ;;  %s12771_s28 = scalar_lea.vmem %s320_s3, 32 }
 0x2ee   :  { %p12768_p5 = scmp.ne.s32.totalorder %s320_s3, %s12767_s9  ;;  %p12772_p6 = scmp.lt.s32.totalorder %s320_s3, %s320_s3 }
 0x2ef   :  { %p12773_p7 = scmp.lt.s32.totalorder %s12771_s28, %s12767_s9 }
 0x2f1   :  { %p12774_p8 = por %p12773_p7, %p12772_p6 }
 0x2f3   :  { %p12775_p9 = pnand %p12774_p8, %p12768_p5 }
 0x2f5   :  { %12778 = shalt.err (!%p12775_p9)
}
 0x2f6   :  { %s15416_s20 = sld [smem:[#allocation119_spill]] }
 0x2f7   :  { %322 = dma.hbm_to_vmem [thread:$0]  %s15415_s27, 16, %s320_s3, [#allocation18]  }
 0x2fc   :  { %s12779_s17 = scalar_lea.hbm %s15416_s20, 16 }
 0x2fd   :  { %p12780_p10 = scmp.ne.s32.totalorder %s15416_s20, %s12779_s17  ;;  %p12783_p11 = scmp.lt.u32.totalorder %s12779_s17, %s15416_s20 }
 0x2ff   :  { %p12785_p12 = pnand %p12783_p11, %p12780_p10 }
 0x301   :  { %12788 = shalt.err (!%p12785_p12)
}
 0x302   :  { %s12789_s1 = scalar_lea.vmem %s342_s19, 16  ;;  %s12793_s5 = scalar_lea.vmem %s342_s19, 32 }
 0x303   :  { %p12790_p13 = scmp.ne.s32.totalorder %s342_s19, %s12789_s1  ;;  %p12794_p0 = scmp.lt.s32.totalorder %s342_s19, %s342_s19 }
 0x304   :  { %p12795_p1 = scmp.lt.s32.totalorder %s12793_s5, %s12789_s1 }
 0x306   :  { %p12796_p2 = por %p12795_p1, %p12794_p0 }
 0x308   :  { %p12797_p3 = pnand %p12796_p2, %p12790_p13 }
 0x30a   :  { %12800 = shalt.err (!%p12797_p3)
}
 0x30b   :  { %s15417_s30 = sld [smem:[#allocation121_spill]]  ;;  %s13414_s2 = smov [#allocation25]  }
 0x30c   :  { %344 = dma.hbm_to_vmem [thread:$0]  %s15416_s20, 16, %s342_s19, [#allocation21]  }
 0x30d   :  { %s363_s12 = sshll.u32 %s13414_s2, 4  ;;  %s13415_s14 = smov [#allocation28]   ;;  %s364_s12 = int_to_ptr.vmem [resolvable:$true] %s363_s12 }
 0x30e   :  { %s384_s21 = sshll.u32 %s13415_s14, 4  ;;  %s14049_s21 = int_to_ptr.vmem [resolvable:$true] %s384_s21 }
 0x311   :  { %s12801_s7 = scalar_lea.hbm %s15417_s30, 16 }
 0x312   :  { %p12802_p4 = scmp.ne.s32.totalorder %s15417_s30, %s12801_s7  ;;  %p12805_p5 = scmp.lt.u32.totalorder %s12801_s7, %s15417_s30 }
 0x314   :  { %p12807_p6 = pnand %p12805_p5, %p12802_p4 }
 0x316   :  { %12810 = shalt.err (!%p12807_p6)
}
 0x317   :  { %s12811_s10 = scalar_lea.vmem %s364_s12, 16  ;;  %s12815_s11 = scalar_lea.vmem %s364_s12, 32 }
 0x318   :  { %p12812_p7 = scmp.ne.s32.totalorder %s364_s12, %s12811_s10  ;;  %p12816_p8 = scmp.lt.s32.totalorder %s364_s12, %s364_s12 }
 0x319   :  { %p12817_p9 = scmp.lt.s32.totalorder %s12815_s11, %s12811_s10 }
 0x31b   :  { %p12818_p10 = por %p12817_p9, %p12816_p8 }
 0x31d   :  { %p12819_p11 = pnand %p12818_p10, %p12812_p7 }
 0x31f   :  { %12822 = shalt.err (!%p12819_p11)
}
 0x320   :  { %s15418_s15 = sld [smem:[#allocation123_spill]] }
 0x321   :  { %366 = dma.hbm_to_vmem [thread:$0]  %s15417_s30, 16, %s364_s12, [#allocation24]  }
 0x326   :  { %s12823_s18 = scalar_lea.hbm %s15418_s15, 64 }
 0x327   :  { %p12824_p12 = scmp.ne.s32.totalorder %s15418_s15, %s12823_s18  ;;  %p12827_p13 = scmp.lt.u32.totalorder %s12823_s18, %s15418_s15 }
 0x329   :  { %p12829_p0 = pnand %p12827_p13, %p12824_p12 }
 0x32b   :  { %12832 = shalt.err (!%p12829_p0)
}
 0x32c   :  { %s12833_s4 = scalar_lea.vmem %s14049_s21, 64  ;;  %p12838_p2 = scmp.lt.s32.totalorder %s14049_s21, %s14049_s21 }
 0x32d   :  { %p12834_p1 = scmp.ne.s32.totalorder %s14049_s21, %s12833_s4  ;;  %p12839_p3 = scmp.lt.s32.totalorder %s12833_s4, %s12833_s4 }
 0x32f   :  { %p12840_p4 = por %p12839_p3, %p12838_p2 }
 0x331   :  { %p12841_p5 = pnand %p12840_p4, %p12834_p1 }
 0x333   :  { %12844 = shalt.err (!%p12841_p5)
}
 0x334   :  { %s15419_s22 = sld [smem:[#allocation127_spill]]  ;;  %s13416_s27 = smov [#allocation31]  }
 0x335   :  { %390 = dma.hbm_to_vmem [thread:$0]  %s15418_s15, 64, %s14049_s21, [#allocation27], %s13379_s0, %s13379_s0, %s13380_s25  }
 0x336   :  { %s415_s16 = sshll.u32 %s13416_s27, 4  ;;  %s13417_s3 = smov [#allocation34]   ;;  %s416_s16 = int_to_ptr.vmem [resolvable:$true] %s415_s16 }
 0x337   :  { %s435_s23 = sshll.u32 %s13417_s3, 4  ;;  %s436_s23 = int_to_ptr.vmem [resolvable:$true] %s435_s23 }
 0x33a   :  { %s12845_s19 = scalar_lea.hbm %s15419_s22, 16 }
 0x33b   :  { %p12846_p6 = scmp.ne.s32.totalorder %s15419_s22, %s12845_s19  ;;  %p12849_p7 = scmp.lt.u32.totalorder %s12845_s19, %s15419_s22 }
 0x33d   :  { %p12851_p8 = pnand %p12849_p7, %p12846_p6 }
 0x33f   :  { %12854 = shalt.err (!%p12851_p8)
}
 0x340   :  { %s12855_s26 = scalar_lea.vmem %s416_s16, 16  ;;  %s12859_s9 = scalar_lea.vmem %s416_s16, 32 }
 0x341   :  { %p12856_p9 = scmp.ne.s32.totalorder %s416_s16, %s12855_s26  ;;  %p12860_p10 = scmp.lt.s32.totalorder %s416_s16, %s416_s16 }
 0x342   :  { %p12861_p11 = scmp.lt.s32.totalorder %s12859_s9, %s12855_s26 }
 0x344   :  { %p12862_p12 = por %p12861_p11, %p12860_p10 }
 0x346   :  { %p12863_p13 = pnand %p12862_p12, %p12856_p9 }
 0x348   :  { %12866 = shalt.err (!%p12863_p13)
}
 0x349   :  { %s15420_s28 = sld [smem:[#allocation128_spill]] }
 0x34a   :  { %418 = dma.hbm_to_vmem [thread:$0]  %s15419_s22, 16, %s416_s16, [#allocation30]  }
 0x34f   :  { %s12867_s20 = scalar_lea.hbm %s15420_s28, 16 }
 0x350   :  { %p12868_p0 = scmp.ne.s32.totalorder %s15420_s28, %s12867_s20  ;;  %p12871_p1 = scmp.lt.u32.totalorder %s12867_s20, %s15420_s28 }
 0x352   :  { %p12873_p2 = pnand %p12871_p1, %p12868_p0 }
 0x354   :  { %12876 = shalt.err (!%p12873_p2)
}
 0x355   :  { %s12877_s17 = scalar_lea.vmem %s436_s23, 16  ;;  %s12881_s1 = scalar_lea.vmem %s436_s23, 32 }
 0x356   :  { %p12878_p3 = scmp.ne.s32.totalorder %s436_s23, %s12877_s17  ;;  %p12882_p4 = scmp.lt.s32.totalorder %s436_s23, %s436_s23 }
 0x357   :  { %p12883_p5 = scmp.lt.s32.totalorder %s12881_s1, %s12877_s17 }
 0x359   :  { %p12884_p6 = por %p12883_p5, %p12882_p4 }
 0x35b   :  { %p12885_p7 = pnand %p12884_p6, %p12878_p3 }
 0x35d   :  { %12888 = shalt.err (!%p12885_p7)
}
 0x35e   :  { %s15421_s5 = sld [smem:[#allocation131_spill]]  ;;  %s13418_s30 = smov [#allocation37]  }
 0x35f   :  { %438 = dma.hbm_to_vmem [thread:$0]  %s15420_s28, 16, %s436_s23, [#allocation33]  }
 0x360   :  { %s459_s2 = sshll.u32 %s13418_s30, 4  ;;  %s13419_s12 = smov [#allocation40]   ;;  %s460_s2 = int_to_ptr.vmem [resolvable:$true] %s459_s2 }
 0x361   :  { %s479_s14 = sshll.u32 %s13419_s12, 4  ;;  %s480_s14 = int_to_ptr.vmem [resolvable:$true] %s479_s14 }
 0x364   :  { %s12889_s21 = scalar_lea.hbm %s15421_s5, 16 }
 0x365   :  { %p12890_p8 = scmp.ne.s32.totalorder %s15421_s5, %s12889_s21  ;;  %p12893_p9 = scmp.lt.u32.totalorder %s12889_s21, %s15421_s5 }
 0x367   :  { %p12895_p10 = pnand %p12893_p9, %p12890_p8 }
 0x369   :  { %12898 = shalt.err (!%p12895_p10)
}
 0x36a   :  { %s12899_s7 = scalar_lea.vmem %s460_s2, 16  ;;  %s12903_s10 = scalar_lea.vmem %s460_s2, 32 }
 0x36b   :  { %p12900_p11 = scmp.ne.s32.totalorder %s460_s2, %s12899_s7  ;;  %p12904_p12 = scmp.lt.s32.totalorder %s460_s2, %s460_s2 }
 0x36c   :  { %p12905_p13 = scmp.lt.s32.totalorder %s12903_s10, %s12899_s7 }
 0x36e   :  { %p12906_p0 = por %p12905_p13, %p12904_p12 }
 0x370   :  { %p12907_p1 = pnand %p12906_p0, %p12900_p11 }
 0x372   :  { %12910 = shalt.err (!%p12907_p1)
}
 0x373   :  { %s15422_s11 = sld [smem:[#allocation132_spill]] }
 0x374   :  { %462 = dma.hbm_to_vmem [thread:$0]  %s15421_s5, 16, %s460_s2, [#allocation36]  }
 0x379   :  { %s12911_s15 = scalar_lea.hbm %s15422_s11, 16 }
 0x37a   :  { %p12912_p2 = scmp.ne.s32.totalorder %s15422_s11, %s12911_s15  ;;  %p12915_p3 = scmp.lt.u32.totalorder %s12911_s15, %s15422_s11 }
 0x37c   :  { %p12917_p4 = pnand %p12915_p3, %p12912_p2 }
 0x37e   :  { %12920 = shalt.err (!%p12917_p4)
}
 0x37f   :  { %s12921_s18 = scalar_lea.vmem %s480_s14, 16  ;;  %s12925_s4 = scalar_lea.vmem %s480_s14, 32 }
 0x380   :  { %p12922_p5 = scmp.ne.s32.totalorder %s480_s14, %s12921_s18  ;;  %p12926_p6 = scmp.lt.s32.totalorder %s480_s14, %s480_s14 }
 0x381   :  { %p12927_p7 = scmp.lt.s32.totalorder %s12925_s4, %s12921_s18 }
 0x383   :  { %p12928_p8 = por %p12927_p7, %p12926_p6 }
 0x385   :  { %p12929_p9 = pnand %p12928_p8, %p12922_p5 }
 0x387   :  { %12932 = shalt.err (!%p12929_p9)
}
 0x388   :  { %s15423_s22 = sld [smem:[#allocation135_spill]]  ;;  %s13420_s27 = smov [#allocation43]  }
 0x389   :  { %482 = dma.hbm_to_vmem [thread:$0]  %s15422_s11, 16, %s480_s14, [#allocation39]  }
 0x38a   :  { %s504_s16 = sshll.u32 %s13420_s27, 4  ;;  %s13421_s3 = smov [#allocation46]   ;;  %s505_s16 = int_to_ptr.vmem [resolvable:$true] %s504_s16 }
 0x38b   :  { %s533_s23 = sshll.u32 %s13421_s3, 4  ;;  %s534_s23 = int_to_ptr.vmem [resolvable:$true] %s533_s23 }
 0x38e   :  { %s12933_s19 = scalar_lea.hbm %s15423_s22, 64 }
 0x38f   :  { %p12934_p10 = scmp.ne.s32.totalorder %s15423_s22, %s12933_s19  ;;  %p12937_p11 = scmp.lt.u32.totalorder %s12933_s19, %s15423_s22 }
 0x391   :  { %p12939_p12 = pnand %p12937_p11, %p12934_p10 }
 0x393   :  { %12942 = shalt.err (!%p12939_p12)
}
 0x394   :  { %s12943_s26 = scalar_lea.vmem %s505_s16, 64  ;;  %p12948_p0 = scmp.lt.s32.totalorder %s505_s16, %s505_s16 }
 0x395   :  { %p12944_p13 = scmp.ne.s32.totalorder %s505_s16, %s12943_s26  ;;  %p12949_p1 = scmp.lt.s32.totalorder %s12943_s26, %s12943_s26 }
 0x397   :  { %p12950_p2 = por %p12949_p1, %p12948_p0 }
 0x399   :  { %p12951_p3 = pnand %p12950_p2, %p12944_p13 }
 0x39b   :  { %12954 = shalt.err (!%p12951_p3)
}
 0x39c   :  { %s15424_s9 = sld [smem:[#allocation138_spill]] }
 0x39d   :  { %510 = dma.hbm_to_vmem [thread:$0]  %s15423_s22, 64, %s505_s16, [#allocation42], %s13379_s0, %s13379_s0, %s13380_s25  }
 0x3a2   :  { %s12955_s28 = scalar_lea.hbm %s15424_s9, 16 }
 0x3a3   :  { %p12956_p4 = scmp.ne.s32.totalorder %s15424_s9, %s12955_s28  ;;  %p12959_p5 = scmp.lt.u32.totalorder %s12955_s28, %s15424_s9 }
 0x3a5   :  { %p12961_p6 = pnand %p12959_p5, %p12956_p4 }
 0x3a7   :  { %12964 = shalt.err (!%p12961_p6)
}
 0x3a8   :  { %s12965_s20 = scalar_lea.vmem %s534_s23, 16  ;;  %s12969_s17 = scalar_lea.vmem %s534_s23, 32 }
 0x3a9   :  { %p12966_p7 = scmp.ne.s32.totalorder %s534_s23, %s12965_s20  ;;  %p12970_p8 = scmp.lt.s32.totalorder %s534_s23, %s534_s23 }
 0x3aa   :  { %p12971_p9 = scmp.lt.s32.totalorder %s12969_s17, %s12965_s20 }
 0x3ac   :  { %p12972_p10 = por %p12971_p9, %p12970_p8 }
 0x3ae   :  { %p12973_p11 = pnand %p12972_p10, %p12966_p7 }
 0x3b0   :  { %12976 = shalt.err (!%p12973_p11)
}
 0x3b1   :  { %s15425_s1 = sld [smem:[#allocation140_spill]]  ;;  %s13422_s5 = smov [#allocation49]  }
 0x3b2   :  { %536 = dma.hbm_to_vmem [thread:$0]  %s15424_s9, 16, %s534_s23, [#allocation45]  }
 0x3b3   :  { %s553_s30 = sshll.u32 %s13422_s5, 4  ;;  %s13423_s2 = smov [#allocation52]   ;;  %s554_s30 = int_to_ptr.vmem [resolvable:$true] %s553_s30 }
 0x3b4   :  { %s578_s12 = sshll.u32 %s13423_s2, 4  ;;  %s14094_s12 = int_to_ptr.vmem [resolvable:$true] %s578_s12 }
 0x3b7   :  { %s12977_s14 = scalar_lea.hbm %s15425_s1, 16 }
 0x3b8   :  { %p12978_p12 = scmp.ne.s32.totalorder %s15425_s1, %s12977_s14  ;;  %p12981_p13 = scmp.lt.u32.totalorder %s12977_s14, %s15425_s1 }
 0x3ba   :  { %p12983_p0 = pnand %p12981_p13, %p12978_p12 }
 0x3bc   :  { %12986 = shalt.err (!%p12983_p0)
}
 0x3bd   :  { %s12987_s21 = scalar_lea.vmem %s554_s30, 16  ;;  %s12991_s7 = scalar_lea.vmem %s554_s30, 32 }
 0x3be   :  { %p12988_p1 = scmp.ne.s32.totalorder %s554_s30, %s12987_s21  ;;  %p12992_p2 = scmp.lt.s32.totalorder %s554_s30, %s554_s30 }
 0x3bf   :  { %p12993_p3 = scmp.lt.s32.totalorder %s12991_s7, %s12987_s21 }
 0x3c1   :  { %p12994_p4 = por %p12993_p3, %p12992_p2 }
 0x3c3   :  { %p12995_p5 = pnand %p12994_p4, %p12988_p1 }
 0x3c5   :  { %12998 = shalt.err (!%p12995_p5)
}
 0x3c6   :  { %s15426_s10 = sld [smem:[#allocation144_spill]] }
 0x3c7   :  { %556 = dma.hbm_to_vmem [thread:$0]  %s15425_s1, 16, %s554_s30, [#allocation48]  }
 0x3cc   :  { %s12999_s11 = scalar_lea.hbm %s15426_s10, 64 }
 0x3cd   :  { %p13000_p6 = scmp.ne.s32.totalorder %s15426_s10, %s12999_s11  ;;  %p13003_p7 = scmp.lt.u32.totalorder %s12999_s11, %s15426_s10 }
 0x3cf   :  { %p13005_p8 = pnand %p13003_p7, %p13000_p6 }
 0x3d1   :  { %13008 = shalt.err (!%p13005_p8)
}
 0x3d2   :  { %s13009_s15 = scalar_lea.vmem %s14094_s12, 64  ;;  %p13014_p10 = scmp.lt.s32.totalorder %s14094_s12, %s14094_s12 }
 0x3d3   :  { %p13010_p9 = scmp.ne.s32.totalorder %s14094_s12, %s13009_s15  ;;  %p13015_p11 = scmp.lt.s32.totalorder %s13009_s15, %s13009_s15 }
 0x3d5   :  { %p13016_p12 = por %p13015_p11, %p13014_p10 }
 0x3d7   :  { %p13017_p13 = pnand %p13016_p12, %p13010_p9 }
 0x3d9   :  { %13020 = shalt.err (!%p13017_p13)
}
 0x3da   :  { %s15427_s18 = sld [smem:[#allocation148_spill]]  ;;  %s13424_s4 = smov [#allocation55]  }
 0x3db   :  { %584 = dma.hbm_to_vmem [thread:$0]  %s15426_s10, 64, %s14094_s12, [#allocation51], %s13379_s0, %s13379_s0, %s13380_s25  }
 0x3dc   :  { %s607_s22 = sshll.u32 %s13424_s4, 4  ;;  %s13425_s27 = smov [#allocation58]   ;;  %s608_s22 = int_to_ptr.vmem [resolvable:$true] %s607_s22 }
 0x3dd   :  { %s627_s16 = sshll.u32 %s13425_s27, 4  ;;  %s628_s16 = int_to_ptr.vmem [resolvable:$true] %s627_s16 }
 0x3e0   :  { %s13021_s3 = scalar_lea.hbm %s15427_s18, 16 }
 0x3e1   :  { %p13022_p0 = scmp.ne.s32.totalorder %s15427_s18, %s13021_s3  ;;  %p13025_p1 = scmp.lt.u32.totalorder %s13021_s3, %s15427_s18 }
 0x3e3   :  { %p13027_p2 = pnand %p13025_p1, %p13022_p0 }
 0x3e5   :  { %13030 = shalt.err (!%p13027_p2)
}
 0x3e6   :  { %s13031_s23 = scalar_lea.vmem %s608_s22, 16  ;;  %s13035_s19 = scalar_lea.vmem %s608_s22, 32 }
 0x3e7   :  { %p13032_p3 = scmp.ne.s32.totalorder %s608_s22, %s13031_s23  ;;  %p13036_p4 = scmp.lt.s32.totalorder %s608_s22, %s608_s22 }
 0x3e8   :  { %p13037_p5 = scmp.lt.s32.totalorder %s13035_s19, %s13031_s23 }
 0x3ea   :  { %p13038_p6 = por %p13037_p5, %p13036_p4 }
 0x3ec   :  { %p13039_p7 = pnand %p13038_p6, %p13032_p3 }
 0x3ee   :  { %13042 = shalt.err (!%p13039_p7)
}
 0x3ef   :  { %s15428_s26 = sld [smem:[#allocation150_spill]] }
 0x3f0   :  { %610 = dma.hbm_to_vmem [thread:$0]  %s15427_s18, 16, %s608_s22, [#allocation54]  }
 0x3f5   :  { %s13043_s9 = scalar_lea.hbm %s15428_s26, 16 }
 0x3f6   :  { %p13044_p8 = scmp.ne.s32.totalorder %s15428_s26, %s13043_s9  ;;  %p13047_p9 = scmp.lt.u32.totalorder %s13043_s9, %s15428_s26 }
 0x3f8   :  { %p13049_p10 = pnand %p13047_p9, %p13044_p8 }
 0x3fa   :  { %13052 = shalt.err (!%p13049_p10)
}
 0x3fb   :  { %s13053_s28 = scalar_lea.vmem %s628_s16, 16  ;;  %s13057_s20 = scalar_lea.vmem %s628_s16, 32 }
 0x3fc   :  { %p13054_p11 = scmp.ne.s32.totalorder %s628_s16, %s13053_s28  ;;  %p13058_p12 = scmp.lt.s32.totalorder %s628_s16, %s628_s16 }
 0x3fd   :  { %p13059_p13 = scmp.lt.s32.totalorder %s13057_s20, %s13053_s28 }
 0x3ff   :  { %p13060_p0 = por %p13059_p13, %p13058_p12 }
 0x401   :  { %p13061_p1 = pnand %p13060_p0, %p13054_p11 }
 0x403   :  { %13064 = shalt.err (!%p13061_p1)
}
 0x404   :  { %s15429_s17 = sld [smem:[#allocation154_spill]]  ;;  %s13426_s1 = smov [#allocation61]  }
 0x405   :  { %630 = dma.hbm_to_vmem [thread:$0]  %s15428_s26, 16, %s628_s16, [#allocation57]  }
 0x406   :  { %s651_s5 = sshll.u32 %s13426_s1, 4  ;;  %s13427_s30 = smov [#allocation64]   ;;  %s652_s5 = int_to_ptr.vmem [resolvable:$true] %s651_s5 }
 0x407   :  { %s671_s2 = sshll.u32 %s13427_s30, 4  ;;  %s672_s2 = int_to_ptr.vmem [resolvable:$true] %s671_s2 }
 0x40a   :  { %s13065_s12 = scalar_lea.hbm %s15429_s17, 16 }
 0x40b   :  { %p13066_p2 = scmp.ne.s32.totalorder %s15429_s17, %s13065_s12  ;;  %p13069_p3 = scmp.lt.u32.totalorder %s13065_s12, %s15429_s17 }
 0x40d   :  { %p13071_p4 = pnand %p13069_p3, %p13066_p2 }
 0x40f   :  { %13074 = shalt.err (!%p13071_p4)
}
 0x410   :  { %s13075_s14 = scalar_lea.vmem %s652_s5, 16  ;;  %s13079_s21 = scalar_lea.vmem %s652_s5, 32 }
 0x411   :  { %p13076_p5 = scmp.ne.s32.totalorder %s652_s5, %s13075_s14  ;;  %p13080_p6 = scmp.lt.s32.totalorder %s652_s5, %s652_s5 }
 0x412   :  { %p13081_p7 = scmp.lt.s32.totalorder %s13079_s21, %s13075_s14 }
 0x414   :  { %p13082_p8 = por %p13081_p7, %p13080_p6 }
 0x416   :  { %p13083_p9 = pnand %p13082_p8, %p13076_p5 }
 0x418   :  { %13086 = shalt.err (!%p13083_p9)
}
 0x419   :  { %s15430_s7 = sld [smem:[#allocation156_spill]] }
 0x41a   :  { %654 = dma.hbm_to_vmem [thread:$0]  %s15429_s17, 16, %s652_s5, [#allocation60]  }
 0x41f   :  { %s13087_s10 = scalar_lea.hbm %s15430_s7, 16 }
 0x420   :  { %p13088_p10 = scmp.ne.s32.totalorder %s15430_s7, %s13087_s10  ;;  %p13091_p11 = scmp.lt.u32.totalorder %s13087_s10, %s15430_s7 }
 0x422   :  { %p13093_p12 = pnand %p13091_p11, %p13088_p10 }
 0x424   :  { %13096 = shalt.err (!%p13093_p12)
}
 0x425   :  { %s13097_s11 = scalar_lea.vmem %s672_s2, 16  ;;  %s13101_s15 = scalar_lea.vmem %s672_s2, 32 }
 0x426   :  { %p13098_p13 = scmp.ne.s32.totalorder %s672_s2, %s13097_s11  ;;  %p13102_p0 = scmp.lt.s32.totalorder %s672_s2, %s672_s2 }
 0x427   :  { %p13103_p1 = scmp.lt.s32.totalorder %s13101_s15, %s13097_s11 }
 0x429   :  { %p13104_p2 = por %p13103_p1, %p13102_p0 }
 0x42b   :  { %p13105_p3 = pnand %p13104_p2, %p13098_p13 }
 0x42d   :  { %13108 = shalt.err (!%p13105_p3)
}
 0x42e   :  { %s15431_s18 = sld [smem:[#allocation160_spill]]  ;;  %s13428_s4 = smov [#allocation67]  }
 0x42f   :  { %674 = dma.hbm_to_vmem [thread:$0]  %s15430_s7, 16, %s672_s2, [#allocation63]  }
 0x430   :  { %s696_s22 = sshll.u32 %s13428_s4, 4  ;;  %s13429_s27 = smov [#allocation70]   ;;  %s697_s22 = int_to_ptr.vmem [resolvable:$true] %s696_s22 }
 0x431   :  { %s725_s16 = sshll.u32 %s13429_s27, 4  ;;  %s726_s16 = int_to_ptr.vmem [resolvable:$true] %s725_s16 }
 0x434   :  { %s13109_s3 = scalar_lea.hbm %s15431_s18, 64 }
 0x435   :  { %p13110_p4 = scmp.ne.s32.totalorder %s15431_s18, %s13109_s3  ;;  %p13113_p5 = scmp.lt.u32.totalorder %s13109_s3, %s15431_s18 }
 0x437   :  { %p13115_p6 = pnand %p13113_p5, %p13110_p4 }
 0x439   :  { %13118 = shalt.err (!%p13115_p6)
}
 0x43a   :  { %s13119_s23 = scalar_lea.vmem %s697_s22, 64  ;;  %p13124_p8 = scmp.lt.s32.totalorder %s697_s22, %s697_s22 }
 0x43b   :  { %p13120_p7 = scmp.ne.s32.totalorder %s697_s22, %s13119_s23  ;;  %p13125_p9 = scmp.lt.s32.totalorder %s13119_s23, %s13119_s23 }
 0x43d   :  { %p13126_p10 = por %p13125_p9, %p13124_p8 }
 0x43f   :  { %p13127_p11 = pnand %p13126_p10, %p13120_p7 }
 0x441   :  { %13130 = shalt.err (!%p13127_p11)
}
 0x442   :  { %s15432_s19 = sld [smem:[#allocation164_spill]] }
 0x443   :  { %702 = dma.hbm_to_vmem [thread:$0]  %s15431_s18, 64, %s697_s22, [#allocation66], %s13379_s0, %s13379_s0, %s13380_s25  }
 0x448   :  { %s13131_s26 = scalar_lea.hbm %s15432_s19, 16 }
 0x449   :  { %p13132_p12 = scmp.ne.s32.totalorder %s15432_s19, %s13131_s26  ;;  %p13135_p13 = scmp.lt.u32.totalorder %s13131_s26, %s15432_s19 }
 0x44b   :  { %p13137_p0 = pnand %p13135_p13, %p13132_p12 }
 0x44d   :  { %13140 = shalt.err (!%p13137_p0)
}
 0x44e   :  { %s13141_s9 = scalar_lea.vmem %s726_s16, 16  ;;  %s13145_s28 = scalar_lea.vmem %s726_s16, 32 }
 0x44f   :  { %p13142_p1 = scmp.ne.s32.totalorder %s726_s16, %s13141_s9  ;;  %p13146_p2 = scmp.lt.s32.totalorder %s726_s16, %s726_s16 }
 0x450   :  { %p13147_p3 = scmp.lt.s32.totalorder %s13145_s28, %s13141_s9 }
 0x452   :  { %p13148_p4 = por %p13147_p3, %p13146_p2 }
 0x454   :  { %p13149_p5 = pnand %p13148_p4, %p13142_p1 }
 0x456   :  { %13152 = shalt.err (!%p13149_p5)
}
 0x457   :  { %s15433_s20 = sld [smem:[#allocation166_spill]]  ;;  %s13430_s17 = smov [#allocation73]  }
 0x458   :  { %728 = dma.hbm_to_vmem [thread:$0]  %s15432_s19, 16, %s726_s16, [#allocation69]  }
 0x459   :  { %s745_s25 = sshll.u32 %s13430_s17, 4  ;;  %s13431_s1 = smov [#allocation76]   ;;  %s746_s25 = int_to_ptr.vmem [resolvable:$true] %s745_s25 }
 0x45a   :  { %s769_s5 = sshll.u32 %s13431_s1, 4  ;;  %s770_s5 = int_to_ptr.vmem [resolvable:$true] %s769_s5 }
 0x45d   :  { %s13153_s30 = scalar_lea.hbm %s15433_s20, 16 }
 0x45e   :  { %p13154_p6 = scmp.ne.s32.totalorder %s15433_s20, %s13153_s30  ;;  %p13157_p7 = scmp.lt.u32.totalorder %s13153_s30, %s15433_s20 }
 0x460   :  { %p13159_p8 = pnand %p13157_p7, %p13154_p6 }
 0x462   :  { %13162 = shalt.err (!%p13159_p8)
}
 0x463   :  { %s13163_s2 = scalar_lea.vmem %s746_s25, 16  ;;  %s13167_s12 = scalar_lea.vmem %s746_s25, 32 }
 0x464   :  { %p13164_p9 = scmp.ne.s32.totalorder %s746_s25, %s13163_s2  ;;  %p13168_p10 = scmp.lt.s32.totalorder %s746_s25, %s746_s25 }
 0x465   :  { %p13169_p11 = scmp.lt.s32.totalorder %s13167_s12, %s13163_s2 }
 0x467   :  { %p13170_p12 = por %p13169_p11, %p13168_p10 }
 0x469   :  { %p13171_p13 = pnand %p13170_p12, %p13164_p9 }
 0x46b   :  { %13174 = shalt.err (!%p13171_p13)
}
 0x46c   :  { %s15434_s14 = sld [smem:[#allocation170_spill]] }
 0x46d   :  { %748 = dma.hbm_to_vmem [thread:$0]  %s15433_s20, 16, %s746_s25, [#allocation72]  }
 0x472   :  { %s13175_s21 = scalar_lea.hbm %s15434_s14, 16 }
 0x473   :  { %p13176_p0 = scmp.ne.s32.totalorder %s15434_s14, %s13175_s21  ;;  %p13179_p1 = scmp.lt.u32.totalorder %s13175_s21, %s15434_s14 }
 0x475   :  { %p13181_p2 = pnand %p13179_p1, %p13176_p0 }
 0x477   :  { %13184 = shalt.err (!%p13181_p2)
}
 0x478   :  { %s13185_s7 = scalar_lea.vmem %s770_s5, 16  ;;  %s13189_s10 = scalar_lea.vmem %s770_s5, 32 }
 0x479   :  { %p13186_p3 = scmp.ne.s32.totalorder %s770_s5, %s13185_s7  ;;  %p13190_p4 = scmp.lt.s32.totalorder %s770_s5, %s770_s5 }
 0x47a   :  { %p13191_p5 = scmp.lt.s32.totalorder %s13189_s10, %s13185_s7 }
 0x47c   :  { %p13192_p6 = por %p13191_p5, %p13190_p4 }
 0x47e   :  { %p13193_p7 = pnand %p13192_p6, %p13186_p3 }
 0x480   :  { %13196 = shalt.err (!%p13193_p7)
}
 0x481   :  { %772 = dma.hbm_to_vmem [thread:$0]  %s15434_s14, 16, %s770_s5, [#allocation75]  }
 0x482   :  { %s13432_s11 = smov [#allocation79]   ;;  %s13197_s18 = scalar_lea.hbm %s13835_s13, 16 }
 0x483   :  { %s789_s15 = sshll.u32 %s13432_s11, 4  ;;  %p13198_p8 = scmp.ne.s32.totalorder %s13835_s13, %s13197_s18  ;;  %s790_s15 = int_to_ptr.vmem [resolvable:$true] %s789_s15 }
 0x484   :  { %p13201_p9 = scmp.lt.u32.totalorder %s13197_s18, %s13835_s13 }
 0x486   :  { %p13203_p10 = pnand %p13201_p9, %p13198_p8 }
 0x488   :  { %13206 = shalt.err (!%p13203_p10)
}
 0x489   :  { %s13207_s4 = scalar_lea.vmem %s790_s15, 16  ;;  %s13211_s22 = scalar_lea.vmem %s790_s15, 32 }
 0x48a   :  { %p13208_p11 = scmp.ne.s32.totalorder %s790_s15, %s13207_s4  ;;  %p13212_p12 = scmp.lt.s32.totalorder %s790_s15, %s790_s15 }
 0x48b   :  { %p13213_p13 = scmp.lt.s32.totalorder %s13211_s22, %s13207_s4 }
 0x48d   :  { %p13214_p0 = por %p13213_p13, %p13212_p12 }
 0x48f   :  { %p13215_p1 = pnand %p13214_p0, %p13208_p11 }
 0x491   :  { %13218 = shalt.err (!%p13215_p1)
}
 0x492   :  { %792 = dma.hbm_to_vmem [thread:$0]  %s13835_s13, 16, %s790_s15, [#allocation78]  }
 0x493   :  { %13241 = dma.done.wait [#allocation3], 384  }
 0x494   :  { %13242 = vsyncadd [#allocation3], 4294966912 }
 0x495   :  { %13243 = dma.done.wait [#allocation6], 144  }
 0x496   :  { %13244 = vsyncadd [#allocation6], 4294967152 }
 0x497   :  { %13245 = dma.done.wait [#allocation9], 32  }
 0x498   :  { %13246 = vsyncadd [#allocation9], 4294967264 }
 0x499   :  { %13247 = dma.done.wait [#allocation12], 128  }
 0x49a   :  { %13248 = vsyncadd [#allocation12], 4294967168 }
 0x49b   :  { %13249 = dma.done.wait [#allocation15], 272  }
 0x49c   :  { %13250 = vsyncadd [#allocation15], 4294967024 }
 0x49d   :  { %13251 = dma.done.wait [#allocation18], 32  }
 0x49e   :  { %13252 = vsyncadd [#allocation18], 4294967264 }
 0x49f   :  { %13253 = dma.done.wait [#allocation21], 272  }
 0x4a0   :  { %13254 = vsyncadd [#allocation21], 4294967024 }
 0x4a1   :  { %13255 = dma.done.wait [#allocation24], 32  }
 0x4a2   :  { %13256 = vsyncadd [#allocation24], 4294967264 }
 0x4a3   :  { %13257 = dma.done.wait [#allocation27], 80  }
 0x4a4   :  { %13258 = vsyncadd [#allocation27], 4294967216 }
 0x4a5   :  { %13259 = dma.done.wait [#allocation30], 80  }
 0x4a6   :  { %13260 = vsyncadd [#allocation30], 4294967216 }
 0x4a7   :  { %13261 = dma.done.wait [#allocation33], 32  }
 0x4a8   :  { %13262 = vsyncadd [#allocation33], 4294967264 }
 0x4a9   :  { %13263 = dma.done.wait [#allocation36], 32  }
 0x4aa   :  { %13264 = vsyncadd [#allocation36], 4294967264 }
 0x4ab   :  { %13265 = dma.done.wait [#allocation39], 32  }
 0x4ac   :  { %13266 = vsyncadd [#allocation39], 4294967264 }
 0x4ad   :  { %13267 = dma.done.wait [#allocation42], 128  }
 0x4ae   :  { %13268 = vsyncadd [#allocation42], 4294967168 }
 0x4af   :  { %13269 = dma.done.wait [#allocation45], 80  }
 0x4b0   :  { %13270 = vsyncadd [#allocation45], 4294967216 }
 0x4b1   :  { %13271 = dma.done.wait [#allocation48], 32  }
 0x4b2   :  { %13272 = vsyncadd [#allocation48], 4294967264 }
 0x4b3   :  { %13273 = dma.done.wait [#allocation51], 128  }
 0x4b4   :  { %13274 = vsyncadd [#allocation51], 4294967168 }
 0x4b5   :  { %13275 = dma.done.wait [#allocation54], 80  }
 0x4b6   :  { %13276 = vsyncadd [#allocation54], 4294967216 }
 0x4b7   :  { %13277 = dma.done.wait [#allocation57], 32  }
 0x4b8   :  { %13278 = vsyncadd [#allocation57], 4294967264 }
 0x4b9   :  { %13279 = dma.done.wait [#allocation60], 32  }
 0x4ba   :  { %13280 = vsyncadd [#allocation60], 4294967264 }
 0x4bb   :  { %13281 = dma.done.wait [#allocation63], 32  }
 0x4bc   :  { %13282 = vsyncadd [#allocation63], 4294967264 }
 0x4bd   :  { %13283 = dma.done.wait [#allocation66], 128  }
 0x4be   :  { %13284 = vsyncadd [#allocation66], 4294967168 }
 0x4bf   :  { %13285 = dma.done.wait [#allocation69], 80  }
 0x4c0   :  { %13286 = vsyncadd [#allocation69], 4294967216 }
 0x4c1   :  { %13287 = dma.done.wait [#allocation72], 32  }
 0x4c2   :  { %13288 = vsyncadd [#allocation72], 4294967264 }
 0x4c3   :  { %13289 = dma.done.wait [#allocation75], 32  }
 0x4c4   :  { %13290 = vsyncadd [#allocation75], 4294967264 }
 0x4c5   :  { %13291 = dma.done.wait [#allocation78], 32  }
 0x4c6   :  { %13292 = vsyncadd [#allocation78], 4294967264  ;;  %s15435_s13 = sld [smem:[#allocation109_spill]]  ;;  %s15436_s27 = sld [smem:[#allocation108_spill]]  ;;  %vm984_vm0 = vcmask 392192   ;;  %v965_v8 = vld [vmem:[#allocation2 + $0x10] sm:$0xff] }
 0x4c7   :  { %v963_v9 = vld [vmem:[#allocation2] sm:$0xff]  ;;  %vm1041_vm1 = vcmask 261120   ;;  %v964_v13 = vld [vmem:[#allocation2 + $0x8] sm:$0xff]  ;;  %s15437_s16 = sld [smem:[#allocation113_spill]]  ;;  %s15438_s3 = sld [smem:[#allocation115_spill]]  ;;  %vm1318_vm2 = vcmask 64512  }
 0x4c8   :  { %s15439_s23 = sld [smem:[#allocation114_spill]]  ;;  %v9650_v52 = vld [vmem:[#allocation8] ss:$0 sm:$0xff]  ;;  %v9651_v58 = vld [vmem:[#allocation10] ss:$0 sm:$0xff]  ;;  %vm1435_vm3 = vcmask 1043456  }
 0x4c9   :  { %vm1391_vm4 = vcmask 195584   ;;  %s13433_s19 = smov 24   ;;  %vm2651_vm5 = vcmask 130048   ;;  %s15440_s26 = sld [smem:[#allocation120_spill]]  ;;  %vm2946_vm6 = vcmask 523264   ;;  %vm13435_vm7 = vmmov 0  }
 0x4ca   :  { %s15441_s9 = sld [smem:[#allocation122_spill]]  ;;  %s15442_s28 = sld [smem:[#allocation125_spill]] }
 0x4cb   :  { %s15443_s20 = sld [smem:[#allocation124_spill]]  ;;  %s15444_s17 = sld [smem:[#allocation126_spill]] }
 0x4cc   :  { %v11736_v0 = vld [vmem:[%s15435_s13] sm:$0xff]   ;;  %v11737_v1 = vld [vmem:[%s15435_s13 + $0x8] sm:$0xff]   ;;  %v11738_v4 = vld [vmem:[%s15435_s13 + $0x10] sm:$0xff]   ;;  %s15445_s25 = sld [smem:[#allocation129_spill]]  ;;  %s15446_s1 = sld [smem:[#allocation133_spill]] }
 0x4cd   :  { %10634 = vmatprep.subr.bf16.mxu0 %v11736_v0  ;;  %v952_v2 = vld [vmem:[%s15436_s27] sm:$0xff]  ;;  %v953_v3 = vld [vmem:[%s15436_s27 + $0x8] sm:$0xff]  ;;  %v954_v6 = vld [vmem:[%s15436_s27 + $0x10] sm:$0xff]  ;;  %s15447_s5 = sld [smem:[#allocation134_spill]]  ;;  %s15448_s30 = sld [smem:[#allocation130_spill]] }
 0x4ce   :  { %10635 = vmatpush3.bf16.msra.mxu0 %v11736_v0  ;;  %v961_v5 = vpack.c.bf16 %v953_v3, %v952_v2  ;;  %v962_v7 = vpack.c.bf16 %v954_v6, %v954_v6  ;;  %v11739_v36 = vld [vmem:[%s15437_s16] sm:$0xff]   ;;  %v11741_v38 = vld [vmem:[%s15437_s16 + $0x8] sm:$0xff]   ;;  %s15449_s2 = sld [smem:[#allocation136_spill]]  ;;  %s15450_s12 = sld [smem:[#allocation137_spill]] }
 0x4cf   :  { %10636 = vmatprep.subr.bf16.mxu0 %v11737_v1  ;;  %v11740_v37 = vld [vmem:[%s15438_s3] sm:$0xff]   ;;  %10644 = vmatprep.subr.bf16.mxu1 %v11739_v36  ;;  %v11742_v39 = vld [vmem:[%s15438_s3 + $0x8] sm:$0xff]   ;;  %s15451_s14 = sld [smem:[#allocation143_spill]]  ;;  %s15452_s21 = sld [smem:[#allocation141_spill]] }
 0x4d0   :  { %10640 = vmatprep.mubr.msk.bf16.mxu0 %vm984_vm0, %v961_v5  ;;  %10645 = vmatpush3.bf16.msra.mxu1 %v11739_v36  ;;  %v11743_v40 = vld [vmem:[%s15439_s23] sm:$0xff]   ;;  %v11744_v2 = vld [vmem:[%s15439_s23 + $0x8] sm:$0xff]   ;;  %v11746_v36 = vld [vmem:[%s15439_s23 + $0x18] sm:$0xff]   ;;  %s15453_s7 = sld [smem:[#allocation145_spill]]  ;;  %s15454_s10 = sld [smem:[#allocation147_spill]] }
 0x4d1   :  { %10646 = vmatprep.subr.bf16.mxu1 %v11741_v38  ;;  %v9661_v5 = vld [vmem:[#allocation13] ss:$0 sm:$0xff]  ;;  %v9652_v6 = vld [vmem:[#allocation11] ss:$0 sm:$0xff]  ;;  %s15455_s11 = sld [smem:[#allocation151_spill]]  ;;  %s15456_s15 = sld [smem:[#allocation153_spill]] }
 0x4d2   :  { %10637 = vmatpush3.bf16.msra.mxu0 %v11737_v1  ;;  %s15457_s18 = sld [smem:[#allocation157_spill]]  ;;  %s15458_s4 = sld [smem:[#allocation161_spill]] }
 0x4d3   :  { %10638 = vmatprep.subr.bf16.mxu0 %v11738_v4  ;;  %s15459_s22 = sld [smem:[#allocation159_spill]]  ;;  %s15460_s13 = sld [smem:[#allocation163_spill]] }
 0x4d4   :  { %10647 = vmatpush3.bf16.msra.mxu1 %v11741_v38  ;;  %s13436_s27 = smov [#allocation80]  }
 0x4d5   :  { %10652 = vmatprep.subr.bf16.mxu1 %v11743_v40 }
 0x4d6   :  { %10639 = vmatpush3.bf16.msra.mxu0 %v11738_v4 }
 0x4d7   :  { %10660 = vmatprep.subr.bf16.mxu0 %v11740_v37 }
 0x4d9   :  { %10641 = vmatmul.mubr.msk.bf16.vlgmr.msra.gmra.mrb[0].mxu0 %vm984_vm0, %v962_v7 }
 0x4da   :  { %10661 = vmatpush3.bf16.msra.mxu0 %v11740_v37 }
 0x4db   :  { %10662 = vmatprep.subr.bf16.mxu0 %v11742_v39 }
 0x4de   :  { %10663 = vmatpush3.bf16.msra.mxu0 %v11742_v39  ;;  %v14213_v39 = vld [vmem:[#allocation5] ss:$0 sm:$0xff] }
 0x5ac   :  { %v10642_v10 = vpop.f32.mrb[0].mxu0 }
 0x5ad   :  { %v14159_v11 = vadd.f32 %v10642_v10, %v965_v8  ;;  %v1025_v12 = vpop.f32.mrb[1].mxu0 }
 0x5ae   :  { %v14161_v14 = vadd.f32 %v1025_v12, %v963_v9  ;;  %v10643_v15 = vpop.f32.mrb[2].mxu0 }
 0x5af   :  { %v1028_v16 = vpop.f32.mrb[3].mxu0  ;;  %v1048_v17 = vsel %vm1041_vm1, %v14159_v11, 0.0 }
 0x5b0   :  { %v14165_v18 = vadd.f32 %v1028_v16, %v964_v13  ;;  %1049 = vadd.xlane.f32.xlu1 %v1048_v17  ;;  %v1042_v19 = vsel %vm1041_vm1, %v14161_v14, 0.0 }
 0x5b1   :  { %1043 = vadd.xlane.f32.xlu0 %v1042_v19 }
 0x5b2   :  { %v1045_v20 = vsel %vm1041_vm1, %v14165_v18, 0.0 }
 0x5b5   :  { %1046 = vadd.xlane.f32.xlu0 %v1045_v20 }
 0x63d   :  { %v1050_v21 = vpop.xlane.xlu1 %1049 }
 0x63e   :  { %v1054_v22 = vmul.f32 0.03125, %v1050_v21  ;;  %v1044_v23 = vpop.xlane.xlu0 %1043 }
 0x63f   :  { %v1052_v24 = vmul.f32 0.03125, %v1044_v23 }
 0x640   :  { %v1057_v25 = vsub.f32 %v14159_v11, %v1054_v22 }
 0x641   :  { %v1055_v26 = vsub.f32 %v14161_v14, %v1052_v24 }
 0x642   :  { %v1047_v27 = vpop.xlane.xlu0 %1046  ;;  %v1060_v32 = vmul.f32 %v1057_v25, %v1057_v25 }
 0x643   :  { %v1053_v28 = vmul.f32 0.03125, %v1047_v27  ;;  %v1058_v29 = vmul.f32 %v1055_v26, %v1055_v26 }
 0x644   :  { %v1067_v34 = vsel %vm1041_vm1, %v1060_v32, 0.0  ;;  %v11745_v32 = vld [vmem:[%s15439_s23 + $0x10] sm:$0xff]  }
 0x645   :  { %v1056_v30 = vsub.f32 %v14165_v18, %v1053_v28  ;;  %v1061_v31 = vsel %vm1041_vm1, %v1058_v29, 0.0 }
 0x646   :  { %1062 = vadd.xlane.f32.xlu1 %v1061_v31 }
 0x647   :  { %v1059_v33 = vmul.f32 %v1056_v30, %v1056_v30 }
 0x649   :  { %v1064_v35 = vsel %vm1041_vm1, %v1059_v33, 0.0 }
 0x64a   :  { %1068 = vadd.xlane.f32.xlu1 %v1067_v34  ;;  %1065 = vadd.xlane.f32.xlu0 %v1064_v35 }
 0x6d3   :  { %v1063_v41 = vpop.xlane.xlu1 %1062 }
 0x6d4   :  { %v1070_v42 = vmul.f32 0.03125, %v1063_v41 }
 0x6d6   :  { %v1073_v43 = vadd.f32 1e-05, %v1070_v42 }
 0x6d7   :  { %v1069_v44 = vpop.xlane.xlu1 %1068  ;;  %v1066_v45 = vpop.xlane.xlu0 %1065 }
 0x6d8   :  { %11895 = vrsqrt.f32 %v1073_v43  ;;  %v1072_v46 = vmul.f32 0.03125, %v1069_v44  ;;  %v1071_v47 = vmul.f32 0.03125, %v1066_v45 }
 0x6da   :  { %v1075_v48 = vadd.f32 1e-05, %v1072_v46  ;;  %v1074_v49 = vadd.f32 1e-05, %v1071_v47 }
 0x6dc   :  { %11897 = vrsqrt.f32 %v1075_v48 }
 0x6dd   :  { %11899 = vrsqrt.f32 %v1074_v49 }
 0x6e2   :  { %v11896_v50 = vpop.eup %11895 }
 0x6e3   :  { %v1079_v51 = vmul.f32 %v11896_v50, %v1055_v26 }
 0x6e5   :  { %v1088_v56 = vmul.f32 %v9650_v52, %v1079_v51 }
 0x6e6   :  { %v11898_v53 = vpop.eup %11897 }
 0x6e7   :  { %v11900_v54 = vpop.eup %11899  ;;  %v1081_v55 = vmul.f32 %v11898_v53, %v1057_v25  ;;  %v1097_v62 = vadd.f32 %v9651_v58, %v1088_v56 }
 0x6e8   :  { %v1080_v57 = vmul.f32 %v11900_v54, %v1056_v30 }
 0x6e9   :  { %v1090_v59 = vmul.f32 %v9650_v52, %v1081_v55 }
 0x6ea   :  { %v1089_v60 = vmul.f32 %v9650_v52, %v1080_v57 }
 0x6eb   :  { %v1099_v61 = vadd.f32 %v9651_v58, %v1090_v59 }
 0x6ec   :  { %v1098_v63 = vadd.f32 %v9651_v58, %v1089_v60 }
 0x6ed   :  { %v14182_v0 = vpack.c.bf16 %v1099_v61, %v1099_v61 }
 0x6ee   :  { %v14184_v1 = vpack.c.bf16 %v1098_v63, %v1097_v62 }
 0x6f0   :  { %10648 = vmatprep.mubr.msk.bf16.mxu1 %vm1041_vm1, %v14184_v1  ;;  %10664 = vmatprep.mubr.msk.bf16.mxu0 %vm1041_vm1, %v14184_v1 }
 0x6f1   :  { %10649 = vmatmul.mubr.msk.bf16.vlgmr.msra.gmra.mrb[0].mxu1 %vm1041_vm1, %v14182_v0  ;;  %10665 = vmatmul.mubr.msk.bf16.vlgmr.msra.gmra.mrb[4].mxu0 %vm1041_vm1, %v14182_v0 }
 0x6f2   :  { %10653 = vmatpush3.bf16.msra.mxu1 %v11743_v40  ;;  %10656 = vmatprep.mubr.msk.bf16.mxu1 %vm1041_vm1, %v14184_v1 }
 0x6f3   :  { %10654 = vmatprep.subr.bf16.mxu1 %v11744_v2 }
 0x6f6   :  { %10655 = vmatpush3.bf16.msra.mxu1 %v11744_v2 }
 0x6f9   :  { %10657 = vmatmul.mubr.msk.bf16.vlgmr.msra.gmra.mrb[4].mxu1 %vm1041_vm1, %v14182_v0 }
 0x7c4   :  { %v10650_v3 = vpop.f32.mrb[0].mxu1  ;;  %v10666_v4 = vpop.f32.mrb[4].mxu0 }
 0x7c5   :  { %v1165_v7 = vpop.f32.mrb[1].mxu1  ;;  %v1300_v8 = vpop.f32.mrb[5].mxu0  ;;  %v1309_v12 = vadd.f32 %v10666_v4, %v9661_v5  ;;  %v1174_v34 = vadd.f32 %v10650_v3, %v9652_v6 }
 0x7c6   :  { %v10651_v9 = vpop.f32.mrb[2].mxu1  ;;  %v10667_v10 = vpop.f32.mrb[6].mxu0  ;;  %v1166_v16 = vadd.f32 %v9652_v6, %v1165_v7  ;;  %v1301_v17 = vadd.f32 %v9661_v5, %v1300_v8 }
 0x7c7   :  { %v1168_v13 = vpop.f32.mrb[3].mxu1  ;;  %v1303_v15 = vpop.f32.mrb[7].mxu0  ;;  %v1428_v23 = vpack.c.bf16 %v1309_v12, %v1309_v12  ;;  %v1315_v35 = vpack.c.bf16 %v1174_v34, %v1174_v34 }
 0x7c8   :  { %v1169_v19 = vadd.f32 %v9652_v6, %v1168_v13  ;;  %v1304_v20 = vadd.f32 %v9661_v5, %v1303_v15  ;;  %v11747_v13 = vld [vmem:[%s15437_s16 + $0x10] sm:$0xff]  }
 0x7c9   :  { %v1437_v28 = vsel %vm1435_vm3, %v1428_v23, 0 }
 0x7ca   :  { %v1314_v21 = vpack.c.bf16 %v1169_v19, %v1166_v16  ;;  %v1427_v22 = vpack.c.bf16 %v1304_v20, %v1301_v17 }
 0x7cc   :  { %v10658_v24 = vpop.f32.mrb[4].mxu1  ;;  %10672 = vmatprep.mubr.msk.bf16.mxu1 %vm1318_vm2, %v1314_v21  ;;  %10676 = vmatprep.subr.bf16.mxu0 %v1427_v22 }
 0x7cd   :  { %v1229_v25 = vpop.f32.mrb[5].mxu1  ;;  %10677 = vmatpush3.bf16.msra.mxu0 %v1427_v22  ;;  %v1317_v30 = vpack.c.bf16 %v10658_v24, %v10658_v24 }
 0x7ce   :  { %v10659_v26 = vpop.f32.mrb[6].mxu1  ;;  %11542 = vmatprep.subr.msk.bf16.mxu0 %vm1435_vm3, %v1428_v23 }
 0x7cf   :  { %v1232_v27 = vpop.f32.mrb[7].mxu1  ;;  %v1329_v33 = vsel %vm1318_vm2, %v1317_v30, 0 }
 0x7d0   :  { %v1316_v29 = vpack.c.bf16 %v1232_v27, %v1229_v25  ;;  %v11748_v27 = vld [vmem:[%s15437_s16 + $0x18] sm:$0xff]  }
 0x7d1   :  { %10679 = vmatpush3.bf16.msra.mxu0 %v1437_v28  ;;  %v11749_v28 = vld [vmem:[%s15438_s3 + $0x10] sm:$0xff]  }
 0x7d2   :  { %v1326_v31 = vsel %vm1318_vm2, %v1316_v29, 0  ;;  %11540 = vmatprep.subr.msk.bf16.mxu1 %vm1318_vm2, %v1316_v29  ;;  %10684 = vmatprep.subr.bf16.mxu0 %v11747_v13  ;;  %v11750_v29 = vld [vmem:[%s15438_s3 + $0x18] sm:$0xff]  }
 0x7d3   :  { %10669 = vmatpush3.bf16.xpose.msra.mxu1 %v1326_v31 }
 0x7d4   :  { %11541 = vmatprep.subr.msk.bf16.mxu1 %vm1318_vm2, %v1317_v30  ;;  %v11751_v30 = vld [vmem:[%s15439_s23 + $0x20] sm:$0xff]  }
 0x7db   :  { %10671 = vmatpush3.bf16.xpose.msra.mxu1 %v1329_v33 }
 0x7dc   :  { %10692 = vmatprep.subr.bf16.mxu1 %v11745_v32 }
 0x7e2   :  { %10673 = vmatmul.mubr.msk.bf16.vlgmr.msra.gmra.mrb[8].mxu1 %vm1318_vm2, %v1315_v35 }
 0x7e3   :  { %10693 = vmatpush3.bf16.msra.mxu1 %v11745_v32  ;;  %10696 = vmatprep.mubr.msk.bf16.mxu1 %vm1041_vm1, %v14184_v1 }
 0x7e4   :  { %10694 = vmatprep.subr.bf16.mxu1 %v11746_v36 }
 0x7e7   :  { %10695 = vmatpush3.bf16.msra.mxu1 %v11746_v36  ;;  %v9675_v36 = vld [vmem:[#allocation11 + $0x1] ss:$0 sm:$0xff] }
 0x7ea   :  { %10697 = vmatmul.mubr.msk.bf16.vlgmr.msra.gmra.mrb[12].mxu1 %vm1041_vm1, %v14182_v0 }
 0x8b5   :  { %v10674_v37 = vpop.f32.mrb[8].mxu1 }
 0x8b6   :  { %v1365_v38 = vpop.f32.mrb[9].mxu1  ;;  %v1381_v40 = vmul.f32 0.35355338, %v10674_v37 }
 0x8b7   :  { %v1379_v41 = vmul.f32 0.35355338, %v1365_v38  ;;  %v10675_v42 = vpop.f32.mrb[10].mxu1 }
 0x8b8   :  { %v1368_v43 = vpop.f32.mrb[11].mxu1  ;;  %v1390_v48 = vadd.f32 %v14213_v39, %v1381_v40 }
 0x8b9   :  { %v1380_v44 = vmul.f32 0.35355338, %v1368_v43  ;;  %v1388_v45 = vadd.f32 %v14213_v39, %v1379_v41 }
 0x8ba   :  { %v1398_v53 = vsel %vm1391_vm4, %v1390_v48, -inf }
 0x8bb   :  { %v1392_v46 = vsel %vm1391_vm4, %v1388_v45, -inf  ;;  %v1389_v47 = vadd.f32 %v14213_v39, %v1380_v44 }
 0x8bc   :  { %1393 = vmax.xlane.f32.xlu0 %v1392_v46  ;;  %v11752_v46 = vld [vmem:[%s15439_s23 + $0x28] sm:$0xff]  }
 0x8bd   :  { %v10698_v49 = vpop.f32.mrb[12].mxu1  ;;  %v1395_v50 = vsel %vm1391_vm4, %v1389_v47, -inf }
 0x8be   :  { %v1611_v51 = vpop.f32.mrb[13].mxu1  ;;  %1396 = vmax.xlane.f32.xlu1 %v1395_v50  ;;  %v1701_v56 = vpack.c.bf16 %v10698_v49, %v10698_v49 }
 0x8bf   :  { %v10699_v52 = vpop.f32.mrb[14].mxu1 }
 0x8c0   :  { %v1614_v54 = vpop.f32.mrb[15].mxu1  ;;  %1399 = vmax.xlane.f32.xlu0 %v1398_v53  ;;  %v1712_v58 = vsel %vm1318_vm2, %v1701_v56, 0 }
 0x8c1   :  { %v1700_v55 = vpack.c.bf16 %v1614_v54, %v1611_v51 }
 0x8c3   :  { %v1709_v57 = vsel %vm1318_vm2, %v1700_v55, 0  ;;  %11543 = vmatprep.subr.msk.bf16.mxu1 %vm1318_vm2, %v1700_v55 }
 0x8c4   :  { %10709 = vmatpush3.bf16.xpose.msra.mxu1 %v1709_v57 }
 0x8c5   :  { %11544 = vmatprep.subr.msk.bf16.mxu1 %vm1318_vm2, %v1701_v56 }
 0x8cc   :  { %10711 = vmatpush3.bf16.xpose.msra.mxu1 %v1712_v58 }
 0x8cd   :  { %10732 = vmatprep.subr.bf16.mxu1 %v11751_v30 }
 0x949   :  { %v1394_v59 = vpop.xlane.xlu0 %1393 }
 0x94a   :  { %v1401_v60 = vsub.f32 %v1388_v45, %v1394_v59 }
 0x94b   :  { %v1397_v61 = vpop.xlane.xlu1 %1396 }
 0x94c   :  { %v1404_v62 = vmul.f32 1.442695, %v1401_v60  ;;  %v1402_v63 = vsub.f32 %v1389_v47, %v1397_v61 }
 0x94d   :  { %v1400_v2 = vpop.xlane.xlu0 %1399 }
 0x94e   :  { %11901 = vpow2.f32 %v1404_v62  ;;  %v1406_v3 = vmul.f32 1.442695, %v1402_v63  ;;  %v1403_v4 = vsub.f32 %v1390_v48, %v1400_v2  ;;  %v9692_v48 = vld [vmem:[#allocation13 + $0x1] ss:$0 sm:$0xff] }
 0x950   :  { %11903 = vpow2.f32 %v1406_v3  ;;  %v1408_v5 = vmul.f32 1.442695, %v1403_v4 }
 0x952   :  { %11905 = vpow2.f32 %v1408_v5 }
 0x958   :  { %v11902_v6 = vpop.eup %11901 }
 0x959   :  { %v1410_v7 = vsel %vm1391_vm4, %v11902_v6, 0.0 }
 0x95a   :  { %v11904_v8 = vpop.eup %11903  ;;  %1411 = vadd.xlane.f32.xlu1 %v1410_v7 }
 0x95b   :  { %v1413_v9 = vsel %vm1391_vm4, %v11904_v8, 0.0 }
 0x95c   :  { %v11906_v10 = vpop.eup %11905  ;;  %1414 = vadd.xlane.f32.xlu0 %v1413_v9 }
 0x95d   :  { %v1416_v12 = vsel %vm1391_vm4, %v11906_v10, 0.0 }
 0x95e   :  { %1417 = vadd.xlane.f32.xlu1 %v1416_v12 }
 0x9e7   :  { %v1412_v15 = vpop.xlane.xlu1 %1411 }
 0x9e8   :  { %11907 = vrcp.f32 %v1412_v15 }
 0x9e9   :  { %v1415_v16 = vpop.xlane.xlu0 %1414 }
 0x9ea   :  { %11909 = vrcp.f32 %v1415_v16 }
 0x9eb   :  { %v1418_v17 = vpop.xlane.xlu1 %1417 }
 0x9ec   :  { %11911 = vrcp.f32 %v1418_v17 }
 0x9f2   :  { %v11908_v19 = vpop.eup %11907 }
 0x9f3   :  { %v1422_v21 = vmul.f32 %v11908_v19, %v11902_v6 }
 0x9f4   :  { %v11910_v20 = vpop.eup %11909 }
 0x9f5   :  { %v1423_v22 = vmul.f32 %v11910_v20, %v11904_v8 }
 0x9f6   :  { %v11912_v23 = vpop.eup %11911 }
 0x9f7   :  { %v1425_v24 = vpack.c.bf16 %v1423_v22, %v1422_v21  ;;  %v1424_v25 = vmul.f32 %v11912_v23, %v11906_v10 }
 0x9f9   :  { %10680 = vmatprep.mubr.msk.bf16.mxu0 %vm1391_vm4, %v1425_v24  ;;  %v1426_v26 = vpack.c.bf16 %v1424_v25, %v1424_v25 }
 0x9fb   :  { %10681 = vmatmul.mubr.msk.bf16.vlgmr.msra.gmra.mrb[8].mxu0 %vm1391_vm4, %v1426_v26 }
 0x9fc   :  { %10685 = vmatpush3.bf16.msra.mxu0 %v11747_v13  ;;  %10688 = vmatprep.mubr.msk.bf16.mxu0 %vm1041_vm1, %v14184_v1 }
 0x9fd   :  { %10686 = vmatprep.subr.bf16.mxu0 %v11748_v27 }
 0xa00   :  { %10687 = vmatpush3.bf16.msra.mxu0 %v11748_v27 }
 0xa01   :  { %10700 = vmatprep.subr.bf16.mxu0 %v11749_v28 }
 0xa03   :  { %10689 = vmatmul.mubr.msk.bf16.vlgmr.msra.gmra.mrb[12].mxu0 %vm1041_vm1, %v14182_v0 }
 0xa04   :  { %10701 = vmatpush3.bf16.msra.mxu0 %v11749_v28  ;;  %10704 = vmatprep.mubr.msk.bf16.mxu0 %vm1041_vm1, %v14184_v1 }
 0xa05   :  { %10702 = vmatprep.subr.bf16.mxu0 %v11750_v29 }
 0xa08   :  { %10703 = vmatpush3.bf16.msra.mxu0 %v11750_v29 }
 0xa0b   :  { %10705 = vmatmul.mubr.msk.bf16.vlgmr.msra.gmra.mrb[16].mxu0 %vm1041_vm1, %v14182_v0 }
 0xace   :  { %v14243_v31 = vpop.f32.mrb[8].mxu0 }
 0xacf   :  { %v14245_v32 = vpop.f32.mrb[9].mxu0 }
 0xad0   :  { %v10683_v33 = vpop.f32.mrb[10].mxu0 }
 0xad1   :  { %v14247_v34 = vpop.f32.mrb[11].mxu0 }
 0xad6   :  { %v10690_v35 = vpop.f32.mrb[12].mxu0 }
 0xad7   :  { %v1546_v37 = vpop.f32.mrb[13].mxu0  ;;  %v1555_v40 = vadd.f32 %v10690_v35, %v9675_v36 }
 0xad8   :  { %v10691_v38 = vpop.f32.mrb[14].mxu0  ;;  %v1547_v42 = vadd.f32 %v9675_v36, %v1546_v37 }
 0xad9   :  { %v1549_v41 = vpop.f32.mrb[15].mxu0  ;;  %v1699_v45 = vpack.c.bf16 %v1555_v40, %v1555_v40  ;;  %v11753_v38 = vld [vmem:[%s15437_s16 + $0x20] sm:$0xff]  }
 0xada   :  { %v1550_v43 = vadd.f32 %v9675_v36, %v1549_v41 }
 0xadc   :  { %v1698_v44 = vpack.c.bf16 %v1550_v43, %v1547_v42 }
 0xade   :  { %v10706_v47 = vpop.f32.mrb[16].mxu0  ;;  %10712 = vmatprep.mubr.msk.bf16.mxu1 %vm1318_vm2, %v1698_v44 }
 0xadf   :  { %v1684_v49 = vpop.f32.mrb[17].mxu0  ;;  %10713 = vmatmul.mubr.msk.bf16.vlgmr.msra.gmra.mrb[16].mxu1 %vm1318_vm2, %v1699_v45  ;;  %v1693_v52 = vadd.f32 %v10706_v47, %v9692_v48 }
 0xae0   :  { %v10707_v50 = vpop.f32.mrb[18].mxu0  ;;  %10733 = vmatpush3.bf16.msra.mxu1 %v11751_v30  ;;  %10736 = vmatprep.mubr.msk.bf16.mxu1 %vm1041_vm1, %v14184_v1  ;;  %v1685_v53 = vadd.f32 %v9692_v48, %v1684_v49 }
 0xae1   :  { %v1687_v51 = vpop.f32.mrb[19].mxu0  ;;  %10734 = vmatprep.subr.bf16.mxu1 %v11752_v46  ;;  %v1804_v56 = vpack.c.bf16 %v1693_v52, %v1693_v52  ;;  %v11755_v52 = vld [vmem:[%s15438_s3 + $0x20] sm:$0xff]  }
 0xae2   :  { %v1688_v54 = vadd.f32 %v9692_v48, %v1687_v51  ;;  %v11754_v51 = vld [vmem:[%s15437_s16 + $0x28] sm:$0xff]  }
 0xae3   :  { %v1812_v57 = vsel %vm1435_vm3, %v1804_v56, 0 }
 0xae4   :  { %v1803_v55 = vpack.c.bf16 %v1688_v54, %v1685_v53  ;;  %10735 = vmatpush3.bf16.msra.mxu1 %v11752_v46  ;;  %v11756_v53 = vld [vmem:[%s15438_s3 + $0x28] sm:$0xff]   ;;  %v11757_v54 = vld [vmem:[%s15439_s23 + $0x30] sm:$0xff]  }
 0xae6   :  { %10716 = vmatprep.subr.bf16.mxu0 %v1803_v55 }
 0xae7   :  { %10717 = vmatpush3.bf16.msra.mxu0 %v1803_v55  ;;  %10737 = vmatmul.mubr.msk.bf16.vlgmr.msra.gmra.mrb[20].mxu1 %vm1041_vm1, %v14182_v0 }
 0xae8   :  { %11545 = vmatprep.subr.msk.bf16.mxu0 %vm1435_vm3, %v1804_v56 }
 0xaeb   :  { %10719 = vmatpush3.bf16.msra.mxu0 %v1812_v57 }
 0xaec   :  { %10724 = vmatprep.subr.bf16.mxu0 %v11753_v38 }
 0xbb2   :  { %v10714_v58 = vpop.f32.mrb[16].mxu1 }
 0xbb3   :  { %v1748_v59 = vpop.f32.mrb[17].mxu1  ;;  %v1764_v60 = vmul.f32 0.35355338, %v10714_v58 }
 0xbb4   :  { %v1762_v61 = vmul.f32 0.35355338, %v1748_v59  ;;  %v10715_v62 = vpop.f32.mrb[18].mxu1 }
 0xbb5   :  { %v1751_v63 = vpop.f32.mrb[19].mxu1  ;;  %v1767_v6 = vadd.f32 %v14213_v39, %v1764_v60 }
 0xbb6   :  { %v1763_v2 = vmul.f32 0.35355338, %v1751_v63  ;;  %v1765_v3 = vadd.f32 %v14213_v39, %v1762_v61  ;;  %v9705_v61 = vld [vmem:[#allocation11 + $0x2] ss:$0 sm:$0xff] }
 0xbb7   :  { %v1774_v12 = vsel %vm1391_vm4, %v1767_v6, -inf }
 0xbb8   :  { %v1768_v4 = vsel %vm1391_vm4, %v1765_v3, -inf  ;;  %v1766_v5 = vadd.f32 %v14213_v39, %v1763_v2 }
 0xbb9   :  { %1769 = vmax.xlane.f32.xlu0 %v1768_v4 }
 0xbba   :  { %v10738_v7 = vpop.f32.mrb[20].mxu1  ;;  %v1771_v8 = vsel %vm1391_vm4, %v1766_v5, -inf }
 0xbbb   :  { %v1986_v9 = vpop.f32.mrb[21].mxu1  ;;  %1772 = vmax.xlane.f32.xlu1 %v1771_v8  ;;  %v2076_v16 = vpack.c.bf16 %v10738_v7, %v10738_v7  ;;  %v11758_v8 = vld [vmem:[%s15439_s23 + $0x38] sm:$0xff]  }
 0xbbc   :  { %v10739_v10 = vpop.f32.mrb[22].mxu1 }
 0xbbd   :  { %1775 = vmax.xlane.f32.xlu0 %v1774_v12  ;;  %v1989_v13 = vpop.f32.mrb[23].mxu1  ;;  %v2087_v19 = vsel %vm1318_vm2, %v2076_v16, 0  ;;  %v9722_v10 = vld [vmem:[#allocation13 + $0x2] ss:$0 sm:$0xff] }
 0xbbe   :  { %v2075_v15 = vpack.c.bf16 %v1989_v13, %v1986_v9 }
 0xbc0   :  { %v2084_v17 = vsel %vm1318_vm2, %v2075_v15, 0  ;;  %11546 = vmatprep.subr.msk.bf16.mxu1 %vm1318_vm2, %v2075_v15 }
 0xbc1   :  { %10749 = vmatpush3.bf16.xpose.msra.mxu1 %v2084_v17 }
 0xbc2   :  { %11547 = vmatprep.subr.msk.bf16.mxu1 %vm1318_vm2, %v2076_v16 }
 0xbc9   :  { %10751 = vmatpush3.bf16.xpose.msra.mxu1 %v2087_v19 }
 0xbca   :  { %10772 = vmatprep.subr.bf16.mxu1 %v11757_v54 }
 0xc46   :  { %v1770_v20 = vpop.xlane.xlu0 %1769 }
 0xc47   :  { %v1777_v21 = vsub.f32 %v1765_v3, %v1770_v20 }
 0xc48   :  { %v1773_v22 = vpop.xlane.xlu1 %1772 }
 0xc49   :  { %v1780_v23 = vmul.f32 1.442695, %v1777_v21  ;;  %v1778_v24 = vsub.f32 %v1766_v5, %v1773_v22 }
 0xc4a   :  { %v1776_v25 = vpop.xlane.xlu0 %1775 }
 0xc4b   :  { %11913 = vpow2.f32 %v1780_v23  ;;  %v1782_v26 = vmul.f32 1.442695, %v1778_v24  ;;  %v1779_v27 = vsub.f32 %v1767_v6, %v1776_v25 }
 0xc4d   :  { %11915 = vpow2.f32 %v1782_v26  ;;  %v1784_v28 = vmul.f32 1.442695, %v1779_v27 }
 0xc4f   :  { %11917 = vpow2.f32 %v1784_v28 }
 0xc55   :  { %v11914_v29 = vpop.eup %11913 }
 0xc56   :  { %v1786_v30 = vsel %vm1391_vm4, %v11914_v29, 0.0 }
 0xc57   :  { %v11916_v33 = vpop.eup %11915  ;;  %1787 = vadd.xlane.f32.xlu1 %v1786_v30 }
 0xc58   :  { %v1789_v35 = vsel %vm1391_vm4, %v11916_v33, 0.0 }
 0xc59   :  { %v11918_v36 = vpop.eup %11917  ;;  %1790 = vadd.xlane.f32.xlu0 %v1789_v35 }
 0xc5a   :  { %v1792_v37 = vsel %vm1391_vm4, %v11918_v36, 0.0 }
 0xc5b   :  { %1793 = vadd.xlane.f32.xlu1 %v1792_v37 }
 0xce4   :  { %v1788_v40 = vpop.xlane.xlu1 %1787 }
 0xce5   :  { %11919 = vrcp.f32 %v1788_v40 }
 0xce6   :  { %v1791_v41 = vpop.xlane.xlu0 %1790 }
 0xce7   :  { %11921 = vrcp.f32 %v1791_v41 }
 0xce8   :  { %v1794_v42 = vpop.xlane.xlu1 %1793 }
 0xce9   :  { %11923 = vrcp.f32 %v1794_v42 }
 0xcef   :  { %v11920_v43 = vpop.eup %11919 }
 0xcf0   :  { %v1798_v45 = vmul.f32 %v11920_v43, %v11914_v29 }
 0xcf1   :  { %v11922_v44 = vpop.eup %11921 }
 0xcf2   :  { %v1799_v46 = vmul.f32 %v11922_v44, %v11916_v33 }
 0xcf3   :  { %v11924_v47 = vpop.eup %11923 }
 0xcf4   :  { %v1801_v48 = vpack.c.bf16 %v1799_v46, %v1798_v45  ;;  %v1800_v49 = vmul.f32 %v11924_v47, %v11918_v36 }
 0xcf6   :  { %10720 = vmatprep.mubr.msk.bf16.mxu0 %vm1391_vm4, %v1801_v48  ;;  %v1802_v50 = vpack.c.bf16 %v1800_v49, %v1800_v49 }
 0xcf8   :  { %10721 = vmatmul.mubr.msk.bf16.vlgmr.msra.gmra.mrb[20].mxu0 %vm1391_vm4, %v1802_v50 }
 0xcf9   :  { %10725 = vmatpush3.bf16.msra.mxu0 %v11753_v38  ;;  %10728 = vmatprep.mubr.msk.bf16.mxu0 %vm1041_vm1, %v14184_v1 }
 0xcfa   :  { %10726 = vmatprep.subr.bf16.mxu0 %v11754_v51 }
 0xcfd   :  { %10727 = vmatpush3.bf16.msra.mxu0 %v11754_v51 }
 0xcfe   :  { %10740 = vmatprep.subr.bf16.mxu0 %v11755_v52 }
 0xd00   :  { %10729 = vmatmul.mubr.msk.bf16.vlgmr.msra.gmra.mrb[24].mxu0 %vm1041_vm1, %v14182_v0 }
 0xd01   :  { %10741 = vmatpush3.bf16.msra.mxu0 %v11755_v52  ;;  %10744 = vmatprep.mubr.msk.bf16.mxu0 %vm1041_vm1, %v14184_v1 }
 0xd02   :  { %10742 = vmatprep.subr.bf16.mxu0 %v11756_v53 }
 0xd05   :  { %10743 = vmatpush3.bf16.msra.mxu0 %v11756_v53 }
 0xd08   :  { %10745 = vmatmul.mubr.msk.bf16.vlgmr.msra.gmra.mrb[28].mxu0 %vm1041_vm1, %v14182_v0 }
 0xdcb   :  { %v14286_v55 = vpop.f32.mrb[20].mxu0 }
 0xdcc   :  { %v14288_v56 = vpop.f32.mrb[21].mxu0 }
 0xdcd   :  { %v10723_v57 = vpop.f32.mrb[22].mxu0 }
 0xdce   :  { %v14290_v58 = vpop.f32.mrb[23].mxu0 }
 0xdcf   :  { %v11706_v59 = vpack.i.bf16 %v14290_v58, %v14288_v56 }
 0xdd3   :  { %v10730_v60 = vpop.f32.mrb[24].mxu0 }
 0xdd4   :  { %v1921_v62 = vpop.f32.mrb[25].mxu0  ;;  %v1930_v2 = vadd.f32 %v10730_v60, %v9705_v61 }
 0xdd5   :  { %v10731_v63 = vpop.f32.mrb[26].mxu0  ;;  %v1922_v4 = vadd.f32 %v9705_v61, %v1921_v62 }
 0xdd6   :  { %v1924_v3 = vpop.f32.mrb[27].mxu0  ;;  %v2074_v7 = vpack.c.bf16 %v1930_v2, %v1930_v2 }
 0xdd7   :  { %v1925_v5 = vadd.f32 %v9705_v61, %v1924_v3 }
 0xdd9   :  { %v2073_v6 = vpack.c.bf16 %v1925_v5, %v1922_v4  ;;  %v11759_v5 = vld [vmem:[%s15437_s16 + $0x30] sm:$0xff]  }
 0xddb   :  { %v10746_v9 = vpop.f32.mrb[28].mxu0  ;;  %10752 = vmatprep.mubr.msk.bf16.mxu1 %vm1318_vm2, %v2073_v6 }
 0xddc   :  { %v2059_v12 = vpop.f32.mrb[29].mxu0  ;;  %10753 = vmatmul.mubr.msk.bf16.vlgmr.msra.gmra.mrb[24].mxu1 %vm1318_vm2, %v2074_v7  ;;  %v2068_v16 = vadd.f32 %v10746_v9, %v9722_v10 }
 0xddd   :  { %v10747_v13 = vpop.f32.mrb[30].mxu0  ;;  %10773 = vmatpush3.bf16.msra.mxu1 %v11757_v54  ;;  %10776 = vmatprep.mubr.msk.bf16.mxu1 %vm1041_vm1, %v14184_v1  ;;  %v2060_v17 = vadd.f32 %v9722_v10, %v2059_v12 }
 0xdde   :  { %v2062_v15 = vpop.f32.mrb[31].mxu0  ;;  %10774 = vmatprep.subr.bf16.mxu1 %v11758_v8  ;;  %v2179_v21 = vpack.c.bf16 %v2068_v16, %v2068_v16 }
 0xddf   :  { %v2063_v19 = vadd.f32 %v9722_v10, %v2062_v15 }
 0xde0   :  { %v2187_v22 = vsel %vm1435_vm3, %v2179_v21, 0 }
 0xde1   :  { %v2178_v20 = vpack.c.bf16 %v2063_v19, %v2060_v17  ;;  %10775 = vmatpush3.bf16.msra.mxu1 %v11758_v8 }
 0xde3   :  { %10756 = vmatprep.subr.bf16.mxu0 %v2178_v20 }
 0xde4   :  { %10757 = vmatpush3.bf16.msra.mxu0 %v2178_v20  ;;  %10777 = vmatmul.mubr.msk.bf16.vlgmr.msra.gmra.mrb[28].mxu1 %vm1041_vm1, %v14182_v0  ;;  %v11760_v20 = vld [vmem:[%s15437_s16 + $0x38] sm:$0xff]   ;;  %s9530_s16 = sshll.u32 %s13436_s27, 4  ;;  %s9531_s16 = int_to_ptr.vmem [resolvable:$true] %s9530_s16 }
 0xde5   :  { %11548 = vmatprep.subr.msk.bf16.mxu0 %vm1435_vm3, %v2179_v21  ;;  %v11761_v21 = vld [vmem:[%s15438_s3 + $0x30] sm:$0xff]   ;;  %p13224_p3 = scmp.lt.s32.totalorder %s9531_s16, %s9531_s16 }
 0xde8   :  { %10759 = vmatpush3.bf16.msra.mxu0 %v2187_v22  ;;  %v11762_v22 = vld [vmem:[%s15438_s3 + $0x38] sm:$0xff]  }
 0xde9   :  { %10764 = vmatprep.subr.bf16.mxu0 %v11759_v5 }
 0xeaf   :  { %v10754_v23 = vpop.f32.mrb[24].mxu1 }
 0xeb0   :  { %v2123_v24 = vpop.f32.mrb[25].mxu1  ;;  %v2139_v25 = vmul.f32 0.35355338, %v10754_v23 }
 0xeb1   :  { %v2137_v26 = vmul.f32 0.35355338, %v2123_v24  ;;  %v10755_v27 = vpop.f32.mrb[26].mxu1 }
 0xeb2   :  { %v2126_v28 = vpop.f32.mrb[27].mxu1  ;;  %v2142_v36 = vadd.f32 %v14213_v39, %v2139_v25 }
 0xeb3   :  { %v2138_v29 = vmul.f32 0.35355338, %v2126_v28  ;;  %v2140_v30 = vadd.f32 %v14213_v39, %v2137_v26 }
 0xeb4   :  { %v2149_v42 = vsel %vm1391_vm4, %v2142_v36, -inf }
 0xeb5   :  { %v2143_v33 = vsel %vm1391_vm4, %v2140_v30, -inf  ;;  %v2141_v35 = vadd.f32 %v14213_v39, %v2138_v29  ;;  %v9735_v29 = vld [vmem:[#allocation11 + $0x3] ss:$0 sm:$0xff] }
 0xeb6   :  { %2144 = vmax.xlane.f32.xlu0 %v2143_v33 }
 0xeb7   :  { %v10778_v37 = vpop.f32.mrb[28].mxu1  ;;  %v2146_v38 = vsel %vm1391_vm4, %v2141_v35, -inf }
 0xeb8   :  { %v2361_v40 = vpop.f32.mrb[29].mxu1  ;;  %2147 = vmax.xlane.f32.xlu1 %v2146_v38  ;;  %v2451_v45 = vpack.c.bf16 %v10778_v37, %v10778_v37 }
 0xeb9   :  { %v10779_v41 = vpop.f32.mrb[30].mxu1 }
 0xeba   :  { %2150 = vmax.xlane.f32.xlu0 %v2149_v42  ;;  %v2364_v43 = vpop.f32.mrb[31].mxu1  ;;  %v2462_v47 = vsel %vm1318_vm2, %v2451_v45, 0  ;;  %v9752_v41 = vld [vmem:[#allocation13 + $0x3] ss:$0 sm:$0xff] }
 0xebb   :  { %v2450_v44 = vpack.c.bf16 %v2364_v43, %v2361_v40 }
 0xebd   :  { %v2459_v46 = vsel %vm1318_vm2, %v2450_v44, 0  ;;  %11549 = vmatprep.subr.msk.bf16.mxu1 %vm1318_vm2, %v2450_v44 }
 0xebe   :  { %10789 = vmatpush3.bf16.xpose.msra.mxu1 %v2459_v46 }
 0xebf   :  { %11550 = vmatprep.subr.msk.bf16.mxu1 %vm1318_vm2, %v2451_v45 }
 0xec6   :  { %10791 = vmatpush3.bf16.xpose.msra.mxu1 %v2462_v47 }
 0xf43   :  { %v2145_v48 = vpop.xlane.xlu0 %2144 }
 0xf44   :  { %v2152_v49 = vsub.f32 %v2140_v30, %v2145_v48 }
 0xf45   :  { %v2148_v50 = vpop.xlane.xlu1 %2147 }
 0xf46   :  { %v2155_v51 = vmul.f32 1.442695, %v2152_v49  ;;  %v2153_v52 = vsub.f32 %v2141_v35, %v2148_v50 }
 0xf47   :  { %v2151_v53 = vpop.xlane.xlu0 %2150 }
 0xf48   :  { %11925 = vpow2.f32 %v2155_v51  ;;  %v2157_v54 = vmul.f32 1.442695, %v2153_v52  ;;  %v2154_v57 = vsub.f32 %v2142_v36, %v2151_v53 }
 0xf4a   :  { %11927 = vpow2.f32 %v2157_v54  ;;  %v2159_v60 = vmul.f32 1.442695, %v2154_v57 }
 0xf4c   :  { %11929 = vpow2.f32 %v2159_v60 }
 0xf52   :  { %v11926_v61 = vpop.eup %11925 }
 0xf53   :  { %v2161_v62 = vsel %vm1391_vm4, %v11926_v61, 0.0 }
 0xf54   :  { %v11928_v63 = vpop.eup %11927  ;;  %2162 = vadd.xlane.f32.xlu1 %v2161_v62 }
 0xf55   :  { %v2164_v2 = vsel %vm1391_vm4, %v11928_v63, 0.0 }
 0xf56   :  { %v11930_v3 = vpop.eup %11929  ;;  %2165 = vadd.xlane.f32.xlu0 %v2164_v2 }
 0xf57   :  { %v2167_v4 = vsel %vm1391_vm4, %v11930_v3, 0.0 }
 0xf58   :  { %2168 = vadd.xlane.f32.xlu1 %v2167_v4 }
 0xfe1   :  { %v2163_v6 = vpop.xlane.xlu1 %2162 }
 0xfe2   :  { %11931 = vrcp.f32 %v2163_v6 }
 0xfe3   :  { %v2166_v7 = vpop.xlane.xlu0 %2165 }
 0xfe4   :  { %11933 = vrcp.f32 %v2166_v7 }
 0xfe5   :  { %v2169_v8 = vpop.xlane.xlu1 %2168 }
 0xfe6   :  { %11935 = vrcp.f32 %v2169_v8 }
 0xfec   :  { %v11932_v9 = vpop.eup %11931 }
 0xfed   :  { %v2173_v12 = vmul.f32 %v11932_v9, %v11926_v61 }
 0xfee   :  { %v11934_v10 = vpop.eup %11933 }
 0xfef   :  { %v2174_v13 = vmul.f32 %v11934_v10, %v11928_v63 }
 0xff0   :  { %v11936_v15 = vpop.eup %11935 }
 0xff1   :  { %v2176_v16 = vpack.c.bf16 %v2174_v13, %v2173_v12  ;;  %v2175_v17 = vmul.f32 %v11936_v15, %v11930_v3 }
 0xff3   :  { %10760 = vmatprep.mubr.msk.bf16.mxu0 %vm1391_vm4, %v2176_v16  ;;  %v2177_v19 = vpack.c.bf16 %v2175_v17, %v2175_v17 }
 0xff5   :  { %10761 = vmatmul.mubr.msk.bf16.vlgmr.msra.gmra.mrb[32].mxu0 %vm1391_vm4, %v2177_v19 }
 0xff6   :  { %10765 = vmatpush3.bf16.msra.mxu0 %v11759_v5  ;;  %10768 = vmatprep.mubr.msk.bf16.mxu0 %vm1041_vm1, %v14184_v1 }
 0xff7   :  { %10766 = vmatprep.subr.bf16.mxu0 %v11760_v20 }
 0xffa   :  { %10767 = vmatpush3.bf16.msra.mxu0 %v11760_v20 }
 0xffb   :  { %10780 = vmatprep.subr.bf16.mxu0 %v11761_v21 }
 0xffd   :  { %10769 = vmatmul.mubr.msk.bf16.vlgmr.msra.gmra.mrb[36].mxu0 %vm1041_vm1, %v14182_v0 }
 0xffe   :  { %10781 = vmatpush3.bf16.msra.mxu0 %v11761_v21  ;;  %10784 = vmatprep.mubr.msk.bf16.mxu0 %vm1041_vm1, %v14184_v1 }
 0xfff   :  { %10782 = vmatprep.subr.bf16.mxu0 %v11762_v22 }
0x1002   :  { %10783 = vmatpush3.bf16.msra.mxu0 %v11762_v22 }
0x1005   :  { %10785 = vmatmul.mubr.msk.bf16.vlgmr.msra.gmra.mrb[40].mxu0 %vm1041_vm1, %v14182_v0 }
0x10c8   :  { %v14330_v23 = vpop.f32.mrb[32].mxu0 }
0x10c9   :  { %v14332_v24 = vpop.f32.mrb[33].mxu0 }
0x10ca   :  { %v10763_v25 = vpop.f32.mrb[34].mxu0 }
0x10cb   :  { %v14334_v26 = vpop.f32.mrb[35].mxu0 }
0x10cc   :  { %v11711_v27 = vpack.i.bf16 %v14334_v26, %v14332_v24  ;;  %v11763_v26 = vld [vmem:[#allocation14] sm:$0xff]  }
0x10d0   :  { %v10770_v28 = vpop.f32.mrb[36].mxu0 }
0x10d1   :  { %v2296_v30 = vpop.f32.mrb[37].mxu0  ;;  %v2305_v1 = vadd.f32 %v10770_v28, %v9735_v29 }
0x10d2   :  { %v10771_v33 = vpop.f32.mrb[38].mxu0  ;;  %v2297_v36 = vadd.f32 %v9735_v29, %v2296_v30 }
0x10d3   :  { %v2299_v35 = vpop.f32.mrb[39].mxu0  ;;  %v2449_v0 = vpack.c.bf16 %v2305_v1, %v2305_v1 }
0x10d4   :  { %v2300_v37 = vadd.f32 %v9735_v29, %v2299_v35 }
0x10d6   :  { %v2448_v38 = vpack.c.bf16 %v2300_v37, %v2297_v36 }
0x10d8   :  { %v10786_v40 = vpop.f32.mrb[40].mxu0  ;;  %10792 = vmatprep.mubr.msk.bf16.mxu1 %vm1318_vm2, %v2448_v38 }
0x10d9   :  { %v2434_v42 = vpop.f32.mrb[41].mxu0  ;;  %10793 = vmatmul.mubr.msk.bf16.vlgmr.msra.gmra.mrb[32].mxu1 %vm1318_vm2, %v2449_v0  ;;  %v2443_v45 = vadd.f32 %v10786_v40, %v9752_v41 }
0x10da   :  { %v10787_v43 = vpop.f32.mrb[42].mxu0  ;;  %v2435_v46 = vadd.f32 %v9752_v41, %v2434_v42 }
0x10db   :  { %v2437_v44 = vpop.f32.mrb[43].mxu0  ;;  %v2554_v49 = vpack.c.bf16 %v2443_v45, %v2443_v45 }
0x10dc   :  { %v2438_v47 = vadd.f32 %v9752_v41, %v2437_v44 }
0x10dd   :  { %v2562_v50 = vsel %vm1435_vm3, %v2554_v49, 0 }
0x10de   :  { %v2553_v48 = vpack.c.bf16 %v2438_v47, %v2435_v46 }
0x10e0   :  { %10796 = vmatprep.subr.bf16.mxu0 %v2553_v48 }
0x10e1   :  { %10797 = vmatpush3.bf16.msra.mxu0 %v2553_v48 }
0x10e2   :  { %11551 = vmatprep.subr.msk.bf16.mxu0 %vm1435_vm3, %v2554_v49 }
0x10e5   :  { %10799 = vmatpush3.bf16.msra.mxu0 %v2562_v50 }
0x10e6   :  { %10804 = vmatprep.subr.bf16.mxu0 %v11763_v26 }
0x11ac   :  { %v10794_v51 = vpop.f32.mrb[32].mxu1 }
0x11ad   :  { %v2498_v52 = vpop.f32.mrb[33].mxu1  ;;  %v2514_v53 = vmul.f32 0.35355338, %v10794_v51 }
0x11ae   :  { %v2512_v54 = vmul.f32 0.35355338, %v2498_v52  ;;  %v10795_v57 = vpop.f32.mrb[34].mxu1 }
0x11af   :  { %v2501_v60 = vpop.f32.mrb[35].mxu1  ;;  %v2517_v3 = vadd.f32 %v14213_v39, %v2514_v53 }
0x11b0   :  { %v2513_v61 = vmul.f32 0.35355338, %v2501_v60  ;;  %v2515_v62 = vadd.f32 %v14213_v39, %v2512_v54 }
0x11b1   :  { %v2524_v5 = vsel %vm1391_vm4, %v2517_v3, -inf }
0x11b2   :  { %v2518_v63 = vsel %vm1391_vm4, %v2515_v62, -inf  ;;  %v2516_v2 = vadd.f32 %v14213_v39, %v2513_v61 }
0x11b3   :  { %2519 = vmax.xlane.f32.xlu0 %v2518_v63 }
0x11b4   :  { %v2521_v4 = vsel %vm1391_vm4, %v2516_v2, -inf }
0x11b5   :  { %2522 = vmax.xlane.f32.xlu1 %v2521_v4 }
0x11b7   :  { %2525 = vmax.xlane.f32.xlu0 %v2524_v5 }
0x1240   :  { %v2520_v6 = vpop.xlane.xlu0 %2519 }
0x1241   :  { %v2527_v7 = vsub.f32 %v2515_v62, %v2520_v6 }
0x1242   :  { %v2523_v8 = vpop.xlane.xlu1 %2522 }
0x1243   :  { %v2530_v9 = vmul.f32 1.442695, %v2527_v7  ;;  %v2528_v10 = vsub.f32 %v2516_v2, %v2523_v8 }
0x1244   :  { %v2526_v12 = vpop.xlane.xlu0 %2525 }
0x1245   :  { %11937 = vpow2.f32 %v2530_v9  ;;  %v2532_v13 = vmul.f32 1.442695, %v2528_v10  ;;  %v2529_v15 = vsub.f32 %v2517_v3, %v2526_v12 }
0x1247   :  { %11939 = vpow2.f32 %v2532_v13  ;;  %v2534_v16 = vmul.f32 1.442695, %v2529_v15 }
0x1249   :  { %11941 = vpow2.f32 %v2534_v16 }
0x124f   :  { %v11938_v39 = vpop.eup %11937 }
0x1250   :  { %v2536_v17 = vsel %vm1391_vm4, %v11938_v39, 0.0 }
0x1251   :  { %v11940_v19 = vpop.eup %11939  ;;  %2537 = vadd.xlane.f32.xlu1 %v2536_v17 }
0x1252   :  { %v2539_v20 = vsel %vm1391_vm4, %v11940_v19, 0.0 }
0x1253   :  { %v11942_v21 = vpop.eup %11941  ;;  %2540 = vadd.xlane.f32.xlu0 %v2539_v20 }
0x1254   :  { %v2542_v22 = vsel %vm1391_vm4, %v11942_v21, 0.0 }
0x1255   :  { %2543 = vadd.xlane.f32.xlu1 %v2542_v22 }
0x1266   :  { %2619 = vrot.lane.b32.xlu1 %v14286_v55, %s13407_s8 }
0x1269   :  { %11707 = vrot.lane.b32.xlu0 %v11706_v59, %s13407_s8 }
0x126a   :  { %11712 = vrot.lane.b32.xlu1 %v11711_v27, %s13379_s0 }
0x126e   :  { %2631 = vrot.lane.b32.xlu1 %v14330_v23, %s13379_s0  ;;  %v11764_v23 = vld [vmem:[#allocation14 + $0x8] sm:$0xff]  }
0x12de   :  { %v2538_v25 = vpop.xlane.xlu1 %2537 }
0x12df   :  { %11943 = vrcp.f32 %v2538_v25 }
0x12e0   :  { %v2541_v28 = vpop.xlane.xlu0 %2540 }
0x12e1   :  { %11945 = vrcp.f32 %v2541_v28 }
0x12e2   :  { %v2544_v29 = vpop.xlane.xlu1 %2543 }
0x12e3   :  { %11947 = vrcp.f32 %v2544_v29 }
0x12e4   :  { %v11708_v41 = vpop.permute.xlu0 %11707 }
0x12e5   :  { %v11710_v43 = vunpack.i.h.bf16 %v11708_v41  ;;  %v11709_v44 = vunpack.i.l.bf16 %v11708_v41 }
0x12e6   :  { %v2620_v0 = vpop.permute.xlu1 %2619 }
0x12e7   :  { %v2649_v48 = vsel %vm1318_vm2, %v14247_v34, %v11710_v43  ;;  %v2650_v49 = vsel %vm1318_vm2, %v14243_v31, %v2620_v0  ;;  %v2648_v51 = vsel %vm1318_vm2, %v14245_v32, %v11709_v44  ;;  %v9761_v32 = vld [vmem:[#allocation16] ss:$0 sm:$0xff] }
0x12e9   :  { %v11944_v55 = vpop.eup %11943 }
0x12ea   :  { %v2548_v33 = vmul.f32 %v11944_v55, %v11938_v39  ;;  %v11713_v40 = vpop.permute.xlu1 %11712 }
0x12eb   :  { %v11946_v30 = vpop.eup %11945  ;;  %v11715_v45 = vunpack.i.h.bf16 %v11713_v40  ;;  %v11714_v46 = vunpack.i.l.bf16 %v11713_v40  ;;  %v9766_v40 = vld [vmem:[#allocation17] ss:$0 sm:$0xff] }
0x12ec   :  { %v2549_v1 = vmul.f32 %v11946_v30, %v11940_v19 }
0x12ed   :  { %v11948_v56 = vpop.eup %11947  ;;  %v2653_v57 = vsel %vm2651_vm5, %v2649_v48, %v11715_v45  ;;  %v2652_v60 = vsel %vm2651_vm5, %v2648_v51, %v11714_v46  ;;  %v9767_v46 = vld [vmem:[#allocation19] ss:$0 sm:$0xff] }
0x12ee   :  { %v2551_v58 = vpack.c.bf16 %v2549_v1, %v2548_v33  ;;  %v2550_v59 = vmul.f32 %v11948_v56, %v11942_v21  ;;  %v2632_v42 = vpop.permute.xlu1 %2631  ;;  %v11765_v1 = vld [vmem:[#allocation20] sm:$0xff]   ;;  %v11766_v56 = vld [vmem:[#allocation20 + $0x8] sm:$0xff]  }
0x12ef   :  { %v2654_v52 = vsel %vm2651_vm5, %v2650_v49, %v2632_v42  ;;  %10812 = vmatprep.subr.bf16.mxu1 %v11765_v1 }
0x12f0   :  { %10800 = vmatprep.mubr.msk.bf16.mxu0 %vm1391_vm4, %v2551_v58  ;;  %v2552_v24 = vpack.c.bf16 %v2550_v59, %v2550_v59  ;;  %10813 = vmatpush3.bf16.msra.mxu1 %v11765_v1 }
0x12f1   :  { %10814 = vmatprep.subr.bf16.mxu1 %v11766_v56 }
0x12f2   :  { %10801 = vmatmul.mubr.msk.bf16.vlgmr.msra.gmra.mrb[44].mxu0 %vm1391_vm4, %v2552_v24 }
0x12f3   :  { %10805 = vmatpush3.bf16.msra.mxu0 %v11763_v26 }
0x12f4   :  { %10806 = vmatprep.subr.bf16.mxu0 %v11764_v23  ;;  %10815 = vmatpush3.bf16.msra.mxu1 %v11766_v56 }
0x12f7   :  { %10807 = vmatpush3.bf16.msra.mxu0 %v11764_v23 }
0x13c5   :  { %v10802_v27 = vpop.f32.mrb[44].mxu0 }
0x13c6   :  { %2643 = vrot.lane.b32.xlu1 %v10802_v27, %s13433_s19  ;;  %v2598_v35 = vpop.f32.mrb[45].mxu0 }
0x13c7   :  { %v10803_v36 = vpop.f32.mrb[46].mxu0 }
0x13c8   :  { %v2601_v37 = vpop.f32.mrb[47].mxu0 }
0x13c9   :  { %v11716_v38 = vpack.i.bf16 %v2601_v37, %v2598_v35 }
0x13cb   :  { %11717 = vrot.lane.b32.xlu0 %v11716_v38, %s13433_s19 }
0x1438   :  { %v2644_v47 = vpop.permute.xlu1 %2643 }
0x1439   :  { %v2657_v61 = vsel %vm1391_vm4, %v2654_v52, %v2644_v47 }
0x143a   :  { %v2663_v31 = vpack.c.bf16 %v2657_v61, %v2657_v61  ;;  %v11770_v61 = vld [vmem:[%s15440_s26 + $0x18] sm:$0xff]  }
0x143d   :  { %v11718_v50 = vpop.permute.xlu0 %11717 }
0x143e   :  { %v11720_v53 = vunpack.i.h.bf16 %v11718_v50  ;;  %v11719_v54 = vunpack.i.l.bf16 %v11718_v50 }
0x1440   :  { %v2655_v62 = vsel %vm1391_vm4, %v2652_v60, %v11719_v54  ;;  %v2656_v34 = vsel %vm1391_vm4, %v2653_v57, %v11720_v53  ;;  %v11767_v54 = vld [vmem:[%s15440_s26] sm:$0xff]   ;;  %v11768_v57 = vld [vmem:[%s15440_s26 + $0x8] sm:$0xff]   ;;  %v11769_v60 = vld [vmem:[%s15440_s26 + $0x10] sm:$0xff]  }
0x1441   :  { %v2662_v63 = vpack.c.bf16 %v2656_v34, %v2655_v62  ;;  %10820 = vmatprep.subr.bf16.mxu0 %v11767_v54  ;;  %v9768_v62 = vld [vmem:[#allocation22] ss:$0 sm:$0xff] }
0x1443   :  { %10808 = vmatprep.mubr.msk.bf16.mxu0 %vm1041_vm1, %v2662_v63 }
0x1444   :  { %10809 = vmatmul.mubr.msk.bf16.vlgmr.msra.gmra.mrb[48].mxu0 %vm1041_vm1, %v2663_v31 }
0x1445   :  { %10821 = vmatpush3.bf16.msra.mxu0 %v11767_v54 }
0x1446   :  { %10822 = vmatprep.subr.bf16.mxu0 %v11768_v57 }
0x1449   :  { %10823 = vmatpush3.bf16.msra.mxu0 %v11768_v57 }
0x144a   :  { %10824 = vmatprep.subr.bf16.mxu0 %v11769_v60 }
0x144d   :  { %10825 = vmatpush3.bf16.msra.mxu0 %v11769_v60 }
0x144e   :  { %10826 = vmatprep.subr.bf16.mxu0 %v11770_v61 }
0x1451   :  { %10827 = vmatpush3.bf16.msra.mxu0 %v11770_v61 }
0x1517   :  { %v10810_v2 = vpop.f32.mrb[48].mxu0 }
0x1518   :  { %v2723_v3 = vpop.f32.mrb[49].mxu0  ;;  %v2732_v4 = vadd.f32 %v10810_v2, %v9761_v32 }
0x1519   :  { %v2724_v5 = vadd.f32 %v9761_v32, %v2723_v3  ;;  %v10811_v6 = vpop.f32.mrb[50].mxu0 }
0x151a   :  { %v2726_v7 = vpop.f32.mrb[51].mxu0  ;;  %v14385_v10 = vadd.f32 %v2732_v4, %v14159_v11 }
0x151b   :  { %v14382_v8 = vadd.f32 %v2724_v5, %v14161_v14  ;;  %v2727_v9 = vadd.f32 %v9761_v32, %v2726_v7 }
0x151c   :  { %v2748_v16 = vsel %vm1041_vm1, %v14385_v10, 0.0 }
0x151d   :  { %v14388_v12 = vadd.f32 %v2727_v9, %v14165_v18  ;;  %v2742_v13 = vsel %vm1041_vm1, %v14382_v8, 0.0 }
0x151e   :  { %2743 = vadd.xlane.f32.xlu0 %v2742_v13 }
0x151f   :  { %v2745_v15 = vsel %vm1041_vm1, %v14388_v12, 0.0 }
0x1520   :  { %2746 = vadd.xlane.f32.xlu1 %v2745_v15 }
0x1522   :  { %2749 = vadd.xlane.f32.xlu0 %v2748_v16 }
0x15ab   :  { %v2744_v14 = vpop.xlane.xlu0 %2743 }
0x15ac   :  { %v2751_v39 = vmul.f32 0.03125, %v2744_v14 }
0x15ad   :  { %v2747_v17 = vpop.xlane.xlu1 %2746 }
0x15ae   :  { %v2754_v11 = vsub.f32 %v14382_v8, %v2751_v39  ;;  %v2752_v19 = vmul.f32 0.03125, %v2747_v17 }
0x15af   :  { %v2750_v18 = vpop.xlane.xlu0 %2749 }
0x15b0   :  { %v2755_v20 = vsub.f32 %v14388_v12, %v2752_v19  ;;  %v2753_v21 = vmul.f32 0.03125, %v2750_v18  ;;  %v2757_v22 = vmul.f32 %v2754_v11, %v2754_v11 }
0x15b2   :  { %v2756_v25 = vsub.f32 %v14385_v10, %v2753_v21  ;;  %v2760_v28 = vsel %vm1041_vm1, %v2757_v22, 0.0  ;;  %v2758_v29 = vmul.f32 %v2755_v20, %v2755_v20 }
0x15b3   :  { %2761 = vadd.xlane.f32.xlu0 %v2760_v28 }
0x15b4   :  { %v2759_v55 = vmul.f32 %v2756_v25, %v2756_v25  ;;  %v2763_v30 = vsel %vm1041_vm1, %v2758_v29, 0.0 }
0x15b6   :  { %v2766_v33 = vsel %vm1041_vm1, %v2759_v55, 0.0 }
0x15b7   :  { %2764 = vadd.xlane.f32.xlu0 %v2763_v30  ;;  %2767 = vadd.xlane.f32.xlu1 %v2766_v33 }
0x1640   :  { %v2762_v58 = vpop.xlane.xlu0 %2761 }
0x1641   :  { %v2769_v59 = vmul.f32 0.03125, %v2762_v58 }
0x1643   :  { %v2772_v24 = vadd.f32 1e-05, %v2769_v59 }
0x1644   :  { %v2768_v26 = vpop.xlane.xlu1 %2767  ;;  %v2765_v23 = vpop.xlane.xlu0 %2764 }
0x1645   :  { %11949 = vrsqrt.f32 %v2772_v24  ;;  %v2771_v27 = vmul.f32 0.03125, %v2768_v26  ;;  %v2770_v35 = vmul.f32 0.03125, %v2765_v23 }
0x1647   :  { %v2774_v36 = vadd.f32 1e-05, %v2771_v27  ;;  %v2773_v37 = vadd.f32 1e-05, %v2770_v35  ;;  %v9773_v27 = vld [vmem:[#allocation23] ss:$0 sm:$0xff] }
0x1649   :  { %11951 = vrsqrt.f32 %v2774_v36 }
0x164a   :  { %11953 = vrsqrt.f32 %v2773_v37 }
0x164f   :  { %v11950_v38 = vpop.eup %11949 }
0x1650   :  { %v2778_v0 = vmul.f32 %v11950_v38, %v2754_v11 }
0x1652   :  { %v2787_v45 = vmul.f32 %v9766_v40, %v2778_v0 }
0x1653   :  { %v11952_v41 = vpop.eup %11951 }
0x1654   :  { %v11954_v42 = vpop.eup %11953  ;;  %v2780_v43 = vmul.f32 %v11952_v41, %v2756_v25  ;;  %v2796_v50 = vadd.f32 %v9767_v46, %v2787_v45 }
0x1655   :  { %v2779_v44 = vmul.f32 %v11954_v42, %v2755_v20 }
0x1656   :  { %v2789_v47 = vmul.f32 %v9766_v40, %v2780_v43 }
0x1657   :  { %v2788_v48 = vmul.f32 %v9766_v40, %v2779_v44 }
0x1658   :  { %v2798_v49 = vadd.f32 %v9767_v46, %v2789_v47 }
0x1659   :  { %v2797_v51 = vadd.f32 %v9767_v46, %v2788_v48 }
0x165a   :  { %v2804_v52 = vpack.c.bf16 %v2798_v49, %v2798_v49 }
0x165b   :  { %v2803_v53 = vpack.c.bf16 %v2797_v51, %v2796_v50 }
0x165d   :  { %10816 = vmatprep.mubr.msk.bf16.mxu1 %vm1041_vm1, %v2803_v53 }
0x165e   :  { %10817 = vmatmul.mubr.msk.bf16.vlgmr.msra.gmra.mrb[36].mxu1 %vm1041_vm1, %v2804_v52 }
0x1731   :  { %v10818_v34 = vpop.f32.mrb[36].mxu1 }
0x1732   :  { %v2873_v63 = vadd.f32 %v10818_v34, %v9768_v62  ;;  %v2864_v31 = vpop.f32.mrb[37].mxu1 }
0x1733   :  { %v2865_v32 = vadd.f32 %v9768_v62, %v2864_v31  ;;  %v10819_v2 = vpop.f32.mrb[38].mxu1  ;;  %v11772_v31 = vld [vmem:[%s15442_s28] sm:$0xff]  }
0x1734   :  { %v2880_v3 = vmul.f32 %v2873_v63, %v2873_v63  ;;  %v2867_v4 = vpop.f32.mrb[39].mxu1  ;;  %10848 = vmatprep.subr.bf16.mxu0 %v11772_v31  ;;  %v11774_v2 = vld [vmem:[%s15442_s28 + $0x8] sm:$0xff]  }
0x1735   :  { %v2878_v5 = vmul.f32 %v2865_v32, %v2865_v32  ;;  %v2868_v6 = vadd.f32 %v9768_v62, %v2867_v4 }
0x1736   :  { %v2883_v7 = vmul.f32 %v2880_v3, %v2873_v63  ;;  %v11775_v3 = vld [vmem:[%s15443_s20] sm:$0xff]  }
0x1737   :  { %v2881_v9 = vmul.f32 %v2878_v5, %v2865_v32  ;;  %v2879_v13 = vmul.f32 %v2868_v6, %v2868_v6 }
0x1738   :  { %v2886_v15 = vmul.f32 0.044715, %v2883_v7 }
0x1739   :  { %v2884_v16 = vmul.f32 0.044715, %v2881_v9  ;;  %v2882_v14 = vmul.f32 %v2879_v13, %v2868_v6 }
0x173a   :  { %v2889_v39 = vadd.f32 %v2886_v15, %v2873_v63 }
0x173b   :  { %v2887_v17 = vadd.f32 %v2884_v16, %v2865_v32  ;;  %v2885_v11 = vmul.f32 0.044715, %v2882_v14 }
0x173c   :  { %v2892_v19 = vmul.f32 0.7978846, %v2889_v39 }
0x173d   :  { %v2890_v18 = vmul.f32 0.7978846, %v2887_v17  ;;  %v2888_v20 = vadd.f32 %v2885_v11, %v2868_v6  ;;  %v9780_v17 = vld [vmem:[#allocation25] ss:$0 sm:$0xff] }
0x173e   :  { %11955 = vtanh.f32 %v2892_v19 }
0x173f   :  { %11957 = vtanh.f32 %v2890_v18  ;;  %v2891_v21 = vmul.f32 0.7978846, %v2888_v20 }
0x1741   :  { %11959 = vtanh.f32 %v2891_v21 }
0x1748   :  { %v11956_v22 = vpop.eup %11955 }
0x1749   :  { %v11958_v25 = vpop.eup %11957  ;;  %v2898_v28 = vadd.f32 1.0, %v11956_v22  ;;  %v9781_v22 = vld [vmem:[#allocation26] ss:$0 sm:$0xff] }
0x174a   :  { %v2896_v29 = vadd.f32 1.0, %v11958_v25 }
0x174b   :  { %v11960_v55 = vpop.eup %11959  ;;  %v2901_v30 = vmul.f32 0.5, %v2898_v28 }
0x174c   :  { %v2899_v33 = vmul.f32 0.5, %v2896_v29  ;;  %v2897_v1 = vadd.f32 1.0, %v11960_v55 }
0x174d   :  { %v2904_v58 = vmul.f32 %v2901_v30, %v2873_v63  ;;  %v11771_v63 = vld [vmem:[%s15441_s9] sm:$0xff]  }
0x174e   :  { %v2900_v56 = vmul.f32 0.5, %v2897_v1  ;;  %v2902_v59 = vmul.f32 %v2899_v33, %v2865_v32  ;;  %10832 = vmatprep.subr.bf16.mxu1 %v11771_v63  ;;  %v11773_v32 = vld [vmem:[%s15441_s9 + $0x8] sm:$0xff]  }
0x174f   :  { %v2914_v23 = vpack.c.bf16 %v2904_v58, %v2904_v58  ;;  %10833 = vmatpush3.bf16.msra.mxu1 %v11771_v63  ;;  %v11776_v58 = vld [vmem:[%s15443_s20 + $0x8] sm:$0xff]   ;;  %v11778_v63 = vld [vmem:[%s15443_s20 + $0x18] sm:$0xff]  }
0x1750   :  { %v2903_v24 = vmul.f32 %v2900_v56, %v2868_v6  ;;  %10834 = vmatprep.subr.bf16.mxu1 %v11773_v32 }
0x1752   :  { %v2913_v26 = vpack.c.bf16 %v2903_v24, %v2902_v59 }
0x1753   :  { %10835 = vmatpush3.bf16.msra.mxu1 %v11773_v32 }
0x1754   :  { %10828 = vmatprep.mubr.msk.bf16.mxu0 %vm2946_vm6, %v2913_v26  ;;  %10840 = vmatprep.subr.bf16.mxu1 %v11775_v3  ;;  %v9791_v26 = vld [vmem:[#allocation29] ss:$0 sm:$0xff] }
0x1755   :  { %10829 = vmatmul.mubr.msk.bf16.vlgmr.msra.gmra.mrb[52].mxu0 %vm2946_vm6, %v2914_v23  ;;  %v9782_v23 = vld [vmem:[#allocation28] ss:$0 sm:$0xff] }
0x1756   :  { %10849 = vmatpush3.bf16.msra.mxu0 %v11772_v31 }
0x1757   :  { %10850 = vmatprep.subr.bf16.mxu0 %v11774_v2 }
0x175a   :  { %10851 = vmatpush3.bf16.msra.mxu0 %v11774_v2 }
0x1828   :  { %v10830_v35 = vpop.f32.mrb[52].mxu0 }
0x1829   :  { %v2987_v36 = vpop.f32.mrb[53].mxu0  ;;  %v2996_v37 = vadd.f32 %v10830_v35, %v9773_v27 }
0x182a   :  { %v2988_v38 = vadd.f32 %v9773_v27, %v2987_v36  ;;  %v10831_v0 = vpop.f32.mrb[54].mxu0 }
0x182b   :  { %v2990_v40 = vpop.f32.mrb[55].mxu0  ;;  %v14414_v43 = vadd.f32 %v2996_v37, %v14385_v10 }
0x182c   :  { %v14411_v41 = vadd.f32 %v2988_v38, %v14382_v8  ;;  %v2991_v42 = vadd.f32 %v9773_v27, %v2990_v40 }
0x182d   :  { %v3012_v47 = vsel %vm1041_vm1, %v14414_v43, 0.0 }
0x182e   :  { %v14417_v44 = vadd.f32 %v2991_v42, %v14388_v12  ;;  %v3006_v45 = vsel %vm1041_vm1, %v14411_v41, 0.0 }
0x182f   :  { %3007 = vadd.xlane.f32.xlu0 %v3006_v45 }
0x1830   :  { %v3009_v46 = vsel %vm1041_vm1, %v14417_v44, 0.0 }
0x1831   :  { %3010 = vadd.xlane.f32.xlu1 %v3009_v46 }
0x1833   :  { %3013 = vadd.xlane.f32.xlu0 %v3012_v47 }
0x18bc   :  { %v3008_v8 = vpop.xlane.xlu0 %3007 }
0x18bd   :  { %v3015_v48 = vmul.f32 0.03125, %v3008_v8 }
0x18be   :  { %v3011_v49 = vpop.xlane.xlu1 %3010 }
0x18bf   :  { %v3018_v10 = vsub.f32 %v14411_v41, %v3015_v48  ;;  %v3016_v12 = vmul.f32 0.03125, %v3011_v49 }
0x18c0   :  { %v3014_v50 = vpop.xlane.xlu0 %3013 }
0x18c1   :  { %v3019_v51 = vsub.f32 %v14417_v44, %v3016_v12  ;;  %v3017_v52 = vmul.f32 0.03125, %v3014_v50  ;;  %v3021_v53 = vmul.f32 %v3018_v10, %v3018_v10 }
0x18c3   :  { %v3020_v54 = vsub.f32 %v14414_v43, %v3017_v52  ;;  %v3024_v57 = vsel %vm1041_vm1, %v3021_v53, 0.0  ;;  %v3022_v60 = vmul.f32 %v3019_v51, %v3019_v51 }
0x18c4   :  { %3025 = vadd.xlane.f32.xlu1 %v3024_v57 }
0x18c5   :  { %v3027_v61 = vsel %vm1041_vm1, %v3022_v60, 0.0  ;;  %v3023_v62 = vmul.f32 %v3020_v54, %v3020_v54  ;;  %v11777_v60 = vld [vmem:[%s15443_s20 + $0x10] sm:$0xff]  }
0x18c6   :  { %3028 = vadd.xlane.f32.xlu0 %v3027_v61 }
0x18c7   :  { %v3030_v34 = vsel %vm1041_vm1, %v3023_v62, 0.0 }
0x18c8   :  { %3031 = vadd.xlane.f32.xlu1 %v3030_v34 }
0x1951   :  { %v3026_v4 = vpop.xlane.xlu1 %3025 }
0x1952   :  { %v3033_v5 = vmul.f32 0.03125, %v3026_v4 }
0x1953   :  { %v3029_v6 = vpop.xlane.xlu0 %3028 }
0x1954   :  { %v3036_v7 = vadd.f32 1e-05, %v3033_v5  ;;  %v3034_v9 = vmul.f32 0.03125, %v3029_v6 }
0x1955   :  { %v3032_v13 = vpop.xlane.xlu1 %3031 }
0x1956   :  { %11961 = vrsqrt.f32 %v3036_v7  ;;  %v3037_v15 = vadd.f32 1e-05, %v3034_v9  ;;  %v3035_v16 = vmul.f32 0.03125, %v3032_v13  ;;  %v14467_v7 = vld [vmem:[#allocation5] ss:$0 sm:$0xff] }
0x1958   :  { %11963 = vrsqrt.f32 %v3037_v15  ;;  %v3038_v14 = vadd.f32 1e-05, %v3035_v16 }
0x195a   :  { %11965 = vrsqrt.f32 %v3038_v14 }
0x1960   :  { %v11962_v39 = vpop.eup %11961 }
0x1961   :  { %v3042_v11 = vmul.f32 %v11962_v39, %v3018_v10 }
0x1962   :  { %v11964_v19 = vpop.eup %11963 }
0x1963   :  { %v3051_v18 = vmul.f32 %v9780_v17, %v3042_v11  ;;  %v3043_v20 = vmul.f32 %v11964_v19, %v3019_v51 }
0x1964   :  { %v11966_v21 = vpop.eup %11965 }
0x1965   :  { %v3052_v25 = vmul.f32 %v9780_v17, %v3043_v20  ;;  %v3044_v28 = vmul.f32 %v11966_v21, %v3020_v54  ;;  %v3060_v29 = vadd.f32 %v9781_v22, %v3051_v18 }
0x1967   :  { %v3061_v55 = vadd.f32 %v9781_v22, %v3052_v25  ;;  %v3053_v30 = vmul.f32 %v9780_v17, %v3044_v28 }
0x1969   :  { %v14436_v33 = vpack.c.bf16 %v3061_v55, %v3060_v29  ;;  %v3062_v1 = vadd.f32 %v9781_v22, %v3053_v30 }
0x196b   :  { %v14438_v56 = vpack.c.bf16 %v3062_v1, %v3062_v1  ;;  %10836 = vmatprep.mubr.msk.bf16.mxu1 %vm1041_vm1, %v14436_v33  ;;  %10852 = vmatprep.mubr.msk.bf16.mxu0 %vm1041_vm1, %v14436_v33 }
0x196d   :  { %10837 = vmatmul.mubr.msk.bf16.vlgmr.msra.gmra.mrb[40].mxu1 %vm1041_vm1, %v14438_v56  ;;  %10853 = vmatmul.mubr.msk.bf16.vlgmr.msra.gmra.mrb[56].mxu0 %vm1041_vm1, %v14438_v56 }
0x196e   :  { %10841 = vmatpush3.bf16.msra.mxu1 %v11775_v3  ;;  %10844 = vmatprep.mubr.msk.bf16.mxu1 %vm1041_vm1, %v14436_v33 }
0x196f   :  { %10842 = vmatprep.subr.bf16.mxu1 %v11776_v58 }
0x1972   :  { %10843 = vmatpush3.bf16.msra.mxu1 %v11776_v58 }
0x1975   :  { %10845 = vmatmul.mubr.msk.bf16.vlgmr.msra.gmra.mrb[44].mxu1 %vm1041_vm1, %v14438_v56 }
0x1a40   :  { %v10838_v59 = vpop.f32.mrb[40].mxu1  ;;  %v10854_v24 = vpop.f32.mrb[56].mxu0 }
0x1a41   :  { %v3128_v27 = vpop.f32.mrb[41].mxu1  ;;  %v3263_v35 = vpop.f32.mrb[57].mxu0  ;;  %v3272_v38 = vadd.f32 %v10854_v24, %v9791_v26  ;;  %v3137_v62 = vadd.f32 %v10838_v59, %v9782_v23 }
0x1a42   :  { %v10839_v36 = vpop.f32.mrb[42].mxu1  ;;  %v10855_v37 = vpop.f32.mrb[58].mxu0  ;;  %v3129_v42 = vadd.f32 %v9782_v23, %v3128_v27  ;;  %v3264_v45 = vadd.f32 %v9791_v26, %v3263_v35 }
0x1a43   :  { %v3131_v0 = vpop.f32.mrb[43].mxu1  ;;  %v3266_v40 = vpop.f32.mrb[59].mxu0  ;;  %v3383_v49 = vpack.c.bf16 %v3272_v38, %v3272_v38  ;;  %v3278_v34 = vpack.c.bf16 %v3137_v62, %v3137_v62 }
0x1a44   :  { %v3132_v46 = vadd.f32 %v9782_v23, %v3131_v0  ;;  %v3267_v47 = vadd.f32 %v9791_v26, %v3266_v40  ;;  %v11779_v0 = vld [vmem:[%s15441_s9 + $0x10] sm:$0xff]  }
0x1a45   :  { %v3391_v52 = vsel %vm1435_vm3, %v3383_v49, 0 }
0x1a46   :  { %v3277_v8 = vpack.c.bf16 %v3132_v46, %v3129_v42  ;;  %v3382_v48 = vpack.c.bf16 %v3267_v47, %v3264_v45 }
0x1a48   :  { %v10846_v10 = vpop.f32.mrb[44].mxu1  ;;  %10860 = vmatprep.mubr.msk.bf16.mxu1 %vm1318_vm2, %v3277_v8  ;;  %10864 = vmatprep.subr.bf16.mxu0 %v3382_v48 }
0x1a49   :  { %v3192_v12 = vpop.f32.mrb[45].mxu1  ;;  %10865 = vmatpush3.bf16.msra.mxu0 %v3382_v48  ;;  %v3280_v54 = vpack.c.bf16 %v10846_v10, %v10846_v10 }
0x1a4a   :  { %v10847_v50 = vpop.f32.mrb[46].mxu1  ;;  %11554 = vmatprep.subr.msk.bf16.mxu0 %vm1435_vm3, %v3383_v49 }
0x1a4b   :  { %v3195_v51 = vpop.f32.mrb[47].mxu1  ;;  %v3291_v61 = vsel %vm1318_vm2, %v3280_v54, 0 }
0x1a4c   :  { %v3279_v53 = vpack.c.bf16 %v3195_v51, %v3192_v12  ;;  %v11780_v51 = vld [vmem:[%s15441_s9 + $0x18] sm:$0xff]  }
0x1a4d   :  { %10867 = vmatpush3.bf16.msra.mxu0 %v3391_v52  ;;  %v11781_v52 = vld [vmem:[%s15442_s28 + $0x10] sm:$0xff]  }
0x1a4e   :  { %v3288_v57 = vsel %vm1318_vm2, %v3279_v53, 0  ;;  %11552 = vmatprep.subr.msk.bf16.mxu1 %vm1318_vm2, %v3279_v53  ;;  %10872 = vmatprep.subr.bf16.mxu0 %v11779_v0  ;;  %v11782_v53 = vld [vmem:[%s15442_s28 + $0x18] sm:$0xff]  }
0x1a4f   :  { %10857 = vmatpush3.bf16.xpose.msra.mxu1 %v3288_v57 }
0x1a50   :  { %11553 = vmatprep.subr.msk.bf16.mxu1 %vm1318_vm2, %v3280_v54  ;;  %v11783_v54 = vld [vmem:[%s15443_s20 + $0x20] sm:$0xff]  }
0x1a57   :  { %10859 = vmatpush3.bf16.xpose.msra.mxu1 %v3291_v61 }
0x1a58   :  { %10880 = vmatprep.subr.bf16.mxu1 %v11777_v60 }
0x1a5e   :  { %10861 = vmatmul.mubr.msk.bf16.vlgmr.msra.gmra.mrb[48].mxu1 %vm1318_vm2, %v3278_v34 }
0x1a5f   :  { %10881 = vmatpush3.bf16.msra.mxu1 %v11777_v60  ;;  %10884 = vmatprep.mubr.msk.bf16.mxu1 %vm1041_vm1, %v14436_v33 }
0x1a60   :  { %10882 = vmatprep.subr.bf16.mxu1 %v11778_v63 }
0x1a63   :  { %10883 = vmatpush3.bf16.msra.mxu1 %v11778_v63  ;;  %v9804_v63 = vld [vmem:[#allocation28 + $0x1] ss:$0 sm:$0xff] }
0x1a66   :  { %10885 = vmatmul.mubr.msk.bf16.vlgmr.msra.gmra.mrb[52].mxu1 %vm1041_vm1, %v14438_v56 }
0x1b31   :  { %v10862_v31 = vpop.f32.mrb[48].mxu1 }
0x1b32   :  { %v3327_v32 = vpop.f32.mrb[49].mxu1  ;;  %v3343_v2 = vmul.f32 0.35355338, %v10862_v31 }
0x1b33   :  { %v3341_v3 = vmul.f32 0.35355338, %v3327_v32  ;;  %v10863_v4 = vpop.f32.mrb[50].mxu1 }
0x1b34   :  { %v3330_v5 = vpop.f32.mrb[51].mxu1  ;;  %v3346_v16 = vadd.f32 %v14467_v7, %v3343_v2 }
0x1b35   :  { %v3342_v6 = vmul.f32 0.35355338, %v3330_v5  ;;  %v3344_v9 = vadd.f32 %v14467_v7, %v3341_v3 }
0x1b36   :  { %v3353_v19 = vsel %vm1391_vm4, %v3346_v16, -inf }
0x1b37   :  { %v3347_v13 = vsel %vm1391_vm4, %v3344_v9, -inf  ;;  %v3345_v15 = vadd.f32 %v14467_v7, %v3342_v6 }
0x1b38   :  { %3348 = vmax.xlane.f32.xlu0 %v3347_v13  ;;  %v11784_v13 = vld [vmem:[%s15443_s20 + $0x28] sm:$0xff]  }
0x1b39   :  { %v10886_v14 = vpop.f32.mrb[52].mxu1  ;;  %v3350_v39 = vsel %vm1391_vm4, %v3345_v15, -inf }
0x1b3a   :  { %v3565_v17 = vpop.f32.mrb[53].mxu1  ;;  %3351 = vmax.xlane.f32.xlu1 %v3350_v39  ;;  %v3655_v21 = vpack.c.bf16 %v10886_v14, %v10886_v14 }
0x1b3b   :  { %v10887_v11 = vpop.f32.mrb[54].mxu1 }
0x1b3c   :  { %3354 = vmax.xlane.f32.xlu0 %v3353_v19  ;;  %v3568_v18 = vpop.f32.mrb[55].mxu1  ;;  %v3666_v25 = vsel %vm1318_vm2, %v3655_v21, 0 }
0x1b3d   :  { %v3654_v20 = vpack.c.bf16 %v3568_v18, %v3565_v17 }
0x1b3f   :  { %v3663_v22 = vsel %vm1318_vm2, %v3654_v20, 0  ;;  %11555 = vmatprep.subr.msk.bf16.mxu1 %vm1318_vm2, %v3654_v20 }
0x1b40   :  { %10897 = vmatpush3.bf16.xpose.msra.mxu1 %v3663_v22 }
0x1b41   :  { %11556 = vmatprep.subr.msk.bf16.mxu1 %vm1318_vm2, %v3655_v21 }
0x1b48   :  { %10899 = vmatpush3.bf16.xpose.msra.mxu1 %v3666_v25 }
0x1b49   :  { %10920 = vmatprep.subr.bf16.mxu1 %v11783_v54 }
0x1bc5   :  { %v3349_v28 = vpop.xlane.xlu0 %3348 }
0x1bc6   :  { %v3356_v29 = vsub.f32 %v3344_v9, %v3349_v28 }
0x1bc7   :  { %v3352_v55 = vpop.xlane.xlu1 %3351 }
0x1bc8   :  { %v3359_v30 = vmul.f32 1.442695, %v3356_v29  ;;  %v3357_v1 = vsub.f32 %v3345_v15, %v3352_v55 }
0x1bc9   :  { %v3355_v58 = vpop.xlane.xlu0 %3354 }
0x1bca   :  { %11967 = vpow2.f32 %v3359_v30  ;;  %v3361_v59 = vmul.f32 1.442695, %v3357_v1  ;;  %v3358_v24 = vsub.f32 %v3346_v16, %v3355_v58  ;;  %v9821_v16 = vld [vmem:[#allocation29 + $0x1] ss:$0 sm:$0xff] }
0x1bcc   :  { %11969 = vpow2.f32 %v3361_v59  ;;  %v3363_v26 = vmul.f32 1.442695, %v3358_v24 }
0x1bce   :  { %11971 = vpow2.f32 %v3363_v26 }
0x1bd4   :  { %v11968_v23 = vpop.eup %11967 }
0x1bd5   :  { %v3365_v27 = vsel %vm1391_vm4, %v11968_v23, 0.0 }
0x1bd6   :  { %v11970_v35 = vpop.eup %11969  ;;  %3366 = vadd.xlane.f32.xlu1 %v3365_v27 }
0x1bd7   :  { %v3368_v36 = vsel %vm1391_vm4, %v11970_v35, 0.0 }
0x1bd8   :  { %v11972_v37 = vpop.eup %11971  ;;  %3369 = vadd.xlane.f32.xlu0 %v3368_v36 }
0x1bd9   :  { %v3371_v38 = vsel %vm1391_vm4, %v11972_v37, 0.0 }
0x1bda   :  { %3372 = vadd.xlane.f32.xlu1 %v3371_v38 }
0x1c63   :  { %v3367_v40 = vpop.xlane.xlu1 %3366 }
0x1c64   :  { %11973 = vrcp.f32 %v3367_v40 }
0x1c65   :  { %v3370_v42 = vpop.xlane.xlu0 %3369 }
0x1c66   :  { %11975 = vrcp.f32 %v3370_v42 }
0x1c67   :  { %v3373_v45 = vpop.xlane.xlu1 %3372 }
0x1c68   :  { %11977 = vrcp.f32 %v3373_v45 }
0x1c6e   :  { %v11974_v46 = vpop.eup %11973 }
0x1c6f   :  { %v3377_v8 = vmul.f32 %v11974_v46, %v11968_v23 }
0x1c70   :  { %v11976_v47 = vpop.eup %11975 }
0x1c71   :  { %v3378_v48 = vmul.f32 %v11976_v47, %v11970_v35 }
0x1c72   :  { %v11978_v49 = vpop.eup %11977 }
0x1c73   :  { %v3379_v10 = vmul.f32 %v11978_v49, %v11972_v37  ;;  %v3380_v12 = vpack.c.bf16 %v3378_v48, %v3377_v8 }
0x1c75   :  { %10868 = vmatprep.mubr.msk.bf16.mxu0 %vm1391_vm4, %v3380_v12  ;;  %v3381_v50 = vpack.c.bf16 %v3379_v10, %v3379_v10 }
0x1c77   :  { %10869 = vmatmul.mubr.msk.bf16.vlgmr.msra.gmra.mrb[60].mxu0 %vm1391_vm4, %v3381_v50 }
0x1c78   :  { %10873 = vmatpush3.bf16.msra.mxu0 %v11779_v0  ;;  %10876 = vmatprep.mubr.msk.bf16.mxu0 %vm1041_vm1, %v14436_v33 }
0x1c79   :  { %10874 = vmatprep.subr.bf16.mxu0 %v11780_v51 }
0x1c7c   :  { %10875 = vmatpush3.bf16.msra.mxu0 %v11780_v51 }
0x1c7d   :  { %10888 = vmatprep.subr.bf16.mxu0 %v11781_v52 }
0x1c7f   :  { %10877 = vmatmul.mubr.msk.bf16.vlgmr.msra.gmra.mrb[64].mxu0 %vm1041_vm1, %v14438_v56 }
0x1c80   :  { %10889 = vmatpush3.bf16.msra.mxu0 %v11781_v52  ;;  %10892 = vmatprep.mubr.msk.bf16.mxu0 %vm1041_vm1, %v14436_v33 }
0x1c81   :  { %10890 = vmatprep.subr.bf16.mxu0 %v11782_v53 }
0x1c84   :  { %10891 = vmatpush3.bf16.msra.mxu0 %v11782_v53 }
0x1c87   :  { %10893 = vmatmul.mubr.msk.bf16.vlgmr.msra.gmra.mrb[68].mxu0 %vm1041_vm1, %v14438_v56 }
0x1d4a   :  { %v14497_v57 = vpop.f32.mrb[60].mxu0 }
0x1d4b   :  { %v14499_v60 = vpop.f32.mrb[61].mxu0 }
0x1d4c   :  { %v10871_v61 = vpop.f32.mrb[62].mxu0 }
0x1d4d   :  { %v14501_v62 = vpop.f32.mrb[63].mxu0 }
0x1d52   :  { %v10878_v34 = vpop.f32.mrb[64].mxu0 }
0x1d53   :  { %v3500_v31 = vpop.f32.mrb[65].mxu0  ;;  %v3509_v2 = vadd.f32 %v10878_v34, %v9804_v63 }
0x1d54   :  { %v10879_v32 = vpop.f32.mrb[66].mxu0  ;;  %v3501_v4 = vadd.f32 %v9804_v63, %v3500_v31 }
0x1d55   :  { %v3503_v3 = vpop.f32.mrb[67].mxu0  ;;  %v3653_v9 = vpack.c.bf16 %v3509_v2, %v3509_v2  ;;  %v11785_v32 = vld [vmem:[%s15441_s9 + $0x20] sm:$0xff]  }
0x1d56   :  { %v3504_v5 = vadd.f32 %v9804_v63, %v3503_v3 }
0x1d58   :  { %v3652_v6 = vpack.c.bf16 %v3504_v5, %v3501_v4 }
0x1d5a   :  { %v10894_v15 = vpop.f32.mrb[68].mxu0  ;;  %10900 = vmatprep.mubr.msk.bf16.mxu1 %vm1318_vm2, %v3652_v6 }
0x1d5b   :  { %v3638_v14 = vpop.f32.mrb[69].mxu0  ;;  %10901 = vmatmul.mubr.msk.bf16.vlgmr.msra.gmra.mrb[56].mxu1 %vm1318_vm2, %v3653_v9  ;;  %v3647_v11 = vadd.f32 %v10894_v15, %v9821_v16 }
0x1d5c   :  { %v10895_v39 = vpop.f32.mrb[70].mxu0  ;;  %10921 = vmatpush3.bf16.msra.mxu1 %v11783_v54  ;;  %10924 = vmatprep.mubr.msk.bf16.mxu1 %vm1041_vm1, %v14436_v33  ;;  %v3639_v19 = vadd.f32 %v9821_v16, %v3638_v14 }
0x1d5d   :  { %v3641_v17 = vpop.f32.mrb[71].mxu0  ;;  %10922 = vmatprep.subr.bf16.mxu1 %v11784_v13  ;;  %v3758_v21 = vpack.c.bf16 %v3647_v11, %v3647_v11  ;;  %v11787_v11 = vld [vmem:[%s15442_s28 + $0x20] sm:$0xff]  }
0x1d5e   :  { %v3642_v18 = vadd.f32 %v9821_v16, %v3641_v17  ;;  %v11786_v17 = vld [vmem:[%s15441_s9 + $0x28] sm:$0xff]  }
0x1d5f   :  { %v3766_v22 = vsel %vm1435_vm3, %v3758_v21, 0 }
0x1d60   :  { %v3757_v20 = vpack.c.bf16 %v3642_v18, %v3639_v19  ;;  %10923 = vmatpush3.bf16.msra.mxu1 %v11784_v13  ;;  %v11788_v19 = vld [vmem:[%s15442_s28 + $0x28] sm:$0xff]   ;;  %v11789_v18 = vld [vmem:[%s15443_s20 + $0x30] sm:$0xff]  }
0x1d62   :  { %10904 = vmatprep.subr.bf16.mxu0 %v3757_v20 }
0x1d63   :  { %10905 = vmatpush3.bf16.msra.mxu0 %v3757_v20  ;;  %10925 = vmatmul.mubr.msk.bf16.vlgmr.msra.gmra.mrb[60].mxu1 %vm1041_vm1, %v14438_v56 }
0x1d64   :  { %11557 = vmatprep.subr.msk.bf16.mxu0 %vm1435_vm3, %v3758_v21 }
0x1d67   :  { %10907 = vmatpush3.bf16.msra.mxu0 %v3766_v22 }
0x1d68   :  { %10912 = vmatprep.subr.bf16.mxu0 %v11785_v32 }
0x1e2e   :  { %v10902_v25 = vpop.f32.mrb[56].mxu1 }
0x1e2f   :  { %v3702_v28 = vpop.f32.mrb[57].mxu1  ;;  %v3718_v29 = vmul.f32 0.35355338, %v10902_v25 }
0x1e30   :  { %v3716_v55 = vmul.f32 0.35355338, %v3702_v28  ;;  %v10903_v30 = vpop.f32.mrb[58].mxu1 }
0x1e31   :  { %v3705_v1 = vpop.f32.mrb[59].mxu1  ;;  %v3721_v23 = vadd.f32 %v14467_v7, %v3718_v29 }
0x1e32   :  { %v3717_v58 = vmul.f32 0.35355338, %v3705_v1  ;;  %v3719_v59 = vadd.f32 %v14467_v7, %v3716_v55  ;;  %v9834_v55 = vld [vmem:[#allocation28 + $0x2] ss:$0 sm:$0xff] }
0x1e33   :  { %v3728_v38 = vsel %vm1391_vm4, %v3721_v23, -inf }
0x1e34   :  { %v3722_v24 = vsel %vm1391_vm4, %v3719_v59, -inf  ;;  %v3720_v26 = vadd.f32 %v14467_v7, %v3717_v58 }
0x1e35   :  { %3723 = vmax.xlane.f32.xlu0 %v3722_v24 }
0x1e36   :  { %v10926_v27 = vpop.f32.mrb[60].mxu1  ;;  %v3725_v35 = vsel %vm1391_vm4, %v3720_v26, -inf }
0x1e37   :  { %v3940_v36 = vpop.f32.mrb[61].mxu1  ;;  %3726 = vmax.xlane.f32.xlu1 %v3725_v35  ;;  %v4030_v42 = vpack.c.bf16 %v10926_v27, %v10926_v27  ;;  %v11790_v35 = vld [vmem:[%s15443_s20 + $0x38] sm:$0xff]  }
0x1e38   :  { %v10927_v37 = vpop.f32.mrb[62].mxu1 }
0x1e39   :  { %3729 = vmax.xlane.f32.xlu0 %v3728_v38  ;;  %v3943_v0 = vpop.f32.mrb[63].mxu1  ;;  %v4041_v46 = vsel %vm1318_vm2, %v4030_v42, 0  ;;  %v9851_v37 = vld [vmem:[#allocation29 + $0x2] ss:$0 sm:$0xff] }
0x1e3a   :  { %v4029_v40 = vpack.c.bf16 %v3943_v0, %v3940_v36 }
0x1e3c   :  { %v4038_v45 = vsel %vm1318_vm2, %v4029_v40, 0  ;;  %11558 = vmatprep.subr.msk.bf16.mxu1 %vm1318_vm2, %v4029_v40 }
0x1e3d   :  { %10937 = vmatpush3.bf16.xpose.msra.mxu1 %v4038_v45 }
0x1e3e   :  { %11559 = vmatprep.subr.msk.bf16.mxu1 %vm1318_vm2, %v4030_v42 }
0x1e45   :  { %10939 = vmatpush3.bf16.xpose.msra.mxu1 %v4041_v46 }
0x1e46   :  { %10960 = vmatprep.subr.bf16.mxu1 %v11789_v18 }
0x1ec2   :  { %v3724_v47 = vpop.xlane.xlu0 %3723 }
0x1ec3   :  { %v3731_v8 = vsub.f32 %v3719_v59, %v3724_v47 }
0x1ec4   :  { %v3727_v48 = vpop.xlane.xlu1 %3726 }
0x1ec5   :  { %v3734_v49 = vmul.f32 1.442695, %v3731_v8  ;;  %v3732_v10 = vsub.f32 %v3720_v26, %v3727_v48 }
0x1ec6   :  { %v3730_v12 = vpop.xlane.xlu0 %3729 }
0x1ec7   :  { %11979 = vpow2.f32 %v3734_v49  ;;  %v3736_v50 = vmul.f32 1.442695, %v3732_v10  ;;  %v3733_v51 = vsub.f32 %v3721_v23, %v3730_v12 }
0x1ec9   :  { %11981 = vpow2.f32 %v3736_v50  ;;  %v3738_v52 = vmul.f32 1.442695, %v3733_v51 }
0x1ecb   :  { %11983 = vpow2.f32 %v3738_v52 }
0x1ed1   :  { %v11980_v53 = vpop.eup %11979 }
0x1ed2   :  { %v3740_v54 = vsel %vm1391_vm4, %v11980_v53, 0.0 }
0x1ed3   :  { %v11982_v61 = vpop.eup %11981  ;;  %3741 = vadd.xlane.f32.xlu1 %v3740_v54 }
0x1ed4   :  { %v3743_v34 = vsel %vm1391_vm4, %v11982_v61, 0.0 }
0x1ed5   :  { %v11984_v63 = vpop.eup %11983  ;;  %3744 = vadd.xlane.f32.xlu0 %v3743_v34 }
0x1ed6   :  { %v3746_v31 = vsel %vm1391_vm4, %v11984_v63, 0.0 }
0x1ed7   :  { %3747 = vadd.xlane.f32.xlu1 %v3746_v31 }
0x1f60   :  { %v3742_v2 = vpop.xlane.xlu1 %3741 }
0x1f61   :  { %11985 = vrcp.f32 %v3742_v2 }
0x1f62   :  { %v3745_v3 = vpop.xlane.xlu0 %3744 }
0x1f63   :  { %11987 = vrcp.f32 %v3745_v3 }
0x1f64   :  { %v3748_v4 = vpop.xlane.xlu1 %3747 }
0x1f65   :  { %11989 = vrcp.f32 %v3748_v4 }
0x1f6b   :  { %v11986_v5 = vpop.eup %11985 }
0x1f6c   :  { %v3752_v9 = vmul.f32 %v11986_v5, %v11980_v53 }
0x1f6d   :  { %v11988_v6 = vpop.eup %11987 }
0x1f6e   :  { %v3753_v13 = vmul.f32 %v11988_v6, %v11982_v61 }
0x1f6f   :  { %v11990_v15 = vpop.eup %11989 }
0x1f70   :  { %v3754_v16 = vmul.f32 %v11990_v15, %v11984_v63  ;;  %v3755_v14 = vpack.c.bf16 %v3753_v13, %v3752_v9 }
0x1f72   :  { %10908 = vmatprep.mubr.msk.bf16.mxu0 %vm1391_vm4, %v3755_v14  ;;  %v3756_v39 = vpack.c.bf16 %v3754_v16, %v3754_v16 }
0x1f74   :  { %10909 = vmatmul.mubr.msk.bf16.vlgmr.msra.gmra.mrb[72].mxu0 %vm1391_vm4, %v3756_v39 }
0x1f75   :  { %10913 = vmatpush3.bf16.msra.mxu0 %v11785_v32  ;;  %10916 = vmatprep.mubr.msk.bf16.mxu0 %vm1041_vm1, %v14436_v33 }
0x1f76   :  { %10914 = vmatprep.subr.bf16.mxu0 %v11786_v17 }
0x1f79   :  { %10915 = vmatpush3.bf16.msra.mxu0 %v11786_v17 }
0x1f7a   :  { %10928 = vmatprep.subr.bf16.mxu0 %v11787_v11 }
0x1f7c   :  { %10917 = vmatmul.mubr.msk.bf16.vlgmr.msra.gmra.mrb[76].mxu0 %vm1041_vm1, %v14438_v56 }
0x1f7d   :  { %10929 = vmatpush3.bf16.msra.mxu0 %v11787_v11  ;;  %10932 = vmatprep.mubr.msk.bf16.mxu0 %vm1041_vm1, %v14436_v33 }
0x1f7e   :  { %10930 = vmatprep.subr.bf16.mxu0 %v11788_v19 }
0x1f81   :  { %10931 = vmatpush3.bf16.msra.mxu0 %v11788_v19 }
0x1f84   :  { %10933 = vmatmul.mubr.msk.bf16.vlgmr.msra.gmra.mrb[80].mxu0 %vm1041_vm1, %v14438_v56 }
0x2047   :  { %v14540_v20 = vpop.f32.mrb[72].mxu0 }
0x2048   :  { %v14542_v21 = vpop.f32.mrb[73].mxu0 }
0x2049   :  { %v10911_v22 = vpop.f32.mrb[74].mxu0 }
0x204a   :  { %v14544_v25 = vpop.f32.mrb[75].mxu0 }
0x204b   :  { %v11721_v28 = vpack.i.bf16 %v14544_v25, %v14542_v21 }
0x204f   :  { %v10918_v29 = vpop.f32.mrb[76].mxu0 }
0x2050   :  { %v3875_v30 = vpop.f32.mrb[77].mxu0  ;;  %v3884_v58 = vadd.f32 %v10918_v29, %v9834_v55 }
0x2051   :  { %v10919_v1 = vpop.f32.mrb[78].mxu0  ;;  %v3876_v24 = vadd.f32 %v9834_v55, %v3875_v30 }
0x2052   :  { %v3878_v59 = vpop.f32.mrb[79].mxu0  ;;  %v4028_v27 = vpack.c.bf16 %v3884_v58, %v3884_v58 }
0x2053   :  { %v3879_v26 = vadd.f32 %v9834_v55, %v3878_v59 }
0x2055   :  { %v4027_v23 = vpack.c.bf16 %v3879_v26, %v3876_v24  ;;  %v11791_v26 = vld [vmem:[%s15441_s9 + $0x30] sm:$0xff]  }
0x2057   :  { %v10934_v36 = vpop.f32.mrb[80].mxu0  ;;  %10940 = vmatprep.mubr.msk.bf16.mxu1 %vm1318_vm2, %v4027_v23 }
0x2058   :  { %v4013_v38 = vpop.f32.mrb[81].mxu0  ;;  %10941 = vmatmul.mubr.msk.bf16.vlgmr.msra.gmra.mrb[64].mxu1 %vm1318_vm2, %v4028_v27  ;;  %v4022_v42 = vadd.f32 %v10934_v36, %v9851_v37 }
0x2059   :  { %v10935_v0 = vpop.f32.mrb[82].mxu0  ;;  %10961 = vmatpush3.bf16.msra.mxu1 %v11789_v18  ;;  %10964 = vmatprep.mubr.msk.bf16.mxu1 %vm1041_vm1, %v14436_v33  ;;  %v4014_v45 = vadd.f32 %v9851_v37, %v4013_v38 }
0x205a   :  { %v4016_v40 = vpop.f32.mrb[83].mxu0  ;;  %10962 = vmatprep.subr.bf16.mxu1 %v11790_v35  ;;  %v4133_v8 = vpack.c.bf16 %v4022_v42, %v4022_v42 }
0x205b   :  { %v4017_v46 = vadd.f32 %v9851_v37, %v4016_v40 }
0x205c   :  { %v4141_v48 = vsel %vm1435_vm3, %v4133_v8, 0 }
0x205d   :  { %v4132_v47 = vpack.c.bf16 %v4017_v46, %v4014_v45  ;;  %10963 = vmatpush3.bf16.msra.mxu1 %v11790_v35 }
0x205f   :  { %10944 = vmatprep.subr.bf16.mxu0 %v4132_v47 }
0x2060   :  { %10945 = vmatpush3.bf16.msra.mxu0 %v4132_v47  ;;  %10965 = vmatmul.mubr.msk.bf16.vlgmr.msra.gmra.mrb[68].mxu1 %vm1041_vm1, %v14438_v56  ;;  %v11792_v47 = vld [vmem:[%s15441_s9 + $0x38] sm:$0xff]  }
0x2061   :  { %11560 = vmatprep.subr.msk.bf16.mxu0 %vm1435_vm3, %v4133_v8  ;;  %v11793_v8 = vld [vmem:[%s15442_s28 + $0x30] sm:$0xff]  }
0x2064   :  { %10947 = vmatpush3.bf16.msra.mxu0 %v4141_v48  ;;  %v11794_v48 = vld [vmem:[%s15442_s28 + $0x38] sm:$0xff]  }
0x2065   :  { %10952 = vmatprep.subr.bf16.mxu0 %v11791_v26 }
0x212b   :  { %v10942_v49 = vpop.f32.mrb[64].mxu1 }
0x212c   :  { %v4077_v10 = vpop.f32.mrb[65].mxu1  ;;  %v4093_v12 = vmul.f32 0.35355338, %v10942_v49 }
0x212d   :  { %v4091_v50 = vmul.f32 0.35355338, %v4077_v10  ;;  %v10943_v51 = vpop.f32.mrb[66].mxu1 }
0x212e   :  { %v4080_v52 = vpop.f32.mrb[67].mxu1  ;;  %v4096_v63 = vadd.f32 %v14467_v7, %v4093_v12 }
0x212f   :  { %v4092_v53 = vmul.f32 0.35355338, %v4080_v52  ;;  %v4094_v54 = vadd.f32 %v14467_v7, %v4091_v50 }
0x2130   :  { %v4103_v4 = vsel %vm1391_vm4, %v4096_v63, -inf }
0x2131   :  { %v4097_v61 = vsel %vm1391_vm4, %v4094_v54, -inf  ;;  %v4095_v34 = vadd.f32 %v14467_v7, %v4092_v53  ;;  %v9864_v53 = vld [vmem:[#allocation28 + $0x3] ss:$0 sm:$0xff] }
0x2132   :  { %4098 = vmax.xlane.f32.xlu0 %v4097_v61 }
0x2133   :  { %v10966_v31 = vpop.f32.mrb[68].mxu1  ;;  %v4100_v32 = vsel %vm1391_vm4, %v4095_v34, -inf }
0x2134   :  { %v4315_v2 = vpop.f32.mrb[69].mxu1  ;;  %4101 = vmax.xlane.f32.xlu1 %v4100_v32  ;;  %v4405_v9 = vpack.c.bf16 %v10966_v31, %v10966_v31 }
0x2135   :  { %v10967_v3 = vpop.f32.mrb[70].mxu1 }
0x2136   :  { %4104 = vmax.xlane.f32.xlu0 %v4103_v4  ;;  %v4318_v5 = vpop.f32.mrb[71].mxu1  ;;  %v4416_v15 = vsel %vm1318_vm2, %v4405_v9, 0  ;;  %v9881_v3 = vld [vmem:[#allocation29 + $0x3] ss:$0 sm:$0xff] }
0x2137   :  { %v4404_v6 = vpack.c.bf16 %v4318_v5, %v4315_v2 }
0x2139   :  { %v4413_v13 = vsel %vm1318_vm2, %v4404_v6, 0  ;;  %11561 = vmatprep.subr.msk.bf16.mxu1 %vm1318_vm2, %v4404_v6 }
0x213a   :  { %10977 = vmatpush3.bf16.xpose.msra.mxu1 %v4413_v13 }
0x213b   :  { %11562 = vmatprep.subr.msk.bf16.mxu1 %vm1318_vm2, %v4405_v9 }
0x2142   :  { %10979 = vmatpush3.bf16.xpose.msra.mxu1 %v4416_v15 }
0x21bf   :  { %v4099_v16 = vpop.xlane.xlu0 %4098 }
0x21c0   :  { %v4106_v14 = vsub.f32 %v4094_v54, %v4099_v16 }
0x21c1   :  { %v4102_v39 = vpop.xlane.xlu1 %4101 }
0x21c2   :  { %v4109_v17 = vmul.f32 1.442695, %v4106_v14  ;;  %v4107_v11 = vsub.f32 %v4095_v34, %v4102_v39 }
0x21c3   :  { %v4105_v19 = vpop.xlane.xlu0 %4104 }
0x21c4   :  { %11991 = vpow2.f32 %v4109_v17  ;;  %v4111_v18 = vmul.f32 1.442695, %v4107_v11  ;;  %v4108_v22 = vsub.f32 %v4096_v63, %v4105_v19 }
0x21c6   :  { %11993 = vpow2.f32 %v4111_v18  ;;  %v4113_v29 = vmul.f32 1.442695, %v4108_v22 }
0x21c8   :  { %11995 = vpow2.f32 %v4113_v29 }
0x21ce   :  { %v11992_v55 = vpop.eup %11991 }
0x21cf   :  { %v4115_v30 = vsel %vm1391_vm4, %v11992_v55, 0.0 }
0x21d0   :  { %v11994_v1 = vpop.eup %11993  ;;  %4116 = vadd.xlane.f32.xlu1 %v4115_v30 }
0x21d1   :  { %v4118_v58 = vsel %vm1391_vm4, %v11994_v1, 0.0 }
0x21d2   :  { %v11996_v59 = vpop.eup %11995  ;;  %4119 = vadd.xlane.f32.xlu0 %v4118_v58 }
0x21d3   :  { %v4121_v24 = vsel %vm1391_vm4, %v11996_v59, 0.0 }
0x21d4   :  { %4122 = vadd.xlane.f32.xlu1 %v4121_v24 }
0x225d   :  { %v4117_v23 = vpop.xlane.xlu1 %4116 }
0x225e   :  { %11997 = vrcp.f32 %v4117_v23 }
0x225f   :  { %v4120_v27 = vpop.xlane.xlu0 %4119 }
0x2260   :  { %11999 = vrcp.f32 %v4120_v27 }
0x2261   :  { %v4123_v35 = vpop.xlane.xlu1 %4122 }
0x2262   :  { %12001 = vrcp.f32 %v4123_v35 }
0x2268   :  { %v11998_v36 = vpop.eup %11997 }
0x2269   :  { %v4127_v38 = vmul.f32 %v11998_v36, %v11992_v55 }
0x226a   :  { %v12000_v37 = vpop.eup %11999 }
0x226b   :  { %v4128_v0 = vmul.f32 %v12000_v37, %v11994_v1 }
0x226c   :  { %v12002_v40 = vpop.eup %12001 }
0x226d   :  { %v4129_v42 = vmul.f32 %v12002_v40, %v11996_v59  ;;  %v4130_v45 = vpack.c.bf16 %v4128_v0, %v4127_v38 }
0x226f   :  { %10948 = vmatprep.mubr.msk.bf16.mxu0 %vm1391_vm4, %v4130_v45  ;;  %v4131_v46 = vpack.c.bf16 %v4129_v42, %v4129_v42 }
0x2271   :  { %10949 = vmatmul.mubr.msk.bf16.vlgmr.msra.gmra.mrb[84].mxu0 %vm1391_vm4, %v4131_v46 }
0x2272   :  { %10953 = vmatpush3.bf16.msra.mxu0 %v11791_v26  ;;  %10956 = vmatprep.mubr.msk.bf16.mxu0 %vm1041_vm1, %v14436_v33 }
0x2273   :  { %10954 = vmatprep.subr.bf16.mxu0 %v11792_v47 }
0x2276   :  { %10955 = vmatpush3.bf16.msra.mxu0 %v11792_v47 }
0x2277   :  { %10968 = vmatprep.subr.bf16.mxu0 %v11793_v8 }
0x2279   :  { %10957 = vmatmul.mubr.msk.bf16.vlgmr.msra.gmra.mrb[88].mxu0 %vm1041_vm1, %v14438_v56 }
0x227a   :  { %10969 = vmatpush3.bf16.msra.mxu0 %v11793_v8  ;;  %10972 = vmatprep.mubr.msk.bf16.mxu0 %vm1041_vm1, %v14436_v33 }
0x227b   :  { %10970 = vmatprep.subr.bf16.mxu0 %v11794_v48 }
0x227e   :  { %10971 = vmatpush3.bf16.msra.mxu0 %v11794_v48 }
0x2281   :  { %10973 = vmatmul.mubr.msk.bf16.vlgmr.msra.gmra.mrb[92].mxu0 %vm1041_vm1, %v14438_v56 }
0x2344   :  { %v14584_v49 = vpop.f32.mrb[84].mxu0 }
0x2345   :  { %v14586_v10 = vpop.f32.mrb[85].mxu0 }
0x2346   :  { %v10951_v12 = vpop.f32.mrb[86].mxu0 }
0x2347   :  { %v14588_v50 = vpop.f32.mrb[87].mxu0 }
0x2348   :  { %v11726_v51 = vpack.i.bf16 %v14588_v50, %v14586_v10  ;;  %v11796_v50 = vld [vmem:[%s15444_s17 + $0x8] sm:$0xff]  }
0x234c   :  { %v10958_v52 = vpop.f32.mrb[88].mxu0 }
0x234d   :  { %v4250_v54 = vpop.f32.mrb[89].mxu0  ;;  %v4259_v33 = vadd.f32 %v10958_v52, %v9864_v53 }
0x234e   :  { %v10959_v61 = vpop.f32.mrb[90].mxu0  ;;  %v4251_v63 = vadd.f32 %v9864_v53, %v4250_v54 }
0x234f   :  { %v4253_v34 = vpop.f32.mrb[91].mxu0  ;;  %v4403_v56 = vpack.c.bf16 %v4259_v33, %v4259_v33 }
0x2350   :  { %v4254_v31 = vadd.f32 %v9864_v53, %v4253_v34 }
0x2352   :  { %v4402_v32 = vpack.c.bf16 %v4254_v31, %v4251_v63 }
0x2354   :  { %v10974_v2 = vpop.f32.mrb[92].mxu0  ;;  %10980 = vmatprep.mubr.msk.bf16.mxu1 %vm1318_vm2, %v4402_v32 }
0x2355   :  { %v4388_v4 = vpop.f32.mrb[93].mxu0  ;;  %10981 = vmatmul.mubr.msk.bf16.vlgmr.msra.gmra.mrb[72].mxu1 %vm1318_vm2, %v4403_v56  ;;  %v4397_v9 = vadd.f32 %v10974_v2, %v9881_v3 }
0x2356   :  { %v10975_v5 = vpop.f32.mrb[94].mxu0  ;;  %v4389_v13 = vadd.f32 %v9881_v3, %v4388_v4 }
0x2357   :  { %v4391_v6 = vpop.f32.mrb[95].mxu0  ;;  %v4508_v14 = vpack.c.bf16 %v4397_v9, %v4397_v9 }
0x2358   :  { %v4392_v15 = vadd.f32 %v9881_v3, %v4391_v6 }
0x2359   :  { %v4516_v39 = vsel %vm1435_vm3, %v4508_v14, 0 }
0x235a   :  { %v4507_v16 = vpack.c.bf16 %v4392_v15, %v4389_v13 }
0x235c   :  { %10984 = vmatprep.subr.bf16.mxu0 %v4507_v16 }
0x235d   :  { %10985 = vmatpush3.bf16.msra.mxu0 %v4507_v16 }
0x235e   :  { %11563 = vmatprep.subr.msk.bf16.mxu0 %vm1435_vm3, %v4508_v14 }
0x2361   :  { %10987 = vmatpush3.bf16.msra.mxu0 %v4516_v39 }
0x2428   :  { %v10982_v17 = vpop.f32.mrb[72].mxu1 }
0x2429   :  { %v4452_v11 = vpop.f32.mrb[73].mxu1  ;;  %v4468_v19 = vmul.f32 0.35355338, %v10982_v17 }
0x242a   :  { %v4466_v18 = vmul.f32 0.35355338, %v4452_v11  ;;  %v10983_v22 = vpop.f32.mrb[74].mxu1 }
0x242b   :  { %v4455_v29 = vpop.f32.mrb[75].mxu1  ;;  %v4471_v59 = vadd.f32 %v14467_v7, %v4468_v19 }
0x242c   :  { %v4467_v55 = vmul.f32 0.35355338, %v4455_v29  ;;  %v4469_v30 = vadd.f32 %v14467_v7, %v4466_v18 }
0x242d   :  { %v4478_v26 = vsel %vm1391_vm4, %v4471_v59, -inf }
0x242e   :  { %v4472_v1 = vsel %vm1391_vm4, %v4469_v30, -inf  ;;  %v4470_v58 = vadd.f32 %v14467_v7, %v4467_v55 }
0x242f   :  { %4473 = vmax.xlane.f32.xlu0 %v4472_v1 }
0x2430   :  { %v4475_v24 = vsel %vm1391_vm4, %v4470_v58, -inf }
0x2431   :  { %4476 = vmax.xlane.f32.xlu1 %v4475_v24 }
0x2433   :  { %4479 = vmax.xlane.f32.xlu0 %v4478_v26 }
0x24bc   :  { %v4474_v23 = vpop.xlane.xlu0 %4473 }
0x24bd   :  { %v4481_v27 = vsub.f32 %v4469_v30, %v4474_v23 }
0x24be   :  { %v4477_v35 = vpop.xlane.xlu1 %4476 }
0x24bf   :  { %v4484_v36 = vmul.f32 1.442695, %v4481_v27  ;;  %v4482_v37 = vsub.f32 %v4470_v58, %v4477_v35 }
0x24c0   :  { %v4480_v38 = vpop.xlane.xlu0 %4479 }
0x24c1   :  { %12003 = vpow2.f32 %v4484_v36  ;;  %v4486_v0 = vmul.f32 1.442695, %v4482_v37  ;;  %v4483_v40 = vsub.f32 %v4471_v59, %v4480_v38 }
0x24c3   :  { %12005 = vpow2.f32 %v4486_v0  ;;  %v4488_v42 = vmul.f32 1.442695, %v4483_v40 }
0x24c5   :  { %12007 = vpow2.f32 %v4488_v42 }
0x24cb   :  { %v12004_v7 = vpop.eup %12003 }
0x24cc   :  { %v4490_v45 = vsel %vm1391_vm4, %v12004_v7, 0.0 }
0x24cd   :  { %v12006_v46 = vpop.eup %12005  ;;  %4491 = vadd.xlane.f32.xlu1 %v4490_v45 }
0x24ce   :  { %v4493_v47 = vsel %vm1391_vm4, %v12006_v46, 0.0 }
0x24cf   :  { %v12008_v8 = vpop.eup %12007  ;;  %4494 = vadd.xlane.f32.xlu0 %v4493_v47 }
0x24d0   :  { %v4496_v48 = vsel %vm1391_vm4, %v12008_v8, 0.0 }
0x24d1   :  { %4497 = vadd.xlane.f32.xlu1 %v4496_v48 }
0x24e2   :  { %4573 = vrot.lane.b32.xlu1 %v14540_v20, %s13407_s8 }
0x24e5   :  { %11722 = vrot.lane.b32.xlu0 %v11721_v28, %s13407_s8 }
0x24e6   :  { %11727 = vrot.lane.b32.xlu1 %v11726_v51, %s13379_s0 }
0x24ea   :  { %4585 = vrot.lane.b32.xlu1 %v14584_v49, %s13379_s0  ;;  %v11795_v49 = vld [vmem:[%s15444_s17] sm:$0xff]  }
0x24eb   :  { %10992 = vmatprep.subr.bf16.mxu0 %v11795_v49 }
0x255a   :  { %v4492_v12 = vpop.xlane.xlu1 %4491 }
0x255b   :  { %12009 = vrcp.f32 %v4492_v12 }
0x255c   :  { %v4495_v52 = vpop.xlane.xlu0 %4494 }
0x255d   :  { %12011 = vrcp.f32 %v4495_v52 }
0x255e   :  { %v4498_v20 = vpop.xlane.xlu1 %4497 }
0x255f   :  { %12013 = vrcp.f32 %v4498_v20 }
0x2560   :  { %v11723_v3 = vpop.permute.xlu0 %11722 }
0x2561   :  { %v11725_v5 = vunpack.i.h.bf16 %v11723_v3  ;;  %v11724_v6 = vunpack.i.l.bf16 %v11723_v3  ;;  %v9895_v3 = vld [vmem:[#allocation32] ss:$0 sm:$0xff] }
0x2562   :  { %v4574_v56 = vpop.permute.xlu1 %4573 }
0x2563   :  { %v4603_v16 = vsel %vm1318_vm2, %v14501_v62, %v11725_v5  ;;  %v4604_v14 = vsel %vm1318_vm2, %v14497_v57, %v4574_v56  ;;  %v4602_v17 = vsel %vm1318_vm2, %v14499_v60, %v11724_v6  ;;  %v9890_v60 = vld [vmem:[#allocation31] ss:$0 sm:$0xff] }
0x2565   :  { %v12010_v53 = vpop.eup %12009 }
0x2566   :  { %v4502_v21 = vmul.f32 %v12010_v53, %v12004_v7  ;;  %v11728_v2 = vpop.permute.xlu1 %11727 }
0x2567   :  { %v12012_v54 = vpop.eup %12011  ;;  %v11730_v9 = vunpack.i.h.bf16 %v11728_v2  ;;  %v11729_v13 = vunpack.i.l.bf16 %v11728_v2 }
0x2568   :  { %v4503_v25 = vmul.f32 %v12012_v54, %v12006_v46 }
0x2569   :  { %v12014_v28 = vpop.eup %12013  ;;  %v4606_v22 = vsel %vm2651_vm5, %v4603_v16, %v11730_v9  ;;  %v4605_v29 = vsel %vm2651_vm5, %v4602_v17, %v11729_v13 }
0x256a   :  { %v4504_v61 = vmul.f32 %v12014_v28, %v12008_v8  ;;  %v4505_v33 = vpack.c.bf16 %v4503_v25, %v4502_v21  ;;  %v4586_v4 = vpop.permute.xlu1 %4585  ;;  %v11797_v25 = vld [vmem:[%s15445_s25] sm:$0xff]   ;;  %v11798_v28 = vld [vmem:[%s15445_s25 + $0x8] sm:$0xff]  }
0x256b   :  { %v4607_v11 = vsel %vm2651_vm5, %v4604_v14, %v4586_v4  ;;  %11000 = vmatprep.subr.bf16.mxu1 %v11797_v25 }
0x256c   :  { %10988 = vmatprep.mubr.msk.bf16.mxu0 %vm1391_vm4, %v4505_v33  ;;  %v4506_v10 = vpack.c.bf16 %v4504_v61, %v4504_v61  ;;  %11001 = vmatpush3.bf16.msra.mxu1 %v11797_v25  ;;  %v13434_v61 = vmov 0.0  }
0x256d   :  { %11002 = vmatprep.subr.bf16.mxu1 %v11798_v28 }
0x256e   :  { %10989 = vmatmul.mubr.msk.bf16.vlgmr.msra.gmra.mrb[96].mxu0 %vm1391_vm4, %v4506_v10 }
0x256f   :  { %10993 = vmatpush3.bf16.msra.mxu0 %v11795_v49 }
0x2570   :  { %10994 = vmatprep.subr.bf16.mxu0 %v11796_v50  ;;  %11003 = vmatpush3.bf16.msra.mxu1 %v11798_v28 }
0x2571   :  { %11020 = vmatprep.subr.bf16.mxu1 %v13434_v61 }
0x2573   :  { %10995 = vmatpush3.bf16.msra.mxu0 %v11796_v50 }
0x2641   :  { %v10990_v51 = vpop.f32.mrb[96].mxu0 }
0x2642   :  { %4597 = vrot.lane.b32.xlu1 %v10990_v51, %s13433_s19  ;;  %v4552_v34 = vpop.f32.mrb[97].mxu0 }
0x2643   :  { %v10991_v63 = vpop.f32.mrb[98].mxu0 }
0x2644   :  { %v4555_v31 = vpop.f32.mrb[99].mxu0 }
0x2645   :  { %v11731_v32 = vpack.i.bf16 %v4555_v31, %v4552_v34 }
0x2647   :  { %11732 = vrot.lane.b32.xlu0 %v11731_v32, %s13433_s19 }
0x26b4   :  { %v4598_v15 = vpop.permute.xlu1 %4597 }
0x26b5   :  { %v4610_v55 = vsel %vm1391_vm4, %v4607_v11, %v4598_v15  ;;  %v9896_v15 = vld [vmem:[#allocation34] ss:$0 sm:$0xff] }
0x26b6   :  { %v4616_v57 = vpack.c.bf16 %v4610_v55, %v4610_v55  ;;  %v14667_v55 = vld [vmem:[#allocation7] sm:$0xff] }
0x26b9   :  { %v11733_v39 = vpop.permute.xlu0 %11732 }
0x26ba   :  { %v11735_v19 = vunpack.i.h.bf16 %v11733_v39  ;;  %v11734_v18 = vunpack.i.l.bf16 %v11733_v39 }
0x26bc   :  { %v4608_v30 = vsel %vm1391_vm4, %v4605_v29, %v11734_v18  ;;  %v4609_v62 = vsel %vm1391_vm4, %v4606_v22, %v11735_v19  ;;  %v11799_v22 = vld [vmem:[%s15446_s1] sm:$0xff]   ;;  %v11800_v29 = vld [vmem:[%s15446_s1 + $0x8] sm:$0xff]  }
0x26bd   :  { %v4615_v1 = vpack.c.bf16 %v4609_v62, %v4608_v30  ;;  %v14672_v30 = vpack.c.bf16 %v14667_v55, %v14667_v55  ;;  %v11801_v62 = vld [vmem:[%s15447_s5] sm:$0xff]  }
0x26bf   :  { %10996 = vmatprep.mubr.msk.bf16.mxu0 %vm1041_vm1, %v4615_v1  ;;  %v11802_v1 = vld [vmem:[%s15447_s5 + $0x8] sm:$0xff]  }
0x26c0   :  { %10997 = vmatmul.mubr.msk.bf16.vlgmr.msra.gmra.mrb[100].mxu0 %vm1041_vm1, %v4616_v57  ;;  %v11803_v57 = vld [vmem:[%s15448_s30] sm:$0xff]  }
0x26c1   :  { %11008 = vmatprep.subr.bf16.mxu0 %v11803_v57 }
0x26c2   :  { %11009 = vmatpush3.bf16.msra.mxu0 %v11803_v57 }
0x2793   :  { %v10998_v58 = vpop.f32.mrb[100].mxu0 }
0x2794   :  { %v4676_v59 = vpop.f32.mrb[101].mxu0  ;;  %v4685_v24 = vadd.f32 %v10998_v58, %v9890_v60  ;;  %v11805_v58 = vld [vmem:[%s15448_s30 + $0x10] sm:$0xff]  }
0x2795   :  { %v4677_v26 = vadd.f32 %v9890_v60, %v4676_v59  ;;  %v10999_v23 = vpop.f32.mrb[102].mxu0  ;;  %v11806_v59 = vld [vmem:[%s15448_s30 + $0x18] sm:$0xff]  }
0x2796   :  { %v4679_v27 = vpop.f32.mrb[103].mxu0  ;;  %v14641_v37 = vadd.f32 %v4685_v24, %v14414_v43  ;;  %v9897_v24 = vld [vmem:[#allocation35] ss:$0 sm:$0xff] }
0x2797   :  { %v14638_v35 = vadd.f32 %v4677_v26, %v14411_v41  ;;  %v4680_v36 = vadd.f32 %v9890_v60, %v4679_v27  ;;  %v11804_v60 = vld [vmem:[%s15448_s30 + $0x8] sm:$0xff]  }
0x2798   :  { %v4701_v42 = vsel %vm1041_vm1, %v14641_v37, 0.0  ;;  %11010 = vmatprep.subr.bf16.mxu0 %v11804_v60 }
0x2799   :  { %v14644_v38 = vadd.f32 %v4680_v36, %v14417_v44  ;;  %v4695_v0 = vsel %vm1041_vm1, %v14638_v35, 0.0  ;;  %11011 = vmatpush3.bf16.msra.mxu0 %v11804_v60 }
0x279a   :  { %4696 = vadd.xlane.f32.xlu0 %v4695_v0  ;;  %11012 = vmatprep.subr.bf16.mxu0 %v11805_v58 }
0x279b   :  { %v4698_v40 = vsel %vm1041_vm1, %v14644_v38, 0.0 }
0x279c   :  { %4699 = vadd.xlane.f32.xlu1 %v4698_v40 }
0x279d   :  { %11013 = vmatpush3.bf16.msra.mxu0 %v11805_v58 }
0x279e   :  { %4702 = vadd.xlane.f32.xlu0 %v4701_v42  ;;  %11014 = vmatprep.subr.bf16.mxu0 %v11806_v59 }
0x27a1   :  { %11015 = vmatpush3.bf16.msra.mxu0 %v11806_v59 }
0x27a2   :  { %11036 = vmatprep.subr.bf16.mxu0 %v13434_v61 }
0x2827   :  { %v4697_v41 = vpop.xlane.xlu0 %4696 }
0x2828   :  { %v4704_v7 = vmul.f32 0.03125, %v4697_v41 }
0x2829   :  { %v4700_v45 = vpop.xlane.xlu1 %4699 }
0x282a   :  { %v4707_v43 = vsub.f32 %v14638_v35, %v4704_v7  ;;  %v4705_v44 = vmul.f32 0.03125, %v4700_v45 }
0x282b   :  { %v4703_v46 = vpop.xlane.xlu0 %4702 }
0x282c   :  { %v4708_v47 = vsub.f32 %v14644_v38, %v4705_v44  ;;  %v4706_v8 = vmul.f32 0.03125, %v4703_v46  ;;  %v4710_v48 = vmul.f32 %v4707_v43, %v4707_v43 }
0x282e   :  { %v4709_v12 = vsub.f32 %v14641_v37, %v4706_v8  ;;  %v4713_v52 = vsel %vm1041_vm1, %v4710_v48, 0.0  ;;  %v4711_v20 = vmul.f32 %v4708_v47, %v4708_v47 }
0x282f   :  { %4714 = vadd.xlane.f32.xlu0 %v4713_v52 }
0x2830   :  { %v4712_v53 = vmul.f32 %v4709_v12, %v4709_v12  ;;  %v4716_v54 = vsel %vm1041_vm1, %v4711_v20, 0.0 }
0x2832   :  { %v4719_v21 = vsel %vm1041_vm1, %v4712_v53, 0.0 }
0x2833   :  { %4717 = vadd.xlane.f32.xlu0 %v4716_v54  ;;  %4720 = vadd.xlane.f32.xlu1 %v4719_v21 }
0x28bc   :  { %v4715_v33 = vpop.xlane.xlu0 %4714 }
0x28bd   :  { %v4722_v10 = vmul.f32 0.03125, %v4715_v33 }
0x28bf   :  { %v4725_v49 = vadd.f32 1e-05, %v4722_v10 }
0x28c0   :  { %v4721_v50 = vpop.xlane.xlu1 %4720  ;;  %v4718_v51 = vpop.xlane.xlu0 %4717 }
0x28c1   :  { %12015 = vrsqrt.f32 %v4725_v49  ;;  %v4724_v34 = vmul.f32 0.03125, %v4721_v50  ;;  %v4723_v63 = vmul.f32 0.03125, %v4718_v51  ;;  %v9915_v49 = vld [vmem:[#allocation43] ss:$0 sm:$0xff] }
0x28c3   :  { %v4727_v31 = vadd.f32 1e-05, %v4724_v34  ;;  %v4726_v32 = vadd.f32 1e-05, %v4723_v63 }
0x28c5   :  { %12017 = vrsqrt.f32 %v4727_v31 }
0x28c6   :  { %12019 = vrsqrt.f32 %v4726_v32 }
0x28cb   :  { %v12016_v56 = vpop.eup %12015 }
0x28cc   :  { %v4731_v2 = vmul.f32 %v12016_v56, %v4707_v43  ;;  %v9911_v56 = vld [vmem:[#allocation41] ss:$0 sm:$0xff] }
0x28ce   :  { %v4740_v13 = vmul.f32 %v9895_v3, %v4731_v2 }
0x28cf   :  { %v12018_v4 = vpop.eup %12017 }
0x28d0   :  { %v12020_v5 = vpop.eup %12019  ;;  %v4733_v6 = vmul.f32 %v12018_v4, %v4709_v12  ;;  %v4749_v17 = vadd.f32 %v9896_v15, %v4740_v13 }
0x28d1   :  { %v4732_v9 = vmul.f32 %v12020_v5, %v4708_v47 }
0x28d2   :  { %v4742_v16 = vmul.f32 %v9895_v3, %v4733_v6 }
0x28d3   :  { %v4741_v14 = vmul.f32 %v9895_v3, %v4732_v9 }
0x28d4   :  { %v4751_v39 = vadd.f32 %v9896_v15, %v4742_v16 }
0x28d5   :  { %v4750_v11 = vadd.f32 %v9896_v15, %v4741_v14 }
0x28d6   :  { %v4757_v19 = vpack.c.bf16 %v4751_v39, %v4751_v39 }
0x28d7   :  { %v4756_v18 = vpack.c.bf16 %v4750_v11, %v4749_v17 }
0x28d9   :  { %11004 = vmatprep.mubr.msk.bf16.mxu1 %vm1041_vm1, %v4756_v18 }
0x28da   :  { %11005 = vmatmul.mubr.msk.bf16.vlgmr.msra.gmra.mrb[76].mxu1 %vm1041_vm1, %v4757_v19 }
0x28db   :  { %11021 = vmatpush3.bf16.msra.mxu1 %v11799_v22  ;;  %11024 = vmatprep.mubr.msk.bf16.mxu1 %vm13435_vm7, %v13434_v61 }
0x28dc   :  { %11022 = vmatprep.subr.bf16.mxu1 %v13434_v61 }
0x28df   :  { %11023 = vmatpush3.bf16.msra.mxu1 %v11800_v29 }
0x28e0   :  { %11028 = vmatprep.subr.bf16.mxu1 %v13434_v61 }
0x28e2   :  { %11025 = vmatmul.mubr.msk.bf16.vlgmr.msra.gmra.mrb[80].mxu1 %vm1041_vm1, %v14672_v30 }
0x28e3   :  { %11029 = vmatpush3.bf16.msra.mxu1 %v11801_v62  ;;  %11032 = vmatprep.mubr.msk.bf16.mxu1 %vm13435_vm7, %v13434_v61  ;;  %v11807_v62 = vld [vmem:[%s15449_s2] sm:$0xff]  }
0x28e4   :  { %11030 = vmatprep.subr.bf16.mxu1 %v13434_v61 }
0x28e7   :  { %11031 = vmatpush3.bf16.msra.mxu1 %v11802_v1  ;;  %v11808_v1 = vld [vmem:[%s15449_s2 + $0x8] sm:$0xff]  }
0x28e8   :  { %11044 = vmatprep.subr.bf16.mxu1 %v13434_v61 }
0x28ea   :  { %11033 = vmatmul.mubr.msk.bf16.vlgmr.msra.gmra.mrb[84].mxu1 %vm1041_vm1, %v14672_v30 }
0x28eb   :  { %11046 = vmatprep.mubr.msk.bf16.mxu1 %vm13435_vm7, %v13434_v61 }
0x29ad   :  { %v11006_v26 = vpop.f32.mrb[76].mxu1 }
0x29ae   :  { %v4826_v23 = vadd.f32 %v11006_v26, %v9897_v24  ;;  %v4817_v27 = vpop.f32.mrb[77].mxu1 }
0x29af   :  { %v4818_v36 = vadd.f32 %v9897_v24, %v4817_v27  ;;  %v11007_v0 = vpop.f32.mrb[78].mxu1 }
0x29b0   :  { %v4833_v40 = vmul.f32 %v4826_v23, %v4826_v23  ;;  %v4820_v42 = vpop.f32.mrb[79].mxu1 }
0x29b1   :  { %v4831_v41 = vmul.f32 %v4818_v36, %v4818_v36  ;;  %v4821_v7 = vadd.f32 %v9897_v24, %v4820_v42 }
0x29b2   :  { %v4836_v45 = vmul.f32 %v4833_v40, %v4826_v23 }
0x29b3   :  { %v4834_v43 = vmul.f32 %v4831_v41, %v4818_v36  ;;  %v4832_v44 = vmul.f32 %v4821_v7, %v4821_v7 }
0x29b4   :  { %v4839_v46 = vmul.f32 0.044715, %v4836_v45 }
0x29b5   :  { %v4837_v47 = vmul.f32 0.044715, %v4834_v43  ;;  %v4835_v8 = vmul.f32 %v4832_v44, %v4821_v7  ;;  %v5077_v48 = vpop.f32.mrb[80].mxu1 }
0x29b6   :  { %v4842_v12 = vadd.f32 %v4839_v46, %v4826_v23  ;;  %v11026_v52 = vpop.f32.mrb[81].mxu1  ;;  %v5078_v4 = vadd.f32 %v9911_v56, %v5077_v48  ;;  %v9919_v48 = vld [vmem:[#allocation44] ss:$0 sm:$0xff] }
0x29b7   :  { %v4840_v20 = vadd.f32 %v4837_v47, %v4818_v36  ;;  %v4838_v53 = vmul.f32 0.044715, %v4835_v8  ;;  %v5080_v54 = vpop.f32.mrb[82].mxu1 }
0x29b8   :  { %v4845_v21 = vmul.f32 0.7978846, %v4842_v12  ;;  %v11027_v25 = vpop.f32.mrb[83].mxu1  ;;  %v5209_v39 = vpack.c.bf16 %v5078_v4, %v5078_v4  ;;  %v11811_v54 = vld [vmem:[%s15446_s1 + $0x10] sm:$0xff]  }
0x29b9   :  { %v4843_v28 = vmul.f32 0.7978846, %v4840_v20  ;;  %v4841_v33 = vadd.f32 %v4838_v53, %v4821_v7  ;;  %v9937_v4 = vld [vmem:[#allocation43 + $0x1] ss:$0 sm:$0xff] }
0x29ba   :  { %12021 = vtanh.f32 %v4845_v21  ;;  %v11812_v21 = vld [vmem:[%s15446_s1 + $0x18] sm:$0xff]  }
0x29bb   :  { %12023 = vtanh.f32 %v4843_v28  ;;  %v4844_v10 = vmul.f32 0.7978846, %v4841_v33 }
0x29bd   :  { %12025 = vtanh.f32 %v4844_v10  ;;  %v5140_v50 = vpop.f32.mrb[84].mxu1  ;;  %v11809_v10 = vld [vmem:[%s15447_s5 + $0x10] sm:$0xff]  }
0x29be   :  { %v5141_v51 = vadd.f32 %v9915_v49, %v5140_v50  ;;  %v11034_v34 = vpop.f32.mrb[85].mxu1  ;;  %v11810_v50 = vld [vmem:[%s15447_s5 + $0x18] sm:$0xff]  }
0x29bf   :  { %v5143_v63 = vpop.f32.mrb[86].mxu1 }
0x29c0   :  { %v5210_v31 = vpack.c.bf16 %v5141_v51, %v5141_v51  ;;  %v11035_v32 = vpop.f32.mrb[87].mxu1 }
0x29c2   :  { %v5215_v2 = vsel %vm1318_vm2, %v5210_v31, 0 }
0x29c3   :  { %11045 = vmatpush3.bf16.xpose.msra.mxu1 %v5215_v2 }
0x29c4   :  { %v12022_v3 = vpop.eup %12021  ;;  %11056 = vmatprep.subr.bf16.mxu1 %v13434_v61 }
0x29c5   :  { %v12024_v5 = vpop.eup %12023  ;;  %v4851_v6 = vadd.f32 1.0, %v12022_v3 }
0x29c6   :  { %v4849_v9 = vadd.f32 1.0, %v12024_v5 }
0x29c7   :  { %v12026_v13 = vpop.eup %12025  ;;  %v4854_v15 = vmul.f32 0.5, %v4851_v6 }
0x29c8   :  { %v4852_v16 = vmul.f32 0.5, %v4849_v9  ;;  %v4850_v14 = vadd.f32 1.0, %v12026_v13 }
0x29c9   :  { %v4857_v11 = vmul.f32 %v4854_v15, %v4826_v23  ;;  %v14710_v23 = vld [vmem:[#allocation37] ss:$0 sm:$0xff]  ;;  %v9929_v15 = vld [vmem:[#allocation41 + $0x1] ss:$0 sm:$0xff] }
0x29ca   :  { %v4853_v17 = vmul.f32 0.5, %v4850_v14  ;;  %11047 = vmatmul.mubr.msk.bf16.vlgmr.msra.gmra.mrb[88].mxu1 %vm1318_vm2, %v5209_v39  ;;  %v4855_v19 = vmul.f32 %v4852_v16, %v4818_v36 }
0x29cb   :  { %11060 = vmatprep.mubr.msk.bf16.mxu1 %vm13435_vm7, %v13434_v61  ;;  %v4867_v29 = vpack.c.bf16 %v4857_v11, %v4857_v11  ;;  %11057 = vmatpush3.bf16.msra.mxu1 %v11811_v54 }
0x29cc   :  { %v4856_v18 = vmul.f32 %v4853_v17, %v4821_v7  ;;  %11058 = vmatprep.subr.bf16.mxu1 %v13434_v61 }
0x29ce   :  { %v4866_v22 = vpack.c.bf16 %v4856_v18, %v4855_v19  ;;  %v11813_v19 = vld [vmem:[%s15449_s2 + $0x10] sm:$0xff]   ;;  %v11814_v18 = vld [vmem:[%s15449_s2 + $0x18] sm:$0xff]  }
0x29cf   :  { %11059 = vmatpush3.bf16.msra.mxu1 %v11812_v21  ;;  %v11816_v21 = vld [vmem:[%s15447_s5 + $0x28] sm:$0xff]  }
0x29d0   :  { %11016 = vmatprep.mubr.msk.bf16.mxu0 %vm2946_vm6, %v4866_v22  ;;  %11072 = vmatprep.subr.bf16.mxu1 %v13434_v61 }
0x29d1   :  { %11017 = vmatmul.mubr.msk.bf16.vlgmr.msra.gmra.mrb[104].mxu0 %vm2946_vm6, %v4867_v29 }
0x29d2   :  { %11040 = vmatprep.mubr.msk.bf16.mxu0 %vm13435_vm7, %v13434_v61  ;;  %11037 = vmatpush3.bf16.msra.mxu0 %v11807_v62 }
0x29d3   :  { %11038 = vmatprep.subr.bf16.mxu0 %v13434_v61  ;;  %11061 = vmatmul.mubr.msk.bf16.vlgmr.msra.gmra.mrb[92].mxu1 %vm1041_vm1, %v14672_v30 }
0x29d4   :  { %11076 = vmatprep.mubr.msk.bf16.mxu1 %vm13435_vm7, %v13434_v61  ;;  %11073 = vmatpush3.bf16.msra.mxu1 %v11813_v19 }
0x29d5   :  { %11074 = vmatprep.subr.bf16.mxu1 %v13434_v61 }
0x29d6   :  { %11039 = vmatpush3.bf16.msra.mxu0 %v11808_v1 }
0x29d7   :  { %11050 = vmatprep.subr.bf16.mxu0 %v13434_v61 }
0x29d8   :  { %11075 = vmatpush3.bf16.msra.mxu1 %v11814_v18 }
0x29d9   :  { %11041 = vmatmul.mubr.msk.bf16.vlgmr.msra.gmra.mrb[108].mxu0 %vm1041_vm1, %v14672_v30  ;;  %11086 = vmatprep.subr.bf16.mxu1 %v13434_v61 }
0x29da   :  { %11052 = vmatprep.mubr.msk.bf16.mxu0 %vm13435_vm7, %v13434_v61 }
0x29db   :  { %11077 = vmatmul.mubr.msk.bf16.vlgmr.msra.gmra.mrb[96].mxu1 %vm1041_vm1, %v14672_v30 }
0x29dc   :  { %11088 = vmatprep.mubr.msk.bf16.mxu1 %vm13435_vm7, %v13434_v61 }
0x2a9d   :  { %v5251_v57 = vpop.f32.mrb[88].mxu1 }
0x2a9e   :  { %v5257_v60 = vmul.f32 0.35355338, %v5251_v57  ;;  %v11048_v58 = vpop.f32.mrb[89].mxu1 }
0x2a9f   :  { %v5254_v59 = vpop.f32.mrb[90].mxu1  ;;  %v9945_v58 = vld [vmem:[#allocation44 + $0x1] ss:$0 sm:$0xff] }
0x2aa0   :  { %v11049_v24 = vpop.f32.mrb[91].mxu1  ;;  %v5258_v26 = vsel %vm1318_vm2, %v5257_v60, -inf }
0x2aa1   :  { %5259 = vmax.xlane.f32.xlu0 %v5258_v26 }
0x2aa4   :  { %v14712_v27 = vpop.f32.mrb[104].mxu0 }
0x2aa5   :  { %v4939_v36 = vpop.f32.mrb[105].mxu0 }
0x2aa6   :  { %v14715_v0 = vadd.f32 %v14710_v23, %v4939_v36  ;;  %v11019_v40 = vpop.f32.mrb[106].mxu0  ;;  %v5376_v51 = vpop.f32.mrb[92].mxu1 }
0x2aa7   :  { %v14717_v42 = vpop.f32.mrb[107].mxu0  ;;  %v11062_v34 = vpop.f32.mrb[93].mxu1  ;;  %v5377_v17 = vadd.f32 %v9929_v15, %v5376_v51 }
0x2aa8   :  { %v5379_v63 = vpop.f32.mrb[94].mxu1 }
0x2aa9   :  { %v11063_v31 = vpop.f32.mrb[95].mxu1  ;;  %v5512_v11 = vpack.c.bf16 %v5377_v17, %v5377_v17  ;;  %v9963_v63 = vld [vmem:[#allocation43 + $0x2] ss:$0 sm:$0xff] }
0x2aac   :  { %v5203_v46 = vpop.f32.mrb[108].mxu0 }
0x2aad   :  { %v11042_v47 = vpop.f32.mrb[109].mxu0  ;;  %v5204_v52 = vadd.f32 %v9919_v48, %v5203_v46  ;;  %v11818_v48 = vld [vmem:[%s15446_s1 + $0x28] sm:$0xff]  }
0x2aae   :  { %v5206_v8 = vpop.f32.mrb[110].mxu0  ;;  %v5506_v59 = vpop.f32.mrb[96].mxu1 }
0x2aaf   :  { %v11043_v12 = vpop.f32.mrb[111].mxu0  ;;  %v5270_v20 = vpack.c.bf16 %v5204_v52, %v5204_v52  ;;  %v5507_v24 = vadd.f32 %v9945_v58, %v5506_v59  ;;  %v11078_v26 = vpop.f32.mrb[97].mxu1  ;;  %v11817_v8 = vld [vmem:[%s15446_s1 + $0x20] sm:$0xff]  }
0x2ab0   :  { %v5509_v36 = vpop.f32.mrb[98].mxu1  ;;  %v9971_v26 = vld [vmem:[#allocation44 + $0x2] ss:$0 sm:$0xff] }
0x2ab1   :  { %v5275_v53 = vsel %vm1435_vm3, %v5270_v20, 0  ;;  %v5573_v40 = vpack.c.bf16 %v5507_v24, %v5507_v24 }
0x2ab2   :  { %11051 = vmatpush3.bf16.msra.mxu0 %v5275_v53  ;;  %v11815_v53 = vld [vmem:[%s15447_s5 + $0x20] sm:$0xff]  }
0x2ab3   :  { %11064 = vmatprep.subr.bf16.mxu0 %v13434_v61 }
0x2b2e   :  { %v5260_v41 = vpop.xlane.xlu0 %5259 }
0x2b2f   :  { %v5261_v7 = vsub.f32 %v5257_v60, %v5260_v41  ;;  %v11079_v41 = vpop.f32.mrb[99].mxu1 }
0x2b31   :  { %v5262_v45 = vmul.f32 1.442695, %v5261_v7  ;;  %v5578_v7 = vsel %vm1435_vm3, %v5573_v40, 0 }
0x2b32   :  { %11087 = vmatpush3.bf16.msra.mxu1 %v5578_v7 }
0x2b33   :  { %12027 = vpow2.f32 %v5262_v45  ;;  %11100 = vmatprep.subr.bf16.mxu1 %v13434_v61 }
0x2b3d   :  { %v12028_v43 = vpop.eup %12027 }
0x2b3e   :  { %v5264_v44 = vsel %vm1318_vm2, %v12028_v43, 0.0 }
0x2b3f   :  { %5265 = vadd.xlane.f32.xlu1 %v5264_v44 }
0x2bcc   :  { %v5266_v25 = vpop.xlane.xlu1 %5265 }
0x2bcd   :  { %12029 = vrcp.f32 %v5266_v25 }
0x2bd7   :  { %v12030_v28 = vpop.eup %12029 }
0x2bd8   :  { %v5268_v33 = vmul.f32 %v12030_v28, %v12028_v43 }
0x2bda   :  { %v5269_v49 = vpack.c.bf16 %v5268_v33, %v5268_v33 }
0x2bdc   :  { %11053 = vmatmul.mubr.msk.bf16.vlgmr.msra.gmra.mrb[112].mxu0 %vm1318_vm2, %v5269_v49 }
0x2bdd   :  { %11065 = vmatpush3.bf16.msra.mxu0 %v11809_v10  ;;  %11068 = vmatprep.mubr.msk.bf16.mxu0 %vm13435_vm7, %v13434_v61 }
0x2bde   :  { %11066 = vmatprep.subr.bf16.mxu0 %v13434_v61 }
0x2be1   :  { %11067 = vmatpush3.bf16.msra.mxu0 %v11810_v50 }
0x2be2   :  { %11080 = vmatprep.subr.bf16.mxu0 %v13434_v61 }
0x2be4   :  { %11069 = vmatmul.mubr.msk.bf16.vlgmr.msra.gmra.mrb[116].mxu0 %vm1041_vm1, %v14672_v30 }
0x2be5   :  { %11082 = vmatprep.mubr.msk.bf16.mxu0 %vm13435_vm7, %v13434_v61 }
0x2caf   :  { %v14741_v32 = vpop.f32.mrb[112].mxu0 }
0x2cb0   :  { %v11054_v56 = vpop.f32.mrb[113].mxu0 }
0x2cb1   :  { %v5314_v2 = vpop.f32.mrb[114].mxu0 }
0x2cb2   :  { %v11055_v3 = vpop.f32.mrb[115].mxu0 }
0x2cb7   :  { %v5441_v5 = vpop.f32.mrb[116].mxu0 }
0x2cb8   :  { %v5442_v6 = vadd.f32 %v9937_v4, %v5441_v5  ;;  %v11070_v9 = vpop.f32.mrb[117].mxu0  ;;  %v9955_v4 = vld [vmem:[#allocation41 + $0x2] ss:$0 sm:$0xff] }
0x2cb9   :  { %v5444_v13 = vpop.f32.mrb[118].mxu0 }
0x2cba   :  { %v5513_v16 = vpack.c.bf16 %v5442_v6, %v5442_v6  ;;  %v11071_v14 = vpop.f32.mrb[119].mxu0 }
0x2cbb   :  { %v11820_v14 = vld [vmem:[%s15449_s2 + $0x28] sm:$0xff]  }
0x2cbc   :  { %v5518_v39 = vsel %vm1318_vm2, %v5513_v16, 0  ;;  %v11819_v16 = vld [vmem:[%s15449_s2 + $0x20] sm:$0xff]  }
0x2cbd   :  { %11081 = vmatpush3.bf16.xpose.msra.mxu0 %v5518_v39 }
0x2cbe   :  { %11092 = vmatprep.subr.bf16.mxu0 %v13434_v61 }
0x2cc4   :  { %11083 = vmatmul.mubr.msk.bf16.vlgmr.msra.gmra.mrb[120].mxu0 %vm1318_vm2, %v5512_v11 }
0x2cc5   :  { %11096 = vmatprep.mubr.msk.bf16.mxu0 %vm13435_vm7, %v13434_v61  ;;  %11093 = vmatpush3.bf16.msra.mxu0 %v11817_v8  ;;  %v11821_v8 = vld [vmem:[%s15447_s5 + $0x30] sm:$0xff]  }
0x2cc6   :  { %11094 = vmatprep.subr.bf16.mxu0 %v13434_v61 }
0x2cc9   :  { %11095 = vmatpush3.bf16.msra.mxu0 %v11818_v48 }
0x2cca   :  { %11108 = vmatprep.subr.bf16.mxu0 %v13434_v61 }
0x2ccc   :  { %11097 = vmatmul.mubr.msk.bf16.vlgmr.msra.gmra.mrb[124].mxu0 %vm1041_vm1, %v14672_v30 }
0x2ccd   :  { %11112 = vmatprep.mubr.msk.bf16.mxu0 %vm13435_vm7, %v13434_v61  ;;  %11109 = vmatpush3.bf16.msra.mxu0 %v11819_v16 }
0x2cce   :  { %11110 = vmatprep.subr.bf16.mxu0 %v13434_v61 }
0x2cd1   :  { %11111 = vmatpush3.bf16.msra.mxu0 %v11820_v14 }
0x2cd2   :  { %11122 = vmatprep.subr.bf16.mxu0 %v13434_v61 }
0x2cd4   :  { %11113 = vmatmul.mubr.msk.bf16.vlgmr.msra.gmra.mrb[128].mxu0 %vm1041_vm1, %v14672_v30 }
0x2cd5   :  { %11124 = vmatprep.mubr.msk.bf16.mxu0 %vm13435_vm7, %v13434_v61 }
0x2d97   :  { %v5554_v22 = vpop.f32.mrb[120].mxu0 }
0x2d98   :  { %v5560_v29 = vmul.f32 0.35355338, %v5554_v22  ;;  %v11084_v62 = vpop.f32.mrb[121].mxu0 }
0x2d99   :  { %v5557_v1 = vpop.f32.mrb[122].mxu0 }
0x2d9a   :  { %v11085_v57 = vpop.f32.mrb[123].mxu0  ;;  %v5561_v60 = vsel %vm1318_vm2, %v5560_v29, -inf }
0x2d9b   :  { %5562 = vmax.xlane.f32.xlu0 %v5561_v60 }
0x2d9f   :  { %v5679_v25 = vpop.f32.mrb[124].mxu0 }
0x2da0   :  { %v11098_v28 = vpop.f32.mrb[125].mxu0  ;;  %v5680_v13 = vadd.f32 %v9955_v4, %v5679_v25 }
0x2da1   :  { %v5682_v33 = vpop.f32.mrb[126].mxu0 }
0x2da2   :  { %v11099_v10 = vpop.f32.mrb[127].mxu0  ;;  %v5815_v15 = vpack.c.bf16 %v5680_v13, %v5680_v13 }
0x2da3   :  { %v9989_v10 = vld [vmem:[#allocation43 + $0x3] ss:$0 sm:$0xff] }
0x2da7   :  { %v5809_v58 = vpop.f32.mrb[128].mxu0 }
0x2da8   :  { %v11114_v59 = vpop.f32.mrb[129].mxu0  ;;  %v5810_v40 = vadd.f32 %v9971_v26, %v5809_v58 }
0x2da9   :  { %v5812_v24 = vpop.f32.mrb[130].mxu0 }
0x2daa   :  { %v11115_v36 = vpop.f32.mrb[131].mxu0  ;;  %v5876_v41 = vpack.c.bf16 %v5810_v40, %v5810_v40 }
0x2dac   :  { %v5881_v7 = vsel %vm1435_vm3, %v5876_v41, 0 }
0x2dad   :  { %11123 = vmatpush3.bf16.msra.mxu0 %v5881_v7  ;;  %v11827_v7 = vld [vmem:[%s15450_s12] sm:$0xff]  }
0x2dae   :  { %11136 = vmatprep.subr.bf16.mxu0 %v13434_v61 }
0x2e28   :  { %v5563_v45 = vpop.xlane.xlu0 %5562 }
0x2e29   :  { %v5564_v43 = vsub.f32 %v5560_v29, %v5563_v45  ;;  %v11823_v45 = vld [vmem:[%s15446_s1 + $0x30] sm:$0xff]  }
0x2e2b   :  { %v5565_v44 = vmul.f32 1.442695, %v5564_v43  ;;  %v11824_v43 = vld [vmem:[%s15446_s1 + $0x38] sm:$0xff]  }
0x2e2d   :  { %12031 = vpow2.f32 %v5565_v44 }
0x2e37   :  { %v12032_v46 = vpop.eup %12031 }
0x2e38   :  { %v5567_v47 = vsel %vm1318_vm2, %v12032_v46, 0.0 }
0x2e39   :  { %5568 = vadd.xlane.f32.xlu1 %v5567_v47 }
0x2ec6   :  { %v5569_v12 = vpop.xlane.xlu1 %5568 }
0x2ec7   :  { %12033 = vrcp.f32 %v5569_v12  ;;  %v11822_v12 = vld [vmem:[%s15447_s5 + $0x38] sm:$0xff]  }
0x2ed1   :  { %v12034_v52 = vpop.eup %12033 }
0x2ed2   :  { %v5571_v20 = vmul.f32 %v12034_v52, %v12032_v46 }
0x2ed4   :  { %v5572_v54 = vpack.c.bf16 %v5571_v20, %v5571_v20 }
0x2ed6   :  { %11089 = vmatmul.mubr.msk.bf16.vlgmr.msra.gmra.mrb[100].mxu1 %vm1318_vm2, %v5572_v54 }
0x2ed7   :  { %11101 = vmatpush3.bf16.msra.mxu1 %v11815_v53  ;;  %11104 = vmatprep.mubr.msk.bf16.mxu1 %vm13435_vm7, %v13434_v61 }
0x2ed8   :  { %11102 = vmatprep.subr.bf16.mxu1 %v13434_v61 }
0x2edb   :  { %11103 = vmatpush3.bf16.msra.mxu1 %v11816_v21 }
0x2edc   :  { %11116 = vmatprep.subr.bf16.mxu1 %v13434_v61 }
0x2ede   :  { %11105 = vmatmul.mubr.msk.bf16.vlgmr.msra.gmra.mrb[104].mxu1 %vm1041_vm1, %v14672_v30 }
0x2edf   :  { %11118 = vmatprep.mubr.msk.bf16.mxu1 %vm13435_vm7, %v13434_v61 }
0x2fa9   :  { %v14779_v49 = vpop.f32.mrb[100].mxu1 }
0x2faa   :  { %v11090_v50 = vpop.f32.mrb[101].mxu1 }
0x2fab   :  { %v5617_v51 = vpop.f32.mrb[102].mxu1 }
0x2fac   :  { %v11091_v34 = vpop.f32.mrb[103].mxu1 }
0x2fb1   :  { %v5744_v31 = vpop.f32.mrb[104].mxu1 }
0x2fb2   :  { %v5745_v56 = vadd.f32 %v9963_v63, %v5744_v31  ;;  %v11106_v2 = vpop.f32.mrb[105].mxu1  ;;  %v9981_v31 = vld [vmem:[#allocation41 + $0x3] ss:$0 sm:$0xff] }
0x2fb3   :  { %v5747_v3 = vpop.f32.mrb[106].mxu1 }
0x2fb4   :  { %v5816_v5 = vpack.c.bf16 %v5745_v56, %v5745_v56  ;;  %v11107_v6 = vpop.f32.mrb[107].mxu1 }
0x2fb5   :  { %v11825_v6 = vld [vmem:[%s15449_s2 + $0x30] sm:$0xff]  }
0x2fb6   :  { %v5821_v9 = vsel %vm1318_vm2, %v5816_v5, 0 }
0x2fb7   :  { %11117 = vmatpush3.bf16.xpose.msra.mxu1 %v5821_v9  ;;  %v11826_v9 = vld [vmem:[%s15449_s2 + $0x38] sm:$0xff]  }
0x2fb8   :  { %11128 = vmatprep.subr.bf16.mxu1 %v13434_v61 }
0x2fbe   :  { %11119 = vmatmul.mubr.msk.bf16.vlgmr.msra.gmra.mrb[108].mxu1 %vm1318_vm2, %v5815_v15 }
0x2fbf   :  { %11132 = vmatprep.mubr.msk.bf16.mxu1 %vm13435_vm7, %v13434_v61  ;;  %11129 = vmatpush3.bf16.msra.mxu1 %v11823_v45  ;;  %v11828_v45 = vld [vmem:[%s15450_s12 + $0x8] sm:$0xff]  }
0x2fc0   :  { %11130 = vmatprep.subr.bf16.mxu1 %v13434_v61 }
0x2fc3   :  { %11131 = vmatpush3.bf16.msra.mxu1 %v11824_v43 }
0x2fc4   :  { %11144 = vmatprep.subr.bf16.mxu1 %v13434_v61 }
0x2fc6   :  { %11133 = vmatmul.mubr.msk.bf16.vlgmr.msra.gmra.mrb[112].mxu1 %vm1041_vm1, %v14672_v30 }
0x2fc7   :  { %11148 = vmatprep.mubr.msk.bf16.mxu1 %vm13435_vm7, %v13434_v61  ;;  %11145 = vmatpush3.bf16.msra.mxu1 %v11825_v6 }
0x2fc8   :  { %11146 = vmatprep.subr.bf16.mxu1 %v13434_v61 }
0x2fcb   :  { %11147 = vmatpush3.bf16.msra.mxu1 %v11826_v9 }
0x2fcc   :  { %11158 = vmatprep.subr.bf16.mxu1 %v13434_v61 }
0x2fce   :  { %11149 = vmatmul.mubr.msk.bf16.vlgmr.msra.gmra.mrb[116].mxu1 %vm1041_vm1, %v14672_v30 }
0x2fcf   :  { %11160 = vmatprep.mubr.msk.bf16.mxu1 %vm13435_vm7, %v13434_v61 }
0x3091   :  { %v5857_v39 = vpop.f32.mrb[108].mxu1 }
0x3092   :  { %v5863_v17 = vmul.f32 0.35355338, %v5857_v39  ;;  %v11120_v11 = vpop.f32.mrb[109].mxu1 }
0x3093   :  { %v5860_v19 = vpop.f32.mrb[110].mxu1  ;;  %v4943_v11 = vadd.f32 %v14710_v23, %v14717_v42  ;;  %v9997_v42 = vld [vmem:[#allocation44 + $0x3] ss:$0 sm:$0xff] }
0x3094   :  { %v11121_v18 = vpop.f32.mrb[111].mxu1  ;;  %v5864_v22 = vsel %vm1318_vm2, %v5863_v17, -inf }
0x3095   :  { %5865 = vmax.xlane.f32.xlu0 %v5864_v22  ;;  %v14838_v19 = vadd.f32 %v4943_v11, %v14644_v38  ;;  %v11830_v11 = vld [vmem:[%s15451_s14 + $0x8] sm:$0xff]  }
0x3097   :  { %v4961_v18 = vsel %vm1041_vm1, %v14838_v19, 0.0 }
0x3099   :  { %v5982_v52 = vpop.f32.mrb[112].mxu1 }
0x309a   :  { %v11134_v20 = vpop.f32.mrb[113].mxu1  ;;  %v5983_v4 = vadd.f32 %v9981_v31, %v5982_v52 }
0x309b   :  { %v5985_v53 = vpop.f32.mrb[114].mxu1 }
0x309c   :  { %v11135_v54 = vpop.f32.mrb[115].mxu1  ;;  %v6118_v5 = vpack.c.bf16 %v5983_v4, %v5983_v4 }
0x3122   :  { %v5866_v29 = vpop.xlane.xlu0 %5865 }
0x3123   :  { %v5867_v62 = vsub.f32 %v5863_v17, %v5866_v29 }
0x3125   :  { %v5868_v1 = vmul.f32 1.442695, %v5867_v62 }
0x3127   :  { %12035 = vpow2.f32 %v5868_v1 }
0x3131   :  { %v12036_v57 = vpop.eup %12035 }
0x3132   :  { %v5870_v60 = vsel %vm1318_vm2, %v12036_v57, 0.0 }
0x3133   :  { %5871 = vadd.xlane.f32.xlu1 %v5870_v60 }
0x31c0   :  { %v5872_v44 = vpop.xlane.xlu1 %5871 }
0x31c1   :  { %12037 = vrcp.f32 %v5872_v44 }
0x31cb   :  { %v12038_v46 = vpop.eup %12037 }
0x31cc   :  { %v5874_v47 = vmul.f32 %v12038_v46, %v12036_v57  ;;  %v6112_v57 = vpop.f32.mrb[116].mxu1 }
0x31cd   :  { %v6113_v60 = vadd.f32 %v9997_v42, %v6112_v57 }
0x31ce   :  { %v5875_v48 = vpack.c.bf16 %v5874_v47, %v5874_v47 }
0x31cf   :  { %v6179_v38 = vpack.c.bf16 %v6113_v60, %v6113_v60 }
0x31d0   :  { %11125 = vmatmul.mubr.msk.bf16.vlgmr.msra.gmra.mrb[132].mxu0 %vm1318_vm2, %v5875_v48 }
0x31d1   :  { %11137 = vmatpush3.bf16.msra.mxu0 %v11821_v8  ;;  %11140 = vmatprep.mubr.msk.bf16.mxu0 %vm13435_vm7, %v13434_v61  ;;  %v6184_v59 = vsel %vm1435_vm3, %v6179_v38, 0  ;;  %v4953_v8 = vadd.f32 %v14715_v0, %v14638_v35 }
0x31d2   :  { %11138 = vmatprep.subr.bf16.mxu0 %v13434_v61  ;;  %11159 = vmatpush3.bf16.msra.mxu1 %v6184_v59 }
0x31d3   :  { %11172 = vmatprep.subr.bf16.mxu1 %v13434_v61  ;;  %v4958_v48 = vsel %vm1041_vm1, %v4953_v8, 0.0 }
0x31d5   :  { %11139 = vmatpush3.bf16.msra.mxu0 %v11822_v12 }
0x31d6   :  { %11152 = vmatprep.subr.bf16.mxu0 %v13434_v61 }
0x31d8   :  { %11141 = vmatmul.mubr.msk.bf16.vlgmr.msra.gmra.mrb[136].mxu0 %vm1041_vm1, %v14672_v30  ;;  %v4948_v30 = vadd.f32 %v14712_v27, %v14710_v23  ;;  %v11150_v23 = vpop.f32.mrb[117].mxu1 }
0x31d9   :  { %11154 = vmatprep.mubr.msk.bf16.mxu0 %vm13435_vm7, %v13434_v61  ;;  %v6115_v27 = vpop.f32.mrb[118].mxu1 }
0x31da   :  { %v4955_v22 = vadd.f32 %v4948_v30, %v14641_v37  ;;  %v11151_v58 = vpop.f32.mrb[119].mxu1 }
0x31dc   :  { %v4964_v29 = vsel %vm1041_vm1, %v4955_v22, 0.0 }
0x32a3   :  { %v5917_v21 = vpop.f32.mrb[132].mxu0 }
0x32a4   :  { %v11126_v25 = vpop.f32.mrb[133].mxu0 }
0x32a5   :  { %v5920_v28 = vpop.f32.mrb[134].mxu0 }
0x32a6   :  { %v11127_v33 = vpop.f32.mrb[135].mxu0 }
0x32ab   :  { %v6047_v50 = vpop.f32.mrb[136].mxu0 }
0x32ac   :  { %v6048_v51 = vadd.f32 %v9989_v10, %v6047_v50  ;;  %v11142_v34 = vpop.f32.mrb[137].mxu0 }
0x32ad   :  { %v6050_v63 = vpop.f32.mrb[138].mxu0 }
0x32ae   :  { %v6119_v56 = vpack.c.bf16 %v6048_v51, %v6048_v51  ;;  %v11143_v2 = vpop.f32.mrb[139].mxu0 }
0x32af   :  { %v10003_v2 = vld [vmem:[#allocation46] ss:$0 sm:$0xff] }
0x32b0   :  { %v6124_v3 = vsel %vm1318_vm2, %v6119_v56, 0 }
0x32b1   :  { %11153 = vmatpush3.bf16.xpose.msra.mxu0 %v6124_v3 }
0x32b2   :  { %11164 = vmatprep.subr.bf16.mxu0 %v13434_v61 }
0x32b8   :  { %11155 = vmatmul.mubr.msk.bf16.vlgmr.msra.gmra.mrb[140].mxu0 %vm1318_vm2, %v6118_v5 }
0x32b9   :  { %11168 = vmatprep.mubr.msk.bf16.mxu0 %vm13435_vm7, %v13434_v61  ;;  %11165 = vmatpush3.bf16.msra.mxu0 %v11827_v7  ;;  %v9910_v7 = vld [vmem:[#allocation40] ss:$0 sm:$0xff] }
0x32ba   :  { %11166 = vmatprep.subr.bf16.mxu0 %v13434_v61 }
0x32bd   :  { %11167 = vmatpush3.bf16.msra.mxu0 %v11828_v45 }
0x338b   :  { %v6160_v13 = vpop.f32.mrb[140].mxu0 }
0x338c   :  { %v6166_v15 = vmul.f32 0.35355338, %v6160_v13  ;;  %v11156_v16 = vpop.f32.mrb[141].mxu0 }
0x338d   :  { %v6163_v14 = vpop.f32.mrb[142].mxu0 }
0x338e   :  { %v11157_v39 = vpop.f32.mrb[143].mxu0  ;;  %v6167_v17 = vsel %vm1318_vm2, %v6166_v15, -inf }
0x338f   :  { %6168 = vmax.xlane.f32.xlu0 %v6167_v17  ;;  %v11829_v17 = vld [vmem:[%s15451_s14] sm:$0xff]  }
0x3390   :  { %11180 = vmatprep.subr.bf16.mxu0 %v11829_v17 }
0x33a5   :  { %6227 = vrot.lane.b32.xlu0 %v14779_v49, %s13407_s8 }
0x33c4   :  { %4962 = vadd.xlane.f32.xlu0 %v4961_v18 }
0x33c8   :  { %4965 = vadd.xlane.f32.xlu0 %v4964_v29 }
0x341c   :  { %v6169_v62 = vpop.xlane.xlu0 %6168 }
0x341d   :  { %v6170_v49 = vsub.f32 %v6166_v15, %v6169_v62 }
0x341f   :  { %v6171_v1 = vmul.f32 1.442695, %v6170_v49 }
0x3420   :  { %v6228_v12 = vpop.permute.xlu0 %6227 }
0x3421   :  { %12039 = vpow2.f32 %v6171_v1  ;;  %v6238_v20 = vsel %vm1318_vm2, %v14741_v32, %v6228_v12  ;;  %v11832_v12 = vld [vmem:[%s15452_s21 + $0x8] sm:$0xff]  }
0x342b   :  { %v12040_v37 = vpop.eup %12039 }
0x342c   :  { %v6173_v24 = vsel %vm1318_vm2, %v12040_v37, 0.0 }
0x342d   :  { %6174 = vadd.xlane.f32.xlu1 %v6173_v24  ;;  %v9909_v24 = vld [vmem:[#allocation38] ss:$0 sm:$0xff] }
0x343e   :  { %6231 = vrot.lane.b32.xlu1 %v5917_v21, %s13379_s0 }
0x3451   :  { %v4963_v28 = vpop.xlane.xlu0 %4962 }
0x3452   :  { %v4968_v56 = vmul.f32 0.03125, %v4963_v28 }
0x3454   :  { %v4971_v4 = vsub.f32 %v14838_v19, %v4968_v56 }
0x3455   :  { %v4966_v33 = vpop.xlane.xlu0 %4965 }
0x3456   :  { %v4969_v10 = vmul.f32 0.03125, %v4966_v33  ;;  %v4974_v14 = vmul.f32 %v4971_v4, %v4971_v4  ;;  %v10008_v33 = vld [vmem:[#allocation49] ss:$0 sm:$0xff] }
0x3458   :  { %v4972_v50 = vsub.f32 %v4955_v22, %v4969_v10  ;;  %v4979_v39 = vsel %vm1041_vm1, %v4974_v14, 0.0 }
0x345a   :  { %v4975_v31 = vmul.f32 %v4972_v50, %v4972_v50 }
0x345c   :  { %v4982_v32 = vsel %vm1041_vm1, %v4975_v31, 0.0 }
0x34ba   :  { %v6175_v26 = vpop.xlane.xlu1 %6174 }
0x34bb   :  { %12041 = vrcp.f32 %v6175_v26 }
0x34be   :  { %v6232_v52 = vpop.permute.xlu1 %6231 }
0x34bf   :  { %v6239_v53 = vsel %vm2651_vm5, %v6238_v20, %v6232_v52  ;;  %v11833_v52 = vld [vmem:[%s15453_s7] sm:$0xff]  }
0x34c5   :  { %v12042_v36 = vpop.eup %12041 }
0x34c6   :  { %v6177_v40 = vmul.f32 %v12042_v36, %v12040_v37 }
0x34c8   :  { %v6178_v41 = vpack.c.bf16 %v6177_v40, %v6177_v40 }
0x34ca   :  { %11161 = vmatmul.mubr.msk.bf16.vlgmr.msra.gmra.mrb[120].mxu1 %vm1318_vm2, %v6178_v41 }
0x34cb   :  { %11176 = vmatprep.mubr.msk.bf16.mxu1 %vm13435_vm7, %v13434_v61 }
0x359d   :  { %v6220_v43 = vpop.f32.mrb[120].mxu1 }
0x359e   :  { %6235 = vrot.lane.b32.xlu1 %v6220_v43, %s13433_s19  ;;  %v11162_v44 = vpop.f32.mrb[121].mxu1 }
0x359f   :  { %v6223_v46 = vpop.f32.mrb[122].mxu1 }
0x35a0   :  { %v11163_v47 = vpop.f32.mrb[123].mxu1 }
0x35c2   :  { %4959 = vadd.xlane.f32.xlu1 %v4958_v48  ;;  %v11831_v48 = vld [vmem:[%s15452_s21] sm:$0xff]  }
0x35c3   :  { %11173 = vmatpush3.bf16.msra.mxu1 %v11831_v48 }
0x35c4   :  { %11174 = vmatprep.subr.bf16.mxu1 %v13434_v61 }
0x35c7   :  { %11175 = vmatpush3.bf16.msra.mxu1 %v11832_v12 }
0x35c8   :  { %11188 = vmatprep.subr.bf16.mxu1 %v11833_v52 }
0x3610   :  { %v6236_v54 = vpop.permute.xlu1 %6235 }
0x3611   :  { %v6240_v21 = vsel %vm1391_vm4, %v6239_v53, %v6236_v54 }
0x3612   :  { %v6245_v25 = vpack.c.bf16 %v6240_v21, %v6240_v21 }
0x3614   :  { %11169 = vmatmul.mubr.msk.bf16.vlgmr.msra.gmra.mrb[144].mxu0 %vm1041_vm1, %v6245_v25  ;;  %v10007_v25 = vld [vmem:[#allocation47] ss:$0 sm:$0xff] }
0x3615   :  { %11181 = vmatpush3.bf16.msra.mxu0 %v11829_v17 }
0x3616   :  { %11182 = vmatprep.subr.bf16.mxu0 %v11830_v11 }
0x3619   :  { %11183 = vmatpush3.bf16.msra.mxu0 %v11830_v11 }
0x361a   :  { %11196 = vmatprep.subr.bf16.mxu0 %v13434_v61 }
0x364f   :  { %v4960_v35 = vpop.xlane.xlu1 %4959 }
0x3650   :  { %v4967_v0 = vmul.f32 0.03125, %v4960_v35 }
0x3652   :  { %v4970_v51 = vsub.f32 %v4953_v8, %v4967_v0 }
0x3654   :  { %v4973_v34 = vmul.f32 %v4970_v51, %v4970_v51 }
0x3656   :  { %v4976_v63 = vsel %vm1041_vm1, %v4973_v34, 0.0  ;;  %v10013_v34 = vld [vmem:[#allocation52] ss:$0 sm:$0xff] }
0x3657   :  { %4977 = vadd.xlane.f32.xlu1 %v4976_v63 }
0x365b   :  { %4983 = vadd.xlane.f32.xlu1 %v4982_v32 }
0x36e4   :  { %v4978_v30 = vpop.xlane.xlu1 %4977 }
0x36e7   :  { %v6302_v3 = vpop.f32.mrb[144].mxu0 }
0x36e8   :  { %v6303_v5 = vadd.f32 %v10003_v2, %v6302_v3  ;;  %v11170_v6 = vpop.f32.mrb[145].mxu0  ;;  %v4984_v19 = vpop.xlane.xlu1 %4983 }
0x36e9   :  { %v6305_v9 = vpop.f32.mrb[146].mxu0  ;;  %v4987_v18 = vmul.f32 0.03125, %v4984_v19  ;;  %v11836_v19 = vld [vmem:[%s15451_s14 + $0x18] sm:$0xff]  }
0x36ea   :  { %v6308_v13 = vadd.f32 %v6303_v5, %v14667_v55  ;;  %v11171_v15 = vpop.f32.mrb[147].mxu0  ;;  %v4985_v55 = vmul.f32 0.03125, %v4978_v30 }
0x36eb   :  { %v4990_v22 = vadd.f32 1e-05, %v4987_v18  ;;  %v10009_v15 = vld [vmem:[#allocation50] ss:$0 sm:$0xff] }
0x36ec   :  { %v6311_v16 = vsel %vm1041_vm1, %v6308_v13, 0.0  ;;  %v4988_v29 = vadd.f32 1e-05, %v4985_v55  ;;  %v10018_v55 = vld [vmem:[#allocation53] ss:$0 sm:$0xff] }
0x36ed   :  { %6312 = vadd.xlane.f32.xlu0 %v6311_v16  ;;  %12043 = vrsqrt.f32 %v4990_v22 }
0x36ee   :  { %12045 = vrsqrt.f32 %v4988_v29 }
0x36f1   :  { %4980 = vadd.xlane.f32.xlu0 %v4979_v39 }
0x36f7   :  { %v12044_v38 = vpop.eup %12043 }
0x36f8   :  { %v12046_v58 = vpop.eup %12045  ;;  %v4996_v59 = vmul.f32 %v12044_v38, %v4972_v50  ;;  %v11834_v50 = vld [vmem:[%s15453_s7 + $0x8] sm:$0xff]  }
0x36f9   :  { %v4994_v37 = vmul.f32 %v12046_v58, %v4970_v51 }
0x36fa   :  { %v5005_v36 = vmul.f32 %v9909_v24, %v4996_v59 }
0x36fb   :  { %v5003_v40 = vmul.f32 %v9909_v24, %v4994_v37  ;;  %v14919_v37 = vld [vmem:[#allocation5] ss:$0 sm:$0xff] }
0x36fc   :  { %v5014_v43 = vadd.f32 %v9910_v7, %v5005_v36 }
0x36fd   :  { %v5012_v44 = vadd.f32 %v9910_v7, %v5003_v40 }
0x36fe   :  { %v14875_v8 = vpack.c.bf16 %v5014_v43, %v5014_v43 }
0x377a   :  { %v6313_v62 = vpop.xlane.xlu0 %6312 }
0x377b   :  { %v6314_v49 = vmul.f32 0.03125, %v6313_v62 }
0x377d   :  { %v6315_v1 = vsub.f32 %v6308_v13, %v6314_v49  ;;  %v11835_v13 = vld [vmem:[%s15451_s14 + $0x10] sm:$0xff]  }
0x377e   :  { %v4981_v42 = vpop.xlane.xlu0 %4980 }
0x377f   :  { %v4986_v57 = vmul.f32 0.03125, %v4981_v42  ;;  %v6316_v60 = vmul.f32 %v6315_v1, %v6315_v1 }
0x3781   :  { %v4989_v23 = vadd.f32 1e-05, %v4986_v57  ;;  %v6317_v27 = vsel %vm1041_vm1, %v6316_v60, 0.0 }
0x3782   :  { %6318 = vadd.xlane.f32.xlu0 %v6317_v27 }
0x3783   :  { %12047 = vrsqrt.f32 %v4989_v23 }
0x378d   :  { %v12048_v26 = vpop.eup %12047 }
0x378e   :  { %v4995_v41 = vmul.f32 %v12048_v26, %v4971_v4 }
0x3790   :  { %v5004_v45 = vmul.f32 %v9909_v24, %v4995_v41  ;;  %v10037_v41 = vld [vmem:[#allocation52 + $0x1] ss:$0 sm:$0xff] }
0x3792   :  { %v5013_v46 = vadd.f32 %v9910_v7, %v5004_v45 }
0x3794   :  { %v14873_v47 = vpack.c.bf16 %v5013_v46, %v5012_v44 }
0x3796   :  { %11184 = vmatprep.mubr.msk.bf16.mxu0 %vm1041_vm1, %v14873_v47 }
0x3797   :  { %11185 = vmatmul.mubr.msk.bf16.vlgmr.msra.gmra.mrb[148].mxu0 %vm1041_vm1, %v14875_v8 }
0x3798   :  { %11200 = vmatprep.mubr.msk.bf16.mxu0 %vm13435_vm7, %v13434_v61 }
0x380f   :  { %v6319_v20 = vpop.xlane.xlu0 %6318 }
0x3810   :  { %v6320_v53 = vmul.f32 0.03125, %v6319_v20 }
0x3812   :  { %v6321_v54 = vadd.f32 1e-12, %v6320_v53 }
0x3814   :  { %12049 = vrsqrt.f32 %v6321_v54 }
0x381e   :  { %v12050_v21 = vpop.eup %12049 }
0x381f   :  { %v6323_v28 = vmul.f32 %v12050_v21, %v6315_v1 }
0x3821   :  { %v6330_v10 = vmul.f32 %v10007_v25, %v6323_v28 }
0x3823   :  { %v14887_v35 = vadd.f32 %v10008_v33, %v6330_v10 }
0x3825   :  { %v14891_v0 = vpack.c.bf16 %v14887_v35, %v14887_v35 }
0x3827   :  { %11177 = vmatmul.mubr.msk.bf16.vlgmr.msra.gmra.mrb[124].mxu1 %vm1041_vm1, %v14891_v0 }
0x3828   :  { %11189 = vmatpush3.bf16.msra.mxu1 %v11833_v52  ;;  %11192 = vmatprep.mubr.msk.bf16.mxu1 %vm1041_vm1, %v14873_v47 }
0x3829   :  { %11190 = vmatprep.subr.bf16.mxu1 %v11834_v50 }
0x382c   :  { %11191 = vmatpush3.bf16.msra.mxu1 %v11834_v50 }
0x382d   :  { %11204 = vmatprep.subr.bf16.mxu1 %v13434_v61 }
0x382f   :  { %11193 = vmatmul.mubr.msk.bf16.vlgmr.msra.gmra.mrb[128].mxu1 %vm1041_vm1, %v14875_v8 }
0x3830   :  { %11208 = vmatprep.mubr.msk.bf16.mxu1 %vm13435_vm7, %v13434_v61 }
0x386a   :  { %v11186_v51 = vpop.f32.mrb[148].mxu0 }
0x386b   :  { %v6470_v63 = vpop.f32.mrb[149].mxu0  ;;  %v6479_v4 = vadd.f32 %v11186_v51, %v10013_v34 }
0x386c   :  { %v11187_v31 = vpop.f32.mrb[150].mxu0  ;;  %v6471_v56 = vadd.f32 %v10013_v34, %v6470_v63 }
0x386d   :  { %v6473_v32 = vpop.f32.mrb[151].mxu0  ;;  %v6557_v6 = vpack.c.bf16 %v6479_v4, %v6479_v4  ;;  %v11838_v31 = vld [vmem:[%s15452_s21 + $0x18] sm:$0xff]  }
0x386e   :  { %v6474_v2 = vadd.f32 %v10013_v34, %v6473_v32  ;;  %v11837_v34 = vld [vmem:[%s15452_s21 + $0x10] sm:$0xff]  }
0x386f   :  { %v6565_v9 = vsel %vm1318_vm2, %v6557_v6, 0  ;;  %v11839_v32 = vld [vmem:[%s15453_s7 + $0x10] sm:$0xff]  }
0x3870   :  { %v6556_v3 = vpack.c.bf16 %v6474_v2, %v6471_v56  ;;  %v11840_v56 = vld [vmem:[%s15453_s7 + $0x18] sm:$0xff]   ;;  %v11841_v2 = vld [vmem:[%s15451_s14 + $0x20] sm:$0xff]  }
0x3872   :  { %v6562_v5 = vsel %vm1318_vm2, %v6556_v3, 0 }
0x3873   :  { %11197 = vmatpush3.bf16.xpose.msra.mxu0 %v6562_v5 }
0x3874   :  { %11198 = vmatprep.subr.bf16.mxu0 %v13434_v61 }
0x387b   :  { %11199 = vmatpush3.bf16.xpose.msra.mxu0 %v6565_v9  ;;  %v10029_v9 = vld [vmem:[#allocation50 + $0x1] ss:$0 sm:$0xff] }
0x387c   :  { %11220 = vmatprep.subr.bf16.mxu0 %v11835_v13 }
0x38fa   :  { %v6399_v16 = vpop.f32.mrb[124].mxu1 }
0x38fb   :  { %v6400_v14 = vadd.f32 %v10009_v15, %v6399_v16  ;;  %v11178_v39 = vpop.f32.mrb[125].mxu1 }
0x38fc   :  { %v6402_v17 = vpop.f32.mrb[126].mxu1 }
0x38fd   :  { %v6555_v11 = vpack.c.bf16 %v6400_v14, %v6400_v14  ;;  %v11179_v30 = vpop.f32.mrb[127].mxu1 }
0x38ff   :  { %11201 = vmatmul.mubr.msk.bf16.vlgmr.msra.gmra.mrb[152].mxu0 %vm1318_vm2, %v6555_v11  ;;  %v11842_v11 = vld [vmem:[%s15451_s14 + $0x28] sm:$0xff]  }
0x3900   :  { %11221 = vmatpush3.bf16.msra.mxu0 %v11835_v13  ;;  %11224 = vmatprep.mubr.msk.bf16.mxu0 %vm1041_vm1, %v14873_v47 }
0x3901   :  { %11222 = vmatprep.subr.bf16.mxu0 %v11836_v19 }
0x3902   :  { %v11194_v18 = vpop.f32.mrb[128].mxu1 }
0x3903   :  { %v6541_v22 = vpop.f32.mrb[129].mxu1  ;;  %v6550_v62 = vadd.f32 %v11194_v18, %v10018_v55 }
0x3904   :  { %v11195_v29 = vpop.f32.mrb[130].mxu1  ;;  %11223 = vmatpush3.bf16.msra.mxu0 %v11836_v19  ;;  %v6542_v1 = vadd.f32 %v10018_v55, %v6541_v22  ;;  %v10046_v19 = vld [vmem:[#allocation53 + $0x1] ss:$0 sm:$0xff] }
0x3905   :  { %v6544_v49 = vpop.f32.mrb[131].mxu1  ;;  %11236 = vmatprep.subr.bf16.mxu0 %v13434_v61  ;;  %v6622_v60 = vpack.c.bf16 %v6550_v62, %v6550_v62 }
0x3906   :  { %v6545_v42 = vadd.f32 %v10018_v55, %v6544_v49 }
0x3907   :  { %11225 = vmatmul.mubr.msk.bf16.vlgmr.msra.gmra.mrb[156].mxu0 %vm1041_vm1, %v14875_v8  ;;  %v6627_v23 = vsel %vm1435_vm3, %v6622_v60, 0 }
0x3908   :  { %v6621_v57 = vpack.c.bf16 %v6545_v42, %v6542_v1  ;;  %11240 = vmatprep.mubr.msk.bf16.mxu0 %vm13435_vm7, %v13434_v61 }
0x390a   :  { %11205 = vmatpush3.bf16.msra.mxu1 %v6621_v57 }
0x390b   :  { %11206 = vmatprep.subr.bf16.mxu1 %v13434_v61 }
0x390e   :  { %11207 = vmatpush3.bf16.msra.mxu1 %v6627_v23 }
0x390f   :  { %11212 = vmatprep.subr.bf16.mxu1 %v13434_v61 }
0x39d2   :  { %v6601_v27 = vpop.f32.mrb[152].mxu0 }
0x39d3   :  { %v6607_v38 = vmul.f32 0.35355338, %v6601_v27  ;;  %v11202_v58 = vpop.f32.mrb[153].mxu0 }
0x39d4   :  { %v6604_v59 = vpop.f32.mrb[154].mxu0 }
0x39d5   :  { %v6608_v24 = vadd.f32 %v14919_v37, %v6607_v38  ;;  %v11203_v26 = vpop.f32.mrb[155].mxu0 }
0x39d7   :  { %v6609_v36 = vsel %vm1391_vm4, %v6608_v24, -inf }
0x39d8   :  { %6610 = vmax.xlane.f32.xlu1 %v6609_v36  ;;  %v10065_v36 = vld [vmem:[#allocation52 + $0x2] ss:$0 sm:$0xff] }
0x39da   :  { %v11226_v40 = vpop.f32.mrb[156].mxu0 }
0x39db   :  { %v6793_v7 = vpop.f32.mrb[157].mxu0  ;;  %v6802_v12 = vadd.f32 %v11226_v40, %v10037_v41 }
0x39dc   :  { %v11227_v45 = vpop.f32.mrb[158].mxu0  ;;  %v6794_v44 = vadd.f32 %v10037_v41, %v6793_v7 }
0x39dd   :  { %v6796_v43 = vpop.f32.mrb[159].mxu0  ;;  %v6882_v20 = vpack.c.bf16 %v6802_v12, %v6802_v12 }
0x39de   :  { %v6797_v46 = vadd.f32 %v10037_v41, %v6796_v43 }
0x39df   :  { %v6890_v53 = vsel %vm1318_vm2, %v6882_v20, 0 }
0x39e0   :  { %v6881_v48 = vpack.c.bf16 %v6797_v46, %v6794_v44 }
0x39e2   :  { %v6887_v52 = vsel %vm1318_vm2, %v6881_v48, 0 }
0x39e3   :  { %11237 = vmatpush3.bf16.xpose.msra.mxu0 %v6887_v52 }
0x39e4   :  { %11238 = vmatprep.subr.bf16.mxu0 %v13434_v61 }
0x39eb   :  { %11239 = vmatpush3.bf16.xpose.msra.mxu0 %v6890_v53 }
0x39ec   :  { %11260 = vmatprep.subr.bf16.mxu0 %v11841_v2 }
0x3a65   :  { %v6611_v54 = vpop.xlane.xlu1 %6610 }
0x3a66   :  { %v6612_v21 = vsub.f32 %v6608_v24, %v6611_v54 }
0x3a68   :  { %v6613_v25 = vmul.f32 1.442695, %v6612_v21 }
0x3a6a   :  { %12051 = vpow2.f32 %v6613_v25 }
0x3a74   :  { %v12052_v28 = vpop.eup %12051 }
0x3a75   :  { %v6615_v33 = vsel %vm1391_vm4, %v12052_v28, 0.0 }
0x3a76   :  { %6616 = vadd.xlane.f32.xlu0 %v6615_v33 }
0x3b03   :  { %v6617_v10 = vpop.xlane.xlu0 %6616 }
0x3b04   :  { %12053 = vrcp.f32 %v6617_v10 }
0x3b0e   :  { %v12054_v50 = vpop.eup %12053 }
0x3b0f   :  { %v6619_v51 = vmul.f32 %v12054_v50, %v12052_v28  ;;  %v11843_v50 = vld [vmem:[%s15452_s21 + $0x20] sm:$0xff]  }
0x3b11   :  { %v6620_v63 = vpack.c.bf16 %v6619_v51, %v6619_v51 }
0x3b13   :  { %11209 = vmatmul.mubr.msk.bf16.vlgmr.msra.gmra.mrb[132].mxu1 %vm1391_vm4, %v6620_v63  ;;  %v11845_v63 = vld [vmem:[%s15453_s7 + $0x20] sm:$0xff]  }
0x3b14   :  { %11213 = vmatpush3.bf16.msra.mxu1 %v11837_v34  ;;  %11216 = vmatprep.mubr.msk.bf16.mxu1 %vm13435_vm7, %v13434_v61  ;;  %v11844_v34 = vld [vmem:[%s15452_s21 + $0x28] sm:$0xff]  }
0x3b15   :  { %11214 = vmatprep.subr.bf16.mxu1 %v13434_v61 }
0x3b18   :  { %11215 = vmatpush3.bf16.msra.mxu1 %v11838_v31  ;;  %v11846_v31 = vld [vmem:[%s15453_s7 + $0x28] sm:$0xff]  }
0x3b19   :  { %11228 = vmatprep.subr.bf16.mxu1 %v11839_v32 }
0x3b1b   :  { %11217 = vmatmul.mubr.msk.bf16.vlgmr.msra.gmra.mrb[136].mxu1 %vm1041_vm1, %v14891_v0 }
0x3b1c   :  { %11229 = vmatpush3.bf16.msra.mxu1 %v11839_v32  ;;  %11232 = vmatprep.mubr.msk.bf16.mxu1 %vm1041_vm1, %v14873_v47  ;;  %v11847_v32 = vld [vmem:[%s15451_s14 + $0x30] sm:$0xff]  }
0x3b1d   :  { %11230 = vmatprep.subr.bf16.mxu1 %v11840_v56 }
0x3b20   :  { %11231 = vmatpush3.bf16.msra.mxu1 %v11840_v56 }
0x3b21   :  { %11244 = vmatprep.subr.bf16.mxu1 %v13434_v61 }
0x3b23   :  { %11233 = vmatmul.mubr.msk.bf16.vlgmr.msra.gmra.mrb[140].mxu1 %vm1041_vm1, %v14875_v8 }
0x3b24   :  { %11248 = vmatprep.mubr.msk.bf16.mxu1 %vm13435_vm7, %v13434_v61 }
0x3be6   :  { %v14945_v3 = vpop.f32.mrb[132].mxu1 }
0x3be7   :  { %v11210_v4 = vpop.f32.mrb[133].mxu1 }
0x3be8   :  { %v6666_v5 = vpop.f32.mrb[134].mxu1 }
0x3be9   :  { %v11211_v6 = vpop.f32.mrb[135].mxu1 }
0x3bea   :  { %v10057_v6 = vld [vmem:[#allocation50 + $0x2] ss:$0 sm:$0xff] }
0x3bee   :  { %v6728_v13 = vpop.f32.mrb[136].mxu1 }
0x3bef   :  { %v6729_v15 = vadd.f32 %v10029_v9, %v6728_v13  ;;  %v11218_v16 = vpop.f32.mrb[137].mxu1 }
0x3bf0   :  { %v6731_v14 = vpop.f32.mrb[138].mxu1 }
0x3bf1   :  { %v6880_v39 = vpack.c.bf16 %v6729_v15, %v6729_v15  ;;  %v11219_v17 = vpop.f32.mrb[139].mxu1 }
0x3bf2   :  { %v11848_v17 = vld [vmem:[%s15451_s14 + $0x38] sm:$0xff]  }
0x3bf3   :  { %11241 = vmatmul.mubr.msk.bf16.vlgmr.msra.gmra.mrb[160].mxu0 %vm1318_vm2, %v6880_v39 }
0x3bf4   :  { %11261 = vmatpush3.bf16.msra.mxu0 %v11841_v2  ;;  %11264 = vmatprep.mubr.msk.bf16.mxu0 %vm1041_vm1, %v14873_v47 }
0x3bf5   :  { %11262 = vmatprep.subr.bf16.mxu0 %v11842_v11 }
0x3bf6   :  { %v11234_v30 = vpop.f32.mrb[140].mxu1 }
0x3bf7   :  { %v6866_v18 = vpop.f32.mrb[141].mxu1  ;;  %v6875_v22 = vadd.f32 %v11234_v30, %v10046_v19  ;;  %v10074_v30 = vld [vmem:[#allocation53 + $0x2] ss:$0 sm:$0xff] }
0x3bf8   :  { %v11235_v55 = vpop.f32.mrb[142].mxu1  ;;  %11263 = vmatpush3.bf16.msra.mxu0 %v11842_v11  ;;  %v6867_v62 = vadd.f32 %v10046_v19, %v6866_v18 }
0x3bf9   :  { %v6869_v29 = vpop.f32.mrb[143].mxu1  ;;  %11276 = vmatprep.subr.bf16.mxu0 %v13434_v61  ;;  %v6947_v42 = vpack.c.bf16 %v6875_v22, %v6875_v22 }
0x3bfa   :  { %v6870_v49 = vadd.f32 %v10046_v19, %v6869_v29 }
0x3bfb   :  { %11265 = vmatmul.mubr.msk.bf16.vlgmr.msra.gmra.mrb[164].mxu0 %vm1041_vm1, %v14875_v8  ;;  %v6952_v57 = vsel %vm1435_vm3, %v6947_v42, 0 }
0x3bfc   :  { %v6946_v1 = vpack.c.bf16 %v6870_v49, %v6867_v62  ;;  %11280 = vmatprep.mubr.msk.bf16.mxu0 %vm13435_vm7, %v13434_v61 }
0x3bfe   :  { %11245 = vmatpush3.bf16.msra.mxu1 %v6946_v1 }
0x3bff   :  { %11246 = vmatprep.subr.bf16.mxu1 %v13434_v61 }
0x3c02   :  { %11247 = vmatpush3.bf16.msra.mxu1 %v6952_v57 }
0x3c03   :  { %11252 = vmatprep.subr.bf16.mxu1 %v13434_v61 }
0x3cc6   :  { %v6926_v60 = vpop.f32.mrb[160].mxu0 }
0x3cc7   :  { %v6932_v23 = vmul.f32 0.35355338, %v6926_v60  ;;  %v11242_v27 = vpop.f32.mrb[161].mxu0 }
0x3cc8   :  { %v6929_v38 = vpop.f32.mrb[162].mxu0 }
0x3cc9   :  { %v6933_v58 = vadd.f32 %v14919_v37, %v6932_v23  ;;  %v11243_v59 = vpop.f32.mrb[163].mxu0 }
0x3ccb   :  { %v6934_v24 = vsel %vm1391_vm4, %v6933_v58, -inf }
0x3ccc   :  { %6935 = vmax.xlane.f32.xlu1 %v6934_v24 }
0x3cce   :  { %v11266_v26 = vpop.f32.mrb[164].mxu0 }
0x3ccf   :  { %v7118_v40 = vpop.f32.mrb[165].mxu0  ;;  %v7127_v46 = vadd.f32 %v11266_v26, %v10065_v36  ;;  %v10093_v26 = vld [vmem:[#allocation52 + $0x3] ss:$0 sm:$0xff] }
0x3cd0   :  { %v11267_v41 = vpop.f32.mrb[166].mxu0  ;;  %v7119_v45 = vadd.f32 %v10065_v36, %v7118_v40 }
0x3cd1   :  { %v7121_v7 = vpop.f32.mrb[167].mxu0  ;;  %v7207_v12 = vpack.c.bf16 %v7127_v46, %v7127_v46 }
0x3cd2   :  { %v7122_v43 = vadd.f32 %v10065_v36, %v7121_v7 }
0x3cd3   :  { %v7215_v52 = vsel %vm1318_vm2, %v7207_v12, 0 }
0x3cd4   :  { %v7206_v44 = vpack.c.bf16 %v7122_v43, %v7119_v45 }
0x3cd6   :  { %v7212_v48 = vsel %vm1318_vm2, %v7206_v44, 0 }
0x3cd7   :  { %11277 = vmatpush3.bf16.xpose.msra.mxu0 %v7212_v48 }
0x3cd8   :  { %11278 = vmatprep.subr.bf16.mxu0 %v13434_v61 }
0x3cdf   :  { %11279 = vmatpush3.bf16.xpose.msra.mxu0 %v7215_v52 }
0x3ce0   :  { %11300 = vmatprep.subr.bf16.mxu0 %v11847_v32 }
0x3d59   :  { %v6936_v20 = vpop.xlane.xlu1 %6935 }
0x3d5a   :  { %v6937_v53 = vsub.f32 %v6933_v58, %v6936_v20 }
0x3d5c   :  { %v6938_v54 = vmul.f32 1.442695, %v6937_v53 }
0x3d5e   :  { %12055 = vpow2.f32 %v6938_v54 }
0x3d68   :  { %v12056_v21 = vpop.eup %12055 }
0x3d69   :  { %v6940_v25 = vsel %vm1391_vm4, %v12056_v21, 0.0 }
0x3d6a   :  { %6941 = vadd.xlane.f32.xlu0 %v6940_v25 }
0x3df7   :  { %v6942_v28 = vpop.xlane.xlu0 %6941 }
0x3df8   :  { %12057 = vrcp.f32 %v6942_v28 }
0x3e02   :  { %v12058_v33 = vpop.eup %12057 }
0x3e03   :  { %v6944_v10 = vmul.f32 %v12058_v33, %v12056_v21 }
0x3e05   :  { %v6945_v51 = vpack.c.bf16 %v6944_v10, %v6944_v10  ;;  %v11849_v10 = vld [vmem:[%s15452_s21 + $0x30] sm:$0xff]  }
0x3e07   :  { %11249 = vmatmul.mubr.msk.bf16.vlgmr.msra.gmra.mrb[144].mxu1 %vm1391_vm4, %v6945_v51  ;;  %v11850_v51 = vld [vmem:[%s15452_s21 + $0x38] sm:$0xff]  }
0x3e08   :  { %11253 = vmatpush3.bf16.msra.mxu1 %v11843_v50  ;;  %11256 = vmatprep.mubr.msk.bf16.mxu1 %vm13435_vm7, %v13434_v61 }
0x3e09   :  { %11254 = vmatprep.subr.bf16.mxu1 %v13434_v61 }
0x3e0c   :  { %11255 = vmatpush3.bf16.msra.mxu1 %v11844_v34  ;;  %v11851_v34 = vld [vmem:[%s15453_s7 + $0x30] sm:$0xff]  }
0x3e0d   :  { %11268 = vmatprep.subr.bf16.mxu1 %v11845_v63 }
0x3e0f   :  { %11257 = vmatmul.mubr.msk.bf16.vlgmr.msra.gmra.mrb[148].mxu1 %vm1041_vm1, %v14891_v0 }
0x3e10   :  { %11269 = vmatpush3.bf16.msra.mxu1 %v11845_v63  ;;  %11272 = vmatprep.mubr.msk.bf16.mxu1 %vm1041_vm1, %v14873_v47  ;;  %v11852_v63 = vld [vmem:[%s15453_s7 + $0x38] sm:$0xff]  }
0x3e11   :  { %11270 = vmatprep.subr.bf16.mxu1 %v11846_v31 }
0x3e14   :  { %11271 = vmatpush3.bf16.msra.mxu1 %v11846_v31 }
0x3e15   :  { %11284 = vmatprep.subr.bf16.mxu1 %v13434_v61 }
0x3e17   :  { %11273 = vmatmul.mubr.msk.bf16.vlgmr.msra.gmra.mrb[152].mxu1 %vm1041_vm1, %v14875_v8 }
0x3e18   :  { %11288 = vmatprep.mubr.msk.bf16.mxu1 %vm13435_vm7, %v13434_v61 }
0x3eda   :  { %v14983_v56 = vpop.f32.mrb[144].mxu1 }
0x3edb   :  { %v11250_v2 = vpop.f32.mrb[145].mxu1 }
0x3edc   :  { %v6991_v4 = vpop.f32.mrb[146].mxu1 }
0x3edd   :  { %v11251_v5 = vpop.f32.mrb[147].mxu1 }
0x3ede   :  { %v10085_v5 = vld [vmem:[#allocation50 + $0x3] ss:$0 sm:$0xff] }
0x3ee2   :  { %v7053_v9 = vpop.f32.mrb[148].mxu1 }
0x3ee3   :  { %v7054_v13 = vadd.f32 %v10057_v6, %v7053_v9  ;;  %v11258_v15 = vpop.f32.mrb[149].mxu1 }
0x3ee4   :  { %v7056_v16 = vpop.f32.mrb[150].mxu1 }
0x3ee5   :  { %v7205_v14 = vpack.c.bf16 %v7054_v13, %v7054_v13  ;;  %v11259_v39 = vpop.f32.mrb[151].mxu1  ;;  %v10102_v16 = vld [vmem:[#allocation53 + $0x3] ss:$0 sm:$0xff] }
0x3ee7   :  { %11281 = vmatmul.mubr.msk.bf16.vlgmr.msra.gmra.mrb[168].mxu0 %vm1318_vm2, %v7205_v14 }
0x3ee8   :  { %11301 = vmatpush3.bf16.msra.mxu0 %v11847_v32  ;;  %11304 = vmatprep.mubr.msk.bf16.mxu0 %vm1041_vm1, %v14873_v47 }
0x3ee9   :  { %11302 = vmatprep.subr.bf16.mxu0 %v11848_v17 }
0x3eea   :  { %v11274_v11 = vpop.f32.mrb[152].mxu1 }
0x3eeb   :  { %v7191_v19 = vpop.f32.mrb[153].mxu1  ;;  %v7200_v55 = vadd.f32 %v11274_v11, %v10074_v30 }
0x3eec   :  { %v11275_v18 = vpop.f32.mrb[154].mxu1  ;;  %11303 = vmatpush3.bf16.msra.mxu0 %v11848_v17  ;;  %v7192_v29 = vadd.f32 %v10074_v30, %v7191_v19 }
0x3eed   :  { %v7194_v22 = vpop.f32.mrb[155].mxu1  ;;  %11316 = vmatprep.subr.bf16.mxu0 %v13434_v61  ;;  %v7272_v1 = vpack.c.bf16 %v7200_v55, %v7200_v55 }
0x3eee   :  { %v7195_v62 = vadd.f32 %v10074_v30, %v7194_v22 }
0x3eef   :  { %11305 = vmatmul.mubr.msk.bf16.vlgmr.msra.gmra.mrb[172].mxu0 %vm1041_vm1, %v14875_v8  ;;  %v7277_v42 = vsel %vm1435_vm3, %v7272_v1, 0 }
0x3ef0   :  { %v7271_v49 = vpack.c.bf16 %v7195_v62, %v7192_v29  ;;  %11320 = vmatprep.mubr.msk.bf16.mxu0 %vm13435_vm7, %v13434_v61 }
0x3ef2   :  { %11285 = vmatpush3.bf16.msra.mxu1 %v7271_v49 }
0x3ef3   :  { %11286 = vmatprep.subr.bf16.mxu1 %v13434_v61 }
0x3ef6   :  { %11287 = vmatpush3.bf16.msra.mxu1 %v7277_v42 }
0x3ef7   :  { %11292 = vmatprep.subr.bf16.mxu1 %v13434_v61 }
0x3fba   :  { %v7251_v57 = vpop.f32.mrb[168].mxu0 }
0x3fbb   :  { %v7257_v60 = vmul.f32 0.35355338, %v7251_v57  ;;  %v11282_v23 = vpop.f32.mrb[169].mxu0 }
0x3fbc   :  { %v7254_v27 = vpop.f32.mrb[170].mxu0 }
0x3fbd   :  { %v7258_v38 = vadd.f32 %v14919_v37, %v7257_v60  ;;  %v11283_v58 = vpop.f32.mrb[171].mxu0 }
0x3fbf   :  { %v7259_v59 = vsel %vm1391_vm4, %v7258_v38, -inf }
0x3fc0   :  { %7260 = vmax.xlane.f32.xlu1 %v7259_v59 }
0x3fc2   :  { %v11306_v24 = vpop.f32.mrb[172].mxu0 }
0x3fc3   :  { %v7443_v36 = vpop.f32.mrb[173].mxu0  ;;  %v7452_v44 = vadd.f32 %v11306_v24, %v10093_v26 }
0x3fc4   :  { %v11307_v40 = vpop.f32.mrb[174].mxu0  ;;  %v7444_v7 = vadd.f32 %v10093_v26, %v7443_v36 }
0x3fc5   :  { %v7446_v41 = vpop.f32.mrb[175].mxu0  ;;  %v7532_v48 = vpack.c.bf16 %v7452_v44, %v7452_v44  ;;  %v11854_v40 = vld [vmem:[%s15454_s10 + $0x8] sm:$0xff]  }
0x3fc6   :  { %v7447_v45 = vadd.f32 %v10093_v26, %v7446_v41 }
0x3fc7   :  { %v7540_v12 = vsel %vm1318_vm2, %v7532_v48, 0 }
0x3fc8   :  { %v7531_v43 = vpack.c.bf16 %v7447_v45, %v7444_v7 }
0x3fca   :  { %v7537_v46 = vsel %vm1318_vm2, %v7531_v43, 0 }
0x3fcb   :  { %11317 = vmatpush3.bf16.xpose.msra.mxu0 %v7537_v46 }
0x3fcc   :  { %11318 = vmatprep.subr.bf16.mxu0 %v13434_v61 }
0x3fd3   :  { %11319 = vmatpush3.bf16.xpose.msra.mxu0 %v7540_v12 }
0x3fd4   :  { %11340 = vmatprep.subr.bf16.mxu0 %v13434_v61 }
0x404d   :  { %v7261_v52 = vpop.xlane.xlu1 %7260 }
0x404e   :  { %v7262_v20 = vsub.f32 %v7258_v38, %v7261_v52 }
0x4050   :  { %v7263_v53 = vmul.f32 1.442695, %v7262_v20 }
0x4052   :  { %12059 = vpow2.f32 %v7263_v53 }
0x405c   :  { %v12060_v54 = vpop.eup %12059 }
0x405d   :  { %v7265_v21 = vsel %vm1391_vm4, %v12060_v54, 0.0 }
0x405e   :  { %7266 = vadd.xlane.f32.xlu0 %v7265_v21 }
0x40eb   :  { %v7267_v25 = vpop.xlane.xlu0 %7266 }
0x40ec   :  { %12061 = vrcp.f32 %v7267_v25 }
0x40f6   :  { %v12062_v28 = vpop.eup %12061 }
0x40f7   :  { %v7269_v33 = vmul.f32 %v12062_v28, %v12060_v54  ;;  %v10109_v54 = vld [vmem:[#allocation55] ss:$0 sm:$0xff] }
0x40f9   :  { %v7270_v50 = vpack.c.bf16 %v7269_v33, %v7269_v33 }
0x40fb   :  { %11289 = vmatmul.mubr.msk.bf16.vlgmr.msra.gmra.mrb[156].mxu1 %vm1391_vm4, %v7270_v50 }
0x40fc   :  { %11293 = vmatpush3.bf16.msra.mxu1 %v11849_v10  ;;  %11296 = vmatprep.mubr.msk.bf16.mxu1 %vm13435_vm7, %v13434_v61 }
0x40fd   :  { %11294 = vmatprep.subr.bf16.mxu1 %v13434_v61 }
0x4100   :  { %11295 = vmatpush3.bf16.msra.mxu1 %v11850_v51 }
0x4101   :  { %11308 = vmatprep.subr.bf16.mxu1 %v11851_v34 }
0x4103   :  { %11297 = vmatmul.mubr.msk.bf16.vlgmr.msra.gmra.mrb[160].mxu1 %vm1041_vm1, %v14891_v0 }
0x4104   :  { %11309 = vmatpush3.bf16.msra.mxu1 %v11851_v34  ;;  %11312 = vmatprep.mubr.msk.bf16.mxu1 %vm1041_vm1, %v14873_v47 }
0x4105   :  { %11310 = vmatprep.subr.bf16.mxu1 %v11852_v63 }
0x4108   :  { %11311 = vmatpush3.bf16.msra.mxu1 %v11852_v63 }
0x4109   :  { %11324 = vmatprep.subr.bf16.mxu1 %v13434_v61 }
0x410b   :  { %11313 = vmatmul.mubr.msk.bf16.vlgmr.msra.gmra.mrb[164].mxu1 %vm1041_vm1, %v14875_v8 }
0x410c   :  { %11328 = vmatprep.mubr.msk.bf16.mxu1 %vm13435_vm7, %v13434_v61 }
0x41ce   :  { %v7313_v31 = vpop.f32.mrb[156].mxu1 }
0x41cf   :  { %v11290_v32 = vpop.f32.mrb[157].mxu1 }
0x41d0   :  { %v7316_v2 = vpop.f32.mrb[158].mxu1 }
0x41d1   :  { %v11291_v4 = vpop.f32.mrb[159].mxu1  ;;  %v11855_v2 = vld [vmem:[%s15455_s11] sm:$0xff]  }
0x41d2   :  { %v11856_v4 = vld [vmem:[%s15455_s11 + $0x8] sm:$0xff]  }
0x41d6   :  { %v7378_v0 = vpop.f32.mrb[160].mxu1 }
0x41d7   :  { %v7379_v6 = vadd.f32 %v10085_v5, %v7378_v0  ;;  %v11298_v9 = vpop.f32.mrb[161].mxu1 }
0x41d8   :  { %v7381_v13 = vpop.f32.mrb[162].mxu1  ;;  %v10113_v9 = vld [vmem:[#allocation56] ss:$0 sm:$0xff] }
0x41d9   :  { %v7530_v47 = vpack.c.bf16 %v7379_v6, %v7379_v6  ;;  %v11299_v15 = vpop.f32.mrb[163].mxu1 }
0x41db   :  { %11321 = vmatmul.mubr.msk.bf16.vlgmr.msra.gmra.mrb[176].mxu0 %vm1318_vm2, %v7530_v47  ;;  %v10114_v47 = vld [vmem:[#allocation58] ss:$0 sm:$0xff] }
0x41dc   :  { %11344 = vmatprep.mubr.msk.bf16.mxu0 %vm13435_vm7, %v13434_v61  ;;  %11341 = vmatpush3.bf16.msra.mxu0 %v11855_v2 }
0x41dd   :  { %11342 = vmatprep.subr.bf16.mxu0 %v13434_v61 }
0x41de   :  { %v11314_v8 = vpop.f32.mrb[164].mxu1 }
0x41df   :  { %v7516_v14 = vpop.f32.mrb[165].mxu1  ;;  %v7525_v17 = vadd.f32 %v11314_v8, %v10102_v16 }
0x41e0   :  { %v11315_v39 = vpop.f32.mrb[166].mxu1  ;;  %v7517_v30 = vadd.f32 %v10102_v16, %v7516_v14  ;;  %11343 = vmatpush3.bf16.msra.mxu0 %v11856_v4  ;;  %v11857_v14 = vld [vmem:[%s15456_s15] sm:$0xff]  }
0x41e1   :  { %v7519_v11 = vpop.f32.mrb[167].mxu1  ;;  %v7597_v55 = vpack.c.bf16 %v7525_v17, %v7525_v17  ;;  %11360 = vmatprep.subr.bf16.mxu0 %v13434_v61  ;;  %v11858_v39 = vld [vmem:[%s15456_s15 + $0x8] sm:$0xff]   ;;  %v11859_v17 = vld [vmem:[%s15456_s15 + $0x10] sm:$0xff]  }
0x41e2   :  { %v7520_v19 = vadd.f32 %v10102_v16, %v7519_v11  ;;  %v11860_v11 = vld [vmem:[%s15456_s15 + $0x18] sm:$0xff]  }
0x41e3   :  { %v7602_v22 = vsel %vm1435_vm3, %v7597_v55, 0 }
0x41e4   :  { %v7596_v18 = vpack.c.bf16 %v7520_v19, %v7517_v30  ;;  %v10115_v30 = vld [vmem:[#allocation59] ss:$0 sm:$0xff] }
0x41e6   :  { %11325 = vmatpush3.bf16.msra.mxu1 %v7596_v18 }
0x41e7   :  { %11326 = vmatprep.subr.bf16.mxu1 %v13434_v61 }
0x41ea   :  { %11327 = vmatpush3.bf16.msra.mxu1 %v7602_v22 }
0x41eb   :  { %11332 = vmatprep.subr.bf16.mxu1 %v13434_v61 }
0x42ae   :  { %v7576_v29 = vpop.f32.mrb[176].mxu0 }
0x42af   :  { %v7582_v62 = vmul.f32 0.35355338, %v7576_v29  ;;  %v11322_v49 = vpop.f32.mrb[177].mxu0 }
0x42b0   :  { %v7579_v1 = vpop.f32.mrb[178].mxu0 }
0x42b1   :  { %v7583_v42 = vadd.f32 %v14919_v37, %v7582_v62  ;;  %v11323_v57 = vpop.f32.mrb[179].mxu0 }
0x42b3   :  { %v7584_v60 = vsel %vm1391_vm4, %v7583_v42, -inf }
0x42b4   :  { %7585 = vmax.xlane.f32.xlu1 %v7584_v60 }
0x42c5   :  { %7645 = vrot.lane.b32.xlu1 %v14983_v56, %s13407_s8  ;;  %v11853_v56 = vld [vmem:[%s15454_s10] sm:$0xff]  }
0x4341   :  { %v7586_v23 = vpop.xlane.xlu1 %7585 }
0x4342   :  { %v7587_v27 = vsub.f32 %v7583_v42, %v7586_v23 }
0x4344   :  { %v7588_v38 = vmul.f32 1.442695, %v7587_v27 }
0x4345   :  { %v7646_v44 = vpop.permute.xlu1 %7645 }
0x4346   :  { %12063 = vpow2.f32 %v7588_v38  ;;  %v7656_v48 = vsel %vm1318_vm2, %v14945_v3, %v7646_v44 }
0x4350   :  { %v12064_v58 = vpop.eup %12063 }
0x4351   :  { %v7590_v59 = vsel %vm1391_vm4, %v12064_v58, 0.0 }
0x4352   :  { %7591 = vadd.xlane.f32.xlu0 %v7590_v59  ;;  %v10119_v59 = vld [vmem:[#allocation61] ss:$0 sm:$0xff] }
0x4368   :  { %7649 = vrot.lane.b32.xlu0 %v7313_v31, %s13379_s0 }
0x43df   :  { %v7592_v37 = vpop.xlane.xlu0 %7591 }
0x43e0   :  { %12065 = vrcp.f32 %v7592_v37 }
0x43e3   :  { %v7650_v46 = vpop.permute.xlu0 %7649 }
0x43e4   :  { %v7657_v12 = vsel %vm2651_vm5, %v7656_v48, %v7650_v46  ;;  %v11861_v48 = vld [vmem:[%s15457_s18] sm:$0xff]  }
0x43ea   :  { %v12066_v24 = vpop.eup %12065 }
0x43eb   :  { %v7594_v26 = vmul.f32 %v12066_v24, %v12064_v58 }
0x43ed   :  { %v7595_v36 = vpack.c.bf16 %v7594_v26, %v7594_v26 }
0x43ef   :  { %11329 = vmatmul.mubr.msk.bf16.vlgmr.msra.gmra.mrb[168].mxu1 %vm1391_vm4, %v7595_v36 }
0x43f0   :  { %11336 = vmatprep.mubr.msk.bf16.mxu1 %vm13435_vm7, %v13434_v61  ;;  %11333 = vmatpush3.bf16.msra.mxu1 %v11853_v56 }
0x43f1   :  { %11334 = vmatprep.subr.bf16.mxu1 %v13434_v61 }
0x43f4   :  { %11335 = vmatpush3.bf16.msra.mxu1 %v11854_v40 }
0x43f5   :  { %11348 = vmatprep.subr.bf16.mxu1 %v13434_v61 }
0x44c2   :  { %v7638_v41 = vpop.f32.mrb[168].mxu1 }
0x44c3   :  { %7653 = vrot.lane.b32.xlu1 %v7638_v41, %s13433_s19  ;;  %v11330_v7 = vpop.f32.mrb[169].mxu1 }
0x44c4   :  { %v7641_v45 = vpop.f32.mrb[170].mxu1 }
0x44c5   :  { %v11331_v43 = vpop.f32.mrb[171].mxu1 }
0x4535   :  { %v7654_v52 = vpop.permute.xlu1 %7653 }
0x4536   :  { %v7658_v20 = vsel %vm1391_vm4, %v7657_v12, %v7654_v52  ;;  %v11862_v12 = vld [vmem:[%s15458_s4] sm:$0xff]   ;;  %v11863_v52 = vld [vmem:[%s15457_s18 + $0x8] sm:$0xff]  }
0x4537   :  { %v7663_v53 = vpack.c.bf16 %v7658_v20, %v7658_v20  ;;  %v11864_v20 = vld [vmem:[%s15458_s4 + $0x8] sm:$0xff]  }
0x4539   :  { %11337 = vmatmul.mubr.msk.bf16.vlgmr.msra.gmra.mrb[172].mxu1 %vm1041_vm1, %v7663_v53 }
0x453a   :  { %11356 = vmatprep.mubr.msk.bf16.mxu1 %vm13435_vm7, %v13434_v61  ;;  %11349 = vmatpush3.bf16.msra.mxu1 %v11857_v14 }
0x453b   :  { %11350 = vmatprep.subr.bf16.mxu1 %v13434_v61 }
0x453e   :  { %11351 = vmatpush3.bf16.msra.mxu1 %v11858_v39 }
0x453f   :  { %11352 = vmatprep.subr.bf16.mxu1 %v13434_v61 }
0x4542   :  { %11353 = vmatpush3.bf16.msra.mxu1 %v11859_v17 }
0x4543   :  { %11354 = vmatprep.subr.bf16.mxu1 %v13434_v61 }
0x4546   :  { %11355 = vmatpush3.bf16.msra.mxu1 %v11860_v11 }
0x4547   :  { %11376 = vmatprep.subr.bf16.mxu1 %v13434_v61 }
0x460c   :  { %v7720_v21 = vpop.f32.mrb[172].mxu1 }
0x460d   :  { %v7721_v25 = vadd.f32 %v10109_v54, %v7720_v21  ;;  %v11338_v28 = vpop.f32.mrb[173].mxu1 }
0x460e   :  { %v7723_v33 = vpop.f32.mrb[174].mxu1  ;;  %v10125_v28 = vld [vmem:[#allocation62] ss:$0 sm:$0xff] }
0x460f   :  { %v7726_v3 = vadd.f32 %v7721_v25, %v14887_v35  ;;  %v11339_v10 = vpop.f32.mrb[175].mxu1 }
0x4611   :  { %v7729_v50 = vsel %vm1041_vm1, %v7726_v3, 0.0 }
0x4612   :  { %7730 = vadd.xlane.f32.xlu1 %v7729_v50 }
0x469f   :  { %v7731_v51 = vpop.xlane.xlu1 %7730 }
0x46a0   :  { %v7732_v34 = vmul.f32 0.03125, %v7731_v51  ;;  %v11865_v51 = vld [vmem:[%s15459_s22] sm:$0xff]  }
0x46a2   :  { %v7733_v63 = vsub.f32 %v7726_v3, %v7732_v34  ;;  %v10126_v3 = vld [vmem:[#allocation64] ss:$0 sm:$0xff] }
0x46a4   :  { %v7734_v31 = vmul.f32 %v7733_v63, %v7733_v63 }
0x46a6   :  { %v7735_v32 = vsel %vm1041_vm1, %v7734_v31, 0.0  ;;  %v10135_v31 = vld [vmem:[#allocation68] ss:$0 sm:$0xff] }
0x46a7   :  { %7736 = vadd.xlane.f32.xlu0 %v7735_v32 }
0x4734   :  { %v7737_v35 = vpop.xlane.xlu0 %7736 }
0x4735   :  { %v7738_v5 = vmul.f32 0.03125, %v7737_v35 }
0x4737   :  { %v7739_v0 = vadd.f32 1e-12, %v7738_v5 }
0x4739   :  { %12067 = vrsqrt.f32 %v7739_v0 }
0x4743   :  { %v12068_v6 = vpop.eup %12067 }
0x4744   :  { %v7741_v13 = vmul.f32 %v12068_v6, %v7733_v63  ;;  %v11866_v63 = vld [vmem:[%s15459_s22 + $0x8] sm:$0xff]  }
0x4746   :  { %v7748_v15 = vmul.f32 %v10113_v9, %v7741_v13 }
0x4748   :  { %v7755_v8 = vadd.f32 %v10114_v47, %v7748_v15 }
0x474a   :  { %v7760_v16 = vpack.c.bf16 %v7755_v8, %v7755_v8 }
0x474c   :  { %11345 = vmatmul.mubr.msk.bf16.vlgmr.msra.gmra.mrb[180].mxu0 %vm1041_vm1, %v7760_v16 }
0x474d   :  { %11364 = vmatprep.mubr.msk.bf16.mxu0 %vm13435_vm7, %v13434_v61  ;;  %11361 = vmatpush3.bf16.msra.mxu0 %v11861_v48 }
0x474e   :  { %11362 = vmatprep.subr.bf16.mxu0 %v13434_v61 }
0x4751   :  { %11363 = vmatpush3.bf16.msra.mxu0 %v11863_v52 }
0x4752   :  { %11368 = vmatprep.subr.bf16.mxu0 %v13434_v61 }
0x481f   :  { %v7817_v19 = vpop.f32.mrb[180].mxu0 }
0x4820   :  { %v7818_v18 = vadd.f32 %v10115_v30, %v7817_v19  ;;  %v11346_v55 = vpop.f32.mrb[181].mxu0  ;;  %v10127_v19 = vld [vmem:[#allocation65] ss:$0 sm:$0xff] }
0x4821   :  { %v7820_v22 = vpop.f32.mrb[182].mxu0 }
0x4822   :  { %v7823_v29 = vmul.f32 %v7818_v18, %v7818_v18  ;;  %v11347_v62 = vpop.f32.mrb[183].mxu0  ;;  %v11867_v22 = vld [vmem:[%s15457_s18 + $0x10] sm:$0xff]  }
0x4823   :  { %v11868_v62 = vld [vmem:[%s15457_s18 + $0x18] sm:$0xff]  }
0x4824   :  { %v7824_v49 = vmul.f32 %v7823_v29, %v7818_v18 }
0x4826   :  { %v7825_v1 = vmul.f32 0.044715, %v7824_v49  ;;  %v11869_v49 = vld [vmem:[%s15458_s4 + $0x10] sm:$0xff]  }
0x4828   :  { %v7826_v42 = vadd.f32 %v7825_v1, %v7818_v18  ;;  %v11870_v1 = vld [vmem:[%s15458_s4 + $0x18] sm:$0xff]  }
0x482a   :  { %v7827_v57 = vmul.f32 0.7978846, %v7826_v42 }
0x482c   :  { %12069 = vtanh.f32 %v7827_v57 }
0x4836   :  { %v12070_v60 = vpop.eup %12069 }
0x4837   :  { %v7829_v23 = vadd.f32 1.0, %v12070_v60 }
0x4839   :  { %v7830_v27 = vmul.f32 0.5, %v7829_v23 }
0x483b   :  { %v7831_v38 = vmul.f32 %v7830_v27, %v7818_v18 }
0x483d   :  { %v7840_v58 = vpack.c.bf16 %v7831_v38, %v7831_v38 }
0x483f   :  { %11357 = vmatmul.mubr.msk.bf16.vlgmr.msra.gmra.mrb[176].mxu1 %vm2946_vm6, %v7840_v58 }
0x4840   :  { %11380 = vmatprep.mubr.msk.bf16.mxu1 %vm13435_vm7, %v13434_v61  ;;  %11377 = vmatpush3.bf16.msra.mxu1 %v11862_v12 }
0x4841   :  { %11378 = vmatprep.subr.bf16.mxu1 %v13434_v61 }
0x4844   :  { %11379 = vmatpush3.bf16.msra.mxu1 %v11864_v20 }
0x4845   :  { %11390 = vmatprep.subr.bf16.mxu1 %v13434_v61 }
0x4912   :  { %v7909_v37 = vpop.f32.mrb[176].mxu1 }
0x4913   :  { %v7910_v24 = vadd.f32 %v10119_v59, %v7909_v37  ;;  %v11358_v26 = vpop.f32.mrb[177].mxu1 }
0x4914   :  { %v7912_v36 = vpop.f32.mrb[178].mxu1  ;;  %v10161_v26 = vld [vmem:[#allocation68 + $0x1] ss:$0 sm:$0xff] }
0x4915   :  { %v7915_v56 = vadd.f32 %v7910_v24, %v7755_v8  ;;  %v11359_v40 = vpop.f32.mrb[179].mxu1  ;;  %v10131_v8 = vld [vmem:[#allocation67] ss:$0 sm:$0xff] }
0x4917   :  { %v7918_v41 = vsel %vm1041_vm1, %v7915_v56, 0.0 }
0x4918   :  { %7919 = vadd.xlane.f32.xlu0 %v7918_v41 }
0x49a5   :  { %v7920_v7 = vpop.xlane.xlu0 %7919 }
0x49a6   :  { %v7921_v45 = vmul.f32 0.03125, %v7920_v7 }
0x49a8   :  { %v7922_v43 = vsub.f32 %v7915_v56, %v7921_v45 }
0x49aa   :  { %v7923_v44 = vmul.f32 %v7922_v43, %v7922_v43 }
0x49ac   :  { %v7924_v46 = vsel %vm1041_vm1, %v7923_v44, 0.0 }
0x49ad   :  { %7925 = vadd.xlane.f32.xlu1 %v7924_v46 }
0x4a3a   :  { %v7926_v53 = vpop.xlane.xlu1 %7925 }
0x4a3b   :  { %v7927_v54 = vmul.f32 0.03125, %v7926_v53 }
0x4a3d   :  { %v7928_v21 = vadd.f32 1e-12, %v7927_v54 }
0x4a3f   :  { %12071 = vrsqrt.f32 %v7928_v21  ;;  %v11871_v21 = vld [vmem:[%s15459_s22 + $0x10] sm:$0xff]  }
0x4a49   :  { %v12072_v25 = vpop.eup %12071 }
0x4a4a   :  { %v7930_v33 = vmul.f32 %v12072_v25, %v7922_v43 }
0x4a4c   :  { %v7937_v10 = vmul.f32 %v10125_v28, %v7930_v33  ;;  %v11872_v28 = vld [vmem:[%s15459_s22 + $0x18] sm:$0xff]  }
0x4a4e   :  { %v15079_v50 = vadd.f32 %v10126_v3, %v7937_v10 }
0x4a50   :  { %v15084_v34 = vpack.c.bf16 %v15079_v50, %v15079_v50 }
0x4a52   :  { %11365 = vmatmul.mubr.msk.bf16.vlgmr.msra.gmra.mrb[184].mxu0 %vm1041_vm1, %v15084_v34  ;;  %11381 = vmatmul.mubr.msk.bf16.vlgmr.msra.gmra.mrb[180].mxu1 %vm1041_vm1, %v15084_v34 }
0x4a53   :  { %11369 = vmatpush3.bf16.msra.mxu0 %v11865_v51  ;;  %11372 = vmatprep.mubr.msk.bf16.mxu0 %vm13435_vm7, %v13434_v61 }
0x4a54   :  { %11370 = vmatprep.subr.bf16.mxu0 %v13434_v61  ;;  %11392 = vmatprep.mubr.msk.bf16.mxu1 %vm13435_vm7, %v13434_v61 }
0x4a57   :  { %11371 = vmatpush3.bf16.msra.mxu0 %v11866_v63  ;;  %v10153_v63 = vld [vmem:[#allocation67 + $0x1] ss:$0 sm:$0xff] }
0x4a58   :  { %11384 = vmatprep.subr.bf16.mxu0 %v13434_v61 }
0x4a5a   :  { %11373 = vmatmul.mubr.msk.bf16.vlgmr.msra.gmra.mrb[188].mxu0 %vm1041_vm1, %v15084_v34 }
0x4a5b   :  { %11386 = vmatprep.mubr.msk.bf16.mxu0 %vm13435_vm7, %v13434_v61 }
0x4b25   :  { %v8006_v32 = vpop.f32.mrb[184].mxu0  ;;  %v8132_v2 = vpop.f32.mrb[180].mxu1 }
0x4b26   :  { %v8133_v4 = vadd.f32 %v10135_v31, %v8132_v2  ;;  %v11366_v35 = vpop.f32.mrb[185].mxu0  ;;  %v11382_v5 = vpop.f32.mrb[181].mxu1  ;;  %v8007_v55 = vadd.f32 %v10127_v19, %v8006_v32 }
0x4b27   :  { %v8009_v0 = vpop.f32.mrb[186].mxu0  ;;  %v8135_v6 = vpop.f32.mrb[182].mxu1 }
0x4b28   :  { %v8199_v9 = vpack.c.bf16 %v8133_v4, %v8133_v4  ;;  %v11367_v13 = vpop.f32.mrb[187].mxu0  ;;  %v11383_v47 = vpop.f32.mrb[183].mxu1  ;;  %v8138_v29 = vpack.c.bf16 %v8007_v55, %v8007_v55  ;;  %v10145_v0 = vld [vmem:[#allocation65 + $0x1] ss:$0 sm:$0xff] }
0x4b29   :  { %v11873_v13 = vld [vmem:[%s15457_s18 + $0x20] sm:$0xff]  }
0x4b2a   :  { %v8204_v15 = vsel %vm1435_vm3, %v8199_v9, 0 }
0x4b2b   :  { %11391 = vmatpush3.bf16.msra.mxu1 %v8204_v15  ;;  %v11874_v15 = vld [vmem:[%s15457_s18 + $0x28] sm:$0xff]  }
0x4b2c   :  { %11404 = vmatprep.subr.bf16.mxu1 %v13434_v61 }
0x4b2d   :  { %v8069_v16 = vpop.f32.mrb[188].mxu0 }
0x4b2e   :  { %v8070_v14 = vadd.f32 %v10131_v8, %v8069_v16  ;;  %v11374_v39 = vpop.f32.mrb[189].mxu0  ;;  %v11875_v8 = vld [vmem:[%s15458_s4 + $0x20] sm:$0xff]   ;;  %v11876_v16 = vld [vmem:[%s15458_s4 + $0x28] sm:$0xff]  }
0x4b2f   :  { %v8072_v17 = vpop.f32.mrb[190].mxu0 }
0x4b30   :  { %v8139_v11 = vpack.c.bf16 %v8070_v14, %v8070_v14  ;;  %v11375_v30 = vpop.f32.mrb[191].mxu0 }
0x4b32   :  { %v8144_v18 = vsel %vm1318_vm2, %v8139_v11, 0 }
0x4b33   :  { %11385 = vmatpush3.bf16.xpose.msra.mxu0 %v8144_v18 }
0x4b34   :  { %11396 = vmatprep.subr.bf16.mxu0 %v13434_v61 }
0x4b3a   :  { %11387 = vmatmul.mubr.msk.bf16.vlgmr.msra.gmra.mrb[192].mxu0 %vm1318_vm2, %v8138_v29 }
0x4b3b   :  { %11397 = vmatpush3.bf16.msra.mxu0 %v11867_v22  ;;  %11400 = vmatprep.mubr.msk.bf16.mxu0 %vm13435_vm7, %v13434_v61 }
0x4b3c   :  { %11398 = vmatprep.subr.bf16.mxu0 %v13434_v61 }
0x4b3f   :  { %11399 = vmatpush3.bf16.msra.mxu0 %v11868_v62  ;;  %v10187_v62 = vld [vmem:[#allocation68 + $0x2] ss:$0 sm:$0xff] }
0x4b40   :  { %11412 = vmatprep.subr.bf16.mxu0 %v13434_v61 }
0x4b42   :  { %11401 = vmatmul.mubr.msk.bf16.vlgmr.msra.gmra.mrb[196].mxu0 %vm1041_vm1, %v15084_v34 }
0x4b43   :  { %11413 = vmatpush3.bf16.msra.mxu0 %v11869_v49  ;;  %11416 = vmatprep.mubr.msk.bf16.mxu0 %vm13435_vm7, %v13434_v61 }
0x4b44   :  { %11414 = vmatprep.subr.bf16.mxu0 %v13434_v61 }
0x4b47   :  { %11415 = vmatpush3.bf16.msra.mxu0 %v11870_v1 }
0x4b48   :  { %11426 = vmatprep.subr.bf16.mxu0 %v13434_v61 }
0x4b4a   :  { %11417 = vmatmul.mubr.msk.bf16.vlgmr.msra.gmra.mrb[200].mxu0 %vm1041_vm1, %v15084_v34 }
0x4b4b   :  { %11428 = vmatprep.mubr.msk.bf16.mxu0 %vm13435_vm7, %v13434_v61 }
0x4c0d   :  { %v8180_v42 = vpop.f32.mrb[192].mxu0 }
0x4c0e   :  { %v8186_v57 = vmul.f32 0.35355338, %v8180_v42  ;;  %v11388_v60 = vpop.f32.mrb[193].mxu0 }
0x4c0f   :  { %v8183_v23 = vpop.f32.mrb[194].mxu0 }
0x4c10   :  { %v11389_v27 = vpop.f32.mrb[195].mxu0  ;;  %v8187_v38 = vsel %vm1318_vm2, %v8186_v57, -inf }
0x4c11   :  { %8188 = vmax.xlane.f32.xlu0 %v8187_v38 }
0x4c15   :  { %v8305_v58 = vpop.f32.mrb[196].mxu0 }
0x4c16   :  { %v11402_v59 = vpop.f32.mrb[197].mxu0  ;;  %v8306_v9 = vadd.f32 %v10145_v0, %v8305_v58 }
0x4c17   :  { %v8308_v37 = vpop.f32.mrb[198].mxu0 }
0x4c18   :  { %v11403_v24 = vpop.f32.mrb[199].mxu0  ;;  %v8441_v47 = vpack.c.bf16 %v8306_v9, %v8306_v9 }
0x4c1d   :  { %v8435_v36 = vpop.f32.mrb[200].mxu0 }
0x4c1e   :  { %v8436_v56 = vadd.f32 %v10161_v26, %v8435_v36  ;;  %v11418_v40 = vpop.f32.mrb[201].mxu0 }
0x4c1f   :  { %v8438_v41 = vpop.f32.mrb[202].mxu0  ;;  %v11877_v40 = vld [vmem:[%s15459_s22 + $0x20] sm:$0xff]  }
0x4c20   :  { %v8502_v7 = vpack.c.bf16 %v8436_v56, %v8436_v56  ;;  %v11419_v45 = vpop.f32.mrb[203].mxu0 }
0x4c22   :  { %v8507_v43 = vsel %vm1435_vm3, %v8502_v7, 0  ;;  %v11878_v7 = vld [vmem:[%s15459_s22 + $0x28] sm:$0xff]  }
0x4c23   :  { %11427 = vmatpush3.bf16.msra.mxu0 %v8507_v43 }
0x4c24   :  { %11440 = vmatprep.subr.bf16.mxu0 %v13434_v61 }
0x4c9e   :  { %v8189_v44 = vpop.xlane.xlu0 %8188 }
0x4c9f   :  { %v8190_v46 = vsub.f32 %v8186_v57, %v8189_v44 }
0x4ca1   :  { %v8191_v48 = vmul.f32 1.442695, %v8190_v46 }
0x4ca3   :  { %12073 = vpow2.f32 %v8191_v48  ;;  %v10179_v48 = vld [vmem:[#allocation67 + $0x2] ss:$0 sm:$0xff] }
0x4cad   :  { %v12074_v12 = vpop.eup %12073 }
0x4cae   :  { %v8193_v52 = vsel %vm1318_vm2, %v12074_v12, 0.0 }
0x4caf   :  { %8194 = vadd.xlane.f32.xlu1 %v8193_v52 }
0x4d3c   :  { %v8195_v20 = vpop.xlane.xlu1 %8194 }
0x4d3d   :  { %12075 = vrcp.f32 %v8195_v20 }
0x4d47   :  { %v12076_v53 = vpop.eup %12075 }
0x4d48   :  { %v8197_v54 = vmul.f32 %v12076_v53, %v12074_v12 }
0x4d4a   :  { %v8198_v25 = vpack.c.bf16 %v8197_v54, %v8197_v54 }
0x4d4c   :  { %11393 = vmatmul.mubr.msk.bf16.vlgmr.msra.gmra.mrb[184].mxu1 %vm1318_vm2, %v8198_v25  ;;  %v10171_v25 = vld [vmem:[#allocation65 + $0x2] ss:$0 sm:$0xff] }
0x4d4d   :  { %11405 = vmatpush3.bf16.msra.mxu1 %v11871_v21  ;;  %11408 = vmatprep.mubr.msk.bf16.mxu1 %vm13435_vm7, %v13434_v61 }
0x4d4e   :  { %11406 = vmatprep.subr.bf16.mxu1 %v13434_v61 }
0x4d51   :  { %11407 = vmatpush3.bf16.msra.mxu1 %v11872_v28 }
0x4d52   :  { %11420 = vmatprep.subr.bf16.mxu1 %v13434_v61 }
0x4d54   :  { %11409 = vmatmul.mubr.msk.bf16.vlgmr.msra.gmra.mrb[188].mxu1 %vm1041_vm1, %v15084_v34 }
0x4d55   :  { %11422 = vmatprep.mubr.msk.bf16.mxu1 %vm13435_vm7, %v13434_v61 }
0x4e1f   :  { %v15139_v33 = vpop.f32.mrb[184].mxu1 }
0x4e20   :  { %v11394_v3 = vpop.f32.mrb[185].mxu1 }
0x4e21   :  { %v8243_v10 = vpop.f32.mrb[186].mxu1 }
0x4e22   :  { %v11395_v51 = vpop.f32.mrb[187].mxu1  ;;  %v11879_v10 = vld [vmem:[%s15457_s18 + $0x30] sm:$0xff]  }
0x4e27   :  { %v8370_v31 = vpop.f32.mrb[188].mxu1 }
0x4e28   :  { %v8371_v32 = vadd.f32 %v10153_v63, %v8370_v31  ;;  %v11410_v2 = vpop.f32.mrb[189].mxu1  ;;  %v11880_v63 = vld [vmem:[%s15457_s18 + $0x38] sm:$0xff]   ;;  %v11881_v31 = vld [vmem:[%s15458_s4 + $0x30] sm:$0xff]  }
0x4e29   :  { %v8373_v4 = vpop.f32.mrb[190].mxu1 }
0x4e2a   :  { %v8442_v35 = vpack.c.bf16 %v8371_v32, %v8371_v32  ;;  %v11411_v5 = vpop.f32.mrb[191].mxu1  ;;  %v11882_v32 = vld [vmem:[%s15458_s4 + $0x38] sm:$0xff]  }
0x4e2c   :  { %v8447_v6 = vsel %vm1318_vm2, %v8442_v35, 0 }
0x4e2d   :  { %11421 = vmatpush3.bf16.xpose.msra.mxu1 %v8447_v6 }
0x4e2e   :  { %11432 = vmatprep.subr.bf16.mxu1 %v13434_v61 }
0x4e34   :  { %11423 = vmatmul.mubr.msk.bf16.vlgmr.msra.gmra.mrb[192].mxu1 %vm1318_vm2, %v8441_v47 }
0x4e35   :  { %11433 = vmatpush3.bf16.msra.mxu1 %v11873_v13  ;;  %11436 = vmatprep.mubr.msk.bf16.mxu1 %vm13435_vm7, %v13434_v61 }
0x4e36   :  { %11434 = vmatprep.subr.bf16.mxu1 %v13434_v61 }
0x4e39   :  { %11435 = vmatpush3.bf16.msra.mxu1 %v11874_v15 }
0x4e3a   :  { %11448 = vmatprep.subr.bf16.mxu1 %v13434_v61 }
0x4e3c   :  { %11437 = vmatmul.mubr.msk.bf16.vlgmr.msra.gmra.mrb[196].mxu1 %vm1041_vm1, %v15084_v34 }
0x4e3d   :  { %11449 = vmatpush3.bf16.msra.mxu1 %v11875_v8  ;;  %11452 = vmatprep.mubr.msk.bf16.mxu1 %vm13435_vm7, %v13434_v61  ;;  %v10213_v8 = vld [vmem:[#allocation68 + $0x3] ss:$0 sm:$0xff] }
0x4e3e   :  { %11450 = vmatprep.subr.bf16.mxu1 %v13434_v61 }
0x4e41   :  { %11451 = vmatpush3.bf16.msra.mxu1 %v11876_v16 }
0x4e42   :  { %11462 = vmatprep.subr.bf16.mxu1 %v13434_v61 }
0x4e44   :  { %11453 = vmatmul.mubr.msk.bf16.vlgmr.msra.gmra.mrb[200].mxu1 %vm1041_vm1, %v15084_v34 }
0x4e45   :  { %11464 = vmatprep.mubr.msk.bf16.mxu1 %vm13435_vm7, %v13434_v61 }
0x4f07   :  { %v8483_v14 = vpop.f32.mrb[192].mxu1 }
0x4f08   :  { %v8489_v39 = vmul.f32 0.35355338, %v8483_v14  ;;  %v11424_v17 = vpop.f32.mrb[193].mxu1 }
0x4f09   :  { %v8486_v11 = vpop.f32.mrb[194].mxu1 }
0x4f0a   :  { %v11425_v30 = vpop.f32.mrb[195].mxu1  ;;  %v8490_v19 = vsel %vm1318_vm2, %v8489_v39, -inf }
0x4f0b   :  { %8491 = vmax.xlane.f32.xlu0 %v8490_v19 }
0x4f0f   :  { %v8608_v18 = vpop.f32.mrb[196].mxu1 }
0x4f10   :  { %v11438_v55 = vpop.f32.mrb[197].mxu1  ;;  %v8609_v3 = vadd.f32 %v10171_v25, %v8608_v18 }
0x4f11   :  { %v8611_v22 = vpop.f32.mrb[198].mxu1 }
0x4f12   :  { %v11439_v29 = vpop.f32.mrb[199].mxu1  ;;  %v8744_v51 = vpack.c.bf16 %v8609_v3, %v8609_v3 }
0x4f17   :  { %v8738_v49 = vpop.f32.mrb[200].mxu1 }
0x4f18   :  { %v8739_v1 = vadd.f32 %v10187_v62, %v8738_v49  ;;  %v11454_v42 = vpop.f32.mrb[201].mxu1 }
0x4f19   :  { %v8741_v57 = vpop.f32.mrb[202].mxu1 }
0x4f1a   :  { %v8805_v60 = vpack.c.bf16 %v8739_v1, %v8739_v1  ;;  %v11455_v23 = vpop.f32.mrb[203].mxu1  ;;  %v11883_v57 = vld [vmem:[%s15459_s22 + $0x30] sm:$0xff]  }
0x4f1b   :  { %v11884_v23 = vld [vmem:[%s15459_s22 + $0x38] sm:$0xff]  }
0x4f1c   :  { %v8810_v27 = vsel %vm1435_vm3, %v8805_v60, 0 }
0x4f1d   :  { %11463 = vmatpush3.bf16.msra.mxu1 %v8810_v27 }
0x4f1e   :  { %11476 = vmatprep.subr.bf16.mxu1 %v13434_v61 }
0x4f98   :  { %v8492_v38 = vpop.xlane.xlu0 %8491 }
0x4f99   :  { %v8493_v58 = vsub.f32 %v8489_v39, %v8492_v38 }
0x4f9b   :  { %v8494_v59 = vmul.f32 1.442695, %v8493_v58 }
0x4f9d   :  { %12077 = vpow2.f32 %v8494_v59 }
0x4fa7   :  { %v12078_v37 = vpop.eup %12077 }
0x4fa8   :  { %v8496_v24 = vsel %vm1318_vm2, %v12078_v37, 0.0 }
0x4fa9   :  { %8497 = vadd.xlane.f32.xlu1 %v8496_v24 }
0x5036   :  { %v8498_v26 = vpop.xlane.xlu1 %8497 }
0x5037   :  { %12079 = vrcp.f32 %v8498_v26 }
0x5041   :  { %v12080_v36 = vpop.eup %12079 }
0x5042   :  { %v8500_v56 = vmul.f32 %v12080_v36, %v12078_v37  ;;  %v10205_v37 = vld [vmem:[#allocation67 + $0x3] ss:$0 sm:$0xff] }
0x5044   :  { %v8501_v41 = vpack.c.bf16 %v8500_v56, %v8500_v56 }
0x5046   :  { %11429 = vmatmul.mubr.msk.bf16.vlgmr.msra.gmra.mrb[204].mxu0 %vm1318_vm2, %v8501_v41 }
0x5047   :  { %11441 = vmatpush3.bf16.msra.mxu0 %v11877_v40  ;;  %11444 = vmatprep.mubr.msk.bf16.mxu0 %vm13435_vm7, %v13434_v61 }
0x5048   :  { %11442 = vmatprep.subr.bf16.mxu0 %v13434_v61 }
0x504b   :  { %11443 = vmatpush3.bf16.msra.mxu0 %v11878_v7  ;;  %v10197_v7 = vld [vmem:[#allocation65 + $0x3] ss:$0 sm:$0xff] }
0x504c   :  { %11456 = vmatprep.subr.bf16.mxu0 %v13434_v61 }
0x504e   :  { %11445 = vmatmul.mubr.msk.bf16.vlgmr.msra.gmra.mrb[208].mxu0 %vm1041_vm1, %v15084_v34 }
0x504f   :  { %11458 = vmatprep.mubr.msk.bf16.mxu0 %vm13435_vm7, %v13434_v61 }
0x5119   :  { %v15177_v45 = vpop.f32.mrb[204].mxu0 }
0x511a   :  { %v11430_v43 = vpop.f32.mrb[205].mxu0 }
0x511b   :  { %v8546_v44 = vpop.f32.mrb[206].mxu0 }
0x511c   :  { %v11431_v46 = vpop.f32.mrb[207].mxu0 }
0x5121   :  { %v8673_v12 = vpop.f32.mrb[208].mxu0 }
0x5122   :  { %v8674_v52 = vadd.f32 %v10179_v48, %v8673_v12  ;;  %v11446_v20 = vpop.f32.mrb[209].mxu0 }
0x5123   :  { %v8676_v53 = vpop.f32.mrb[210].mxu0 }
0x5124   :  { %v8745_v54 = vpack.c.bf16 %v8674_v52, %v8674_v52  ;;  %v11447_v21 = vpop.f32.mrb[211].mxu0 }
0x5126   :  { %v8750_v28 = vsel %vm1318_vm2, %v8745_v54, 0 }
0x5127   :  { %11457 = vmatpush3.bf16.xpose.msra.mxu0 %v8750_v28 }
0x5128   :  { %11468 = vmatprep.subr.bf16.mxu0 %v13434_v61 }
0x512e   :  { %11459 = vmatmul.mubr.msk.bf16.vlgmr.msra.gmra.mrb[212].mxu0 %vm1318_vm2, %v8744_v51 }
0x512f   :  { %11469 = vmatpush3.bf16.msra.mxu0 %v11879_v10  ;;  %11472 = vmatprep.mubr.msk.bf16.mxu0 %vm13435_vm7, %v13434_v61 }
0x5130   :  { %11470 = vmatprep.subr.bf16.mxu0 %v13434_v61 }
0x5133   :  { %11471 = vmatpush3.bf16.msra.mxu0 %v11880_v63 }
0x5134   :  { %11484 = vmatprep.subr.bf16.mxu0 %v13434_v61 }
0x5136   :  { %11473 = vmatmul.mubr.msk.bf16.vlgmr.msra.gmra.mrb[216].mxu0 %vm1041_vm1, %v15084_v34 }
0x5137   :  { %11485 = vmatpush3.bf16.msra.mxu0 %v11881_v31  ;;  %11488 = vmatprep.mubr.msk.bf16.mxu0 %vm13435_vm7, %v13434_v61 }
0x5138   :  { %11486 = vmatprep.subr.bf16.mxu0 %v13434_v61 }
0x513b   :  { %11487 = vmatpush3.bf16.msra.mxu0 %v11882_v32  ;;  %v11886_v32 = vld [vmem:[%s15460_s13 + $0x8] sm:$0xff]  }
0x513c   :  { %11498 = vmatprep.subr.bf16.mxu0 %v13434_v61 }
0x513e   :  { %11489 = vmatmul.mubr.msk.bf16.vlgmr.msra.gmra.mrb[220].mxu0 %vm1041_vm1, %v15084_v34 }
0x513f   :  { %11500 = vmatprep.mubr.msk.bf16.mxu0 %vm13435_vm7, %v13434_v61 }
0x5201   :  { %v8786_v2 = vpop.f32.mrb[212].mxu0 }
0x5202   :  { %v8792_v4 = vmul.f32 0.35355338, %v8786_v2  ;;  %v11460_v35 = vpop.f32.mrb[213].mxu0 }
0x5203   :  { %v8789_v5 = vpop.f32.mrb[214].mxu0 }
0x5204   :  { %v11461_v0 = vpop.f32.mrb[215].mxu0  ;;  %v8793_v6 = vsel %vm1318_vm2, %v8792_v4, -inf }
0x5205   :  { %8794 = vmax.xlane.f32.xlu0 %v8793_v6 }
0x5209   :  { %v8911_v9 = vpop.f32.mrb[216].mxu0 }
0x520a   :  { %v11474_v13 = vpop.f32.mrb[217].mxu0  ;;  %v8912_v44 = vadd.f32 %v10197_v7, %v8911_v9 }
0x520b   :  { %v8914_v47 = vpop.f32.mrb[218].mxu0 }
0x520c   :  { %v11475_v15 = vpop.f32.mrb[219].mxu0 }
0x5211   :  { %v9041_v16 = vpop.f32.mrb[220].mxu0 }
0x5212   :  { %v9042_v14 = vadd.f32 %v10213_v8, %v9041_v16  ;;  %v11490_v39 = vpop.f32.mrb[221].mxu0  ;;  %v10219_v16 = vld [vmem:[#allocation70] ss:$0 sm:$0xff] }
0x5213   :  { %v9044_v17 = vpop.f32.mrb[222].mxu0 }
0x5214   :  { %v9108_v11 = vpack.c.bf16 %v9042_v14, %v9042_v14  ;;  %v11491_v30 = vpop.f32.mrb[223].mxu0 }
0x5216   :  { %v9113_v19 = vsel %vm1435_vm3, %v9108_v11, 0 }
0x5217   :  { %11499 = vmatpush3.bf16.msra.mxu0 %v9113_v19 }
0x5218   :  { %11512 = vmatprep.subr.bf16.mxu0 %v13434_v61 }
0x5292   :  { %v8795_v18 = vpop.xlane.xlu0 %8794 }
0x5293   :  { %v8796_v55 = vsub.f32 %v8792_v4, %v8795_v18 }
0x5295   :  { %v8797_v22 = vmul.f32 1.442695, %v8796_v55 }
0x5297   :  { %12081 = vpow2.f32 %v8797_v22 }
0x52a1   :  { %v12082_v29 = vpop.eup %12081 }
0x52a2   :  { %v8799_v62 = vsel %vm1318_vm2, %v12082_v29, 0.0 }
0x52a3   :  { %8800 = vadd.xlane.f32.xlu1 %v8799_v62 }
0x5330   :  { %v8801_v49 = vpop.xlane.xlu1 %8800 }
0x5331   :  { %12083 = vrcp.f32 %v8801_v49 }
0x533b   :  { %v12084_v1 = vpop.eup %12083 }
0x533c   :  { %v8803_v42 = vmul.f32 %v12084_v1, %v12082_v29 }
0x533e   :  { %v8804_v60 = vpack.c.bf16 %v8803_v42, %v8803_v42 }
0x5340   :  { %11465 = vmatmul.mubr.msk.bf16.vlgmr.msra.gmra.mrb[204].mxu1 %vm1318_vm2, %v8804_v60 }
0x5341   :  { %11477 = vmatpush3.bf16.msra.mxu1 %v11883_v57  ;;  %11480 = vmatprep.mubr.msk.bf16.mxu1 %vm13435_vm7, %v13434_v61 }
0x5342   :  { %11478 = vmatprep.subr.bf16.mxu1 %v13434_v61 }
0x5345   :  { %11479 = vmatpush3.bf16.msra.mxu1 %v11884_v23  ;;  %v10223_v23 = vld [vmem:[#allocation71] ss:$0 sm:$0xff] }
0x5346   :  { %11492 = vmatprep.subr.bf16.mxu1 %v13434_v61 }
0x5348   :  { %11481 = vmatmul.mubr.msk.bf16.vlgmr.msra.gmra.mrb[208].mxu1 %vm1041_vm1, %v15084_v34  ;;  %v9047_v34 = vpack.c.bf16 %v8912_v44, %v8912_v44 }
0x5349   :  { %11494 = vmatprep.mubr.msk.bf16.mxu1 %vm13435_vm7, %v13434_v61 }
0x5413   :  { %v8846_v27 = vpop.f32.mrb[204].mxu1 }
0x5414   :  { %v11466_v38 = vpop.f32.mrb[205].mxu1 }
0x5415   :  { %v8849_v58 = vpop.f32.mrb[206].mxu1  ;;  %v10224_v38 = vld [vmem:[#allocation73] ss:$0 sm:$0xff] }
0x5416   :  { %v11467_v59 = vpop.f32.mrb[207].mxu1 }
0x541b   :  { %v8976_v24 = vpop.f32.mrb[208].mxu1 }
0x541c   :  { %v8977_v26 = vadd.f32 %v10205_v37, %v8976_v24  ;;  %v11482_v36 = vpop.f32.mrb[209].mxu1 }
0x541d   :  { %v8979_v56 = vpop.f32.mrb[210].mxu1 }
0x541e   :  { %v9048_v40 = vpack.c.bf16 %v8977_v26, %v8977_v26  ;;  %v11483_v41 = vpop.f32.mrb[211].mxu1 }
0x5420   :  { %v9053_v43 = vsel %vm1318_vm2, %v9048_v40, 0  ;;  %v10225_v40 = vld [vmem:[#allocation74] ss:$0 sm:$0xff] }
0x5421   :  { %11493 = vmatpush3.bf16.xpose.msra.mxu1 %v9053_v43 }
0x5422   :  { %11504 = vmatprep.subr.bf16.mxu1 %v13434_v61 }
0x5428   :  { %11495 = vmatmul.mubr.msk.bf16.vlgmr.msra.gmra.mrb[212].mxu1 %vm1318_vm2, %v9047_v34 }
0x5429   :  { %11508 = vmatprep.mubr.msk.bf16.mxu1 %vm13435_vm7, %v13434_v61 }
0x54fb   :  { %v9089_v46 = vpop.f32.mrb[212].mxu1 }
0x54fc   :  { %v9095_v48 = vmul.f32 0.35355338, %v9089_v46  ;;  %v11496_v12 = vpop.f32.mrb[213].mxu1 }
0x54fd   :  { %v9092_v52 = vpop.f32.mrb[214].mxu1 }
0x54fe   :  { %v11497_v20 = vpop.f32.mrb[215].mxu1  ;;  %v9096_v53 = vsel %vm1318_vm2, %v9095_v48, -inf }
0x54ff   :  { %9097 = vmax.xlane.f32.xlu0 %v9096_v53 }
0x5515   :  { %9156 = vrot.lane.b32.xlu0 %v15177_v45, %s13407_s8  ;;  %v11885_v45 = vld [vmem:[%s15460_s13] sm:$0xff]   ;;  %s15462_s8 = sld [smem:[#allocation169_spill]] }
0x5516   :  { %11505 = vmatpush3.bf16.msra.mxu1 %v11885_v45 }
0x5517   :  { %11506 = vmatprep.subr.bf16.mxu1 %v13434_v61 }
0x551a   :  { %11507 = vmatpush3.bf16.msra.mxu1 %v11886_v32 }
0x551b   :  { %11520 = vmatprep.subr.bf16.mxu1 %v13434_v61  ;;  %v11889_v24 = vld [vmem:[%s15462_s8] sm:$0xff]   ;;  %v11890_v26 = vld [vmem:[%s15462_s8 + $0x8] sm:$0xff]   ;;  %v11891_v36 = vld [vmem:[%s15462_s8 + $0x10] sm:$0xff]  }
0x551c   :  { %v11892_v56 = vld [vmem:[%s15462_s8 + $0x18] sm:$0xff]  }
0x558c   :  { %v9098_v54 = vpop.xlane.xlu0 %9097 }
0x558d   :  { %v9099_v21 = vsub.f32 %v9095_v48, %v9098_v54 }
0x558f   :  { %v9100_v25 = vmul.f32 1.442695, %v9099_v21 }
0x5590   :  { %v9157_v0 = vpop.permute.xlu0 %9156 }
0x5591   :  { %12085 = vpow2.f32 %v9100_v25  ;;  %v9167_v9 = vsel %vm1318_vm2, %v15139_v33, %v9157_v0 }
0x559b   :  { %v12086_v28 = vpop.eup %12085 }
0x559c   :  { %v9102_v3 = vsel %vm1318_vm2, %v12086_v28, 0.0 }
0x559d   :  { %9103 = vadd.xlane.f32.xlu1 %v9102_v3  ;;  %v10229_v3 = vld [vmem:[#allocation76] ss:$0 sm:$0xff] }
0x55ae   :  { %9160 = vrot.lane.b32.xlu1 %v8846_v27, %s13379_s0  ;;  %s15461_s0 = sld [smem:[#allocation167_spill]] }
0x55b4   :  { %v11887_v49 = vld [vmem:[%s15461_s0] sm:$0xff]   ;;  %v11888_v1 = vld [vmem:[%s15461_s0 + $0x8] sm:$0xff]  }
0x562a   :  { %v9104_v10 = vpop.xlane.xlu1 %9103 }
0x562b   :  { %12087 = vrcp.f32 %v9104_v10 }
0x562e   :  { %v9161_v6 = vpop.permute.xlu1 %9160 }
0x562f   :  { %v9168_v13 = vsel %vm2651_vm5, %v9167_v9, %v9161_v6  ;;  %v11893_v9 = vld [vmem:[%s13840_s29] sm:$0xff]  }
0x5635   :  { %v12088_v51 = vpop.eup %12087 }
0x5636   :  { %v9106_v63 = vmul.f32 %v12088_v51, %v12086_v28 }
0x5638   :  { %v9107_v31 = vpack.c.bf16 %v9106_v63, %v9106_v63 }
0x563a   :  { %11501 = vmatmul.mubr.msk.bf16.vlgmr.msra.gmra.mrb[224].mxu0 %vm1318_vm2, %v9107_v31 }
0x563b   :  { %11516 = vmatprep.mubr.msk.bf16.mxu0 %vm13435_vm7, %v13434_v61  ;;  %11513 = vmatpush3.bf16.msra.mxu0 %v11887_v49 }
0x563c   :  { %11514 = vmatprep.subr.bf16.mxu0 %v13434_v61 }
0x563f   :  { %11515 = vmatpush3.bf16.msra.mxu0 %v11888_v1 }
0x5640   :  { %11532 = vmatprep.subr.bf16.mxu0 %v13434_v61 }
0x570d   :  { %v9149_v2 = vpop.f32.mrb[224].mxu0 }
0x570e   :  { %9164 = vrot.lane.b32.xlu1 %v9149_v2, %s13433_s19  ;;  %v11502_v4 = vpop.f32.mrb[225].mxu0 }
0x570f   :  { %v9152_v35 = vpop.f32.mrb[226].mxu0 }
0x5710   :  { %v11503_v5 = vpop.f32.mrb[227].mxu0 }
0x5780   :  { %v9165_v47 = vpop.permute.xlu1 %9164 }
0x5781   :  { %v9169_v15 = vsel %vm1391_vm4, %v9168_v13, %v9165_v47  ;;  %v11894_v13 = vld [vmem:[%s13840_s29 + $0x8] sm:$0xff]   ;;  %s13219_s29 = scalar_lea.vmem %s9531_s16, 128 }
0x5782   :  { %v9174_v8 = vpack.c.bf16 %v9169_v15, %v9169_v15  ;;  %p13220_p2 = scmp.ne.s32.totalorder %s9531_s16, %s13219_s29  ;;  %p13225_p4 = scmp.lt.s32.totalorder %s13219_s29, %s13219_s29 }
0x5784   :  { %11509 = vmatmul.mubr.msk.bf16.vlgmr.msra.gmra.mrb[216].mxu1 %vm1041_vm1, %v9174_v8  ;;  %p13226_p5 = por %p13225_p4, %p13224_p3 }
0x5785   :  { %11528 = vmatprep.mubr.msk.bf16.mxu1 %vm13435_vm7, %v13434_v61  ;;  %11521 = vmatpush3.bf16.msra.mxu1 %v11889_v24 }
0x5786   :  { %11522 = vmatprep.subr.bf16.mxu1 %v13434_v61  ;;  %p13227_p6 = pnand %p13226_p5, %p13220_p2 }
0x5789   :  { %11523 = vmatpush3.bf16.msra.mxu1 %v11890_v26 }
0x578a   :  { %11524 = vmatprep.subr.bf16.mxu1 %v13434_v61 }
0x578d   :  { %11525 = vmatpush3.bf16.msra.mxu1 %v11891_v36 }
0x578e   :  { %11526 = vmatprep.subr.bf16.mxu1 %v13434_v61 }
0x5791   :  { %11527 = vmatpush3.bf16.msra.mxu1 %v11892_v56 }
0x5857   :  { %v9231_v14 = vpop.f32.mrb[216].mxu1 }
0x5858   :  { %v9232_v39 = vadd.f32 %v10219_v16, %v9231_v14  ;;  %v11510_v17 = vpop.f32.mrb[217].mxu1  ;;  %v10235_v14 = vld [vmem:[#allocation77] ss:$0 sm:$0xff] }
0x5859   :  { %v9234_v11 = vpop.f32.mrb[218].mxu1  ;;  %v10236_v17 = vld [vmem:[#allocation79] ss:$0 sm:$0xff] }
0x585a   :  { %v9237_v33 = vadd.f32 %v9232_v39, %v15079_v50  ;;  %v11511_v30 = vpop.f32.mrb[219].mxu1 }
0x585c   :  { %v9240_v19 = vsel %vm1041_vm1, %v9237_v33, 0.0 }
0x585d   :  { %9241 = vadd.xlane.f32.xlu1 %v9240_v19  ;;  %v10237_v19 = vld [vmem:[%s13845_s24] ss:$0 sm:$0xff] }
0x58ea   :  { %v9242_v18 = vpop.xlane.xlu1 %9241 }
0x58eb   :  { %v9243_v55 = vmul.f32 0.03125, %v9242_v18 }
0x58ed   :  { %v9244_v22 = vsub.f32 %v9237_v33, %v9243_v55 }
0x58ef   :  { %v9245_v29 = vmul.f32 %v9244_v22, %v9244_v22 }
0x58f1   :  { %v9246_v62 = vsel %vm1041_vm1, %v9245_v29, 0.0 }
0x58f2   :  { %9247 = vadd.xlane.f32.xlu0 %v9246_v62 }
0x597f   :  { %v9248_v50 = vpop.xlane.xlu0 %9247 }
0x5980   :  { %v9249_v42 = vmul.f32 0.03125, %v9248_v50 }
0x5982   :  { %v9250_v57 = vadd.f32 1e-12, %v9249_v42 }
0x5984   :  { %12089 = vrsqrt.f32 %v9250_v57 }
0x598e   :  { %v12090_v60 = vpop.eup %12089 }
0x598f   :  { %v9252_v27 = vmul.f32 %v12090_v60, %v9244_v22 }
0x5991   :  { %v9259_v58 = vmul.f32 %v10223_v23, %v9252_v27 }
0x5993   :  { %v9266_v59 = vadd.f32 %v10224_v38, %v9259_v58 }
0x5995   :  { %v9271_v37 = vpack.c.bf16 %v9266_v59, %v9266_v59 }
0x5997   :  { %11517 = vmatmul.mubr.msk.bf16.vlgmr.msra.gmra.mrb[228].mxu0 %vm1041_vm1, %v9271_v37 }
0x5998   :  { %11536 = vmatprep.mubr.msk.bf16.mxu0 %vm13435_vm7, %v13434_v61  ;;  %11533 = vmatpush3.bf16.msra.mxu0 %v11893_v9 }
0x5999   :  { %11534 = vmatprep.subr.bf16.mxu0 %v13434_v61 }
0x599c   :  { %11535 = vmatpush3.bf16.msra.mxu0 %v11894_v13 }
0x5a6a   :  { %v9328_v41 = vpop.f32.mrb[228].mxu0 }
0x5a6b   :  { %v9329_v7 = vadd.f32 %v10225_v40, %v9328_v41  ;;  %v11518_v43 = vpop.f32.mrb[229].mxu0 }
0x5a6c   :  { %v9331_v44 = vpop.f32.mrb[230].mxu0 }
0x5a6d   :  { %v9334_v34 = vmul.f32 %v9329_v7, %v9329_v7  ;;  %v11519_v46 = vpop.f32.mrb[231].mxu0 }
0x5a6f   :  { %v9335_v48 = vmul.f32 %v9334_v34, %v9329_v7 }
0x5a71   :  { %v9336_v12 = vmul.f32 0.044715, %v9335_v48 }
0x5a73   :  { %v9337_v52 = vadd.f32 %v9336_v12, %v9329_v7 }
0x5a75   :  { %v9338_v20 = vmul.f32 0.7978846, %v9337_v52 }
0x5a77   :  { %12091 = vtanh.f32 %v9338_v20 }
0x5a81   :  { %v12092_v53 = vpop.eup %12091 }
0x5a82   :  { %v9340_v54 = vadd.f32 1.0, %v12092_v53 }
0x5a84   :  { %v9341_v21 = vmul.f32 0.5, %v9340_v54 }
0x5a86   :  { %v9342_v25 = vmul.f32 %v9341_v21, %v9329_v7 }
0x5a88   :  { %v9351_v28 = vpack.c.bf16 %v9342_v25, %v9342_v25 }
0x5a8a   :  { %11529 = vmatmul.mubr.msk.bf16.vlgmr.msra.gmra.mrb[220].mxu1 %vm2946_vm6, %v9351_v28 }
0x5b5d   :  { %v9420_v10 = vpop.f32.mrb[220].mxu1 }
0x5b5e   :  { %v9421_v51 = vadd.f32 %v10229_v3, %v9420_v10  ;;  %v11530_v63 = vpop.f32.mrb[221].mxu1 }
0x5b5f   :  { %v9423_v31 = vpop.f32.mrb[222].mxu1 }
0x5b60   :  { %v9426_v45 = vadd.f32 %v9421_v51, %v9266_v59  ;;  %v11531_v32 = vpop.f32.mrb[223].mxu1 }
0x5b62   :  { %v9429_v2 = vsel %vm1041_vm1, %v9426_v45, 0.0 }
0x5b63   :  { %9430 = vadd.xlane.f32.xlu0 %v9429_v2 }
0x5bf0   :  { %v9431_v4 = vpop.xlane.xlu0 %9430 }
0x5bf1   :  { %v9432_v35 = vmul.f32 0.03125, %v9431_v4 }
0x5bf3   :  { %v9433_v5 = vsub.f32 %v9426_v45, %v9432_v35 }
0x5bf5   :  { %v9434_v0 = vmul.f32 %v9433_v5, %v9433_v5 }
0x5bf7   :  { %v9435_v6 = vsel %vm1041_vm1, %v9434_v0, 0.0 }
0x5bf8   :  { %9436 = vadd.xlane.f32.xlu0 %v9435_v6 }
0x5c85   :  { %v9437_v47 = vpop.xlane.xlu0 %9436 }
0x5c86   :  { %v9438_v15 = vmul.f32 0.03125, %v9437_v47 }
0x5c88   :  { %v9439_v8 = vadd.f32 1e-12, %v9438_v15 }
0x5c8a   :  { %12093 = vrsqrt.f32 %v9439_v8 }
0x5c94   :  { %v12094_v16 = vpop.eup %12093 }
0x5c95   :  { %v9441_v39 = vmul.f32 %v12094_v16, %v9433_v5 }
0x5c97   :  { %v9448_v11 = vmul.f32 %v10235_v14, %v9441_v39 }
0x5c99   :  { %v9455_v33 = vadd.f32 %v10236_v17, %v9448_v11 }
0x5c9b   :  { %v9460_v30 = vpack.c.bf16 %v9455_v33, %v9455_v33 }
0x5c9d   :  { %11537 = vmatmul.mubr.msk.bf16.vlgmr.msra.gmra.mrb[232].mxu0 %vm1041_vm1, %v9460_v30 }
0x5d70   :  { %v9517_v18 = vpop.f32.mrb[232].mxu0 }
0x5d71   :  { %v9518_v61 = vadd.f32 %v10237_v19, %v9517_v18  ;;  %v11538_v55 = vpop.f32.mrb[233].mxu0 }
0x5d72   :  { %v9520_v22 = vpop.f32.mrb[234].mxu0 }
0x5d73   :  { %9523 = vst.msk [vmem:[#allocation80] sm:$0xff] %vm984_vm0, %v9518_v61  ;;  %v11539_v29 = vpop.f32.mrb[235].mxu0 }
0x5d74   :  { %13230 = shalt.err (!%p13227_p6)
}
0x5d75   :  { %s13231_s24 = scalar_lea.hbm %s13850_s6, 128 }
0x5d76   :  { %p13232_p7 = scmp.ne.s32.totalorder %s13850_s6, %s13231_s24  ;;  %p13235_p8 = scmp.lt.u32.totalorder %s13231_s24, %s13850_s6 }
0x5d78   :  { %p13237_p9 = pnand %p13235_p8, %p13232_p7 }
0x5d7a   :  { %13240 = shalt.err (!%p13237_p9)
}
0x5d7b   :  { %9533 = dma.vmem_to_hbm [thread:$0]  %s9531_s16, 128, %s13850_s6, [#allocation4]  }
0x5d7c   :  { %13293 = dma.done.wait [#allocation4], 128  }
0x5d7d   :  { %13294 = vsyncadd [#allocation4], 4294967168 }
0x5d7e   :  { %9537 = vsyncpa [#allocation3], 1 }
0x5d7f   :  { %9538 = vsyncpa [#allocation6], 1 }
0x5d80   :  { %9539 = vsyncpa [#allocation9], 1 }
0x5d81   :  { %9540 = vsyncpa [#allocation12], 1 }
0x5d82   :  { %9541 = vsyncpa [#allocation15], 1 }
0x5d83   :  { %9542 = vsyncpa [#allocation18], 1 }
0x5d84   :  { %9543 = vsyncpa [#allocation21], 1 }
0x5d85   :  { %9544 = vsyncpa [#allocation24], 1 }
0x5d86   :  { %9545 = vsyncpa [#allocation27], 1 }
0x5d87   :  { %9546 = vsyncpa [#allocation30], 1 }
0x5d88   :  { %9547 = vsyncpa [#allocation33], 1 }
0x5d89   :  { %9548 = vsyncpa [#allocation36], 1 }
0x5d8a   :  { %9549 = vsyncpa [#allocation39], 1 }
0x5d8b   :  { %9550 = vsyncpa [#allocation42], 1 }
0x5d8c   :  { %9551 = vsyncpa [#allocation45], 1 }
0x5d8d   :  { %9552 = vsyncpa [#allocation48], 1 }
0x5d8e   :  { %9553 = vsyncpa [#allocation51], 1 }
0x5d8f   :  { %9554 = vsyncpa [#allocation54], 1 }
0x5d90   :  { %9555 = vsyncpa [#allocation57], 1 }
0x5d91   :  { %9556 = vsyncpa [#allocation60], 1 }
0x5d92   :  { %9557 = vsyncpa [#allocation63], 1 }
0x5d93   :  { %9558 = vsyncpa [#allocation66], 1 }
0x5d94   :  { %9559 = vsyncpa [#allocation69], 1 }
0x5d95   :  { %9560 = vsyncpa [#allocation72], 1 }
0x5d96   :  { %9561 = vsyncpa [#allocation75], 1 }
0x5d97   :  { %9562 = vsyncpa [#allocation78], 1 }
0x5d98   :  { %9563 = vsyncpa [#allocation4], 1 }

</bundles_post_ra>
